<compile_context>
chip_gen: v5e
topology: v5e:2x2
jax: 0.10.0
libtpu: 0.0.40
codegen_flags: <defaults>
</compile_context>

<pallas_src>
import functools

import jax
import jax.numpy as jnp
from jax import lax
from jax.experimental import pallas as pl
from jax.experimental.pallas import tpu as pltpu

LRELU_SLOPE = 0.2
IN_EPS = 1e-5
_VMEM_LIMIT = 64 * 1024 * 1024
_ROW_PAD = 8          # zero rows appended to flattened activations (slice slack)
_FINAL_COUT_PAD = 8   # final 256->1 conv padded to 8 output lanes


def _shifted_matmul_kernel(x_ref, w_ref, b_ref, o_ref, *,
                           n_i, n_j, row_stride, lp, ow, norm_act):
    """Fused conv (sum of shifted matmuls) + bias [+ InstanceNorm + LeakyReLU].

    x_ref : (1, R, K)        bf16  row-major flattened (padded) activation rows
    w_ref : (n_i*n_j, K, C)  bf16  one (K, C) weight matrix per kernel position
    b_ref : (1, C)           f32
    o_ref : (1, lp, C)       f32   rows follow the input row layout; rows with
                                   (idx % row_stride) >= ow are garbage and are
                                   sliced away by the host wrapper.
    """
    cout = o_ref.shape[2]
    acc = jnp.zeros((lp, cout), jnp.float32)
    for i in range(n_i):
        for j in range(n_j):
            start = i * row_stride + j                 # static offset
            xs = x_ref[0, start:start + lp, :]         # contiguous row window
            acc = acc + jnp.dot(xs, w_ref[i * n_j + j],
                                preferred_element_type=jnp.float32)  # MXU bf16
    y = acc + b_ref[...]

    if norm_act:
        # InstanceNorm2d (biased var, eps=1e-5, affine=False) over the valid
        # spatial positions only -- single-pass sum / sum-of-squares stats.
        row_idx = lax.broadcasted_iota(jnp.int32, (lp, 1), 0)
        valid = (row_idx % row_stride) < ow
        inv_s = 1.0 / float((lp // row_stride) * ow)
        s1 = jnp.sum(jnp.where(valid, y, 0.0), axis=0, keepdims=True)
        s2 = jnp.sum(jnp.where(valid, y * y, 0.0), axis=0, keepdims=True)
        mean = s1 * inv_s
        var = jnp.maximum(s2 * inv_s - mean * mean, 0.0)
        y = (y - mean) * lax.rsqrt(var + IN_EPS)
        y = jnp.where(y >= 0.0, y, LRELU_SLOPE * y)    # LeakyReLU(0.2)

    o_ref[0] = y


def _call_shifted_matmul(x2, w, b, *, n_i, n_j, row_stride, lp, ow, norm_act):
    N, R, K = x2.shape
    n_pos, _, cout = w.shape
    kernel = functools.partial(_shifted_matmul_kernel, n_i=n_i, n_j=n_j,
                               row_stride=row_stride, lp=lp, ow=ow,
                               norm_act=norm_act)
    return pl.pallas_call(
        kernel,
        grid=(N,),
        in_specs=[
            pl.BlockSpec((1, R, K), lambda n: (n, 0, 0)),
            pl.BlockSpec((n_pos, K, cout), lambda n: (0, 0, 0)),
            pl.BlockSpec((1, cout), lambda n: (0, 0)),
        ],
        out_specs=pl.BlockSpec((1, lp, cout), lambda n: (n, 0, 0)),
        out_shape=jax.ShapeDtypeStruct((N, lp, cout), jnp.float32),
        compiler_params=pltpu.CompilerParams(
            dimension_semantics=("parallel",),
            vmem_limit_bytes=_VMEM_LIMIT),
    )(x2, w, b)


def _space_to_depth(x):
    # (N, H, W, C), H/W even -> (N, H//2, W//2, 4C), channel = (a*2+b)*C + c
    N, H, W, C = x.shape
    x = x.reshape(N, H // 2, 2, W // 2, 2, C)
    x = x.transpose(0, 1, 3, 2, 4, 5)
    return x.reshape(N, H // 2, W // 2, 4 * C)


def _down_block(x, w_s2d, b_row):
    # Conv(k=4, s=2, p=1) + InstanceNorm + LeakyReLU.  x: (N, H, W, Cin) f32.
    N, H, W, _ = x.shape
    assert H % 2 == 0 and W % 2 == 0, "spatial dims must be even"
    xp = jnp.pad(x, ((0, 0), (1, 1), (1, 1), (0, 0)))
    xs = _space_to_depth(xp)                            # (N, Hs, Ws, 4*Cin)
    _, Hs, Ws, C4 = xs.shape
    OH, OW = Hs - 1, Ws - 1
    lp = OH * Ws
    x2 = xs.astype(jnp.bfloat16).reshape(N, Hs * Ws, C4)
    x2 = jnp.pad(x2, ((0, 0), (0, _ROW_PAD), (0, 0)))
    out = _call_shifted_matmul(x2, w_s2d, b_row, n_i=2, n_j=2,
                               row_stride=Ws, lp=lp, ow=OW, norm_act=True)
    cout = w_s2d.shape[-1]
    return out.reshape(N, OH, Ws, cout)[:, :, :OW, :]


def _final_block(x, w_flat, b_row):
    # ZeroPad2d((1,0,1,0)) then Conv2d(256 -> 1, k=4, s=1, p=1).
    N, H, W, C = x.shape
    # top/left: 1 (ZeroPad2d) + 1 (conv pad); bottom/right: 1 (conv pad)
    xp = jnp.pad(x, ((0, 0), (2, 1), (2, 1), (0, 0)))
    _, Hp, Wp, _ = xp.shape
    OH, OW = Hp - 3, Wp - 3
    lp = OH * Wp
    x2 = xp.astype(jnp.bfloat16).reshape(N, Hp * Wp, C)
    x2 = jnp.pad(x2, ((0, 0), (0, _ROW_PAD), (0, 0)))
    out = _call_shifted_matmul(x2, w_flat, b_row, n_i=4, n_j=4,
                               row_stride=Wp, lp=lp, ow=OW, norm_act=False)
    return out.reshape(N, OH, Wp, -1)[:, :, :OW, :1]


def _s2d_weight(w):
    # (4, 4, Cin, Cout) -> (4, 4*Cin, Cout) matching the space-to-depth layout.
    kh, kw, cin, cout = w.shape
    assert kh == 4 and kw == 4
    w = w.reshape(2, 2, 2, 2, cin, cout)          # [Di, a, Dj, b, ci, co]
    w = w.transpose(0, 2, 1, 3, 4, 5)             # [Di, Dj, a, b, ci, co]
    return w.reshape(4, 4 * cin, cout)


def prepare_params(params):
    """One-time parameter re-layout (weight transform, bf16 cast, bias rows)."""
    prep = {}
    for i in range(1, 5):
        prep[f"w{i}"] = _s2d_weight(params[f"w{i}"]).astype(jnp.bfloat16)
        prep[f"b{i}"] = params[f"b{i}"].reshape(1, -1).astype(jnp.float32)
    w5 = params["w5"].reshape(16, 256, 1)                       # (di*4+dj, ci, 1)
    prep["w5"] = jnp.pad(w5, ((0, 0), (0, 0), (0, _FINAL_COUT_PAD - 1))
                         ).astype(jnp.bfloat16)
    prep["b5"] = jnp.pad(params["b5"].reshape(1, 1),
                         ((0, 0), (0, _FINAL_COUT_PAD - 1))).astype(jnp.float32)
    return prep


def discriminator_forward(x_nchw, prep):
    # x_nchw: (N, 3, H, W) float32, mirroring the PyTorch NCHW input.
    x = jnp.transpose(x_nchw, (0, 2, 3, 1)).astype(jnp.float32)   # -> NHWC
    for i in range(1, 5):
        x = _down_block(x, prep[f"w{i}"], prep[f"b{i}"])
    x = _final_block(x, prep["w5"], prep["b5"])
    return jnp.transpose(x, (0, 3, 1, 2))          # NCHW: (N, 1, H/16, W/16)


def _init_params(key):
    shapes = [
        ("w1", (4, 4, 3, 32)), ("b1", (32,)),
        ("w2", (4, 4, 32, 64)), ("b2", (64,)),
        ("w3", (4, 4, 64, 128)), ("b3", (128,)),
        ("w4", (4, 4, 128, 256)), ("b4", (256,)),
        ("w5", (4, 4, 256, 1)), ("b5", (1,)),
    ]
    keys = jax.random.split(key, len(shapes))
    params = {}
    for (name, shp), k in zip(shapes, keys):
        if name.startswith("w"):
            fan_in = shp[0] * shp[1] * shp[2]
            params[name] = (jax.random.normal(k, shp, jnp.float32)
                            / jnp.sqrt(jnp.float32(fan_in)))
        else:
            params[name] = 0.01 * jax.random.normal(k, shp, jnp.float32)
    return params


if __name__ == "__main__":
    key = jax.random.PRNGKey(0)
    pkey, xkey = jax.random.split(key)
    params = _init_params(pkey)
    prep = prepare_params(params)      # weight re-layout / bf16 cast done ONCE
    # small input consistent with the module: N=2, C=3, H=W=32 -> out (2,1,2,2)
    x = jax.random.normal(xkey, (2, 3, 32, 32), jnp.float32)

    fwd = jax.jit(discriminator_forward)
    out = jax.block_until_ready(fwd(x, prep))
    assert out.shape == (2, 1, 2, 2), out.shape
    assert bool(jnp.all(jnp.isfinite(out)))
    print("KERNEL_OK")
</pallas_src>

<mosaic_0001>
module attributes {stable_mosaic.version = 11 : i64} {
  func.func @_shifted_matmul_kernel(%arg0: i32, %arg1: memref<1x297x12xbf16, #tpu.memory_space<vmem>>, %arg2: memref<4x12x32xbf16, #tpu.memory_space<vmem>>, %arg3: memref<1x32xf32, #tpu.memory_space<vmem>>, %arg4: memref<1x272x32xf32, #tpu.memory_space<vmem>>) attributes {dimension_semantics = [#tpu.dimension_semantics<parallel>], iteration_bounds = array<i64: 2>, scalar_prefetch = 0 : i64, scratch_operands = 0 : i64, tpu.core_type = #tpu.core_type<tc>, window_params = [{transform_indices = @transform_0, window_bounds = array<i64: 1, 297, 12>}, {pipeline_mode = #tpu.pipeline_mode<synchronous>, transform_indices = @transform_1, window_bounds = array<i64: 4, 12, 32>}, {pipeline_mode = #tpu.pipeline_mode<synchronous>, transform_indices = @transform_2, window_bounds = array<i64: 1, 32>}, {transform_indices = @transform_3, window_bounds = array<i64: 1, 272, 32>}]} {
    %cst = arith.constant 0.000000e+00 : f32
    %0 = vector.broadcast %cst : f32 to vector<272x32xf32>
    %c0 = arith.constant 0 : index
    %c0_0 = arith.constant 0 : index
    %c0_1 = arith.constant 0 : index
    %1 = vector.load %arg1[%c0, %c0_0, %c0_1] : memref<1x297x12xbf16, #tpu.memory_space<vmem>>, vector<1x272x12xbf16>
    %2 = vector.shape_cast %1 : vector<1x272x12xbf16> to vector<272x12xbf16>
    %c0_2 = arith.constant 0 : index
    %c0_3 = arith.constant 0 : index
    %c0_4 = arith.constant 0 : index
    %3 = vector.load %arg2[%c0_2, %c0_3, %c0_4] : memref<4x12x32xbf16, #tpu.memory_space<vmem>>, vector<1x12x32xbf16>
    %4 = vector.shape_cast %3 : vector<1x12x32xbf16> to vector<12x32xbf16>
    %cst_5 = arith.constant dense<0.000000e+00> : vector<272x32xf32>
    %5 = tpu.matmul %2, %4, %cst_5 {dimension_numbers = #tpu.dot_dimension_numbers<[1], [0], [0], [1], [0, 0, 1, 1], [], []>} : vector<272x12xbf16>, vector<12x32xbf16>, vector<272x32xf32> -> vector<272x32xf32>
    %6 = arith.addf %0, %5 : vector<272x32xf32>
    %c0_6 = arith.constant 0 : index
    %c1 = arith.constant 1 : index
    %c0_7 = arith.constant 0 : index
    %7 = vector.load %arg1[%c0_6, %c1, %c0_7] : memref<1x297x12xbf16, #tpu.memory_space<vmem>>, vector<1x272x12xbf16>
    %8 = vector.shape_cast %7 : vector<1x272x12xbf16> to vector<272x12xbf16>
    %c1_8 = arith.constant 1 : index
    %c0_9 = arith.constant 0 : index
    %c0_10 = arith.constant 0 : index
    %9 = vector.load %arg2[%c1_8, %c0_9, %c0_10] : memref<4x12x32xbf16, #tpu.memory_space<vmem>>, vector<1x12x32xbf16>
    %10 = vector.shape_cast %9 : vector<1x12x32xbf16> to vector<12x32xbf16>
    %cst_11 = arith.constant dense<0.000000e+00> : vector<272x32xf32>
    %11 = tpu.matmul %8, %10, %cst_11 {dimension_numbers = #tpu.dot_dimension_numbers<[1], [0], [0], [1], [0, 0, 1, 1], [], []>} : vector<272x12xbf16>, vector<12x32xbf16>, vector<272x32xf32> -> vector<272x32xf32>
    %12 = arith.addf %6, %11 : vector<272x32xf32>
    %c0_12 = arith.constant 0 : index
    %c17 = arith.constant 17 : index
    %c0_13 = arith.constant 0 : index
    %13 = vector.load %arg1[%c0_12, %c17, %c0_13] : memref<1x297x12xbf16, #tpu.memory_space<vmem>>, vector<1x272x12xbf16>
    %14 = vector.shape_cast %13 : vector<1x272x12xbf16> to vector<272x12xbf16>
    %c2 = arith.constant 2 : index
    %c0_14 = arith.constant 0 : index
    %c0_15 = arith.constant 0 : index
    %15 = vector.load %arg2[%c2, %c0_14, %c0_15] : memref<4x12x32xbf16, #tpu.memory_space<vmem>>, vector<1x12x32xbf16>
    %16 = vector.shape_cast %15 : vector<1x12x32xbf16> to vector<12x32xbf16>
    %cst_16 = arith.constant dense<0.000000e+00> : vector<272x32xf32>
    %17 = tpu.matmul %14, %16, %cst_16 {dimension_numbers = #tpu.dot_dimension_numbers<[1], [0], [0], [1], [0, 0, 1, 1], [], []>} : vector<272x12xbf16>, vector<12x32xbf16>, vector<272x32xf32> -> vector<272x32xf32>
    %18 = arith.addf %12, %17 : vector<272x32xf32>
    %c0_17 = arith.constant 0 : index
    %c18 = arith.constant 18 : index
    %c0_18 = arith.constant 0 : index
    %19 = vector.load %arg1[%c0_17, %c18, %c0_18] : memref<1x297x12xbf16, #tpu.memory_space<vmem>>, vector<1x272x12xbf16>
    %20 = vector.shape_cast %19 : vector<1x272x12xbf16> to vector<272x12xbf16>
    %c3 = arith.constant 3 : index
    %c0_19 = arith.constant 0 : index
    %c0_20 = arith.constant 0 : index
    %21 = vector.load %arg2[%c3, %c0_19, %c0_20] : memref<4x12x32xbf16, #tpu.memory_space<vmem>>, vector<1x12x32xbf16>
    %22 = vector.shape_cast %21 : vector<1x12x32xbf16> to vector<12x32xbf16>
    %cst_21 = arith.constant dense<0.000000e+00> : vector<272x32xf32>
    %23 = tpu.matmul %20, %22, %cst_21 {dimension_numbers = #tpu.dot_dimension_numbers<[1], [0], [0], [1], [0, 0, 1, 1], [], []>} : vector<272x12xbf16>, vector<12x32xbf16>, vector<272x32xf32> -> vector<272x32xf32>
    %24 = arith.addf %18, %23 : vector<272x32xf32>
    %c0_22 = arith.constant 0 : index
    %c0_23 = arith.constant 0 : index
    %25 = vector.load %arg3[%c0_22, %c0_23] : memref<1x32xf32, #tpu.memory_space<vmem>>, vector<1x32xf32>
    %26 = vector.broadcast %25 : vector<1x32xf32> to vector<272x32xf32>
    %27 = arith.addf %24, %26 : vector<272x32xf32>
    %28 = tpu.iota {dimensions = array<i32: 0>} : vector<272x1xi32>
    %c17_i32 = arith.constant 17 : i32
    %c0_i32 = arith.constant 0 : i32
    %29 = arith.cmpi eq, %c17_i32, %c0_i32 : i32
    %c1_i32 = arith.constant 1 : i32
    %30 = arith.select %29, %c1_i32, %c17_i32 : i32
    %31 = vector.broadcast %30 : i32 to vector<272x1xi32>
    %32 = arith.remsi %28, %31 : vector<272x1xi32>
    %c0_i32_24 = arith.constant 0 : i32
    %33 = vector.broadcast %c0_i32_24 : i32 to vector<272x1xi32>
    %34 = arith.cmpi ne, %32, %33 : vector<272x1xi32>
    %c0_i32_25 = arith.constant 0 : i32
    %35 = vector.broadcast %c0_i32_25 : i32 to vector<272x1xi32>
    %36 = arith.cmpi slt, %32, %35 : vector<272x1xi32>
    %c0_i32_26 = arith.constant 0 : i32
    %37 = arith.cmpi slt, %30, %c0_i32_26 : i32
    %38 = vector.broadcast %37 : i1 to vector<272x1xi1>
    %39 = vector.broadcast %38 : vector<272x1xi1> to vector<272x1xi1>
    %40 = arith.xori %36, %39 : vector<272x1xi1>
    %41 = arith.andi %40, %34 : vector<272x1xi1>
    %42 = vector.broadcast %30 : i32 to vector<272x1xi32>
    %43 = arith.addi %32, %42 : vector<272x1xi32>
    %44 = arith.select %41, %43, %32 : vector<272x1xi1>, vector<272x1xi32>
    %c16_i32 = arith.constant 16 : i32
    %45 = vector.broadcast %c16_i32 : i32 to vector<272x1xi32>
    %46 = arith.cmpi slt, %44, %45 : vector<272x1xi32>
    %cst_27 = arith.constant 0.000000e+00 : f32
    %47 = vector.shape_cast %46 : vector<272x1xi1> to vector<272x1xi1>
    %48 = vector.broadcast %47 : vector<272x1xi1> to vector<272x32xi1>
    %49 = vector.broadcast %cst_27 : f32 to vector<272x32xf32>
    %50 = arith.select %48, %27, %49 : vector<272x32xi1>, vector<272x32xf32>
    %cst_28 = arith.constant dense<0.000000e+00> : vector<32xf32>
    %51 = vector.multi_reduction <add>, %50, %cst_28 [0] : vector<272x32xf32> to vector<32xf32>
    %52 = vector.shape_cast %51 : vector<32xf32> to vector<1x32xf32>
    %53 = arith.mulf %27, %27 : vector<272x32xf32>
    %cst_29 = arith.constant 0.000000e+00 : f32
    %54 = vector.shape_cast %46 : vector<272x1xi1> to vector<272x1xi1>
    %55 = vector.broadcast %54 : vector<272x1xi1> to vector<272x32xi1>
    %56 = vector.broadcast %cst_29 : f32 to vector<272x32xf32>
    %57 = arith.select %55, %53, %56 : vector<272x32xi1>, vector<272x32xf32>
    %cst_30 = arith.constant dense<0.000000e+00> : vector<32xf32>
    %58 = vector.multi_reduction <add>, %57, %cst_30 [0] : vector<272x32xf32> to vector<32xf32>
    %59 = vector.shape_cast %58 : vector<32xf32> to vector<1x32xf32>
    %cst_31 = arith.constant 3.906250e-03 : f32
    %60 = vector.broadcast %cst_31 : f32 to vector<1x32xf32>
    %61 = arith.mulf %52, %60 : vector<1x32xf32>
    %cst_32 = arith.constant 3.906250e-03 : f32
    %62 = vector.broadcast %cst_32 : f32 to vector<1x32xf32>
    %63 = arith.mulf %59, %62 : vector<1x32xf32>
    %64 = arith.mulf %61, %61 : vector<1x32xf32>
    %65 = arith.subf %63, %64 : vector<1x32xf32>
    %cst_33 = arith.constant 0.000000e+00 : f32
    %66 = vector.broadcast %cst_33 : f32 to vector<1x32xf32>
    %67 = arith.maximumf %65, %66 : vector<1x32xf32>
    %68 = vector.broadcast %61 : vector<1x32xf32> to vector<272x32xf32>
    %69 = arith.subf %27, %68 : vector<272x32xf32>
    %cst_34 = arith.constant 9.99999974E-6 : f32
    %70 = vector.broadcast %cst_34 : f32 to vector<1x32xf32>
    %71 = arith.addf %67, %70 : vector<1x32xf32>
    %72 = math.rsqrt %71 : vector<1x32xf32>
    %73 = vector.broadcast %72 : vector<1x32xf32> to vector<272x32xf32>
    %74 = arith.mulf %69, %73 : vector<272x32xf32>
    %cst_35 = arith.constant 0.000000e+00 : f32
    %75 = vector.broadcast %cst_35 : f32 to vector<272x32xf32>
    %76 = arith.cmpf oge, %74, %75 : vector<272x32xf32>
    %cst_36 = arith.constant 2.000000e-01 : f32
    %77 = vector.broadcast %cst_36 : f32 to vector<272x32xf32>
    %78 = arith.mulf %77, %74 : vector<272x32xf32>
    %79 = arith.select %76, %74, %78 : vector<272x32xi1>, vector<272x32xf32>
    %c0_37 = arith.constant 0 : index
    %c0_38 = arith.constant 0 : index
    %c0_39 = arith.constant 0 : index
    %80 = vector.load %arg4[%c0_37, %c0_38, %c0_39] : memref<1x272x32xf32, #tpu.memory_space<vmem>>, vector<1x272x32xf32>
    %81 = vector.shape_cast %80 : vector<1x272x32xf32> to vector<272x32xf32>
    %82 = vector.shape_cast %79 : vector<272x32xf32> to vector<1x272x32xf32>
    tpu.vector_store %arg4[%c0_37, %c0_38, %c0_39], %82 {strides = array<i32>} : memref<1x272x32xf32, #tpu.memory_space<vmem>>, vector<1x272x32xf32>,
    return
  }
  func.func @transform_0(%arg0: i32) -> (i32, i32, i32) {
    %c0_i32 = arith.constant 0 : i32
    %c0_i32_0 = arith.constant 0 : i32
    %c0_i32_1 = arith.constant 0 : i32
    return %arg0, %c0_i32, %c0_i32_0 : i32, i32, i32
  }
  func.func @transform_1(%arg0: i32) -> (i32, i32, i32) {
    %c0_i32 = arith.constant 0 : i32
    %c0_i32_0 = arith.constant 0 : i32
    %c0_i32_1 = arith.constant 0 : i32
    %c0_i32_2 = arith.constant 0 : i32
    return %c0_i32, %c0_i32_0, %c0_i32_1 : i32, i32, i32
  }
  func.func @transform_2(%arg0: i32) -> (i32, i32) {
    %c0_i32 = arith.constant 0 : i32
    %c0_i32_0 = arith.constant 0 : i32
    %c0_i32_1 = arith.constant 0 : i32
    return %c0_i32, %c0_i32_0 : i32, i32
  }
  func.func @transform_3(%arg0: i32) -> (i32, i32, i32) {
    %c0_i32 = arith.constant 0 : i32
    %c0_i32_0 = arith.constant 0 : i32
    %c0_i32_1 = arith.constant 0 : i32
    return %arg0, %c0_i32, %c0_i32_0 : i32, i32, i32
  }
}

module attributes {stable_mosaic.version = 11 : i64} {
  func.func @_shifted_matmul_kernel(%arg0: i32, %arg1: memref<1x89x128xbf16, #tpu.memory_space<vmem>>, %arg2: memref<4x128x64xbf16, #tpu.memory_space<vmem>>, %arg3: memref<1x64xf32, #tpu.memory_space<vmem>>, %arg4: memref<1x72x64xf32, #tpu.memory_space<vmem>>) attributes {dimension_semantics = [#tpu.dimension_semantics<parallel>], iteration_bounds = array<i64: 2>, scalar_prefetch = 0 : i64, scratch_operands = 0 : i64, tpu.core_type = #tpu.core_type<tc>, window_params = [{transform_indices = @transform_0, window_bounds = array<i64: 1, 89, 128>}, {pipeline_mode = #tpu.pipeline_mode<synchronous>, transform_indices = @transform_1, window_bounds = array<i64: 4, 128, 64>}, {pipeline_mode = #tpu.pipeline_mode<synchronous>, transform_indices = @transform_2, window_bounds = array<i64: 1, 64>}, {transform_indices = @transform_3, window_bounds = array<i64: 1, 72, 64>}]} {
    %cst = arith.constant 0.000000e+00 : f32
    %0 = vector.broadcast %cst : f32 to vector<72x64xf32>
    %c0 = arith.constant 0 : index
    %c0_0 = arith.constant 0 : index
    %c0_1 = arith.constant 0 : index
    %1 = vector.load %arg1[%c0, %c0_0, %c0_1] : memref<1x89x128xbf16, #tpu.memory_space<vmem>>, vector<1x72x128xbf16>
    %2 = vector.shape_cast %1 : vector<1x72x128xbf16> to vector<72x128xbf16>
    %c0_2 = arith.constant 0 : index
    %c0_3 = arith.constant 0 : index
    %c0_4 = arith.constant 0 : index
    %3 = vector.load %arg2[%c0_2, %c0_3, %c0_4] : memref<4x128x64xbf16, #tpu.memory_space<vmem>>, vector<1x128x64xbf16>
    %4 = vector.shape_cast %3 : vector<1x128x64xbf16> to vector<128x64xbf16>
    %cst_5 = arith.constant dense<0.000000e+00> : vector<72x64xf32>
    %5 = tpu.matmul %2, %4, %cst_5 {dimension_numbers = #tpu.dot_dimension_numbers<[1], [0], [0], [1], [0, 0, 1, 1], [], []>} : vector<72x128xbf16>, vector<128x64xbf16>, vector<72x64xf32> -> vector<72x64xf32>
    %6 = arith.addf %0, %5 : vector<72x64xf32>
    %c0_6 = arith.constant 0 : index
    %c1 = arith.constant 1 : index
    %c0_7 = arith.constant 0 : index
    %7 = vector.load %arg1[%c0_6, %c1, %c0_7] : memref<1x89x128xbf16, #tpu.memory_space<vmem>>, vector<1x72x128xbf16>
    %8 = vector.shape_cast %7 : vector<1x72x128xbf16> to vector<72x128xbf16>
    %c1_8 = arith.constant 1 : index
    %c0_9 = arith.constant 0 : index
    %c0_10 = arith.constant 0 : index
    %9 = vector.load %arg2[%c1_8, %c0_9, %c0_10] : memref<4x128x64xbf16, #tpu.memory_space<vmem>>, vector<1x128x64xbf16>
    %10 = vector.shape_cast %9 : vector<1x128x64xbf16> to vector<128x64xbf16>
    %cst_11 = arith.constant dense<0.000000e+00> : vector<72x64xf32>
    %11 = tpu.matmul %8, %10, %cst_11 {dimension_numbers = #tpu.dot_dimension_numbers<[1], [0], [0], [1], [0, 0, 1, 1], [], []>} : vector<72x128xbf16>, vector<128x64xbf16>, vector<72x64xf32> -> vector<72x64xf32>
    %12 = arith.addf %6, %11 : vector<72x64xf32>
    %c0_12 = arith.constant 0 : index
    %c9 = arith.constant 9 : index
    %c0_13 = arith.constant 0 : index
    %13 = vector.load %arg1[%c0_12, %c9, %c0_13] : memref<1x89x128xbf16, #tpu.memory_space<vmem>>, vector<1x72x128xbf16>
    %14 = vector.shape_cast %13 : vector<1x72x128xbf16> to vector<72x128xbf16>
    %c2 = arith.constant 2 : index
    %c0_14 = arith.constant 0 : index
    %c0_15 = arith.constant 0 : index
    %15 = vector.load %arg2[%c2, %c0_14, %c0_15] : memref<4x128x64xbf16, #tpu.memory_space<vmem>>, vector<1x128x64xbf16>
    %16 = vector.shape_cast %15 : vector<1x128x64xbf16> to vector<128x64xbf16>
    %cst_16 = arith.constant dense<0.000000e+00> : vector<72x64xf32>
    %17 = tpu.matmul %14, %16, %cst_16 {dimension_numbers = #tpu.dot_dimension_numbers<[1], [0], [0], [1], [0, 0, 1, 1], [], []>} : vector<72x128xbf16>, vector<128x64xbf16>, vector<72x64xf32> -> vector<72x64xf32>
    %18 = arith.addf %12, %17 : vector<72x64xf32>
    %c0_17 = arith.constant 0 : index
    %c10 = arith.constant 10 : index
    %c0_18 = arith.constant 0 : index
    %19 = vector.load %arg1[%c0_17, %c10, %c0_18] : memref<1x89x128xbf16, #tpu.memory_space<vmem>>, vector<1x72x128xbf16>
    %20 = vector.shape_cast %19 : vector<1x72x128xbf16> to vector<72x128xbf16>
    %c3 = arith.constant 3 : index
    %c0_19 = arith.constant 0 : index
    %c0_20 = arith.constant 0 : index
    %21 = vector.load %arg2[%c3, %c0_19, %c0_20] : memref<4x128x64xbf16, #tpu.memory_space<vmem>>, vector<1x128x64xbf16>
    %22 = vector.shape_cast %21 : vector<1x128x64xbf16> to vector<128x64xbf16>
    %cst_21 = arith.constant dense<0.000000e+00> : vector<72x64xf32>
    %23 = tpu.matmul %20, %22, %cst_21 {dimension_numbers = #tpu.dot_dimension_numbers<[1], [0], [0], [1], [0, 0, 1, 1], [], []>} : vector<72x128xbf16>, vector<128x64xbf16>, vector<72x64xf32> -> vector<72x64xf32>
    %24 = arith.addf %18, %23 : vector<72x64xf32>
    %c0_22 = arith.constant 0 : index
    %c0_23 = arith.constant 0 : index
    %25 = vector.load %arg3[%c0_22, %c0_23] : memref<1x64xf32, #tpu.memory_space<vmem>>, vector<1x64xf32>
    %26 = vector.broadcast %25 : vector<1x64xf32> to vector<72x64xf32>
    %27 = arith.addf %24, %26 : vector<72x64xf32>
    %28 = tpu.iota {dimensions = array<i32: 0>} : vector<72x1xi32>
    %c9_i32 = arith.constant 9 : i32
    %c0_i32 = arith.constant 0 : i32
    %29 = arith.cmpi eq, %c9_i32, %c0_i32 : i32
    %c1_i32 = arith.constant 1 : i32
    %30 = arith.select %29, %c1_i32, %c9_i32 : i32
    %31 = vector.broadcast %30 : i32 to vector<72x1xi32>
    %32 = arith.remsi %28, %31 : vector<72x1xi32>
    %c0_i32_24 = arith.constant 0 : i32
    %33 = vector.broadcast %c0_i32_24 : i32 to vector<72x1xi32>
    %34 = arith.cmpi ne, %32, %33 : vector<72x1xi32>
    %c0_i32_25 = arith.constant 0 : i32
    %35 = vector.broadcast %c0_i32_25 : i32 to vector<72x1xi32>
    %36 = arith.cmpi slt, %32, %35 : vector<72x1xi32>
    %c0_i32_26 = arith.constant 0 : i32
    %37 = arith.cmpi slt, %30, %c0_i32_26 : i32
    %38 = vector.broadcast %37 : i1 to vector<72x1xi1>
    %39 = vector.broadcast %38 : vector<72x1xi1> to vector<72x1xi1>
    %40 = arith.xori %36, %39 : vector<72x1xi1>
    %41 = arith.andi %40, %34 : vector<72x1xi1>
    %42 = vector.broadcast %30 : i32 to vector<72x1xi32>
    %43 = arith.addi %32, %42 : vector<72x1xi32>
    %44 = arith.select %41, %43, %32 : vector<72x1xi1>, vector<72x1xi32>
    %c8_i32 = arith.constant 8 : i32
    %45 = vector.broadcast %c8_i32 : i32 to vector<72x1xi32>
    %46 = arith.cmpi slt, %44, %45 : vector<72x1xi32>
    %cst_27 = arith.constant 0.000000e+00 : f32
    %47 = vector.shape_cast %46 : vector<72x1xi1> to vector<72x1xi1>
    %48 = vector.broadcast %47 : vector<72x1xi1> to vector<72x64xi1>
    %49 = vector.broadcast %cst_27 : f32 to vector<72x64xf32>
    %50 = arith.select %48, %27, %49 : vector<72x64xi1>, vector<72x64xf32>
    %cst_28 = arith.constant dense<0.000000e+00> : vector<64xf32>
    %51 = vector.multi_reduction <add>, %50, %cst_28 [0] : vector<72x64xf32> to vector<64xf32>
    %52 = vector.shape_cast %51 : vector<64xf32> to vector<1x64xf32>
    %53 = arith.mulf %27, %27 : vector<72x64xf32>
    %cst_29 = arith.constant 0.000000e+00 : f32
    %54 = vector.shape_cast %46 : vector<72x1xi1> to vector<72x1xi1>
    %55 = vector.broadcast %54 : vector<72x1xi1> to vector<72x64xi1>
    %56 = vector.broadcast %cst_29 : f32 to vector<72x64xf32>
    %57 = arith.select %55, %53, %56 : vector<72x64xi1>, vector<72x64xf32>
    %cst_30 = arith.constant dense<0.000000e+00> : vector<64xf32>
    %58 = vector.multi_reduction <add>, %57, %cst_30 [0] : vector<72x64xf32> to vector<64xf32>
    %59 = vector.shape_cast %58 : vector<64xf32> to vector<1x64xf32>
    %cst_31 = arith.constant 1.562500e-02 : f32
    %60 = vector.broadcast %cst_31 : f32 to vector<1x64xf32>
    %61 = arith.mulf %52, %60 : vector<1x64xf32>
    %cst_32 = arith.constant 1.562500e-02 : f32
    %62 = vector.broadcast %cst_32 : f32 to vector<1x64xf32>
    %63 = arith.mulf %59, %62 : vector<1x64xf32>
    %64 = arith.mulf %61, %61 : vector<1x64xf32>
    %65 = arith.subf %63, %64 : vector<1x64xf32>
    %cst_33 = arith.constant 0.000000e+00 : f32
    %66 = vector.broadcast %cst_33 : f32 to vector<1x64xf32>
    %67 = arith.maximumf %65, %66 : vector<1x64xf32>
    %68 = vector.broadcast %61 : vector<1x64xf32> to vector<72x64xf32>
    %69 = arith.subf %27, %68 : vector<72x64xf32>
    %cst_34 = arith.constant 9.99999974E-6 : f32
    %70 = vector.broadcast %cst_34 : f32 to vector<1x64xf32>
    %71 = arith.addf %67, %70 : vector<1x64xf32>
    %72 = math.rsqrt %71 : vector<1x64xf32>
    %73 = vector.broadcast %72 : vector<1x64xf32> to vector<72x64xf32>
    %74 = arith.mulf %69, %73 : vector<72x64xf32>
    %cst_35 = arith.constant 0.000000e+00 : f32
    %75 = vector.broadcast %cst_35 : f32 to vector<72x64xf32>
    %76 = arith.cmpf oge, %74, %75 : vector<72x64xf32>
    %cst_36 = arith.constant 2.000000e-01 : f32
    %77 = vector.broadcast %cst_36 : f32 to vector<72x64xf32>
    %78 = arith.mulf %77, %74 : vector<72x64xf32>
    %79 = arith.select %76, %74, %78 : vector<72x64xi1>, vector<72x64xf32>
    %c0_37 = arith.constant 0 : index
    %c0_38 = arith.constant 0 : index
    %c0_39 = arith.constant 0 : index
    %80 = vector.load %arg4[%c0_37, %c0_38, %c0_39] : memref<1x72x64xf32, #tpu.memory_space<vmem>>, vector<1x72x64xf32>
    %81 = vector.shape_cast %80 : vector<1x72x64xf32> to vector<72x64xf32>
    %82 = vector.shape_cast %79 : vector<72x64xf32> to vector<1x72x64xf32>
    tpu.vector_store %arg4[%c0_37, %c0_38, %c0_39], %82 {strides = array<i32>} : memref<1x72x64xf32, #tpu.memory_space<vmem>>, vector<1x72x64xf32>,
    return
  }
  func.func @transform_0(%arg0: i32) -> (i32, i32, i32) {
    %c0_i32 = arith.constant 0 : i32
    %c0_i32_0 = arith.constant 0 : i32
    %c0_i32_1 = arith.constant 0 : i32
    return %arg0, %c0_i32, %c0_i32_0 : i32, i32, i32
  }
  func.func @transform_1(%arg0: i32) -> (i32, i32, i32) {
    %c0_i32 = arith.constant 0 : i32
    %c0_i32_0 = arith.constant 0 : i32
    %c0_i32_1 = arith.constant 0 : i32
    %c0_i32_2 = arith.constant 0 : i32
    return %c0_i32, %c0_i32_0, %c0_i32_1 : i32, i32, i32
  }
  func.func @transform_2(%arg0: i32) -> (i32, i32) {
    %c0_i32 = arith.constant 0 : i32
    %c0_i32_0 = arith.constant 0 : i32
    %c0_i32_1 = arith.constant 0 : i32
    return %c0_i32, %c0_i32_0 : i32, i32
  }
  func.func @transform_3(%arg0: i32) -> (i32, i32, i32) {
    %c0_i32 = arith.constant 0 : i32
    %c0_i32_0 = arith.constant 0 : i32
    %c0_i32_1 = arith.constant 0 : i32
    return %arg0, %c0_i32, %c0_i32_0 : i32, i32, i32
  }
}

module attributes {stable_mosaic.version = 11 : i64} {
  func.func @_shifted_matmul_kernel(%arg0: i32, %arg1: memref<1x33x256xbf16, #tpu.memory_space<vmem>>, %arg2: memref<4x256x128xbf16, #tpu.memory_space<vmem>>, %arg3: memref<1x128xf32, #tpu.memory_space<vmem>>, %arg4: memref<1x20x128xf32, #tpu.memory_space<vmem>>) attributes {dimension_semantics = [#tpu.dimension_semantics<parallel>], iteration_bounds = array<i64: 2>, scalar_prefetch = 0 : i64, scratch_operands = 0 : i64, tpu.core_type = #tpu.core_type<tc>, window_params = [{transform_indices = @transform_0, window_bounds = array<i64: 1, 33, 256>}, {pipeline_mode = #tpu.pipeline_mode<synchronous>, transform_indices = @transform_1, window_bounds = array<i64: 4, 256, 128>}, {pipeline_mode = #tpu.pipeline_mode<synchronous>, transform_indices = @transform_2, window_bounds = array<i64: 1, 128>}, {transform_indices = @transform_3, window_bounds = array<i64: 1, 20, 128>}]} {
    %cst = arith.constant 0.000000e+00 : f32
    %0 = vector.broadcast %cst : f32 to vector<20x128xf32>
    %c0 = arith.constant 0 : index
    %c0_0 = arith.constant 0 : index
    %c0_1 = arith.constant 0 : index
    %1 = vector.load %arg1[%c0, %c0_0, %c0_1] : memref<1x33x256xbf16, #tpu.memory_space<vmem>>, vector<1x20x256xbf16>
    %2 = vector.shape_cast %1 : vector<1x20x256xbf16> to vector<20x256xbf16>
    %c0_2 = arith.constant 0 : index
    %c0_3 = arith.constant 0 : index
    %c0_4 = arith.constant 0 : index
    %3 = vector.load %arg2[%c0_2, %c0_3, %c0_4] : memref<4x256x128xbf16, #tpu.memory_space<vmem>>, vector<1x256x128xbf16>
    %4 = vector.shape_cast %3 : vector<1x256x128xbf16> to vector<256x128xbf16>
    %cst_5 = arith.constant dense<0.000000e+00> : vector<20x128xf32>
    %5 = tpu.matmul %2, %4, %cst_5 {dimension_numbers = #tpu.dot_dimension_numbers<[1], [0], [0], [1], [0, 0, 1, 1], [], []>} : vector<20x256xbf16>, vector<256x128xbf16>, vector<20x128xf32> -> vector<20x128xf32>
    %6 = arith.addf %0, %5 : vector<20x128xf32>
    %c0_6 = arith.constant 0 : index
    %c1 = arith.constant 1 : index
    %c0_7 = arith.constant 0 : index
    %7 = vector.load %arg1[%c0_6, %c1, %c0_7] : memref<1x33x256xbf16, #tpu.memory_space<vmem>>, vector<1x20x256xbf16>
    %8 = vector.shape_cast %7 : vector<1x20x256xbf16> to vector<20x256xbf16>
    %c1_8 = arith.constant 1 : index
    %c0_9 = arith.constant 0 : index
    %c0_10 = arith.constant 0 : index
    %9 = vector.load %arg2[%c1_8, %c0_9, %c0_10] : memref<4x256x128xbf16, #tpu.memory_space<vmem>>, vector<1x256x128xbf16>
    %10 = vector.shape_cast %9 : vector<1x256x128xbf16> to vector<256x128xbf16>
    %cst_11 = arith.constant dense<0.000000e+00> : vector<20x128xf32>
    %11 = tpu.matmul %8, %10, %cst_11 {dimension_numbers = #tpu.dot_dimension_numbers<[1], [0], [0], [1], [0, 0, 1, 1], [], []>} : vector<20x256xbf16>, vector<256x128xbf16>, vector<20x128xf32> -> vector<20x128xf32>
    %12 = arith.addf %6, %11 : vector<20x128xf32>
    %c0_12 = arith.constant 0 : index
    %c5 = arith.constant 5 : index
    %c0_13 = arith.constant 0 : index
    %13 = vector.load %arg1[%c0_12, %c5, %c0_13] : memref<1x33x256xbf16, #tpu.memory_space<vmem>>, vector<1x20x256xbf16>
    %14 = vector.shape_cast %13 : vector<1x20x256xbf16> to vector<20x256xbf16>
    %c2 = arith.constant 2 : index
    %c0_14 = arith.constant 0 : index
    %c0_15 = arith.constant 0 : index
    %15 = vector.load %arg2[%c2, %c0_14, %c0_15] : memref<4x256x128xbf16, #tpu.memory_space<vmem>>, vector<1x256x128xbf16>
    %16 = vector.shape_cast %15 : vector<1x256x128xbf16> to vector<256x128xbf16>
    %cst_16 = arith.constant dense<0.000000e+00> : vector<20x128xf32>
    %17 = tpu.matmul %14, %16, %cst_16 {dimension_numbers = #tpu.dot_dimension_numbers<[1], [0], [0], [1], [0, 0, 1, 1], [], []>} : vector<20x256xbf16>, vector<256x128xbf16>, vector<20x128xf32> -> vector<20x128xf32>
    %18 = arith.addf %12, %17 : vector<20x128xf32>
    %c0_17 = arith.constant 0 : index
    %c6 = arith.constant 6 : index
    %c0_18 = arith.constant 0 : index
    %19 = vector.load %arg1[%c0_17, %c6, %c0_18] : memref<1x33x256xbf16, #tpu.memory_space<vmem>>, vector<1x20x256xbf16>
    %20 = vector.shape_cast %19 : vector<1x20x256xbf16> to vector<20x256xbf16>
    %c3 = arith.constant 3 : index
    %c0_19 = arith.constant 0 : index
    %c0_20 = arith.constant 0 : index
    %21 = vector.load %arg2[%c3, %c0_19, %c0_20] : memref<4x256x128xbf16, #tpu.memory_space<vmem>>, vector<1x256x128xbf16>
    %22 = vector.shape_cast %21 : vector<1x256x128xbf16> to vector<256x128xbf16>
    %cst_21 = arith.constant dense<0.000000e+00> : vector<20x128xf32>
    %23 = tpu.matmul %20, %22, %cst_21 {dimension_numbers = #tpu.dot_dimension_numbers<[1], [0], [0], [1], [0, 0, 1, 1], [], []>} : vector<20x256xbf16>, vector<256x128xbf16>, vector<20x128xf32> -> vector<20x128xf32>
    %24 = arith.addf %18, %23 : vector<20x128xf32>
    %c0_22 = arith.constant 0 : index
    %c0_23 = arith.constant 0 : index
    %25 = vector.load %arg3[%c0_22, %c0_23] : memref<1x128xf32, #tpu.memory_space<vmem>>, vector<1x128xf32>
    %26 = vector.broadcast %25 : vector<1x128xf32> to vector<20x128xf32>
    %27 = arith.addf %24, %26 : vector<20x128xf32>
    %28 = tpu.iota {dimensions = array<i32: 0>} : vector<20x1xi32>
    %c5_i32 = arith.constant 5 : i32
    %c0_i32 = arith.constant 0 : i32
    %29 = arith.cmpi eq, %c5_i32, %c0_i32 : i32
    %c1_i32 = arith.constant 1 : i32
    %30 = arith.select %29, %c1_i32, %c5_i32 : i32
    %31 = vector.broadcast %30 : i32 to vector<20x1xi32>
    %32 = arith.remsi %28, %31 : vector<20x1xi32>
    %c0_i32_24 = arith.constant 0 : i32
    %33 = vector.broadcast %c0_i32_24 : i32 to vector<20x1xi32>
    %34 = arith.cmpi ne, %32, %33 : vector<20x1xi32>
    %c0_i32_25 = arith.constant 0 : i32
    %35 = vector.broadcast %c0_i32_25 : i32 to vector<20x1xi32>
    %36 = arith.cmpi slt, %32, %35 : vector<20x1xi32>
    %c0_i32_26 = arith.constant 0 : i32
    %37 = arith.cmpi slt, %30, %c0_i32_26 : i32
    %38 = vector.broadcast %37 : i1 to vector<20x1xi1>
    %39 = vector.broadcast %38 : vector<20x1xi1> to vector<20x1xi1>
    %40 = arith.xori %36, %39 : vector<20x1xi1>
    %41 = arith.andi %40, %34 : vector<20x1xi1>
    %42 = vector.broadcast %30 : i32 to vector<20x1xi32>
    %43 = arith.addi %32, %42 : vector<20x1xi32>
    %44 = arith.select %41, %43, %32 : vector<20x1xi1>, vector<20x1xi32>
    %c4_i32 = arith.constant 4 : i32
    %45 = vector.broadcast %c4_i32 : i32 to vector<20x1xi32>
    %46 = arith.cmpi slt, %44, %45 : vector<20x1xi32>
    %cst_27 = arith.constant 0.000000e+00 : f32
    %47 = vector.shape_cast %46 : vector<20x1xi1> to vector<20x1xi1>
    %48 = vector.broadcast %47 : vector<20x1xi1> to vector<20x128xi1>
    %49 = vector.broadcast %cst_27 : f32 to vector<20x128xf32>
    %50 = arith.select %48, %27, %49 : vector<20x128xi1>, vector<20x128xf32>
    %cst_28 = arith.constant dense<0.000000e+00> : vector<128xf32>
    %51 = vector.multi_reduction <add>, %50, %cst_28 [0] : vector<20x128xf32> to vector<128xf32>
    %52 = vector.shape_cast %51 : vector<128xf32> to vector<1x128xf32>
    %53 = arith.mulf %27, %27 : vector<20x128xf32>
    %cst_29 = arith.constant 0.000000e+00 : f32
    %54 = vector.shape_cast %46 : vector<20x1xi1> to vector<20x1xi1>
    %55 = vector.broadcast %54 : vector<20x1xi1> to vector<20x128xi1>
    %56 = vector.broadcast %cst_29 : f32 to vector<20x128xf32>
    %57 = arith.select %55, %53, %56 : vector<20x128xi1>, vector<20x128xf32>
    %cst_30 = arith.constant dense<0.000000e+00> : vector<128xf32>
    %58 = vector.multi_reduction <add>, %57, %cst_30 [0] : vector<20x128xf32> to vector<128xf32>
    %59 = vector.shape_cast %58 : vector<128xf32> to vector<1x128xf32>
    %cst_31 = arith.constant 6.250000e-02 : f32
    %60 = vector.broadcast %cst_31 : f32 to vector<1x128xf32>
    %61 = arith.mulf %52, %60 : vector<1x128xf32>
    %cst_32 = arith.constant 6.250000e-02 : f32
    %62 = vector.broadcast %cst_32 : f32 to vector<1x128xf32>
    %63 = arith.mulf %59, %62 : vector<1x128xf32>
    %64 = arith.mulf %61, %61 : vector<1x128xf32>
    %65 = arith.subf %63, %64 : vector<1x128xf32>
    %cst_33 = arith.constant 0.000000e+00 : f32
    %66 = vector.broadcast %cst_33 : f32 to vector<1x128xf32>
    %67 = arith.maximumf %65, %66 : vector<1x128xf32>
    %68 = vector.broadcast %61 : vector<1x128xf32> to vector<20x128xf32>
    %69 = arith.subf %27, %68 : vector<20x128xf32>
    %cst_34 = arith.constant 9.99999974E-6 : f32
    %70 = vector.broadcast %cst_34 : f32 to vector<1x128xf32>
    %71 = arith.addf %67, %70 : vector<1x128xf32>
    %72 = math.rsqrt %71 : vector<1x128xf32>
    %73 = vector.broadcast %72 : vector<1x128xf32> to vector<20x128xf32>
    %74 = arith.mulf %69, %73 : vector<20x128xf32>
    %cst_35 = arith.constant 0.000000e+00 : f32
    %75 = vector.broadcast %cst_35 : f32 to vector<20x128xf32>
    %76 = arith.cmpf oge, %74, %75 : vector<20x128xf32>
    %cst_36 = arith.constant 2.000000e-01 : f32
    %77 = vector.broadcast %cst_36 : f32 to vector<20x128xf32>
    %78 = arith.mulf %77, %74 : vector<20x128xf32>
    %79 = arith.select %76, %74, %78 : vector<20x128xi1>, vector<20x128xf32>
    %c0_37 = arith.constant 0 : index
    %c0_38 = arith.constant 0 : index
    %c0_39 = arith.constant 0 : index
    %80 = vector.load %arg4[%c0_37, %c0_38, %c0_39] : memref<1x20x128xf32, #tpu.memory_space<vmem>>, vector<1x20x128xf32>
    %81 = vector.shape_cast %80 : vector<1x20x128xf32> to vector<20x128xf32>
    %82 = vector.shape_cast %79 : vector<20x128xf32> to vector<1x20x128xf32>
    tpu.vector_store %arg4[%c0_37, %c0_38, %c0_39], %82 {strides = array<i32>} : memref<1x20x128xf32, #tpu.memory_space<vmem>>, vector<1x20x128xf32>,
    return
  }
  func.func @transform_0(%arg0: i32) -> (i32, i32, i32) {
    %c0_i32 = arith.constant 0 : i32
    %c0_i32_0 = arith.constant 0 : i32
    %c0_i32_1 = arith.constant 0 : i32
    return %arg0, %c0_i32, %c0_i32_0 : i32, i32, i32
  }
  func.func @transform_1(%arg0: i32) -> (i32, i32, i32) {
    %c0_i32 = arith.constant 0 : i32
    %c0_i32_0 = arith.constant 0 : i32
    %c0_i32_1 = arith.constant 0 : i32
    %c0_i32_2 = arith.constant 0 : i32
    return %c0_i32, %c0_i32_0, %c0_i32_1 : i32, i32, i32
  }
  func.func @transform_2(%arg0: i32) -> (i32, i32) {
    %c0_i32 = arith.constant 0 : i32
    %c0_i32_0 = arith.constant 0 : i32
    %c0_i32_1 = arith.constant 0 : i32
    return %c0_i32, %c0_i32_0 : i32, i32
  }
  func.func @transform_3(%arg0: i32) -> (i32, i32, i32) {
    %c0_i32 = arith.constant 0 : i32
    %c0_i32_0 = arith.constant 0 : i32
    %c0_i32_1 = arith.constant 0 : i32
    return %arg0, %c0_i32, %c0_i32_0 : i32, i32, i32
  }
}

module attributes {stable_mosaic.version = 11 : i64} {
  func.func @_shifted_matmul_kernel(%arg0: i32, %arg1: memref<1x17x512xbf16, #tpu.memory_space<vmem>>, %arg2: memref<4x512x256xbf16, #tpu.memory_space<vmem>>, %arg3: memref<1x256xf32, #tpu.memory_space<vmem>>, %arg4: memref<1x6x256xf32, #tpu.memory_space<vmem>>) attributes {dimension_semantics = [#tpu.dimension_semantics<parallel>], iteration_bounds = array<i64: 2>, scalar_prefetch = 0 : i64, scratch_operands = 0 : i64, tpu.core_type = #tpu.core_type<tc>, window_params = [{transform_indices = @transform_0, window_bounds = array<i64: 1, 17, 512>}, {pipeline_mode = #tpu.pipeline_mode<synchronous>, transform_indices = @transform_1, window_bounds = array<i64: 4, 512, 256>}, {pipeline_mode = #tpu.pipeline_mode<synchronous>, transform_indices = @transform_2, window_bounds = array<i64: 1, 256>}, {transform_indices = @transform_3, window_bounds = array<i64: 1, 6, 256>}]} {
    %cst = arith.constant 0.000000e+00 : f32
    %0 = vector.broadcast %cst : f32 to vector<6x256xf32>
    %c0 = arith.constant 0 : index
    %c0_0 = arith.constant 0 : index
    %c0_1 = arith.constant 0 : index
    %1 = vector.load %arg1[%c0, %c0_0, %c0_1] : memref<1x17x512xbf16, #tpu.memory_space<vmem>>, vector<1x6x512xbf16>
    %2 = vector.shape_cast %1 : vector<1x6x512xbf16> to vector<6x512xbf16>
    %c0_2 = arith.constant 0 : index
    %c0_3 = arith.constant 0 : index
    %c0_4 = arith.constant 0 : index
    %3 = vector.load %arg2[%c0_2, %c0_3, %c0_4] : memref<4x512x256xbf16, #tpu.memory_space<vmem>>, vector<1x512x256xbf16>
    %4 = vector.shape_cast %3 : vector<1x512x256xbf16> to vector<512x256xbf16>
    %cst_5 = arith.constant dense<0.000000e+00> : vector<6x256xf32>
    %5 = tpu.matmul %2, %4, %cst_5 {dimension_numbers = #tpu.dot_dimension_numbers<[1], [0], [0], [1], [0, 0, 1, 1], [], []>} : vector<6x512xbf16>, vector<512x256xbf16>, vector<6x256xf32> -> vector<6x256xf32>
    %6 = arith.addf %0, %5 : vector<6x256xf32>
    %c0_6 = arith.constant 0 : index
    %c1 = arith.constant 1 : index
    %c0_7 = arith.constant 0 : index
    %7 = vector.load %arg1[%c0_6, %c1, %c0_7] : memref<1x17x512xbf16, #tpu.memory_space<vmem>>, vector<1x6x512xbf16>
    %8 = vector.shape_cast %7 : vector<1x6x512xbf16> to vector<6x512xbf16>
    %c1_8 = arith.constant 1 : index
    %c0_9 = arith.constant 0 : index
    %c0_10 = arith.constant 0 : index
    %9 = vector.load %arg2[%c1_8, %c0_9, %c0_10] : memref<4x512x256xbf16, #tpu.memory_space<vmem>>, vector<1x512x256xbf16>
    %10 = vector.shape_cast %9 : vector<1x512x256xbf16> to vector<512x256xbf16>
    %cst_11 = arith.constant dense<0.000000e+00> : vector<6x256xf32>
    %11 = tpu.matmul %8, %10, %cst_11 {dimension_numbers = #tpu.dot_dimension_numbers<[1], [0], [0], [1], [0, 0, 1, 1], [], []>} : vector<6x512xbf16>, vector<512x256xbf16>, vector<6x256xf32> -> vector<6x256xf32>
    %12 = arith.addf %6, %11 : vector<6x256xf32>
    %c0_12 = arith.constant 0 : index
    %c3 = arith.constant 3 : index
    %c0_13 = arith.constant 0 : index
    %13 = vector.load %arg1[%c0_12, %c3, %c0_13] : memref<1x17x512xbf16, #tpu.memory_space<vmem>>, vector<1x6x512xbf16>
    %14 = vector.shape_cast %13 : vector<1x6x512xbf16> to vector<6x512xbf16>
    %c2 = arith.constant 2 : index
    %c0_14 = arith.constant 0 : index
    %c0_15 = arith.constant 0 : index
    %15 = vector.load %arg2[%c2, %c0_14, %c0_15] : memref<4x512x256xbf16, #tpu.memory_space<vmem>>, vector<1x512x256xbf16>
    %16 = vector.shape_cast %15 : vector<1x512x256xbf16> to vector<512x256xbf16>
    %cst_16 = arith.constant dense<0.000000e+00> : vector<6x256xf32>
    %17 = tpu.matmul %14, %16, %cst_16 {dimension_numbers = #tpu.dot_dimension_numbers<[1], [0], [0], [1], [0, 0, 1, 1], [], []>} : vector<6x512xbf16>, vector<512x256xbf16>, vector<6x256xf32> -> vector<6x256xf32>
    %18 = arith.addf %12, %17 : vector<6x256xf32>
    %c0_17 = arith.constant 0 : index
    %c4 = arith.constant 4 : index
    %c0_18 = arith.constant 0 : index
    %19 = vector.load %arg1[%c0_17, %c4, %c0_18] : memref<1x17x512xbf16, #tpu.memory_space<vmem>>, vector<1x6x512xbf16>
    %20 = vector.shape_cast %19 : vector<1x6x512xbf16> to vector<6x512xbf16>
    %c3_19 = arith.constant 3 : index
    %c0_20 = arith.constant 0 : index
    %c0_21 = arith.constant 0 : index
    %21 = vector.load %arg2[%c3_19, %c0_20, %c0_21] : memref<4x512x256xbf16, #tpu.memory_space<vmem>>, vector<1x512x256xbf16>
    %22 = vector.shape_cast %21 : vector<1x512x256xbf16> to vector<512x256xbf16>
    %cst_22 = arith.constant dense<0.000000e+00> : vector<6x256xf32>
    %23 = tpu.matmul %20, %22, %cst_22 {dimension_numbers = #tpu.dot_dimension_numbers<[1], [0], [0], [1], [0, 0, 1, 1], [], []>} : vector<6x512xbf16>, vector<512x256xbf16>, vector<6x256xf32> -> vector<6x256xf32>
    %24 = arith.addf %18, %23 : vector<6x256xf32>
    %c0_23 = arith.constant 0 : index
    %c0_24 = arith.constant 0 : index
    %25 = vector.load %arg3[%c0_23, %c0_24] : memref<1x256xf32, #tpu.memory_space<vmem>>, vector<1x256xf32>
    %26 = vector.broadcast %25 : vector<1x256xf32> to vector<6x256xf32>
    %27 = arith.addf %24, %26 : vector<6x256xf32>
    %28 = tpu.iota {dimensions = array<i32: 0>} : vector<6x1xi32>
    %c3_i32 = arith.constant 3 : i32
    %c0_i32 = arith.constant 0 : i32
    %29 = arith.cmpi eq, %c3_i32, %c0_i32 : i32
    %c1_i32 = arith.constant 1 : i32
    %30 = arith.select %29, %c1_i32, %c3_i32 : i32
    %31 = vector.broadcast %30 : i32 to vector<6x1xi32>
    %32 = arith.remsi %28, %31 : vector<6x1xi32>
    %c0_i32_25 = arith.constant 0 : i32
    %33 = vector.broadcast %c0_i32_25 : i32 to vector<6x1xi32>
    %34 = arith.cmpi ne, %32, %33 : vector<6x1xi32>
    %c0_i32_26 = arith.constant 0 : i32
    %35 = vector.broadcast %c0_i32_26 : i32 to vector<6x1xi32>
    %36 = arith.cmpi slt, %32, %35 : vector<6x1xi32>
    %c0_i32_27 = arith.constant 0 : i32
    %37 = arith.cmpi slt, %30, %c0_i32_27 : i32
    %38 = vector.broadcast %37 : i1 to vector<6x1xi1>
    %39 = vector.broadcast %38 : vector<6x1xi1> to vector<6x1xi1>
    %40 = arith.xori %36, %39 : vector<6x1xi1>
    %41 = arith.andi %40, %34 : vector<6x1xi1>
    %42 = vector.broadcast %30 : i32 to vector<6x1xi32>
    %43 = arith.addi %32, %42 : vector<6x1xi32>
    %44 = arith.select %41, %43, %32 : vector<6x1xi1>, vector<6x1xi32>
    %c2_i32 = arith.constant 2 : i32
    %45 = vector.broadcast %c2_i32 : i32 to vector<6x1xi32>
    %46 = arith.cmpi slt, %44, %45 : vector<6x1xi32>
    %cst_28 = arith.constant 0.000000e+00 : f32
    %47 = vector.shape_cast %46 : vector<6x1xi1> to vector<6x1xi1>
    %48 = vector.broadcast %47 : vector<6x1xi1> to vector<6x256xi1>
    %49 = vector.broadcast %cst_28 : f32 to vector<6x256xf32>
    %50 = arith.select %48, %27, %49 : vector<6x256xi1>, vector<6x256xf32>
    %cst_29 = arith.constant dense<0.000000e+00> : vector<256xf32>
    %51 = vector.multi_reduction <add>, %50, %cst_29 [0] : vector<6x256xf32> to vector<256xf32>
    %52 = vector.shape_cast %51 : vector<256xf32> to vector<1x256xf32>
    %53 = arith.mulf %27, %27 : vector<6x256xf32>
    %cst_30 = arith.constant 0.000000e+00 : f32
    %54 = vector.shape_cast %46 : vector<6x1xi1> to vector<6x1xi1>
    %55 = vector.broadcast %54 : vector<6x1xi1> to vector<6x256xi1>
    %56 = vector.broadcast %cst_30 : f32 to vector<6x256xf32>
    %57 = arith.select %55, %53, %56 : vector<6x256xi1>, vector<6x256xf32>
    %cst_31 = arith.constant dense<0.000000e+00> : vector<256xf32>
    %58 = vector.multi_reduction <add>, %57, %cst_31 [0] : vector<6x256xf32> to vector<256xf32>
    %59 = vector.shape_cast %58 : vector<256xf32> to vector<1x256xf32>
    %cst_32 = arith.constant 2.500000e-01 : f32
    %60 = vector.broadcast %cst_32 : f32 to vector<1x256xf32>
    %61 = arith.mulf %52, %60 : vector<1x256xf32>
    %cst_33 = arith.constant 2.500000e-01 : f32
    %62 = vector.broadcast %cst_33 : f32 to vector<1x256xf32>
    %63 = arith.mulf %59, %62 : vector<1x256xf32>
    %64 = arith.mulf %61, %61 : vector<1x256xf32>
    %65 = arith.subf %63, %64 : vector<1x256xf32>
    %cst_34 = arith.constant 0.000000e+00 : f32
    %66 = vector.broadcast %cst_34 : f32 to vector<1x256xf32>
    %67 = arith.maximumf %65, %66 : vector<1x256xf32>
    %68 = vector.broadcast %61 : vector<1x256xf32> to vector<6x256xf32>
    %69 = arith.subf %27, %68 : vector<6x256xf32>
    %cst_35 = arith.constant 9.99999974E-6 : f32
    %70 = vector.broadcast %cst_35 : f32 to vector<1x256xf32>
    %71 = arith.addf %67, %70 : vector<1x256xf32>
    %72 = math.rsqrt %71 : vector<1x256xf32>
    %73 = vector.broadcast %72 : vector<1x256xf32> to vector<6x256xf32>
    %74 = arith.mulf %69, %73 : vector<6x256xf32>
    %cst_36 = arith.constant 0.000000e+00 : f32
    %75 = vector.broadcast %cst_36 : f32 to vector<6x256xf32>
    %76 = arith.cmpf oge, %74, %75 : vector<6x256xf32>
    %cst_37 = arith.constant 2.000000e-01 : f32
    %77 = vector.broadcast %cst_37 : f32 to vector<6x256xf32>
    %78 = arith.mulf %77, %74 : vector<6x256xf32>
    %79 = arith.select %76, %74, %78 : vector<6x256xi1>, vector<6x256xf32>
    %c0_38 = arith.constant 0 : index
    %c0_39 = arith.constant 0 : index
    %c0_40 = arith.constant 0 : index
    %80 = vector.load %arg4[%c0_38, %c0_39, %c0_40] : memref<1x6x256xf32, #tpu.memory_space<vmem>>, vector<1x6x256xf32>
    %81 = vector.shape_cast %80 : vector<1x6x256xf32> to vector<6x256xf32>
    %82 = vector.shape_cast %79 : vector<6x256xf32> to vector<1x6x256xf32>
    tpu.vector_store %arg4[%c0_38, %c0_39, %c0_40], %82 {strides = array<i32>} : memref<1x6x256xf32, #tpu.memory_space<vmem>>, vector<1x6x256xf32>,
    return
  }
  func.func @transform_0(%arg0: i32) -> (i32, i32, i32) {
    %c0_i32 = arith.constant 0 : i32
    %c0_i32_0 = arith.constant 0 : i32
    %c0_i32_1 = arith.constant 0 : i32
    return %arg0, %c0_i32, %c0_i32_0 : i32, i32, i32
  }
  func.func @transform_1(%arg0: i32) -> (i32, i32, i32) {
    %c0_i32 = arith.constant 0 : i32
    %c0_i32_0 = arith.constant 0 : i32
    %c0_i32_1 = arith.constant 0 : i32
    %c0_i32_2 = arith.constant 0 : i32
    return %c0_i32, %c0_i32_0, %c0_i32_1 : i32, i32, i32
  }
  func.func @transform_2(%arg0: i32) -> (i32, i32) {
    %c0_i32 = arith.constant 0 : i32
    %c0_i32_0 = arith.constant 0 : i32
    %c0_i32_1 = arith.constant 0 : i32
    return %c0_i32, %c0_i32_0 : i32, i32
  }
  func.func @transform_3(%arg0: i32) -> (i32, i32, i32) {
    %c0_i32 = arith.constant 0 : i32
    %c0_i32_0 = arith.constant 0 : i32
    %c0_i32_1 = arith.constant 0 : i32
    return %arg0, %c0_i32, %c0_i32_0 : i32, i32, i32
  }
}

module attributes {stable_mosaic.version = 11 : i64} {
  func.func @_shifted_matmul_kernel(%arg0: i32, %arg1: memref<1x33x256xbf16, #tpu.memory_space<vmem>>, %arg2: memref<16x256x8xbf16, #tpu.memory_space<vmem>>, %arg3: memref<1x8xf32, #tpu.memory_space<vmem>>, %arg4: memref<1x10x8xf32, #tpu.memory_space<vmem>>) attributes {dimension_semantics = [#tpu.dimension_semantics<parallel>], iteration_bounds = array<i64: 2>, scalar_prefetch = 0 : i64, scratch_operands = 0 : i64, tpu.core_type = #tpu.core_type<tc>, window_params = [{transform_indices = @transform_0, window_bounds = array<i64: 1, 33, 256>}, {pipeline_mode = #tpu.pipeline_mode<synchronous>, transform_indices = @transform_1, window_bounds = array<i64: 16, 256, 8>}, {pipeline_mode = #tpu.pipeline_mode<synchronous>, transform_indices = @transform_2, window_bounds = array<i64: 1, 8>}, {transform_indices = @transform_3, window_bounds = array<i64: 1, 10, 8>}]} {
    %cst = arith.constant 0.000000e+00 : f32
    %0 = vector.broadcast %cst : f32 to vector<10x8xf32>
    %c0 = arith.constant 0 : index
    %c0_0 = arith.constant 0 : index
    %c0_1 = arith.constant 0 : index
    %1 = vector.load %arg1[%c0, %c0_0, %c0_1] : memref<1x33x256xbf16, #tpu.memory_space<vmem>>, vector<1x10x256xbf16>
    %2 = vector.shape_cast %1 : vector<1x10x256xbf16> to vector<10x256xbf16>
    %c0_2 = arith.constant 0 : index
    %c0_3 = arith.constant 0 : index
    %c0_4 = arith.constant 0 : index
    %3 = vector.load %arg2[%c0_2, %c0_3, %c0_4] : memref<16x256x8xbf16, #tpu.memory_space<vmem>>, vector<1x256x8xbf16>
    %4 = vector.shape_cast %3 : vector<1x256x8xbf16> to vector<256x8xbf16>
    %cst_5 = arith.constant dense<0.000000e+00> : vector<10x8xf32>
    %5 = tpu.matmul %2, %4, %cst_5 {dimension_numbers = #tpu.dot_dimension_numbers<[1], [0], [0], [1], [0, 0, 1, 1], [], []>} : vector<10x256xbf16>, vector<256x8xbf16>, vector<10x8xf32> -> vector<10x8xf32>
    %6 = arith.addf %0, %5 : vector<10x8xf32>
    %c0_6 = arith.constant 0 : index
    %c1 = arith.constant 1 : index
    %c0_7 = arith.constant 0 : index
    %7 = vector.load %arg1[%c0_6, %c1, %c0_7] : memref<1x33x256xbf16, #tpu.memory_space<vmem>>, vector<1x10x256xbf16>
    %8 = vector.shape_cast %7 : vector<1x10x256xbf16> to vector<10x256xbf16>
    %c1_8 = arith.constant 1 : index
    %c0_9 = arith.constant 0 : index
    %c0_10 = arith.constant 0 : index
    %9 = vector.load %arg2[%c1_8, %c0_9, %c0_10] : memref<16x256x8xbf16, #tpu.memory_space<vmem>>, vector<1x256x8xbf16>
    %10 = vector.shape_cast %9 : vector<1x256x8xbf16> to vector<256x8xbf16>
    %cst_11 = arith.constant dense<0.000000e+00> : vector<10x8xf32>
    %11 = tpu.matmul %8, %10, %cst_11 {dimension_numbers = #tpu.dot_dimension_numbers<[1], [0], [0], [1], [0, 0, 1, 1], [], []>} : vector<10x256xbf16>, vector<256x8xbf16>, vector<10x8xf32> -> vector<10x8xf32>
    %12 = arith.addf %6, %11 : vector<10x8xf32>
    %c0_12 = arith.constant 0 : index
    %c2 = arith.constant 2 : index
    %c0_13 = arith.constant 0 : index
    %13 = vector.load %arg1[%c0_12, %c2, %c0_13] : memref<1x33x256xbf16, #tpu.memory_space<vmem>>, vector<1x10x256xbf16>
    %14 = vector.shape_cast %13 : vector<1x10x256xbf16> to vector<10x256xbf16>
    %c2_14 = arith.constant 2 : index
    %c0_15 = arith.constant 0 : index
    %c0_16 = arith.constant 0 : index
    %15 = vector.load %arg2[%c2_14, %c0_15, %c0_16] : memref<16x256x8xbf16, #tpu.memory_space<vmem>>, vector<1x256x8xbf16>
    %16 = vector.shape_cast %15 : vector<1x256x8xbf16> to vector<256x8xbf16>
    %cst_17 = arith.constant dense<0.000000e+00> : vector<10x8xf32>
    %17 = tpu.matmul %14, %16, %cst_17 {dimension_numbers = #tpu.dot_dimension_numbers<[1], [0], [0], [1], [0, 0, 1, 1], [], []>} : vector<10x256xbf16>, vector<256x8xbf16>, vector<10x8xf32> -> vector<10x8xf32>
    %18 = arith.addf %12, %17 : vector<10x8xf32>
    %c0_18 = arith.constant 0 : index
    %c3 = arith.constant 3 : index
    %c0_19 = arith.constant 0 : index
    %19 = vector.load %arg1[%c0_18, %c3, %c0_19] : memref<1x33x256xbf16, #tpu.memory_space<vmem>>, vector<1x10x256xbf16>
    %20 = vector.shape_cast %19 : vector<1x10x256xbf16> to vector<10x256xbf16>
    %c3_20 = arith.constant 3 : index
    %c0_21 = arith.constant 0 : index
    %c0_22 = arith.constant 0 : index
    %21 = vector.load %arg2[%c3_20, %c0_21, %c0_22] : memref<16x256x8xbf16, #tpu.memory_space<vmem>>, vector<1x256x8xbf16>
    %22 = vector.shape_cast %21 : vector<1x256x8xbf16> to vector<256x8xbf16>
    %cst_23 = arith.constant dense<0.000000e+00> : vector<10x8xf32>
    %23 = tpu.matmul %20, %22, %cst_23 {dimension_numbers = #tpu.dot_dimension_numbers<[1], [0], [0], [1], [0, 0, 1, 1], [], []>} : vector<10x256xbf16>, vector<256x8xbf16>, vector<10x8xf32> -> vector<10x8xf32>
    %24 = arith.addf %18, %23 : vector<10x8xf32>
    %c0_24 = arith.constant 0 : index
    %c5 = arith.constant 5 : index
    %c0_25 = arith.constant 0 : index
    %25 = vector.load %arg1[%c0_24, %c5, %c0_25] : memref<1x33x256xbf16, #tpu.memory_space<vmem>>, vector<1x10x256xbf16>
    %26 = vector.shape_cast %25 : vector<1x10x256xbf16> to vector<10x256xbf16>
    %c4 = arith.constant 4 : index
    %c0_26 = arith.constant 0 : index
    %c0_27 = arith.constant 0 : index
    %27 = vector.load %arg2[%c4, %c0_26, %c0_27] : memref<16x256x8xbf16, #tpu.memory_space<vmem>>, vector<1x256x8xbf16>
    %28 = vector.shape_cast %27 : vector<1x256x8xbf16> to vector<256x8xbf16>
    %cst_28 = arith.constant dense<0.000000e+00> : vector<10x8xf32>
    %29 = tpu.matmul %26, %28, %cst_28 {dimension_numbers = #tpu.dot_dimension_numbers<[1], [0], [0], [1], [0, 0, 1, 1], [], []>} : vector<10x256xbf16>, vector<256x8xbf16>, vector<10x8xf32> -> vector<10x8xf32>
    %30 = arith.addf %24, %29 : vector<10x8xf32>
    %c0_29 = arith.constant 0 : index
    %c6 = arith.constant 6 : index
    %c0_30 = arith.constant 0 : index
    %31 = vector.load %arg1[%c0_29, %c6, %c0_30] : memref<1x33x256xbf16, #tpu.memory_space<vmem>>, vector<1x10x256xbf16>
    %32 = vector.shape_cast %31 : vector<1x10x256xbf16> to vector<10x256xbf16>
    %c5_31 = arith.constant 5 : index
    %c0_32 = arith.constant 0 : index
    %c0_33 = arith.constant 0 : index
    %33 = vector.load %arg2[%c5_31, %c0_32, %c0_33] : memref<16x256x8xbf16, #tpu.memory_space<vmem>>, vector<1x256x8xbf16>
    %34 = vector.shape_cast %33 : vector<1x256x8xbf16> to vector<256x8xbf16>
    %cst_34 = arith.constant dense<0.000000e+00> : vector<10x8xf32>
    %35 = tpu.matmul %32, %34, %cst_34 {dimension_numbers = #tpu.dot_dimension_numbers<[1], [0], [0], [1], [0, 0, 1, 1], [], []>} : vector<10x256xbf16>, vector<256x8xbf16>, vector<10x8xf32> -> vector<10x8xf32>
    %36 = arith.addf %30, %35 : vector<10x8xf32>
    %c0_35 = arith.constant 0 : index
    %c7 = arith.constant 7 : index
    %c0_36 = arith.constant 0 : index
    %37 = vector.load %arg1[%c0_35, %c7, %c0_36] : memref<1x33x256xbf16, #tpu.memory_space<vmem>>, vector<1x10x256xbf16>
    %38 = vector.shape_cast %37 : vector<1x10x256xbf16> to vector<10x256xbf16>
    %c6_37 = arith.constant 6 : index
    %c0_38 = arith.constant 0 : index
    %c0_39 = arith.constant 0 : index
    %39 = vector.load %arg2[%c6_37, %c0_38, %c0_39] : memref<16x256x8xbf16, #tpu.memory_space<vmem>>, vector<1x256x8xbf16>
    %40 = vector.shape_cast %39 : vector<1x256x8xbf16> to vector<256x8xbf16>
    %cst_40 = arith.constant dense<0.000000e+00> : vector<10x8xf32>
    %41 = tpu.matmul %38, %40, %cst_40 {dimension_numbers = #tpu.dot_dimension_numbers<[1], [0], [0], [1], [0, 0, 1, 1], [], []>} : vector<10x256xbf16>, vector<256x8xbf16>, vector<10x8xf32> -> vector<10x8xf32>
    %42 = arith.addf %36, %41 : vector<10x8xf32>
    %c0_41 = arith.constant 0 : index
    %c8 = arith.constant 8 : index
    %c0_42 = arith.constant 0 : index
    %43 = vector.load %arg1[%c0_41, %c8, %c0_42] : memref<1x33x256xbf16, #tpu.memory_space<vmem>>, vector<1x10x256xbf16>
    %44 = vector.shape_cast %43 : vector<1x10x256xbf16> to vector<10x256xbf16>
    %c7_43 = arith.constant 7 : index
    %c0_44 = arith.constant 0 : index
    %c0_45 = arith.constant 0 : index
    %45 = vector.load %arg2[%c7_43, %c0_44, %c0_45] : memref<16x256x8xbf16, #tpu.memory_space<vmem>>, vector<1x256x8xbf16>
    %46 = vector.shape_cast %45 : vector<1x256x8xbf16> to vector<256x8xbf16>
    %cst_46 = arith.constant dense<0.000000e+00> : vector<10x8xf32>
    %47 = tpu.matmul %44, %46, %cst_46 {dimension_numbers = #tpu.dot_dimension_numbers<[1], [0], [0], [1], [0, 0, 1, 1], [], []>} : vector<10x256xbf16>, vector<256x8xbf16>, vector<10x8xf32> -> vector<10x8xf32>
    %48 = arith.addf %42, %47 : vector<10x8xf32>
    %c0_47 = arith.constant 0 : index
    %c10 = arith.constant 10 : index
    %c0_48 = arith.constant 0 : index
    %49 = vector.load %arg1[%c0_47, %c10, %c0_48] : memref<1x33x256xbf16, #tpu.memory_space<vmem>>, vector<1x10x256xbf16>
    %50 = vector.shape_cast %49 : vector<1x10x256xbf16> to vector<10x256xbf16>
    %c8_49 = arith.constant 8 : index
    %c0_50 = arith.constant 0 : index
    %c0_51 = arith.constant 0 : index
    %51 = vector.load %arg2[%c8_49, %c0_50, %c0_51] : memref<16x256x8xbf16, #tpu.memory_space<vmem>>, vector<1x256x8xbf16>
    %52 = vector.shape_cast %51 : vector<1x256x8xbf16> to vector<256x8xbf16>
    %cst_52 = arith.constant dense<0.000000e+00> : vector<10x8xf32>
    %53 = tpu.matmul %50, %52, %cst_52 {dimension_numbers = #tpu.dot_dimension_numbers<[1], [0], [0], [1], [0, 0, 1, 1], [], []>} : vector<10x256xbf16>, vector<256x8xbf16>, vector<10x8xf32> -> vector<10x8xf32>
    %54 = arith.addf %48, %53 : vector<10x8xf32>
    %c0_53 = arith.constant 0 : index
    %c11 = arith.constant 11 : index
    %c0_54 = arith.constant 0 : index
    %55 = vector.load %arg1[%c0_53, %c11, %c0_54] : memref<1x33x256xbf16, #tpu.memory_space<vmem>>, vector<1x10x256xbf16>
    %56 = vector.shape_cast %55 : vector<1x10x256xbf16> to vector<10x256xbf16>
    %c9 = arith.constant 9 : index
    %c0_55 = arith.constant 0 : index
    %c0_56 = arith.constant 0 : index
    %57 = vector.load %arg2[%c9, %c0_55, %c0_56] : memref<16x256x8xbf16, #tpu.memory_space<vmem>>, vector<1x256x8xbf16>
    %58 = vector.shape_cast %57 : vector<1x256x8xbf16> to vector<256x8xbf16>
    %cst_57 = arith.constant dense<0.000000e+00> : vector<10x8xf32>
    %59 = tpu.matmul %56, %58, %cst_57 {dimension_numbers = #tpu.dot_dimension_numbers<[1], [0], [0], [1], [0, 0, 1, 1], [], []>} : vector<10x256xbf16>, vector<256x8xbf16>, vector<10x8xf32> -> vector<10x8xf32>
    %60 = arith.addf %54, %59 : vector<10x8xf32>
    %c0_58 = arith.constant 0 : index
    %c12 = arith.constant 12 : index
    %c0_59 = arith.constant 0 : index
    %61 = vector.load %arg1[%c0_58, %c12, %c0_59] : memref<1x33x256xbf16, #tpu.memory_space<vmem>>, vector<1x10x256xbf16>
    %62 = vector.shape_cast %61 : vector<1x10x256xbf16> to vector<10x256xbf16>
    %c10_60 = arith.constant 10 : index
    %c0_61 = arith.constant 0 : index
    %c0_62 = arith.constant 0 : index
    %63 = vector.load %arg2[%c10_60, %c0_61, %c0_62] : memref<16x256x8xbf16, #tpu.memory_space<vmem>>, vector<1x256x8xbf16>
    %64 = vector.shape_cast %63 : vector<1x256x8xbf16> to vector<256x8xbf16>
    %cst_63 = arith.constant dense<0.000000e+00> : vector<10x8xf32>
    %65 = tpu.matmul %62, %64, %cst_63 {dimension_numbers = #tpu.dot_dimension_numbers<[1], [0], [0], [1], [0, 0, 1, 1], [], []>} : vector<10x256xbf16>, vector<256x8xbf16>, vector<10x8xf32> -> vector<10x8xf32>
    %66 = arith.addf %60, %65 : vector<10x8xf32>
    %c0_64 = arith.constant 0 : index
    %c13 = arith.constant 13 : index
    %c0_65 = arith.constant 0 : index
    %67 = vector.load %arg1[%c0_64, %c13, %c0_65] : memref<1x33x256xbf16, #tpu.memory_space<vmem>>, vector<1x10x256xbf16>
    %68 = vector.shape_cast %67 : vector<1x10x256xbf16> to vector<10x256xbf16>
    %c11_66 = arith.constant 11 : index
    %c0_67 = arith.constant 0 : index
    %c0_68 = arith.constant 0 : index
    %69 = vector.load %arg2[%c11_66, %c0_67, %c0_68] : memref<16x256x8xbf16, #tpu.memory_space<vmem>>, vector<1x256x8xbf16>
    %70 = vector.shape_cast %69 : vector<1x256x8xbf16> to vector<256x8xbf16>
    %cst_69 = arith.constant dense<0.000000e+00> : vector<10x8xf32>
    %71 = tpu.matmul %68, %70, %cst_69 {dimension_numbers = #tpu.dot_dimension_numbers<[1], [0], [0], [1], [0, 0, 1, 1], [], []>} : vector<10x256xbf16>, vector<256x8xbf16>, vector<10x8xf32> -> vector<10x8xf32>
    %72 = arith.addf %66, %71 : vector<10x8xf32>
    %c0_70 = arith.constant 0 : index
    %c15 = arith.constant 15 : index
    %c0_71 = arith.constant 0 : index
    %73 = vector.load %arg1[%c0_70, %c15, %c0_71] : memref<1x33x256xbf16, #tpu.memory_space<vmem>>, vector<1x10x256xbf16>
    %74 = vector.shape_cast %73 : vector<1x10x256xbf16> to vector<10x256xbf16>
    %c12_72 = arith.constant 12 : index
    %c0_73 = arith.constant 0 : index
    %c0_74 = arith.constant 0 : index
    %75 = vector.load %arg2[%c12_72, %c0_73, %c0_74] : memref<16x256x8xbf16, #tpu.memory_space<vmem>>, vector<1x256x8xbf16>
    %76 = vector.shape_cast %75 : vector<1x256x8xbf16> to vector<256x8xbf16>
    %cst_75 = arith.constant dense<0.000000e+00> : vector<10x8xf32>
    %77 = tpu.matmul %74, %76, %cst_75 {dimension_numbers = #tpu.dot_dimension_numbers<[1], [0], [0], [1], [0, 0, 1, 1], [], []>} : vector<10x256xbf16>, vector<256x8xbf16>, vector<10x8xf32> -> vector<10x8xf32>
    %78 = arith.addf %72, %77 : vector<10x8xf32>
    %c0_76 = arith.constant 0 : index
    %c16 = arith.constant 16 : index
    %c0_77 = arith.constant 0 : index
    %79 = vector.load %arg1[%c0_76, %c16, %c0_77] : memref<1x33x256xbf16, #tpu.memory_space<vmem>>, vector<1x10x256xbf16>
    %80 = vector.shape_cast %79 : vector<1x10x256xbf16> to vector<10x256xbf16>
    %c13_78 = arith.constant 13 : index
    %c0_79 = arith.constant 0 : index
    %c0_80 = arith.constant 0 : index
    %81 = vector.load %arg2[%c13_78, %c0_79, %c0_80] : memref<16x256x8xbf16, #tpu.memory_space<vmem>>, vector<1x256x8xbf16>
    %82 = vector.shape_cast %81 : vector<1x256x8xbf16> to vector<256x8xbf16>
    %cst_81 = arith.constant dense<0.000000e+00> : vector<10x8xf32>
    %83 = tpu.matmul %80, %82, %cst_81 {dimension_numbers = #tpu.dot_dimension_numbers<[1], [0], [0], [1], [0, 0, 1, 1], [], []>} : vector<10x256xbf16>, vector<256x8xbf16>, vector<10x8xf32> -> vector<10x8xf32>
    %84 = arith.addf %78, %83 : vector<10x8xf32>
    %c0_82 = arith.constant 0 : index
    %c17 = arith.constant 17 : index
    %c0_83 = arith.constant 0 : index
    %85 = vector.load %arg1[%c0_82, %c17, %c0_83] : memref<1x33x256xbf16, #tpu.memory_space<vmem>>, vector<1x10x256xbf16>
    %86 = vector.shape_cast %85 : vector<1x10x256xbf16> to vector<10x256xbf16>
    %c14 = arith.constant 14 : index
    %c0_84 = arith.constant 0 : index
    %c0_85 = arith.constant 0 : index
    %87 = vector.load %arg2[%c14, %c0_84, %c0_85] : memref<16x256x8xbf16, #tpu.memory_space<vmem>>, vector<1x256x8xbf16>
    %88 = vector.shape_cast %87 : vector<1x256x8xbf16> to vector<256x8xbf16>
    %cst_86 = arith.constant dense<0.000000e+00> : vector<10x8xf32>
    %89 = tpu.matmul %86, %88, %cst_86 {dimension_numbers = #tpu.dot_dimension_numbers<[1], [0], [0], [1], [0, 0, 1, 1], [], []>} : vector<10x256xbf16>, vector<256x8xbf16>, vector<10x8xf32> -> vector<10x8xf32>
    %90 = arith.addf %84, %89 : vector<10x8xf32>
    %c0_87 = arith.constant 0 : index
    %c18 = arith.constant 18 : index
    %c0_88 = arith.constant 0 : index
    %91 = vector.load %arg1[%c0_87, %c18, %c0_88] : memref<1x33x256xbf16, #tpu.memory_space<vmem>>, vector<1x10x256xbf16>
    %92 = vector.shape_cast %91 : vector<1x10x256xbf16> to vector<10x256xbf16>
    %c15_89 = arith.constant 15 : index
    %c0_90 = arith.constant 0 : index
    %c0_91 = arith.constant 0 : index
    %93 = vector.load %arg2[%c15_89, %c0_90, %c0_91] : memref<16x256x8xbf16, #tpu.memory_space<vmem>>, vector<1x256x8xbf16>
    %94 = vector.shape_cast %93 : vector<1x256x8xbf16> to vector<256x8xbf16>
    %cst_92 = arith.constant dense<0.000000e+00> : vector<10x8xf32>
    %95 = tpu.matmul %92, %94, %cst_92 {dimension_numbers = #tpu.dot_dimension_numbers<[1], [0], [0], [1], [0, 0, 1, 1], [], []>} : vector<10x256xbf16>, vector<256x8xbf16>, vector<10x8xf32> -> vector<10x8xf32>
    %96 = arith.addf %90, %95 : vector<10x8xf32>
    %c0_93 = arith.constant 0 : index
    %c0_94 = arith.constant 0 : index
    %97 = vector.load %arg3[%c0_93, %c0_94] : memref<1x8xf32, #tpu.memory_space<vmem>>, vector<1x8xf32>
    %98 = vector.broadcast %97 : vector<1x8xf32> to vector<10x8xf32>
    %99 = arith.addf %96, %98 : vector<10x8xf32>
    %c0_95 = arith.constant 0 : index
    %c0_96 = arith.constant 0 : index
    %c0_97 = arith.constant 0 : index
    %100 = vector.load %arg4[%c0_95, %c0_96, %c0_97] : memref<1x10x8xf32, #tpu.memory_space<vmem>>, vector<1x10x8xf32>
    %101 = vector.shape_cast %100 : vector<1x10x8xf32> to vector<10x8xf32>
    %102 = vector.shape_cast %99 : vector<10x8xf32> to vector<1x10x8xf32>
    tpu.vector_store %arg4[%c0_95, %c0_96, %c0_97], %102 {strides = array<i32>} : memref<1x10x8xf32, #tpu.memory_space<vmem>>, vector<1x10x8xf32>,
    return
  }
  func.func @transform_0(%arg0: i32) -> (i32, i32, i32) {
    %c0_i32 = arith.constant 0 : i32
    %c0_i32_0 = arith.constant 0 : i32
    %c0_i32_1 = arith.constant 0 : i32
    return %arg0, %c0_i32, %c0_i32_0 : i32, i32, i32
  }
  func.func @transform_1(%arg0: i32) -> (i32, i32, i32) {
    %c0_i32 = arith.constant 0 : i32
    %c0_i32_0 = arith.constant 0 : i32
    %c0_i32_1 = arith.constant 0 : i32
    %c0_i32_2 = arith.constant 0 : i32
    return %c0_i32, %c0_i32_0, %c0_i32_1 : i32, i32, i32
  }
  func.func @transform_2(%arg0: i32) -> (i32, i32) {
    %c0_i32 = arith.constant 0 : i32
    %c0_i32_0 = arith.constant 0 : i32
    %c0_i32_1 = arith.constant 0 : i32
    return %c0_i32, %c0_i32_0 : i32, i32
  }
  func.func @transform_3(%arg0: i32) -> (i32, i32, i32) {
    %c0_i32 = arith.constant 0 : i32
    %c0_i32_0 = arith.constant 0 : i32
    %c0_i32_1 = arith.constant 0 : i32
    return %arg0, %c0_i32, %c0_i32_0 : i32, i32, i32
  }
}

</mosaic_0001>

<bundles_post_ra>
// kernel: discriminator_forward.5
= control target key start
LH: loop header
LB: loop body
LE: loop exit
PB: predicated region body
PF: predicated region fallthrough
CT: control target
= control target key end

     0   :  { %s3591_s12 = smov 0   ;;  %s5815_s0 = inlined_call_operand.vmem [shape: bf16[2,297,12], index: 0, kind: input, shape index: {}]   ;;  %s5816_s1 = inlined_call_operand.vmem [shape: bf16[4,12,32], index: 1, kind: input, shape index: {}]   ;;  %s5817_s2 = inlined_call_operand.vmem [shape: f32[1,32], index: 2, kind: input, shape index: {}]   ;;  %s5818_s3 = inlined_call_operand.vmem [shape: f32[2,272,32], index: 3, kind: output, shape index: {}]  }
   0x1 LB: > { %s3270_s13 = sadd.s32 4294967295, %s3568_s12   ;;  %p3274_p0 = scmp.ge.s32.totalorder %s3568_s12, 1  ;;  %s3568_s12 = sphi %s3591_s12, %s13_s12  }
   0x2   : > { %p137_p1 = scmp.lt.s32.totalorder %s3568_s12, 3 }
   0x4   : > { %p138_p2 = pnand %p3274_p0, %p137_p1 }
   0x6   : > { %141 = sbr.rel (%p138_p2) target bundleno = 568 (0x238), region = 32 }
   0xb   : > { %v3370_v0 = vld [vmem:[%s5816_s1] sm:$0xf]  ;;  %v3518_v1 = vld [vmem:[%s5816_s1] sm:$0x30]  ;;  %vm498_vm0 = vcmask 1045504   ;;  %p161_p3 = scmp.lt.s32.totalorder %s3270_s13, 1 }
   0xc   : > { %v3371_v2 = vor.u32 %v3518_v1, %v3370_v0  ;;  %v3480_v3 = vld [vmem:[%s5816_s1 + $0x18] sm:$0xf]  ;;  %v3537_v4 = vld [vmem:[%s5816_s1 + $0x18] sm:$0x30]  ;;  %v3457_v6 = vld [vmem:[%s5816_s1 + $0x10] sm:$0xf] }
   0xd   : > { %v3481_v5 = vor.u32 %v3537_v4, %v3480_v3  ;;  %s5984_s13 = smov (!%p161_p3, %s3270_s13), 1  ;;  %v3536_v7 = vld [vmem:[%s5816_s1 + $0x10] sm:$0x30]  ;;  %v3349_v10 = vld [vmem:[%s5816_s1 + $0x8] sm:$0xf]  ;;  %vm446_vm1 = vcmask 97280  }
   0xe   : > { %v636_v8 = vsel %vm498_vm0, %v3371_v2, 0  ;;  %v3458_v9 = vor.u32 %v3536_v7, %v3457_v6  ;;  %v3519_v11 = vld [vmem:[%s5816_s1 + $0x8] sm:$0x30]  ;;  %s3546_s30 = smul.u32 152, %s5984_s13  ;;  %vm1192_vm2 = vcmask 1046528  }
   0xf   : > { %645 = vmatpush.bf16.msra.mxu1 %v636_v8  ;;  %v1285_v12 = vsel %vm498_vm0, %v3481_v5, 0  ;;  %v3350_v13 = vor.u32 %v3519_v11, %v3349_v10  ;;  %vm300_vm3 = vsmask.f32 7424  ;;  %s3547_s15 = smul.u32 272, %s5984_s13 }
  0x10   : > { %1294 = vmatpush.bf16.msra.mxu3 %v1285_v12  ;;  %v1055_v14 = vsel %vm498_vm0, %v3458_v9, 0  ;;  %s3632_s6 = scalar_lea.vmem %s5815_s0, %s3546_s30 }
  0x11   : > { %1064 = vmatpush.bf16.msra.mxu2 %v1055_v14  ;;  %v500_v15 = vsel %vm498_vm0, %v3350_v13, 0  ;;  %v3501_v16 = vld [vmem:[%s3632_s6] sm:$0xff]  ;;  %v3543_v17 = vld [vmem:[%s3632_s6 + $0x8] sm:$0xf0]  ;;  %v3520_v18 = vld [vmem:[%s3632_s6 + $0x10] sm:$0xff]  ;;  %s5661_s18 = scalar_lea.vmem %s5818_s3, %s3547_s15 }
  0x12   : > { %509 = vmatpush.bf16.msra.mxu0 %v500_v15  ;;  %v3544_v19 = vld [vmem:[%s3632_s6 + $0x8] sm:$0xe]  ;;  %v304_v22 = vshll.u32 %v3501_v16, 16  ;;  %3372 = vmatmul.msk.bf16.vlgmr.msra.gmra.mxu1 %vm446_vm1, %v3501_v16  ;;  %v1194_v24 = vrot.slane %v3520_v18, 1  ;;  %v866_v27 = vshll.u32 %v3520_v18, 16  ;;  %v302_v28 = vshrl.u32 %v3501_v16, 16 }
  0x13   : > { %v3542_v20 = vld [vmem:[%s3632_s6 + $0x8] sm:$0xff]   ;;  %v3545_v23 = vor.u32 %v3544_v19, %v3543_v17  ;;  %v3503_v40 = vld [vmem:[%s3632_s6 + $0x10] sm:$0xff]  ;;  %v3521_v41 = vld [vmem:[%s3632_s6 + $0x18] sm:$0xff]  ;;  %v870_v44 = vshrl.u32 %v3520_v18, 16 }
  0x14   : > { %v3502_v21 = vld [vmem:[%s3632_s6 + $0x8] sm:$0xff]  ;;  %v859_v25 = vshrl.u32 %v3542_v20, 16  ;;  %v861_v26 = vshll.u32 %v3542_v20, 16  ;;  %v306_v31 = vrot.slane %v304_v22, 1  ;;  %v868_v33 = vrot.slane %v866_v27, 1  ;;  %v3504_v54 = vld [vmem:[%s3632_s6 + $0x18] sm:$0xff] }
  0x15   : > { %v309_v29 = vshll.u32 %v3502_v21, 16  ;;  %v1193_v30 = vrot.slane %v3545_v23, 1  ;;  %v313_v42 = vshrl.u32 %v3502_v21, 16  ;;  %v317_v43 = vshll.u32 %v3503_v40, 16  ;;  %v3522_v55 = vld [vmem:[%s3632_s6 + $0x20] sm:$0xff]  ;;  %v3523_v5 = vld [vmem:[%s3632_s6 + $0x28] sm:$0xff] }
  0x16   : > { %v863_v32 = vrot.slane %v861_v26, 1  ;;  %v307_v36 = vor.u32 %v306_v31, %v302_v28  ;;  %v874_v45 = vshll.u32 %v3521_v41, 16  ;;  %v1196_v46 = vrot.slane %v3521_v41, 1  ;;  %v3505_v4 = vld [vmem:[%s3632_s6 + $0x20] sm:$0xff]  ;;  %v3506_v18 = vld [vmem:[%s3632_s6 + $0x28] sm:$0xff]  ;;  %v3524_v19 = vld [vmem:[%s3632_s6 + $0x30] sm:$0xff] }
  0x17   : > { %v311_v34 = vrot.slane %v309_v29, 1  ;;  %v1195_v35 = vsel %vm1192_vm2, %v1193_v30, %v1194_v24  ;;  %v319_v48 = vrot.slane %v317_v43, 1  ;;  %v872_v49 = vor.u32 %v870_v44, %v868_v33 }
  0x18   : > { %3482 = vmatmul.msk.bf16.vlgmr.msra.gmra.mxu3 %vm446_vm1, %v1195_v35  ;;  %v864_v37 = vor.u32 %v863_v32, %v859_v25  ;;  %v876_v50 = vrot.slane %v874_v45, 1  ;;  %v1197_v51 = vsel %vm1192_vm2, %v1194_v24, %v1196_v46  ;;  %v321_v56 = vshrl.u32 %v3503_v40, 16  ;;  %v3507_v32 = vld [vmem:[%s3632_s6 + $0x30] sm:$0xff] }
  0x19   : > { %v312_v38 = vsel %vm300_vm3, %v307_v36, %v311_v34  ;;  %v315_v47 = vor.u32 %v313_v42, %v311_v34  ;;  %v325_v57 = vshll.u32 %v3504_v54, 16  ;;  %v878_v58 = vshrl.u32 %v3521_v41, 16 }
  0x1a   : > { %v869_v39 = vsel %vm300_vm3, %v864_v37, %v868_v33  ;;  %3351 = vmatmul.msk.bf16.vlgmr.msra.gmra.mxu0 %vm446_vm1, %v312_v38  ;;  %v877_v53 = vsel %vm300_vm3, %v872_v49, %v876_v50  ;;  %v882_v59 = vshll.u32 %v3522_v55, 16  ;;  %v1198_v60 = vrot.slane %v3522_v55, 1  ;;  %v3525_v33 = vld [vmem:[%s3632_s6 + $0x38] sm:$0xff] }
  0x1b   : > { %3459 = vmatmul.msk.bf16.vlgmr.msra.gmra.mxu2 %vm446_vm1, %v869_v39  ;;  %v320_v52 = vsel %vm300_vm3, %v315_v47, %v319_v48  ;;  %v323_v61 = vor.u32 %v321_v56, %v319_v48  ;;  %v327_v62 = vrot.slane %v325_v57, 1  ;;  %v880_v63 = vor.u32 %v878_v58, %v876_v50  ;;  %v3696_v48 = vld [vmem:[%s3632_s6 + $0x38] sm:$0xff]  ;;  %v3700_v50 = vld [vmem:[%s3632_s6 + $0x40] sm:$0xff] }
  0x1c   : > { %v884_v0 = vrot.slane %v882_v59, 1  ;;  %v1199_v1 = vsel %vm1192_vm2, %v1196_v46, %v1198_v60  ;;  %v329_v6 = vshrl.u32 %v3504_v54, 16  ;;  %v333_v7 = vshll.u32 %v3505_v4, 16 }
  0x1d   : > { %v328_v2 = vsel %vm300_vm3, %v323_v61, %v327_v62  ;;  %v886_v8 = vshrl.u32 %v3522_v55, 16  ;;  %v890_v9 = vshll.u32 %v3523_v5, 16  ;;  %v1200_v10 = vrot.slane %v3523_v5, 1 }
  0x1e   : > { %v885_v3 = vsel %vm300_vm3, %v880_v63, %v884_v0  ;;  %v331_v11 = vor.u32 %v329_v6, %v327_v62  ;;  %v335_v12 = vrot.slane %v333_v7, 1  ;;  %v337_v20 = vshrl.u32 %v3505_v4, 16 }
  0x1f   : > { %v888_v13 = vor.u32 %v886_v8, %v884_v0  ;;  %v892_v14 = vrot.slane %v890_v9, 1  ;;  %v1201_v15 = vsel %vm1192_vm2, %v1198_v60, %v1200_v10  ;;  %v894_v22 = vshrl.u32 %v3523_v5, 16 }
  0x20   : > { %v336_v16 = vsel %vm300_vm3, %v331_v11, %v335_v12  ;;  %v898_v23 = vshll.u32 %v3524_v19, 16  ;;  %v1202_v24 = vrot.slane %v3524_v19, 1  ;;  %v339_v25 = vor.u32 %v337_v20, %v335_v12 }
  0x21   : > { %v893_v17 = vsel %vm300_vm3, %v888_v13, %v892_v14  ;;  %v896_v27 = vor.u32 %v894_v22, %v892_v14  ;;  %v345_v34 = vshrl.u32 %v3506_v18, 16  ;;  %v349_v35 = vshll.u32 %v3507_v32, 16 }
  0x22   : > { %3373 = vmatmul.msk.bf16.gmra.mxu1 %vm446_vm1, %v3502_v21  ;;  %v341_v21 = vshll.u32 %v3506_v18, 16  ;;  %v900_v28 = vrot.slane %v898_v23, 1  ;;  %v1203_v29 = vsel %vm1192_vm2, %v1200_v10, %v1202_v24  ;;  %v902_v36 = vshrl.u32 %v3524_v19, 16  ;;  %v3731_v19 = vld [vmem:[%s3632_s6 + $0x40] sm:$0xff] }
  0x23   : > { %v906_v37 = vshll.u32 %v3525_v33, 16  ;;  %v1204_v38 = vrot.slane %v3525_v33, 1  ;;  %v1453_v45 = vlaneseq  ;;  %v910_v58 = vshrl.u32 %v3525_v33, 16 }
  0x24   : > { %v343_v26 = vrot.slane %v341_v21, 1  ;;  %v901_v31 = vsel %vm300_vm3, %v896_v27, %v900_v28  ;;  %v904_v41 = vor.u32 %v902_v36, %v900_v28  ;;  %v914_v59 = vshll.u32 %v3700_v50, 16 }
  0x25   : > { %v908_v42 = vrot.slane %v906_v37, 1  ;;  %v1205_v43 = vsel %vm1192_vm2, %v1202_v24, %v1204_v38  ;;  %v3691_v47 = vshrl.u32 %v1453_v45, 7  ;;  %v1206_v60 = vrot.slane %v3700_v50, 1 }
  0x26   : > { %v344_v30 = vsel %vm300_vm3, %v339_v25, %v343_v26  ;;  %v347_v39 = vor.u32 %v345_v34, %v343_v26  ;;  %v916_v6 = vrot.slane %v914_v59, 1  ;;  %v918_v24 = vshrl.u32 %v3700_v50, 16  ;;  %v3768_v59 = vld [vmem:[%s3632_s6 + $0x50] sm:$0xff] }
  0x27   : > { %v909_v46 = vsel %vm300_vm3, %v904_v41, %v908_v42  ;;  %v1491_v49 = vand.u32 65535, %v3691_v47  ;;  %v3707_v0 = vadd.s32 8, %v3691_v47  ;;  %v912_v5 = vor.u32 %v910_v58, %v908_v42 }
  0x28   : > { %3483 = vmatmul.msk.bf16.gmra.mxu3 %vm446_vm1, %v1197_v51  ;;  %v1492_v51 = vshrl.u32 %v3691_v47, 16  ;;  %v1207_v8 = vsel %vm1192_vm2, %v1204_v38, %v1206_v60  ;;  %v920_v38 = vor.u32 %v918_v24, %v916_v6  ;;  %v3753_v45 = vadd.s32 24, %v3691_v47 }
  0x29   : > { %v1494_v55 = vmul.u32 61681, %v1491_v49  ;;  %v1520_v7 = vand.u32 65535, %v3707_v0  ;;  %v1521_v12 = vshrl.u32 %v3707_v0, 16  ;;  %v917_v14 = vsel %vm300_vm3, %v912_v5, %v916_v6 }
  0x2a   : > { %3352 = vmatmul.msk.bf16.gmra.mxu0 %vm446_vm1, %v320_v52  ;;  %v1495_v52 = vmul.u32 61680, %v1491_v49  ;;  %v1496_v56 = vmul.u32 61681, %v1492_v51  ;;  %v1497_v62 = vmul.u32 61680, %v1492_v51  ;;  %v1579_v50 = vshrl.u32 %v3753_v45, 16 }
  0x2b   : > { %3460 = vmatmul.msk.bf16.gmra.mxu2 %vm446_vm1, %v877_v53  ;;  %v353_v53 = vshrl.u32 %v3507_v32, 16  ;;  %v3718_v13 = vmul.u32 61680, %v1520_v7  ;;  %v1523_v20 = vmul.u32 61681, %v1520_v7  ;;  %v3733_v21 = vmul.u32 61681, %v1521_v12 }
  0x2c   : > { %v1498_v57 = vshll.u32 %v1495_v52, 16  ;;  %v1500_v61 = vshll.u32 %v1496_v56, 16  ;;  %v1501_v27 = vshrl.u32 %v1496_v56, 16  ;;  %v1526_v41 = vmul.u32 61680, %v1521_v12 }
  0x2d   : > { %v1527_v22 = vshll.u32 %v3718_v13, 16  ;;  %v3778_v6 = vmul.u32 61681, %v1579_v50  ;;  %v1210_v7 = vrot.slane %v3768_v59, 1 }
  0x2e   : > { %vm1502_vm4 = vc.u32 %v1494_v55, %v1498_v57  ;;  %v1504_v63 = vadd.s32 %v1498_v57, %v1494_v55  ;;  %v1578_v57 = vand.u32 65535, %v3753_v45 }
  0x2f   : > { %vm1531_vm6 = vc.u32 %v1523_v20, %v1527_v22  ;;  %v1533_v33 = vadd.s32 %v1527_v22, %v1523_v20 }
  0x30   : > { %vm1506_vm5 = vc.u32 %v1504_v63, %v1500_v61  ;;  %v1582_v5 = vmul.u32 61680, %v1578_v57 }
  0x32   : > { %3374 = vmatmul.msk.bf16.gmra.mxu1 %vm446_vm1, %v3503_v40  ;;  %v351_v40 = vrot.slane %v349_v35, 1  ;;  %v1585_v12 = vshll.u32 %v1582_v5, 16 }
  0x34   : > { %v352_v44 = vsel %vm300_vm3, %v347_v39, %v351_v40 }
  0x38   : > { %3484 = vmatmul.msk.bf16.gmra.mxu3 %vm446_vm1, %v1199_v1  ;;  %v355_v1 = vor.u32 %v353_v53, %v351_v40 }
  0x3a   : > { %3353 = vmatmul.msk.bf16.gmra.mxu0 %vm446_vm1, %v328_v2 }
  0x3b   : > { %3461 = vmatmul.msk.bf16.gmra.mxu2 %vm446_vm1, %v885_v3  ;;  %v5821_v3 = vmov 0  }
  0x3c   : > { %v1507_v11 = vsel %vm1506_vm5, 1, %v5821_v3 }
  0x42   : > { %3375 = vmatmul.msk.bf16.gmra.mxu1 %vm446_vm1, %v3504_v54  ;;  %v357_v54 = vshll.u32 %v3696_v48, 16 }
  0x44   : > { %v359_v2 = vrot.slane %v357_v54, 1 }
  0x46   : > { %v360_v10 = vsel %vm300_vm3, %v355_v1, %v359_v2 }
  0x48   : > { %3485 = vmatmul.msk.bf16.gmra.mxu3 %vm446_vm1, %v1201_v15  ;;  %v3724_v15 = vld [vmem:[%s3632_s6 + $0x48] sm:$0xff] }
  0x49   : > { %v922_v26 = vshll.u32 %v3724_v15, 16  ;;  %v1208_v37 = vrot.slane %v3724_v15, 1 }
  0x4a   : > { %3354 = vmatmul.msk.bf16.gmra.mxu0 %vm446_vm1, %v336_v16  ;;  %v1499_v16 = vshrl.u32 %v1495_v52, 16 }
  0x4b   : > { %3462 = vmatmul.msk.bf16.gmra.mxu2 %vm446_vm1, %v893_v17  ;;  %v924_v39 = vrot.slane %v922_v26, 1 }
  0x4d   : > { %v925_v58 = vsel %vm300_vm3, %v920_v38, %v924_v39 }
  0x52   : > { %3376 = vmatmul.msk.bf16.gmra.mxu1 %vm446_vm1, %v3505_v4  ;;  %v1503_v4 = vsel %vm1502_vm4, 1, %v5821_v3 }
  0x53   : > { %v1505_v9 = vadd.s32 %v1503_v4, %v1497_v62  ;;  %v1528_v62 = vshrl.u32 %v3718_v13, 16  ;;  %v1581_v4 = vmul.u32 61681, %v1578_v57  ;;  %v1587_v13 = vshll.u32 %v3778_v6, 16 }
  0x55   : > { %v1509_v17 = vadd.s32 %v1507_v11, %v1505_v9  ;;  %v930_v9 = vshll.u32 %v3768_v59, 16  ;;  %v1584_v11 = vmul.u32 61680, %v1579_v50  ;;  %vm1589_vm10 = vc.u32 %v1581_v4, %v1585_v12 }
  0x56   : > { %v1588_v50 = vshrl.u32 %v3778_v6, 16 }
  0x57   : > { %v1510_v28 = vadd.s32 %v1509_v17, %v1499_v16  ;;  %v1530_v17 = vshrl.u32 %v3733_v21, 16 }
  0x58   : > { %3486 = vmatmul.msk.bf16.gmra.mxu3 %vm446_vm1, %v1203_v29 }
  0x59   : > { %v1511_v40 = vadd.s32 %v1510_v28, %v1501_v27  ;;  %v932_v28 = vrot.slane %v930_v9, 1 }
  0x5a   : > { %3355 = vmatmul.msk.bf16.gmra.mxu0 %vm446_vm1, %v344_v30  ;;  %v361_v30 = vshrl.u32 %v3696_v48, 16 }
  0x5b   : > { %3463 = vmatmul.msk.bf16.gmra.mxu2 %vm446_vm1, %v901_v31  ;;  %v365_v31 = vshll.u32 %v3731_v19, 16  ;;  %v1512_v51 = vshrl.u32 %v1511_v40, 4 }
  0x5c   : > { %v363_v42 = vor.u32 %v361_v30, %v359_v2  ;;  %v1590_v30 = vsel %vm1589_vm10, 1, %v5821_v3 }
  0x5d   : > { %v1513_v61 = vmul.u32 17, %v1512_v51 }
  0x62   : > { %3377 = vmatmul.msk.bf16.gmra.mxu1 %vm446_vm1, %v3506_v18  ;;  %v3727_v18 = vadd.s32 16, %v3691_v47 }
  0x64   : > { %v1549_v23 = vand.u32 65535, %v3727_v18  ;;  %v1550_v25 = vshrl.u32 %v3727_v18, 16 }
  0x66   : > { %v3740_v29 = vmul.u32 61680, %v1549_v23  ;;  %v1552_v34 = vmul.u32 61681, %v1549_v23  ;;  %v3745_v35 = vmul.u32 61681, %v1550_v25  ;;  %v1555_v53 = vmul.u32 61680, %v1550_v25 }
  0x67   : > { %v3792_v23 = vsub.s32 %v3691_v47, %v1513_v61  ;;  %v1591_v25 = vadd.s32 %v1585_v12, %v1581_v4 }
  0x68   : > { %3487 = vmatmul.msk.bf16.gmra.mxu3 %vm446_vm1, %v1205_v43  ;;  %v1556_v36 = vshll.u32 %v3740_v29, 16  ;;  %v367_v43 = vrot.slane %v365_v31, 1  ;;  %v1557_v20 = vshrl.u32 %v3740_v29, 16  ;;  %v1559_v29 = vshrl.u32 %v3745_v35, 16 }
  0x69   : > { %vm1593_vm11 = vc.u32 %v1591_v25, %v1587_v13  ;;  %vm2474_vm12 = vcmp.ne.s32.totalorder %v3792_v23, 0  ;;  %vm2508_vm13 = vcmp.lt.s32.totalorder %v3792_v23, 0 }
  0x6a   : > { %3356 = vmatmul.msk.bf16.gmra.mxu0 %vm446_vm1, %v352_v44  ;;  %v1532_v44 = vsel %vm1531_vm6, 1, %v5821_v3  ;;  %vm1560_vm8 = vc.u32 %v1552_v34, %v1556_v36  ;;  %v1562_v49 = vadd.s32 %v1556_v36, %v1552_v34  ;;  %v368_v54 = vsel %vm300_vm3, %v363_v42, %v367_v43  ;;  %vm3821_vm14 = vmand %vm2508_vm13, %vm2474_vm12 }
  0x6b   : > { %3464 = vmatmul.msk.bf16.gmra.mxu2 %vm446_vm1, %v909_v46  ;;  %v1558_v46 = vshll.u32 %v3745_v35, 16  ;;  %v1534_v52 = vadd.s32 %v1532_v44, %v1526_v41  ;;  %v1561_v56 = vsel %vm1560_vm8, 1, %v5821_v3  ;;  %v1594_v36 = vsel %vm1593_vm11, 1, %v5821_v3  ;;  %v3817_v44 = vld [vmem:[%s3632_s6 + $0x58] sm:$0xff] }
  0x6c   : > { %v1563_v1 = vadd.s32 %v1561_v56, %v1555_v53  ;;  %v1586_v41 = vshrl.u32 %v1582_v5, 16  ;;  %v1211_v35 = vsel %vm1192_vm2, %v1208_v37, %v1210_v7  ;;  %v3830_v56 = vld [vmem:[%s3632_s6 + $0x50] sm:$0xff]  ;;  %vm2780_vm12 = vcmask 261120  }
  0x6d   : > { %vm1564_vm9 = vc.u32 %v1562_v49, %v1558_v46  ;;  %v3863_v49 = vadd.s32 48, %v3691_v47 }
  0x6e   : > { %v1565_v2 = vsel %vm1564_vm9, 1, %v5821_v3 }
  0x6f   : > { %v1567_v22 = vadd.s32 %v1565_v2, %v1563_v1  ;;  %v938_v1 = vshll.u32 %v3817_v44, 16 }
  0x71   : > { %v1568_v34 = vadd.s32 %v1567_v22, %v1557_v20 }
  0x72   : > { %3378 = vmatmul.msk.bf16.gmra.mxu1 %vm446_vm1, %v3507_v32  ;;  %v1529_v32 = vshll.u32 %v3733_v21, 16 }
  0x74   : > { %vm1535_vm7 = vc.u32 %v1533_v33, %v1529_v32  ;;  %v1592_v33 = vadd.s32 %v1590_v30, %v1584_v11  ;;  %v381_v11 = vshll.u32 %v3830_v56, 16 }
  0x75   : > { %v1536_v55 = vsel %vm1535_vm7, 1, %v5821_v3 }
  0x76   : > { %v1538_v63 = vadd.s32 %v1536_v55, %v1534_v52  ;;  %v1596_v42 = vadd.s32 %v1594_v36, %v1592_v33  ;;  %v934_v55 = vshrl.u32 %v3768_v59, 16 }
  0x78   : > { %3488 = vmatmul.msk.bf16.gmra.mxu3 %vm446_vm1, %v1207_v8  ;;  %v926_v8 = vshrl.u32 %v3724_v15, 16  ;;  %v1539_v24 = vadd.s32 %v1538_v63, %v1528_v62  ;;  %v1597_v61 = vadd.s32 %v1596_v42, %v1586_v41 }
  0x7a   : > { %3357 = vmatmul.msk.bf16.gmra.mxu0 %vm446_vm1, %v360_v10  ;;  %v369_v10 = vshrl.u32 %v3731_v19, 16  ;;  %v928_v27 = vor.u32 %v926_v8, %v924_v39  ;;  %v1540_v40 = vadd.s32 %v1539_v24, %v1530_v17  ;;  %v936_v17 = vor.u32 %v934_v55, %v932_v28  ;;  %v3886_v55 = vld [vmem:[%s3632_s6 + $0x60] sm:$0xff] }
  0x7b   : > { %3465 = vmatmul.msk.bf16.gmra.mxu2 %vm446_vm1, %v917_v14  ;;  %v3786_v14 = vadd.s32 32, %v3691_v47  ;;  %v1598_v20 = vadd.s32 %v1597_v61, %v1588_v50  ;;  %v3896_v50 = vld [vmem:[%s3632_s6 + $0x58] sm:$0xff] }
  0x7c   : > { %v371_v32 = vor.u32 %v369_v10, %v367_v43  ;;  %v3806_v43 = vadd.s32 40, %v3691_v47  ;;  %v933_v15 = vsel %vm300_vm3, %v928_v27, %v932_v28  ;;  %v1212_v10 = vrot.slane %v3817_v44, 1 }
  0x7d   : > { %v1607_v31 = vand.u32 65535, %v3786_v14  ;;  %v1608_v21 = vshrl.u32 %v3786_v14, 16  ;;  %v1599_v42 = vshrl.u32 %v1598_v20, 4  ;;  %v1666_v20 = vshrl.u32 %v3863_v49, 16 }
  0x7e   : > { %v1636_v62 = vand.u32 65535, %v3806_v43  ;;  %v1637_v4 = vshrl.u32 %v3806_v43, 16 }
  0x7f   : > { %v3799_v38 = vmul.u32 61680, %v1607_v31  ;;  %v3819_v46 = vmul.u32 61681, %v1608_v21  ;;  %v1610_v51 = vmul.u32 61681, %v1607_v31  ;;  %v1613_v6 = vmul.u32 61680, %v1608_v21 }
  0x80   : > { %v3848_v22 = vmul.u32 61680, %v1636_v62  ;;  %v1639_v24 = vmul.u32 61681, %v1636_v62  ;;  %v3852_v25 = vmul.u32 61681, %v1637_v4 }
  0x81   : > { %v1614_v52 = vshll.u32 %v3799_v38, 16  ;;  %v1616_v2 = vshll.u32 %v3819_v46, 16  ;;  %v1617_v61 = vshrl.u32 %v3819_v46, 16 }
  0x82   : > { %3379 = vmatmul.msk.bf16.gmra.mxu1 %vm446_vm1, %v3696_v48  ;;  %v1209_v48 = vsel %vm1192_vm2, %v1206_v60, %v1208_v37  ;;  %v3773_v60 = vld [vmem:[%s3632_s6 + $0x48] sm:$0xff] }
  0x83   : > { %v373_v16 = vshll.u32 %v3773_v60, 16  ;;  %v377_v5 = vshrl.u32 %v3773_v60, 16  ;;  %vm1618_vm15 = vc.u32 %v1610_v51, %v1614_v52  ;;  %v1620_v13 = vadd.s32 %v1614_v52, %v1610_v51 }
  0x84   : > { %v1619_v12 = vsel %vm1618_vm15, 1, %v5821_v3  ;;  %v1615_v51 = vshrl.u32 %v3799_v38, 16 }
  0x85   : > { %v375_v39 = vrot.slane %v373_v16, 1  ;;  %vm1622_vm0 = vc.u32 %v1620_v13, %v1616_v2  ;;  %v1621_v31 = vadd.s32 %v1619_v12, %v1613_v6  ;;  %v1214_v12 = vrot.slane %v3886_v55, 1 }
  0x86   : > { %v1623_v28 = vsel %vm1622_vm0, 1, %v5821_v3  ;;  %v942_v13 = vshrl.u32 %v3817_v44, 16 }
  0x87   : > { %v376_v37 = vsel %vm300_vm3, %v371_v32, %v375_v39  ;;  %v379_v27 = vor.u32 %v377_v5, %v375_v39  ;;  %v1643_v32 = vshll.u32 %v3848_v22, 16  ;;  %v1625_v52 = vadd.s32 %v1623_v28, %v1621_v31 }
  0x88   : > { %3489 = vmatmul.msk.bf16.gmra.mxu3 %vm446_vm1, %v1209_v48  ;;  %v1569_v48 = vadd.s32 %v1568_v34, %v1559_v29  ;;  %v3855_v29 = vrot.slane %v381_v11, 1  ;;  %v1642_v34 = vmul.u32 61680, %v1637_v4  ;;  %v1644_v5 = vshrl.u32 %v3848_v22, 16 }
  0x89   : > { %vm1647_vm4 = vc.u32 %v1639_v24, %v1643_v32  ;;  %v1626_v62 = vadd.s32 %v1625_v52, %v1615_v51 }
  0x8a   : > { %3358 = vmatmul.msk.bf16.gmra.mxu0 %vm446_vm1, %v368_v54  ;;  %v1541_v54 = vshrl.u32 %v1540_v40, 4  ;;  %v1570_v8 = vshrl.u32 %v1569_v48, 4 }
  0x8b   : > { %3466 = vmatmul.msk.bf16.gmra.mxu2 %vm446_vm1, %v925_v58 }
  0x8c   : > { %v1542_v16 = vmul.u32 17, %v1541_v54  ;;  %v1571_v30 = vmul.u32 17, %v1570_v8  ;;  %v384_v54 = vsel %vm300_vm3, %v379_v27, %v3855_v29  ;;  %v1627_v27 = vadd.s32 %v1626_v62, %v1617_v61 }
  0x8e   : > { %v3859_v41 = vsub.s32 %v3707_v0, %v1542_v16  ;;  %v3866_v48 = vsub.s32 %v3727_v18, %v1571_v30  ;;  %v1628_v44 = vshrl.u32 %v1627_v27, 4 }
  0x8f   : > { %v647_v26 = vpop.f32.mrf.mxu1 }
  0x90   : > { %vm2475_vm7 = vcmp.ne.s32.totalorder %v3859_v41, 0  ;;  %vm2509_vm8 = vcmp.lt.s32.totalorder %v3859_v41, 0  ;;  %vm2476_vm9 = vcmp.ne.s32.totalorder %v3866_v48, 0  ;;  %vm2510_vm10 = vcmp.lt.s32.totalorder %v3866_v48, 0 }
  0x91   : > { %v3905_v4 = vadd.s32 17, %v3866_v48  ;;  %vm3912_vm11 = vmand %vm2509_vm8, %vm2475_vm7  ;;  %v1629_v62 = vmul.u32 17, %v1628_v44 }
  0x92   : > { %3380 = vmatmul.msk.bf16.gmra.mxu1 %vm446_vm1, %v3731_v19  ;;  %v3814_v19 = vadd.s32 17, %v3792_v23  ;;  %vm3926_vm13 = vmand %vm2510_vm10, %vm2476_vm9 }
  0x93   : > { %v2612_v28 = vsel %vm3926_vm13, %v3905_v4, %v3866_v48  ;;  %v4026_v27 = vsub.s32 %v3786_v14, %v1629_v62 }
  0x94   : > { %v2610_v63 = vsel %vm3821_vm14, %v3814_v19, %v3792_v23  ;;  %v3850_v23 = vrot.slane %v938_v1, 1  ;;  %v1649_v19 = vadd.s32 %v1643_v32, %v1639_v24  ;;  %v385_v24 = vshrl.u32 %v3830_v56, 16 }
  0x95   : > { %vm3877_vm6 = vcmp.lt.s32.totalorder %v2610_v63, 16  ;;  %v3902_v63 = vld [vmem:[%s5817_s2] ss:$0 sm:$0xff]  ;;  %vm4017_vm7 = vcmp.lt.s32.totalorder %v2612_v28, 16  ;;  %vm2478_vm9 = vcmp.ne.s32.totalorder %v4026_v27, 0  ;;  %vm2512_vm10 = vcmp.lt.s32.totalorder %v4026_v27, 0 }
  0x96   : > { %v941_v38 = vsel %vm300_vm3, %v936_v17, %v3850_v23 }
  0x97   : > { %v511_v53 = vpop.f32.mrf.mxu0  ;;  %v649_v58 = vpop.f32.mrf.mxu1 }
  0x98   : > { %3490 = vmatmul.msk.bf16.gmra.mxu3 %vm446_vm1, %v1211_v35  ;;  %v648_v57 = vadd.f32 %v647_v26, %v511_v53  ;;  %v1645_v35 = vshll.u32 %v3852_v25, 16  ;;  %v1648_v53 = vsel %vm1647_vm4, 1, %v5821_v3 }
  0x9a   : > { %3359 = vmatmul.msk.bf16.gmra.mxu0 %vm446_vm1, %v376_v37  ;;  %v1650_v37 = vadd.s32 %v1648_v53, %v1642_v34  ;;  %vm1651_vm5 = vc.u32 %v1649_v19, %v1645_v35  ;;  %v1215_v34 = vsel %vm1192_vm2, %v1212_v10, %v1214_v12  ;;  %v387_v19 = vor.u32 %v385_v24, %v3855_v29 }
  0x9b   : > { %3467 = vmatmul.msk.bf16.gmra.mxu2 %vm446_vm1, %v933_v15  ;;  %v1296_v9 = vpop.f32.mrf.mxu3  ;;  %v1213_v15 = vsel %vm1192_vm2, %v1210_v7, %v1212_v10  ;;  %v1652_v59 = vsel %vm1651_vm5, 1, %v5821_v3  ;;  %v2577_v7 = vadd.s32 17, %v3859_v41 }
  0x9c   : > { %v1654_v8 = vadd.s32 %v1652_v59, %v1650_v37 }
  0x9d   : > { %v2611_v31 = vsel %vm3912_vm11, %v2577_v7, %v3859_v41  ;;  %v3960_v41 = vmul.u32 61681, %v1666_v20  ;;  %v1671_v7 = vmul.u32 61680, %v1666_v20 }
  0x9e   : > { %v1066_v26 = vpop.f32.mrf.mxu2  ;;  %vm3976_vm0 = vcmp.lt.s32.totalorder %v2611_v31, 16 }
  0x9f   : > { %v1151_v33 = vadd.f32 %v1066_v26, %v648_v57  ;;  %v513_v21 = vpop.f32.mrf.mxu0  ;;  %v652_v40 = vpop.f32.mrf.mxu1  ;;  %v1665_v57 = vand.u32 65535, %v3863_v49  ;;  %v389_v26 = vshll.u32 %v3896_v50, 16 }
  0xa0   : > { %v650_v36 = vadd.f32 %v649_v58, %v513_v21  ;;  %v1655_v21 = vadd.s32 %v1654_v8, %v1644_v5  ;;  %v4002_v8 = vld [vmem:[%s3632_s6 + $0x60] sm:$0xff] }
  0xa1   : > { %v1381_v39 = vadd.f32 %v1296_v9, %v1151_v33  ;;  %v3931_v22 = vmul.u32 61680, %v1665_v57  ;;  %v1646_v33 = vshrl.u32 %v3852_v25, 16  ;;  %v1668_v25 = vmul.u32 61681, %v1665_v57 }
  0xa2   : > { %3381 = vmatmul.msk.bf16.gmra.mxu1 %vm446_vm1, %v3773_v60  ;;  %v1600_v60 = vmul.u32 17, %v1599_v42  ;;  %v3964_v48 = vrot.slane %v389_v26, 1  ;;  %v1674_v57 = vshll.u32 %v3960_v41, 16 }
  0xa3   : > { %v1298_v0 = vpop.f32.mrf.mxu3  ;;  %v3938_v30 = vadd.f32 %v3902_v63, %v1381_v39  ;;  %v1672_v42 = vshll.u32 %v3931_v22, 16  ;;  %v1656_v53 = vadd.s32 %v1655_v21, %v1646_v33 }
  0xa4   : > { %v3918_v11 = vsub.s32 %v3753_v45, %v1600_v60  ;;  %v946_v45 = vshll.u32 %v3886_v55, 16  ;;  %v392_v61 = vsel %vm300_vm3, %v387_v19, %v3964_v48 }
  0xa5   : > { %v2746_v10 = vsel %vm3877_vm6, %v3938_v30, 0.0  ;;  %vm1676_vm5 = vc.u32 %v1668_v25, %v1672_v42  ;;  %v1657_v5 = vshrl.u32 %v1656_v53, 4  ;;  %v1678_v46 = vadd.s32 %v1672_v42, %v1668_v25 }
  0xa6   : > { %v1068_v58 = vpop.f32.mrf.mxu2  ;;  %vm2477_vm14 = vcmp.ne.s32.totalorder %v3918_v11, 0  ;;  %vm2511_vm15 = vcmp.lt.s32.totalorder %v3918_v11, 0  ;;  %v948_v39 = vrot.slane %v946_v45, 1  ;;  %v3970_v52 = vadd.s32 17, %v3918_v11 }
  0xa7   : > { %v1152_v1 = vadd.f32 %v1068_v58, %v650_v36  ;;  %v516_v2 = vpop.f32.mrf.mxu0  ;;  %v654_v9 = vpop.f32.mrf.mxu1  ;;  %v944_v36 = vor.u32 %v942_v13, %v3850_v23  ;;  %vm3984_vm4 = vmand %vm2511_vm15, %vm2477_vm14  ;;  %vm1680_vm8 = vc.u32 %v1678_v46, %v1674_v57  ;;  %v1658_v28 = vmul.u32 17, %v1657_v5 }
  0xa8   : > { %3491 = vmatmul.msk.bf16.gmra.mxu3 %vm446_vm1, %v1213_v15  ;;  %v653_v6 = vadd.f32 %v652_v40, %v516_v2  ;;  %v3957_v40 = vld [vmem:[%s3632_s6 + $0x68] sm:$0xff]  ;;  %v2613_v4 = vsel %vm3984_vm4, %v3970_v52, %v3918_v11  ;;  %v1681_v31 = vsel %vm1680_vm8, 1, %v5821_v3  ;;  %v397_v25 = vshll.u32 %v4002_v8, 16  ;;  %vm4081_vm4 = vmand %vm2512_vm10, %vm2478_vm9 }
  0xa9   : > { %v1382_v16 = vadd.f32 %v1298_v0, %v1152_v1  ;;  %v3974_v0 = vmul.f32 %v3938_v30, %v3938_v30  ;;  %v954_v60 = vshll.u32 %v3957_v40, 16  ;;  %v949_v58 = vsel %vm300_vm3, %v944_v36, %v948_v39 }
  0xaa   : > { %3360 = vmatmul.msk.bf16.gmra.mxu0 %vm446_vm1, %v384_v54  ;;  %v950_v54 = vshrl.u32 %v3886_v55, 16  ;;  %v1677_v1 = vsel %vm1676_vm5, 1, %v5821_v3  ;;  %v1216_v11 = vrot.slane %v3957_v40, 1  ;;  %v393_v36 = vshrl.u32 %v3896_v50, 16 }
  0xab   : > { %3468 = vmatmul.msk.bf16.gmra.mxu2 %vm446_vm1, %v941_v38  ;;  %v1301_v32 = vpop.f32.mrf.mxu3  ;;  %v2888_v13 = vsel %vm3877_vm6, %v3974_v0, 0.0  ;;  %v4014_v17 = vadd.f32 %v3902_v63, %v1382_v16  ;;  %v4023_v45 = vrot.slane %v954_v60, 1  ;;  %v1679_v24 = vadd.s32 %v1677_v1, %v1671_v7 }
  0xac   : > { %v4021_v20 = vor.u32 %v950_v54, %v948_v39  ;;  %vm4061_vm11 = vcmp.lt.s32.totalorder %v2613_v4, 16 }
  0xad   : > { %v2855_v42 = vmul.f32 %v4014_v17, %v4014_v17  ;;  %v2747_v53 = vsel %vm3976_vm0, %v4014_v17, 0.0 }
  0xae   : > { %v1071_v35 = vpop.f32.mrf.mxu2  ;;  %v2782_v1 = vsel %vm2780_vm12, %v2747_v53, 0.0  ;;  %v957_v55 = vsel %vm300_vm3, %v4021_v20, %v4023_v45 }
  0xaf   : > { %v1153_v23 = vadd.f32 %v1071_v35, %v653_v6  ;;  %v518_v51 = vpop.f32.mrf.mxu0  ;;  %v657_v37 = vpop.f32.mrf.mxu1  ;;  %v4005_v6 = vadd.s32 56, %v3691_v47  ;;  %v2889_v54 = vsel %vm3976_vm0, %v2855_v42, 0.0  ;;  %v1217_v42 = vsel %vm1192_vm2, %v1214_v12, %v1216_v11  ;;  %v4123_v12 = vld [vmem:[%s3632_s6 + $0x70] sm:$0xff] }
  0xb0   : > { %v655_v29 = vadd.f32 %v654_v9, %v518_v51  ;;  %v4008_v9 = vsel %vm2780_vm12, %v2746_v10, 0.0  ;;  %v1673_v10 = vshrl.u32 %v3931_v22, 16  ;;  %v4050_v22 = vadd.s32 17, %v4026_v27 }
  0xb1   : > { %v1383_v59 = vadd.f32 %v1301_v32, %v1153_v23  ;;  %v1694_v16 = vand.u32 65535, %v4005_v6  ;;  %v1695_v32 = vshrl.u32 %v4005_v6, 16  ;;  %v1683_v23 = vadd.s32 %v1681_v31, %v1679_v24 }
  0xb2   : > { %3382 = vmatmul.msk.bf16.gmra.mxu1 %vm446_vm1, %v3830_v56  ;;  %v2923_v4 = vsel %vm2780_vm12, %v2889_v54, 0.0  ;;  %v2614_v0 = vsel %vm4081_vm4, %v4050_v22, %v4026_v27  ;;  %v4137_v22 = vadd.s32 72, %v3691_v47 }
  0xb3   : > { %v1303_v2 = vpop.f32.mrf.mxu3  ;;  %v1697_v39 = vmul.u32 61681, %v1694_v16  ;;  %v4036_v19 = vmul.u32 61680, %v1694_v16  ;;  %v4039_v51 = vmul.u32 61681, %v1695_v32  ;;  %v1700_v52 = vmul.u32 61680, %v1695_v32 }
  0xb4   : > { %v4059_v60 = vadd.f32 %v3902_v63, %v1383_v59  ;;  %v4087_v16 = vadd.s32 64, %v3691_v47  ;;  %vm4158_vm6 = vcmp.lt.s32.totalorder %v2614_v0, 16 }
  0xb5   : > { %v1703_v38 = vshll.u32 %v4039_v51, 16 }
  0xb6   : > { %v1073_v26 = vpop.f32.mrf.mxu2  ;;  %v2856_v32 = vmul.f32 %v4059_v60, %v4059_v60  ;;  %v1724_v20 = vshrl.u32 %v4087_v16, 16 }
  0xb7   : > { %v1154_v33 = vadd.f32 %v1073_v26, %v655_v29  ;;  %v521_v21 = vpop.f32.mrf.mxu0  ;;  %v659_v35 = vpop.f32.mrf.mxu1 }
  0xb8   : > { %3492 = vmatmul.msk.bf16.gmra.mxu3 %vm446_vm1, %v1215_v34  ;;  %v658_v14 = vadd.f32 %v657_v37, %v521_v21  ;;  %v1701_v34 = vshll.u32 %v4036_v19, 16  ;;  %v4053_v37 = vsub.s32 %v3806_v43, %v1658_v28  ;;  %v1684_v43 = vadd.s32 %v1683_v23, %v1673_v10 }
  0xb9   : > { %v1384_v44 = vadd.f32 %v1303_v2, %v1154_v33  ;;  %v4069_v2 = vrot.slane %v397_v25, 1  ;;  %v1723_v23 = vand.u32 65535, %v4087_v16  ;;  %v2890_v27 = vsel %vm4017_vm7, %v2856_v32, 0.0 }
  0xba   : > { %3361 = vmatmul.msk.bf16.gmra.mxu0 %vm446_vm1, %v392_v61  ;;  %vm1705_vm13 = vc.u32 %v1697_v39, %v1701_v34  ;;  %v1707_v57 = vadd.s32 %v1701_v34, %v1697_v39  ;;  %v1675_v61 = vshrl.u32 %v3960_v41, 16  ;;  %vm2479_vm15 = vcmp.ne.s32.totalorder %v4053_v37, 0 }
  0xbb   : > { %3469 = vmatmul.msk.bf16.gmra.mxu2 %vm446_vm1, %v949_v58  ;;  %v1306_v29 = vpop.f32.mrf.mxu3  ;;  %v395_v58 = vor.u32 %v393_v36, %v3964_v48  ;;  %v1706_v62 = vsel %vm1705_vm13, 1, %v5821_v3  ;;  %vm2513_vm0 = vcmp.lt.s32.totalorder %v4053_v37, 0  ;;  %v2748_v41 = vsel %vm4017_vm7, %v4059_v60, 0.0 }
  0xbc   : > { %v1708_v59 = vadd.s32 %v1706_v62, %v1700_v52  ;;  %vm1709_vm14 = vc.u32 %v1707_v57, %v1703_v38  ;;  %v2581_v21 = vadd.s32 17, %v4053_v37  ;;  %v1685_v28 = vadd.s32 %v1684_v43, %v1675_v61  ;;  %vm4099_vm5 = vmand %vm2513_vm0, %vm2479_vm15 }
  0xbd   : > { %v1710_v31 = vsel %vm1709_vm14, 1, %v5821_v3  ;;  %v2922_v36 = vsel %vm2780_vm12, %v2888_v13, 0.0  ;;  %v2784_v39 = vsel %vm2780_vm12, %v2748_v41, 0.0  ;;  %v4111_v18 = vadd.f32 %v3902_v63, %v1384_v44 }
  0xbe   : > { %v1076_v15 = vpop.f32.mrf.mxu2  ;;  %v2924_v10 = vadd.f32 %v2923_v4, %v2922_v36  ;;  %v400_v44 = vsel %vm300_vm3, %v395_v58, %v4069_v2  ;;  %v1686_v52 = vshrl.u32 %v1685_v28, 4  ;;  %v1218_v57 = vrot.slane %v4123_v12, 1  ;;  %v4172_v28 = vld [vmem:[%s3632_s6 + $0x68] sm:$0xff] }
  0xbf   : > { %v1155_v5 = vadd.f32 %v1076_v15, %v658_v14  ;;  %v523_v46 = vpop.f32.mrf.mxu0  ;;  %v662_v26 = vpop.f32.mrf.mxu1  ;;  %v1702_v14 = vshrl.u32 %v4036_v19, 16  ;;  %v2783_v19 = vadd.f32 %v2782_v1, %v4008_v9  ;;  %v1704_v9 = vshrl.u32 %v4039_v51, 16 }
  0xc0   : > { %v660_v24 = vadd.f32 %v659_v35, %v523_v46  ;;  %v1712_v35 = vadd.s32 %v1710_v31, %v1708_v59  ;;  %v2749_v56 = vsel %vm4061_vm11, %v4111_v18, 0.0  ;;  %v2925_v58 = vsel %vm2780_vm12, %v2890_v27, 0.0 }
  0xc1   : > { %v4091_v33 = vadd.f32 %v1306_v29, %v1155_v5  ;;  %v2785_v34 = vadd.f32 %v2784_v39, %v2783_v19  ;;  %v1726_v43 = vmul.u32 61681, %v1723_v23  ;;  %v4146_v62 = vmul.u32 61680, %v1723_v23 }
  0xc2   : > { %3383 = vmatmul.msk.bf16.gmra.mxu1 %vm446_vm1, %v3896_v50  ;;  %v2615_v50 = vsel %vm4099_vm5, %v2581_v21, %v4053_v37  ;;  %v1713_v29 = vadd.s32 %v1712_v35, %v1702_v14  ;;  %v958_v37 = vshrl.u32 %v3957_v40, 16  ;;  %v2857_v1 = vmul.f32 %v4111_v18, %v4111_v18 }
  0xc3   : > { %v1308_v13 = vpop.f32.mrf.mxu3  ;;  %v1687_v59 = vmul.u32 17, %v1686_v52  ;;  %v4150_v4 = vmul.u32 61681, %v1724_v20  ;;  %v2786_v5 = vsel %vm2780_vm12, %v2749_v56, 0.0  ;;  %v1730_v41 = vshll.u32 %v4146_v62, 16 }
  0xc4   : > { %v1714_v46 = vadd.s32 %v1713_v29, %v1704_v9  ;;  %v1752_v48 = vand.u32 65535, %v4137_v22  ;;  %v4168_v32 = vsel %vm1192_vm2, %v1216_v11, %v1218_v57  ;;  %v960_v21 = vor.u32 %v958_v37, %v4023_v45 }
  0xc5   : > { %v1729_v36 = vmul.u32 61680, %v1724_v20  ;;  %v962_v25 = vshll.u32 %v4123_v12, 16  ;;  %vm1734_vm7 = vc.u32 %v1726_v43, %v1730_v41  ;;  %v1736_v14 = vadd.s32 %v1730_v41, %v1726_v43 }
  0xc6   : > { %v1078_v53 = vpop.f32.mrf.mxu2  ;;  %v4176_v35 = vadd.f32 %v2786_v5, %v2785_v34  ;;  %v2891_v39 = vsel %vm4061_vm11, %v2857_v1, 0.0  ;;  %vm4180_vm8 = vcmp.lt.s32.totalorder %v2615_v50, 16  ;;  %v4185_v11 = vsub.s32 %v3863_v49, %v1687_v59 }
  0xc7   : > { %v1156_v38 = vadd.f32 %v1078_v53, %v660_v24  ;;  %v526_v54 = vpop.f32.mrf.mxu0  ;;  %v664_v51 = vpop.f32.mrf.mxu1  ;;  %v4156_v24 = vadd.f32 %v2925_v58, %v2924_v10  ;;  %v1735_v45 = vsel %vm1734_vm7, 1, %v5821_v3  ;;  %v1753_v19 = vshrl.u32 %v4137_v22, 16 }
  0xc8   : > { %3493 = vmatmul.msk.bf16.gmra.mxu3 %vm446_vm1, %v1217_v42  ;;  %v663_v61 = vadd.f32 %v662_v26, %v526_v54  ;;  %v1732_v42 = vshll.u32 %v4150_v4, 16  ;;  %v4190_v10 = vmul.u32 61680, %v1752_v48  ;;  %v4194_v7 = vadd.f32 %v3902_v63, %v4091_v33 }
  0xc9   : > { %v1386_v15 = vadd.f32 %v1308_v13, %v1156_v38  ;;  %v1715_v13 = vshrl.u32 %v1714_v46, 4  ;;  %v405_v27 = vshll.u32 %v4172_v28, 16  ;;  %v1737_v49 = vadd.s32 %v1735_v45, %v1729_v36 }
  0xca   : > { %3362 = vmatmul.msk.bf16.gmra.mxu0 %vm446_vm1, %v400_v44  ;;  %v2927_v50 = vsel %vm2780_vm12, %v2891_v39, 0.0  ;;  %v4198_v20 = vrot.slane %v962_v25, 1  ;;  %vm1738_vm9 = vc.u32 %v1736_v14, %v1732_v42  ;;  %v1755_v34 = vmul.u32 61681, %v1752_v48 }
  0xcb   : > { %3470 = vmatmul.msk.bf16.gmra.mxu2 %vm446_vm1, %v957_v55  ;;  %v1311_v31 = vpop.f32.mrf.mxu3  ;;  %v401_v55 = vshrl.u32 %v4002_v8, 16  ;;  %vm2480_vm10 = vcmp.ne.s32.totalorder %v4185_v11, 0  ;;  %v1731_v9 = vshrl.u32 %v4146_v62, 16  ;;  %v1739_v33 = vsel %vm1738_vm9, 1, %v5821_v3 }
  0xcc   : > { %v1716_v29 = vmul.u32 17, %v1715_v13  ;;  %v1741_v56 = vadd.s32 %v1739_v33, %v1737_v49  ;;  %v4203_v38 = vmul.u32 61681, %v1753_v19  ;;  %v1759_v54 = vshll.u32 %v4190_v10, 16 }
  0xcd   : > { %v2858_v37 = vmul.f32 %v4194_v7, %v4194_v7  ;;  %vm2514_vm11 = vcmp.lt.s32.totalorder %v4185_v11, 0  ;;  %v4212_v43 = vrot.slane %v405_v27, 1  ;;  %v4215_v62 = vadd.f32 %v3902_v63, %v1386_v15 }
  0xce   : > { %v1081_v0 = vpop.f32.mrf.mxu2  ;;  %v2582_v1 = vadd.s32 17, %v4185_v11  ;;  %v1761_v59 = vshll.u32 %v4203_v38, 16  ;;  %vm1763_vm13 = vc.u32 %v1755_v34, %v1759_v54  ;;  %v1733_v46 = vshrl.u32 %v4150_v4, 16  ;;  %vm4225_vm14 = vmand %vm2514_vm11, %vm2480_vm10 }
  0xcf   : > { %v1157_v44 = vadd.f32 %v1081_v0, %v663_v61  ;;  %v528_v23 = vpop.f32.mrf.mxu0  ;;  %v667_v52 = vpop.f32.mrf.mxu1  ;;  %v403_v61 = vor.u32 %v401_v55, %v4069_v2  ;;  %v1742_v41 = vadd.s32 %v1741_v56, %v1731_v9  ;;  %v1765_v48 = vadd.s32 %v1759_v54, %v1755_v34 }
  0xd0   : > { %v665_v5 = vadd.f32 %v664_v51, %v528_v23  ;;  %v965_v51 = vsel %vm300_vm3, %v960_v21, %v4198_v20  ;;  %v1758_v4 = vmul.u32 61680, %v1753_v19  ;;  %v2892_v36 = vsel %vm4158_vm6, %v2858_v37, 0.0 }
  0xd1   : > { %v1387_v53 = vadd.f32 %v1311_v31, %v1157_v44  ;;  %v4230_v31 = vsub.s32 %v4005_v6, %v1716_v29  ;;  %v408_v14 = vsel %vm300_vm3, %v403_v61, %v4212_v43  ;;  %v1764_v39 = vsel %vm1763_vm13, 1, %v5821_v3 }
  0xd2   : > { %3384 = vmatmul.msk.bf16.gmra.mxu1 %vm446_vm1, %v4002_v8  ;;  %v2750_v8 = vsel %vm4158_vm6, %v4194_v7, 0.0  ;;  %v2751_v45 = vsel %vm4180_vm8, %v4215_v62, 0.0  ;;  %v2859_v6 = vmul.f32 %v4215_v62, %v4215_v62  ;;  %vm1767_vm15 = vc.u32 %v1765_v48, %v1761_v59 }
  0xd3   : > { %v1313_v58 = vpop.f32.mrf.mxu3  ;;  %v2788_v0 = vsel %vm2780_vm12, %v2750_v8, 0.0  ;;  %v2616_v13 = vsel %vm4225_vm14, %v2582_v1, %v4185_v11  ;;  %v1743_v19 = vadd.s32 %v1742_v41, %v1733_v46  ;;  %v2929_v44 = vsel %vm2780_vm12, %v2892_v36, 0.0 }
  0xd4   : > { %vm2481_vm0 = vcmp.ne.s32.totalorder %v4230_v31, 0  ;;  %vm2515_vm4 = vcmp.lt.s32.totalorder %v4230_v31, 0  ;;  %v2928_v23 = vadd.f32 %v2927_v50, %v4156_v24  ;;  %v2790_v27 = vsel %vm2780_vm12, %v2751_v45, 0.0  ;;  %v4273_v24 = vld [vmem:[%s3632_s6 + $0x78] sm:$0xff] }
  0xd5   : > { %v1768_v49 = vsel %vm1767_vm15, 1, %v5821_v3  ;;  %v4266_v34 = vadd.s32 80, %v3691_v47  ;;  %v2789_v9 = vadd.f32 %v2788_v0, %v4176_v35  ;;  %v2893_v33 = vsel %vm4180_vm8, %v2859_v6, 0.0  ;;  %vm4288_vm6 = vmand %vm2515_vm4, %vm2481_vm0 }
  0xd6   : > { %v1083_v15 = vpop.f32.mrf.mxu2  ;;  %v2583_v29 = vadd.s32 17, %v4230_v31  ;;  %v4275_v50 = vadd.f32 %v2929_v44, %v2928_v23  ;;  %v4278_v56 = vadd.f32 %v3902_v63, %v1387_v53  ;;  %vm4280_vm5 = vcmp.lt.s32.totalorder %v2616_v13, 16 }
  0xd7   : > { %v1158_v25 = vadd.f32 %v1083_v15, %v665_v5  ;;  %v531_v42 = vpop.f32.mrf.mxu0  ;;  %v4246_v26 = vpop.f32.mrf.mxu1  ;;  %v1744_v40 = vshrl.u32 %v1743_v19, 4  ;;  %v4292_v37 = vadd.f32 %v2790_v27, %v2789_v9  ;;  %v1760_v61 = vshrl.u32 %v4190_v10, 16 }
  0xd8   : > { %3494 = vmatmul.msk.bf16.gmra.mxu3 %vm446_vm1, %v4168_v32  ;;  %v668_v21 = vadd.f32 %v667_v52, %v531_v42  ;;  %v1766_v32 = vadd.s32 %v1764_v39, %v1758_v4  ;;  %v4263_v52 = vld [vmem:[%s3632_s6 + $0x70] sm:$0xff]  ;;  %v1781_v1 = vand.u32 65535, %v4266_v34  ;;  %v4297_v59 = vsel %vm2780_vm12, %v2893_v33, 0.0 }
  0xd9   : > { %v4252_v55 = vadd.f32 %v1313_v58, %v1158_v25  ;;  %v409_v41 = vshrl.u32 %v4172_v28, 16  ;;  %v413_v48 = vshll.u32 %v4263_v52, 16  ;;  %v2617_v8 = vsel %vm4288_vm6, %v2583_v29, %v4230_v31 }
  0xda   : > { %3363 = vmatmul.msk.bf16.gmra.mxu0 %vm446_vm1, %v408_v14  ;;  %v1770_v53 = vadd.s32 %v1768_v49, %v1766_v32  ;;  %v1220_v15 = vrot.slane %v4273_v24, 1  ;;  %v966_v10 = vshrl.u32 %v4123_v12, 16  ;;  %v2752_v4 = vsel %vm4280_vm5, %v4278_v56, 0.0 }
  0xdb   : > { %3471 = vmatmul.msk.bf16.gmra.mxu2 %vm446_vm1, %v965_v51  ;;  %v1316_v11 = vpop.f32.mrf.mxu3  ;;  %v970_v51 = vshll.u32 %v4273_v24, 16  ;;  %v1745_v25 = vmul.u32 17, %v1744_v40  ;;  %v1762_v42 = vshrl.u32 %v4203_v38, 16  ;;  %v1782_v39 = vshrl.u32 %v4266_v34, 16 }
  0xdc   : > { %v1771_v14 = vadd.s32 %v1770_v53, %v1760_v61  ;;  %v4314_v31 = vmul.u32 61680, %v1781_v1  ;;  %v4317_v45 = vadd.s32 88, %v3691_v47  ;;  %v2860_v6 = vmul.f32 %v4278_v56, %v4278_v56 }
  0xdd   : > { %vm4321_vm7 = vcmp.lt.s32.totalorder %v2617_v8, 16  ;;  %v411_v38 = vor.u32 %v409_v41, %v4212_v43  ;;  %v4328_v13 = vrot.slane %v413_v48, 1  ;;  %v1784_v19 = vmul.u32 61681, %v1781_v1 }
  0xde   : > { %v1086_v58 = vpop.f32.mrf.mxu2  ;;  %v968_v44 = vor.u32 %v966_v10, %v4198_v20  ;;  %v4331_v32 = vrot.slane %v970_v51, 1  ;;  %v4333_v23 = vmul.u32 61681, %v1782_v39  ;;  %v1788_v27 = vshll.u32 %v4314_v31, 16 }
  0xdf   : > { %v1159_v5 = vadd.f32 %v1086_v58, %v668_v21  ;;  %v533_v46 = vpop.f32.mrf.mxu0  ;;  %v672_v2 = vpop.f32.mrf.mxu1  ;;  %v4338_v49 = vsub.s32 %v4087_v16, %v1745_v25  ;;  %v1221_v43 = vsel %vm1192_vm2, %v1218_v57, %v1220_v15  ;;  %v1772_v9 = vadd.s32 %v1771_v14, %v1762_v42 }
  0xe0   : > { %v1787_v33 = vmul.u32 61680, %v1782_v39  ;;  %v1810_v29 = vand.u32 65535, %v4317_v45  ;;  %v1811_v35 = vshrl.u32 %v4317_v45, 16  ;;  %v416_v16 = vsel %vm300_vm3, %v411_v38, %v4328_v13  ;;  %v4392_v38 = vld [vmem:[%s3632_s6 + $0x80] sm:$0xff] }
  0xe1   : > { %v4310_v36 = vadd.f32 %v1316_v11, %v1159_v5  ;;  %v2792_v11 = vsel %vm2780_vm12, %v2752_v4, 0.0  ;;  %vm1792_vm8 = vc.u32 %v1784_v19, %v1788_v27  ;;  %v4353_v12 = vadd.f32 %v3902_v63, %v4252_v55 }
  0xe2   : > { %3385 = vmatmul.msk.bf16.gmra.mxu1 %vm446_vm1, %v4172_v28  ;;  %v670_v28 = vadd.f32 %v4246_v26, %v533_v46  ;;  %v1790_v26 = vshll.u32 %v4333_v23, 16  ;;  %v973_v61 = vsel %vm300_vm3, %v968_v44, %v4331_v32  ;;  %v1793_v1 = vsel %vm1792_vm8, 1, %v5821_v3 }
  0xe3   : > { %v1318_v0 = vpop.f32.mrf.mxu3  ;;  %vm2482_vm9 = vcmp.ne.s32.totalorder %v4338_v49, 0  ;;  %vm2516_vm10 = vcmp.lt.s32.totalorder %v4338_v49, 0  ;;  %v1794_v46 = vadd.s32 %v1788_v27, %v1784_v19  ;;  %v1795_v55 = vadd.s32 %v1793_v1, %v1787_v33 }
  0xe4   : > { %v1813_v41 = vmul.u32 61681, %v1810_v29  ;;  %v4364_v48 = vmul.u32 61680, %v1810_v29  ;;  %v4366_v8 = vmul.u32 61681, %v1811_v35  ;;  %v2584_v10 = vadd.s32 17, %v4338_v49  ;;  %vm4380_vm13 = vmand %vm2516_vm10, %vm2482_vm9 }
  0xe5   : > { %v1773_v51 = vshrl.u32 %v1772_v9, 4  ;;  %vm1796_vm11 = vc.u32 %v1794_v46, %v1790_v26  ;;  %v4374_v25 = vadd.f32 %v4297_v59, %v4275_v50  ;;  %v1789_v50 = vshrl.u32 %v4314_v31, 16  ;;  %v4408_v9 = vld [vmem:[%s3632_s6 + $0x78] sm:$0xff] }
  0xe6   : > { %v1088_v20 = vpop.f32.mrf.mxu2  ;;  %v1797_v54 = vsel %vm1796_vm11, 1, %v5821_v3  ;;  %v1817_v14 = vshll.u32 %v4364_v48, 16  ;;  %v1819_v39 = vshll.u32 %v4366_v8, 16  ;;  %v2753_v44 = vsel %vm4321_vm7, %v4353_v12, 0.0 }
  0xe7   : > { %v1160_v40 = vadd.f32 %v1088_v20, %v670_v28  ;;  %v536_v58 = vpop.f32.mrf.mxu0  ;;  %v674_v53 = vpop.f32.mrf.mxu1  ;;  %v1799_v59 = vadd.s32 %v1797_v54, %v1795_v55  ;;  %v2618_v31 = vsel %vm4380_vm13, %v2584_v10, %v4338_v49  ;;  %v1791_v33 = vshrl.u32 %v4333_v23, 16 }
  0xe8   : > { %3495 = vmatmul.msk.bf16.gmra.mxu3 %vm446_vm1, %v1221_v43  ;;  %v673_v57 = vadd.f32 %v672_v2, %v536_v58  ;;  %v2894_v2 = vsel %vm4280_vm5, %v2860_v6, 0.0  ;;  %v4388_v6 = vadd.f32 %v2792_v11, %v4292_v37  ;;  %vm1821_vm14 = vc.u32 %v1813_v41, %v1817_v14 }
  0xe9   : > { %v4361_v5 = vadd.f32 %v1318_v0, %v1160_v40  ;;  %v1816_v0 = vmul.u32 61680, %v1811_v35  ;;  %v4395_v19 = vsel %vm2780_vm12, %v2894_v2, 0.0  ;;  %v1823_v28 = vadd.s32 %v1817_v14, %v1813_v41 }
  0xea   : > { %3364 = vmatmul.msk.bf16.gmra.mxu0 %vm446_vm1, %v416_v16  ;;  %v4402_v37 = vmul.f32 %v4353_v12, %v4353_v12  ;;  %v1774_v11 = vmul.u32 17, %v1773_v51  ;;  %v1822_v40 = vsel %vm1821_vm14, 1, %v5821_v3  ;;  %v1800_v16 = vadd.s32 %v1799_v59, %v1789_v50 }
  0xeb   : > { %3472 = vmatmul.msk.bf16.gmra.mxu2 %vm446_vm1, %v973_v61  ;;  %v1321_v4 = vpop.f32.mrf.mxu3  ;;  %vm1825_vm15 = vc.u32 %v1823_v28, %v1819_v39  ;;  %v1824_v26 = vadd.s32 %v1822_v40, %v1816_v0  ;;  %v1222_v61 = vrot.slane %v4392_v38, 1  ;;  %v978_v1 = vshll.u32 %v4392_v38, 16 }
  0xec   : > { %v1826_v49 = vsel %vm1825_vm15, 1, %v5821_v3  ;;  %v417_v46 = vshrl.u32 %v4263_v52, 16  ;;  %vm4419_vm0 = vcmp.lt.s32.totalorder %v2618_v31, 16  ;;  %v1818_v55 = vshrl.u32 %v4364_v48, 16 }
  0xed   : > { %v1828_v41 = vadd.s32 %v1826_v49, %v1824_v26  ;;  %v421_v2 = vshll.u32 %v4408_v9, 16  ;;  %v4428_v51 = vrot.slane %v978_v1, 1  ;;  %v4432_v42 = vadd.s32 96, %v3691_v47 }
  0xee   : > { %v1091_v27 = vpop.f32.mrf.mxu2  ;;  %v4436_v54 = vadd.f32 %v3902_v63, %v4310_v36  ;;  %v1775_v48 = vsub.s32 %v4137_v22, %v1774_v11  ;;  %v1801_v14 = vadd.s32 %v1800_v16, %v1791_v33  ;;  %v2895_v33 = vsel %vm4321_vm7, %v4402_v37, 0.0 }
  0xef   : > { %v1161_v43 = vadd.f32 %v1091_v27, %v673_v57  ;;  %v538_v20 = vpop.f32.mrf.mxu0  ;;  %v677_v35 = vpop.f32.mrf.mxu1  ;;  %v974_v57 = vshrl.u32 %v4273_v24, 16  ;;  %v1839_v50 = vand.u32 65535, %v4432_v42  ;;  %v1840_v59 = vshrl.u32 %v4432_v42, 16 }
  0xf0   : > { %v675_v29 = vadd.f32 %v674_v53, %v538_v20  ;;  %v1829_v0 = vadd.s32 %v1828_v41, %v1818_v55  ;;  %vm2483_vm4 = vcmp.ne.s32.totalorder %v1775_v48, 0  ;;  %vm2517_vm5 = vcmp.lt.s32.totalorder %v1775_v48, 0 }
  0xf1   : > { %v4412_v58 = vadd.f32 %v1321_v4, %v1161_v43  ;;  %v976_v10 = vor.u32 %v974_v57, %v4331_v32  ;;  %v419_v4 = vor.u32 %v417_v46, %v4328_v13  ;;  %v4444_v32 = vrot.slane %v421_v2, 1  ;;  %vm4471_vm6 = vmand %vm2517_vm5, %vm2483_vm4 }
  0xf2   : > { %3386 = vmatmul.msk.bf16.gmra.mxu1 %vm446_vm1, %v4263_v52  ;;  %v1223_v52 = vsel %vm1192_vm2, %v1220_v15, %v1222_v61  ;;  %v1820_v13 = vshrl.u32 %v4366_v8, 16  ;;  %v1842_v31 = vmul.u32 61681, %v1839_v50  ;;  %v1843_v11 = vmul.u32 61680, %v1839_v50 }
  0xf3   : > { %v1323_v53 = vpop.f32.mrf.mxu3  ;;  %v981_v22 = vsel %vm300_vm3, %v976_v10, %v4428_v51  ;;  %v424_v24 = vsel %vm300_vm3, %v419_v4, %v4444_v32  ;;  %v4454_v8 = vmul.u32 61681, %v1840_v59  ;;  %v2794_v43 = vsel %vm2780_vm12, %v2753_v44, 0.0 }
  0xf4   : > { %v1845_v40 = vmul.u32 61680, %v1840_v59  ;;  %v2754_v16 = vsel %vm4419_vm0, %v4436_v54, 0.0  ;;  %v2585_v26 = vadd.s32 17, %v1775_v48  ;;  %v1830_v49 = vadd.s32 %v1829_v0, %v1820_v13  ;;  %v4494_v0 = vld [vmem:[%s3632_s6 + $0x88] sm:$0xff] }
  0xf5   : > { %v1848_v57 = vshll.u32 %v4454_v8, 16  ;;  %v2862_v21 = vmul.f32 %v4436_v54, %v4436_v54  ;;  %v2934_v46 = vadd.f32 %v4395_v19, %v4374_v25  ;;  %v4480_v41 = vadd.s32 104, %v3691_v47 }
  0xf6   : > { %v1093_v39 = vpop.f32.mrf.mxu2  ;;  %v2935_v2 = vsel %vm2780_vm12, %v2895_v33, 0.0  ;;  %v2796_v10 = vsel %vm2780_vm12, %v2754_v16, 0.0  ;;  %v1831_v13 = vshrl.u32 %v1830_v49, 4  ;;  %v4490_v50 = vadd.f32 %v3902_v63, %v4361_v5 }
  0xf7   : > { %v1162_v36 = vadd.f32 %v1093_v39, %v675_v29  ;;  %v541_v27 = vpop.f32.mrf.mxu0  ;;  %v679_v28 = vpop.f32.mrf.mxu1  ;;  %v1802_v29 = vshrl.u32 %v1801_v14, 4  ;;  %v2619_v39 = vsel %vm4471_vm6, %v2585_v26, %v1775_v48  ;;  %v2896_v19 = vsel %vm4419_vm0, %v2862_v21, 0.0 }
  0xf8   : > { %3496 = vmatmul.msk.bf16.gmra.mxu3 %vm446_vm1, %v1223_v52  ;;  %v678_v15 = vadd.f32 %v677_v35, %v541_v27  ;;  %v1846_v35 = vshll.u32 %v1843_v11, 16  ;;  %v1847_v59 = vshrl.u32 %v1843_v11, 16  ;;  %vm4499_vm9 = vcmp.lt.s32.totalorder %v2619_v39, 16 }
  0xf9   : > { %v4457_v20 = vadd.f32 %v1323_v53, %v1162_v36  ;;  %v2795_v53 = vadd.f32 %v2794_v43, %v4388_v6  ;;  %v1803_v4 = vmul.u32 17, %v1802_v29  ;;  %v4507_v11 = vadd.f32 %v2935_v2, %v2934_v46 }
  0xfa   : > { %3365 = vmatmul.msk.bf16.gmra.mxu0 %vm446_vm1, %v424_v24  ;;  %vm1850_vm7 = vc.u32 %v1842_v31, %v1846_v35  ;;  %v1852_v1 = vadd.s32 %v1846_v35, %v1842_v31  ;;  %v1868_v24 = vand.u32 65535, %v4480_v41  ;;  %v1869_v31 = vshrl.u32 %v4480_v41, 16 }
  0xfb   : > { %3473 = vmatmul.msk.bf16.gmra.mxu2 %vm446_vm1, %v981_v22  ;;  %v1326_v44 = vpop.f32.mrf.mxu3  ;;  %v1851_v55 = vsel %vm1850_vm7, 1, %v5821_v3  ;;  %v4504_v23 = vsub.s32 %v4266_v34, %v1803_v4  ;;  %v4509_v43 = vadd.f32 %v2796_v10, %v2795_v53  ;;  %v4512_v33 = vsel %vm2780_vm12, %v2896_v19, 0.0 }
  0xfc   : > { %v1853_v14 = vadd.s32 %v1851_v55, %v1845_v40  ;;  %vm1854_vm8 = vc.u32 %v1852_v1, %v1848_v57  ;;  %v1871_v40 = vmul.u32 61681, %v1868_v24  ;;  %v4516_v35 = vmul.u32 61680, %v1868_v24 }
  0xfd   : > { %v1855_v36 = vsel %vm1854_vm8, 1, %v5821_v3  ;;  %v4518_v34 = vmul.u32 61681, %v1869_v31  ;;  %v1224_v16 = vrot.slane %v4494_v0, 1  ;;  %v2755_v26 = vsel %vm4499_vm9, %v4490_v50, 0.0 }
  0xfe   : > { %v1096_v52 = vpop.f32.mrf.mxu2  ;;  %v1857_v22 = vadd.s32 %v1855_v36, %v1853_v14  ;;  %v4526_v49 = vmul.f32 %v4490_v50, %v4490_v50  ;;  %vm2484_vm10 = vcmp.ne.s32.totalorder %v4504_v23, 0  ;;  %v1874_v37 = vmul.u32 61680, %v1869_v31  ;;  %v4544_v14 = vld [vmem:[%s3632_s6 + $0x80] sm:$0xff] }
  0xff   : > { %v1163_v25 = vadd.f32 %v1096_v52, %v678_v15  ;;  %v543_v6 = vpop.f32.mrf.mxu0  ;;  %v682_v5 = vpop.f32.mrf.mxu1  ;;  %v1875_v1 = vshll.u32 %v4516_v35, 16  ;;  %v982_v46 = vshrl.u32 %v4392_v38, 16  ;;  %vm2518_vm11 = vcmp.lt.s32.totalorder %v4504_v23, 0 }
 0x100   : > { %v680_v48 = vadd.f32 %v679_v28, %v543_v6  ;;  %v1832_v28 = vmul.u32 17, %v1831_v13  ;;  %v1858_v57 = vadd.s32 %v1857_v22, %v1847_v59  ;;  %v1877_v2 = vshll.u32 %v4518_v34, 16  ;;  %vm4554_vm14 = vmand %vm2518_vm11, %vm2484_vm10 }
 0x101   : > { %v4496_v27 = vadd.f32 %v1326_v44, %v1163_v25  ;;  %v1849_v44 = vshrl.u32 %v4454_v8, 16  ;;  %v2586_v8 = vadd.s32 17, %v4504_v23  ;;  %vm1879_vm13 = vc.u32 %v1871_v40, %v1875_v1 }
 0x102   : > { %3387 = vmatmul.msk.bf16.gmra.mxu1 %vm446_vm1, %v4408_v9  ;;  %v4534_v53 = vsub.s32 %v4317_v45, %v1832_v28  ;;  %v1881_v4 = vadd.s32 %v1875_v1, %v1871_v40  ;;  %v1225_v52 = vsel %vm1192_vm2, %v1222_v61, %v1224_v16  ;;  %v1880_v45 = vsel %vm1879_vm13, 1, %v5821_v3 }
 0x103   : > { %v1328_v29 = vpop.f32.mrf.mxu3  ;;  %v1859_v39 = vadd.s32 %v1858_v57, %v1849_v44  ;;  %v1882_v38 = vadd.s32 %v1880_v45, %v1874_v37  ;;  %v984_v61 = vor.u32 %v982_v46, %v4428_v51  ;;  %v986_v19 = vshll.u32 %v4494_v0, 16 }
 0x104   : > { %vm1883_vm15 = vc.u32 %v1881_v4, %v1877_v2  ;;  %vm2485_vm0 = vcmp.ne.s32.totalorder %v4534_v53, 0  ;;  %vm2519_vm4 = vcmp.lt.s32.totalorder %v4534_v53, 0  ;;  %v425_v22 = vshrl.u32 %v4408_v9, 16 }
 0x105   : > { %v1884_v59 = vsel %vm1883_vm15, 1, %v5821_v3  ;;  %v4568_v24 = vrot.slane %v986_v19, 1  ;;  %v429_v51 = vshll.u32 %v4544_v14, 16  ;;  %v4572_v31 = vadd.s32 112, %v3691_v47  ;;  %vm4579_vm5 = vmand %vm2519_vm4, %vm2485_vm0 }
 0x106   : > { %v1098_v21 = vpop.f32.mrf.mxu2  ;;  %v2620_v28 = vsel %vm4554_vm14, %v2586_v8, %v4504_v23  ;;  %v1860_v40 = vshrl.u32 %v1859_v39, 4  ;;  %v1876_v9 = vshrl.u32 %v4516_v35, 16  ;;  %v427_v57 = vor.u32 %v425_v22, %v4444_v32 }
 0x107   : > { %v1164_v55 = vadd.f32 %v1098_v21, %v680_v48  ;;  %v546_v10 = vpop.f32.mrf.mxu0  ;;  %v4566_v48 = vadd.f32 %v3902_v63, %v4412_v58  ;;  %v1886_v58 = vadd.s32 %v1884_v59, %v1882_v38  ;;  %v989_v44 = vsel %vm300_vm3, %v984_v61, %v4568_v24 }
 0x108   : > { %3497 = vmatmul.msk.bf16.gmra.mxu3 %vm446_vm1, %v1225_v52  ;;  %v683_v25 = vadd.f32 %v682_v5, %v546_v10  ;;  %v684_v5 = vpop.f32.mrf.mxu1  ;;  %v4586_v21 = vrot.slane %v429_v51, 1  ;;  %v2798_v23 = vsel %vm2780_vm12, %v2755_v26, 0.0  ;;  %v1897_v35 = vand.u32 65535, %v4572_v31 }
 0x109   : > { %v4546_v13 = vadd.f32 %v1328_v29, %v1164_v55  ;;  %v2587_v29 = vadd.s32 17, %v4534_v53  ;;  %v1898_v46 = vshrl.u32 %v4572_v31, 16  ;;  %v2897_v2 = vsel %vm4499_vm9, %v4526_v49, 0.0 }
 0x10a   : > { %v2864_v32 = vmul.f32 %v4566_v48, %v4566_v48  ;;  %v432_v10 = vsel %vm300_vm3, %v427_v57, %v4586_v21  ;;  %vm4599_vm6 = vcmp.lt.s32.totalorder %v2620_v28, 16  ;;  %v1878_v52 = vshrl.u32 %v4518_v34, 16 }
 0x10b   : > { %v1331_v36 = vpop.f32.mrf.mxu3  ;;  %3474 = vmatmul.msk.bf16.gmra.mxu2 %vm446_vm1, %v989_v44  ;;  %v2621_v4 = vsel %vm4579_vm5, %v2587_v29, %v4534_v53  ;;  %3366 = vmatmul.msk.bf16.gmra.mxu0 %vm446_vm1, %v432_v10  ;;  %v1861_v49 = vmul.u32 17, %v1860_v40  ;;  %v1887_v39 = vadd.s32 %v1886_v58, %v1876_v9  ;;  %v1900_v45 = vmul.u32 61681, %v1897_v35  ;;  %v4626_v53 = vld [vmem:[%s5817_s2] ss:$0 sm:$0xff] }
 0x10c   : > { %v2938_v6 = vadd.f32 %v4512_v33, %v4507_v11  ;;  %v2799_v38 = vadd.f32 %v2798_v23, %v4509_v43  ;;  %v2939_v61 = vsel %vm2780_vm12, %v2897_v2, 0.0  ;;  %v4616_v19 = vmul.u32 61681, %v1898_v46 }
 0x10d   : > { %v2756_v34 = vsel %vm4599_vm6, %v4566_v48, 0.0  ;;  %v4630_v11 = vadd.f32 %v4626_v53, %v4457_v20  ;;  %v1903_v43 = vmul.u32 61680, %v1898_v46  ;;  %vm4635_vm7 = vcmp.lt.s32.totalorder %v2621_v4, 16  ;;  %v766_v46 = vld [vmem:[%s3632_s6 + $0x90] sm:$0x1] }
 0x10e   : > { %v1101_v37 = vpop.f32.mrf.mxu2  ;;  %v4641_v51 = vadd.s32 120, %v3691_v47  ;;  %v4644_v20 = vsub.s32 %v4432_v42, %v1861_v49  ;;  %v1888_v28 = vadd.s32 %v1887_v39, %v1878_v52  ;;  %v2800_v23 = vsel %vm2780_vm12, %v2756_v34, 0.0 }
 0x10f   : > { %v1165_v1 = vadd.f32 %v1101_v37, %v683_v25  ;;  %v548_v55 = vpop.f32.mrf.mxu0  ;;  %v4610_v25 = vmul.u32 61680, %v1897_v35  ;;  %v4656_v42 = vadd.f32 %v4626_v53, %v4496_v27  ;;  %v839_v52 = vunpack.c.l.b16 %v766_v46 }
 0x110   : > { %v685_v8 = vadd.f32 %v684_v5, %v548_v55  ;;  %v1906_v5 = vshll.u32 %v4616_v19, 16  ;;  %v687_v40 = vpop.f32.mrf.mxu1  ;;  %v1926_v44 = vand.u32 65535, %v4641_v51  ;;  %v1927_v57 = vshrl.u32 %v4641_v51, 16 }
 0x111   : > { %v4608_v15 = vadd.f32 %v1331_v36, %v1165_v1  ;;  %v1904_v33 = vshll.u32 %v4610_v25, 16  ;;  %v2898_v36 = vsel %vm4599_vm6, %v2864_v32, 0.0  ;;  %v4652_v1 = vmul.f32 %v4630_v11, %v4630_v11 }
 0x112   : > { %3388 = vmatmul.msk.bf16.gmra.mxu1 %vm446_vm1, %v4544_v14  ;;  %v2757_v55 = vsel %vm4635_vm7, %v4630_v11, 0.0  ;;  %v4664_v32 = vmul.u32 61680, %v1926_v44  ;;  %vm2486_vm10 = vcmp.ne.s32.totalorder %v4644_v20, 0  ;;  %v4668_v26 = vmul.u32 61681, %v1927_v57 }
 0x113   : > { %v1333_v59 = vpop.f32.mrf.mxu3  ;;  %vm1908_vm8 = vc.u32 %v1900_v45, %v1904_v33  ;;  %v1910_v29 = vadd.s32 %v1904_v33, %v1900_v45  ;;  %vm2520_vm11 = vcmp.lt.s32.totalorder %v4644_v20, 0  ;;  %v1889_v27 = vshrl.u32 %v1888_v28, 4 }
 0x114   : > { %v1909_v63 = vsel %vm1908_vm8, 1, %v5821_v3  ;;  %v1933_v4 = vshll.u32 %v4664_v32, 16  ;;  %v2940_v49 = vadd.f32 %v2939_v61, %v2938_v6  ;;  %v1905_v39 = vshrl.u32 %v4610_v25, 16  ;;  %vm4685_vm13 = vmand %vm2520_vm11, %vm2486_vm10 }
 0x115   : > { %v1911_v35 = vadd.s32 %v1909_v63, %v1903_v43  ;;  %vm1912_vm9 = vc.u32 %v1910_v29, %v1906_v5  ;;  %v4673_v34 = vadd.f32 %v2800_v23, %v2799_v38  ;;  %v2941_v43 = vsel %vm2780_vm12, %v2898_v36, 0.0 }
 0x116   : > { %v1103_v9 = vpop.f32.mrf.mxu2  ;;  %v1913_v10 = vsel %vm1912_vm9, 1, %v5821_v3  ;;  %v2899_v33 = vsel %vm4635_vm7, %v4652_v1, 0.0  ;;  %v4681_v5 = vsel %vm2780_vm12, %v2757_v55, 0.0  ;;  %v1935_v25 = vshll.u32 %v4668_v26, 16 }
 0x117   : > { %v1166_v58 = vadd.f32 %v1103_v9, %v685_v8  ;;  %v551_v37 = vpop.f32.mrf.mxu0  ;;  %v1929_v8 = vmul.u32 61681, %v1926_v44  ;;  %v1915_v45 = vadd.s32 %v1913_v10, %v1911_v35  ;;  %v4696_v28 = vmul.f32 %v4656_v42, %v4656_v42 }
 0x118   : > { %v1890_v29 = vmul.u32 17, %v1889_v27  ;;  %v1907_v9 = vshrl.u32 %v4616_v19, 16  ;;  %v857_v63 = vpack.c.b16 %v839_v52, %v839_v52  ;;  %v1932_v23 = vmul.u32 61680, %v1927_v57  ;;  %v689_v46 = vpop.f32.mrf.mxu1 }
 0x119   : > { %v4662_v2 = vadd.f32 %v1333_v59, %v1166_v58  ;;  %v2588_v59 = vadd.s32 17, %v4644_v20  ;;  %vm4690_vm14 = vc.u32 %v1929_v8, %v1933_v4  ;;  %v1939_v61 = vadd.s32 %v1933_v4, %v1929_v8  ;;  %v208_v58 = vld [vmem:[%s3632_s6 + $0x88] sm:$0x1] }
 0x11a   : > { %v1916_v44 = vadd.s32 %v1915_v45, %v1905_v39  ;;  %v688_v1 = vadd.f32 %v687_v40, %v551_v37  ;;  %v990_v35 = vshrl.u32 %v4494_v0, 16  ;;  %v1938_v8 = vsel %vm4690_vm14, 1, %v5821_v3 }
 0x11b   : > { %v1336_v36 = vpop.f32.mrf.mxu3  ;;  %v2622_v10 = vsel %vm4685_vm13, %v2588_v59, %v4644_v20  ;;  %v1226_v27 = vrot.slane %v857_v63, 1  ;;  %v994_v4 = vshll.u32 %v857_v63, 16  ;;  %vm1941_vm15 = vc.u32 %v1939_v61, %v1935_v25 }
 0x11c   : > { %v992_v19 = vor.u32 %v990_v35, %v4568_v24  ;;  %v281_v52 = vunpack.c.l.b16 %v208_v58  ;;  %v433_v40 = vshrl.u32 %v4544_v14, 16  ;;  %v4710_v57 = vsub.s32 %v4480_v41, %v1890_v29 }
 0x11d   : > { %v1227_v37 = vsel %vm1192_vm2, %v1224_v16, %v1226_v27  ;;  %v996_v20 = vrot.slane %v994_v4, 1  ;;  %v1917_v45 = vadd.s32 %v1916_v44, %v1907_v9  ;;  %v1940_v59 = vadd.s32 %v1938_v8, %v1932_v23 }
 0x11e   : > { %v1106_v22 = vpop.f32.mrf.mxu2  ;;  %3498 = vmatmul.msk.bf16.gmra.mxu3 %vm446_vm1, %v1227_v37  ;;  %v299_v6 = vpack.c.b16 %v281_v52, %v281_v52  ;;  %v4717_v25 = vadd.s32 128, %v3691_v47  ;;  %v1942_v24 = vsel %vm1941_vm15, 1, %v5821_v3  ;;  %v435_v0 = vor.u32 %v433_v40, %v4586_v21 }
 0x11f   : > { %v553_v55 = vpop.f32.mrf.mxu0  ;;  %v1167_v39 = vadd.f32 %v1106_v22, %v688_v1  ;;  %v997_v14 = vsel %vm300_vm3, %v992_v19, %v996_v20  ;;  %vm4727_vm2 = vcmp.lt.s32.totalorder %v2622_v10, 16  ;;  %vm2487_vm0 = vcmp.ne.s32.totalorder %v4710_v57, 0 }
 0x120   : > { %v690_v38 = vadd.f32 %v689_v46, %v553_v55  ;;  %3475 = vmatmul.msk.bf16.gmra.mxu2 %vm446_vm1, %v997_v14  ;;  %v437_v16 = vshll.u32 %v299_v6, 16  ;;  %v1955_v61 = vand.u32 65535, %v4717_v25  ;;  %v1956_v22 = vshrl.u32 %v4717_v25, 16 }
 0x121   : > { %v4721_v41 = vadd.f32 %v1336_v36, %v1167_v39  ;;  %vm2521_vm4 = vcmp.lt.s32.totalorder %v4710_v57, 0  ;;  %v1934_v36 = vshrl.u32 %v4664_v32, 16  ;;  %v1918_v63 = vshrl.u32 %v1917_v45, 4  ;;  %v692_v32 = vpop.f32.mrf.mxu1 }
 0x122   : > { %v1944_v58 = vadd.s32 %v1942_v24, %v1940_v59  ;;  %v439_v44 = vrot.slane %v437_v16, 1  ;;  %v1959_v21 = vmul.u32 61680, %v1955_v61  ;;  %v2942_v1 = vadd.f32 %v2941_v43, %v2940_v49  ;;  %vm4749_vm5 = vmand %vm2521_vm4, %vm2487_vm0 }
 0x123   : > { %v1338_v23 = vpop.f32.mrf.mxu3  ;;  %v2943_v35 = vsel %vm2780_vm12, %v2899_v33, 0.0  ;;  %v1958_v46 = vmul.u32 61681, %v1955_v61  ;;  %v1960_v55 = vmul.u32 61681, %v1956_v22  ;;  %v2758_v10 = vsel %vm4727_vm2, %v4656_v42, 0.0 }
 0x124   : > { %v2589_v8 = vadd.s32 17, %v4710_v57  ;;  %v440_v27 = vsel %vm300_vm3, %v435_v0, %v439_v44  ;;  %v1962_v4 = vshll.u32 %v1959_v21, 16  ;;  %v2803_v52 = vadd.f32 %v4681_v5, %v4673_v34 }
 0x125   : > { %v2900_v49 = vsel %vm4727_vm2, %v4696_v28, 0.0  ;;  %3367 = vmatmul.msk.bf16.gmra.mxu0 %vm446_vm1, %v440_v27  ;;  %v1961_v33 = vmul.u32 61680, %v1956_v22  ;;  %v1964_v40 = vshll.u32 %v1960_v55, 16  ;;  %v2944_v37 = vadd.f32 %v2943_v35, %v2942_v1 }
 0x126   : > { %v1108_v29 = vpop.f32.mrf.mxu2  ;;  %v1919_v20 = vmul.u32 17, %v1918_v63  ;;  %v1936_v34 = vshrl.u32 %v4668_v26, 16  ;;  %v1945_v5 = vadd.s32 %v1944_v58, %v1934_v36  ;;  %v2804_v39 = vsel %vm2780_vm12, %v2758_v10, 0.0 }
 0x127   : > { %v556_v19 = vpop.f32.mrf.mxu0  ;;  %v4758_v28 = vadd.f32 %v4626_v53, %v4546_v13  ;;  %vm1966_vm3 = vc.u32 %v1958_v46, %v1962_v4  ;;  %v1968_v45 = vadd.s32 %v1962_v4, %v1958_v46  ;;  %v2945_v59 = vsel %vm2780_vm12, %v2900_v49, 0.0 }
 0x128   : > { %v2623_v6 = vsel %vm4749_vm5, %v2589_v8, %v4710_v57  ;;  %v1963_v24 = vshrl.u32 %v1959_v21, 16  ;;  %v1967_v14 = vsel %vm1966_vm3, 1, %v5821_v3  ;;  %v1168_v16 = vadd.f32 %v1108_v29, %v690_v38 }
 0x129   : > { %v1969_v26 = vadd.s32 %v1967_v14, %v1961_v33  ;;  %vm1970_vm1 = vc.u32 %v1968_v45, %v1964_v40  ;;  %v4766_v61 = vadd.s32 136, %v3691_v47  ;;  %v4769_v13 = vsub.s32 %v4572_v31, %v1919_v20 }
 0x12a   : > { %v1946_v22 = vadd.s32 %v1945_v5, %v1936_v34  ;;  %v1971_v9 = vsel %vm1970_vm1, 1, %v5821_v3  ;;  %v693_v36 = vadd.f32 %v692_v32, %v556_v19  ;;  %v1965_v63 = vshrl.u32 %v1960_v55, 16  ;;  %v694_v32 = vpop.f32.mrf.mxu1 }
 0x12b   : > { %v1973_v58 = vadd.s32 %v1971_v9, %v1969_v26  ;;  %v4772_v57 = vadd.f32 %v1338_v23, %v1168_v16  ;;  %v1984_v44 = vand.u32 65535, %v4766_v61  ;;  %v2867_v21 = vmul.f32 %v4758_v28, %v4758_v28  ;;  %v1341_v29 = vpop.f32.mrf.mxu3 }
 0x12c   : > { %v1985_v38 = vshrl.u32 %v4766_v61, 16  ;;  %v4779_v31 = vadd.s32 144, %v3691_v47  ;;  %v4781_v35 = vadd.f32 %v2804_v39, %v2803_v52  ;;  %v4783_v46 = vadd.f32 %v2945_v59, %v2944_v37 }
 0x12d   : > { %v4787_v23 = vadd.f32 %v4626_v53, %v4608_v15  ;;  %v1974_v55 = vadd.s32 %v1973_v58, %v1963_v24  ;;  %vm4789_vm6 = vcmp.lt.s32.totalorder %v2623_v6, 16  ;;  %v1947_v8 = vshrl.u32 %v1946_v22, 4 }
 0x12e   : > { %v1111_v0 = vpop.f32.mrf.mxu2  ;;  %v1987_v27 = vmul.u32 61681, %v1984_v44  ;;  %v1988_v4 = vmul.u32 61680, %v1984_v44  ;;  %vm2488_vm7 = vcmp.ne.s32.totalorder %v4769_v13, 0  ;;  %vm2522_vm8 = vcmp.lt.s32.totalorder %v4769_v13, 0 }
 0x12f   : > { %v1169_v1 = vadd.f32 %v1111_v0, %v693_v36  ;;  %v558_v19 = vpop.f32.mrf.mxu0  ;;  %v1975_v52 = vadd.s32 %v1974_v55, %v1965_v63  ;;  %v1989_v49 = vmul.u32 61681, %v1985_v38  ;;  %v1990_v43 = vmul.u32 61680, %v1985_v38  ;;  %vm4803_vm9 = vmand %vm2522_vm8, %vm2488_vm7 }
 0x130   : > { %v1991_v33 = vshll.u32 %v1988_v4, 16  ;;  %v2013_v40 = vand.u32 65535, %v4779_v31  ;;  %v2759_v37 = vsel %vm4789_vm6, %v4758_v28, 0.0  ;;  %v2590_v20 = vadd.s32 17, %v4769_v13 }
 0x131   : > { %v4795_v15 = vadd.f32 %v1341_v29, %v1169_v1  ;;  %v1993_v34 = vshll.u32 %v1989_v49, 16  ;;  %v2014_v5 = vshrl.u32 %v4779_v31, 16  ;;  %v1948_v45 = vmul.u32 17, %v1947_v8 }
 0x132   : > { %v1976_v59 = vshrl.u32 %v1975_v52, 4  ;;  %vm1995_vm10 = vc.u32 %v1987_v27, %v1991_v33  ;;  %v1997_v6 = vadd.s32 %v1991_v33, %v1987_v27  ;;  %v2016_v0 = vmul.u32 61681, %v2013_v40 }
 0x133   : > { %v1996_v14 = vsel %vm1995_vm10, 1, %v5821_v3  ;;  %v4808_v26 = vmul.u32 61680, %v2013_v40  ;;  %v4810_v16 = vmul.u32 61681, %v2014_v5  ;;  %v2901_v22 = vsel %vm4789_vm6, %v2867_v21, 0.0  ;;  %v1343_v10 = vpop.f32.mrf.mxu3 }
 0x134   : > { %v1992_v9 = vshrl.u32 %v1988_v4, 16  ;;  %v1998_v36 = vadd.s32 %v1996_v14, %v1990_v43  ;;  %vm1999_vm11 = vc.u32 %v1997_v6, %v1993_v34  ;;  %v2806_v63 = vsel %vm2780_vm12, %v2759_v37, 0.0 }
 0x135   : > { %v2624_v58 = vsel %vm4803_vm9, %v2590_v20, %v4769_v13  ;;  %v2000_v44 = vsel %vm1999_vm11, 1, %v5821_v3  ;;  %v2020_v38 = vshll.u32 %v4808_v26, 16  ;;  %v1994_v29 = vshrl.u32 %v1989_v49, 16  ;;  %v697_v13 = vpop.f32.mrf.mxu1 }
 0x136   : > { %v1113_v24 = vpop.f32.mrf.mxu2  ;;  %v2002_v1 = vadd.s32 %v2000_v44, %v1998_v36  ;;  %v2022_v55 = vshll.u32 %v4810_v16, 16  ;;  %v695_v8 = vadd.f32 %v694_v32, %v558_v19  ;;  %v1949_v21 = vsub.s32 %v4641_v51, %v1948_v45 }
 0x137   : > { %v1977_v27 = vmul.u32 17, %v1976_v59  ;;  %v2019_v4 = vmul.u32 61680, %v2014_v5  ;;  %vm2024_vm13 = vc.u32 %v2016_v0, %v2020_v38  ;;  %v2026_v33 = vadd.s32 %v2020_v38, %v2016_v0  ;;  %v561_v37 = vpop.f32.mrf.mxu0 }
 0x138   : > { %v2003_v52 = vadd.s32 %v2002_v1, %v1992_v9  ;;  %v2025_v43 = vsel %vm2024_vm13, 1, %v5821_v3  ;;  %v1170_v40 = vadd.f32 %v1113_v24, %v695_v8  ;;  %v2947_v20 = vsel %vm2780_vm12, %v2901_v22, 0.0 }
 0x139   : > { %v2868_v49 = vmul.f32 %v4787_v23, %v4787_v23  ;;  %v4827_v32 = vadd.s32 152, %v3691_v47  ;;  %v698_v19 = vadd.f32 %v697_v13, %v561_v37  ;;  %vm4829_vm14 = vcmp.lt.s32.totalorder %v2624_v58, 16 }
 0x13a   : > { %v2004_v34 = vadd.s32 %v2003_v52, %v1994_v29  ;;  %vm2028_vm15 = vc.u32 %v2026_v33, %v2022_v55  ;;  %v4833_v5 = vadd.f32 %v1343_v10, %v1170_v40  ;;  %v2807_v39 = vadd.f32 %v2806_v63, %v4781_v35 }
 0x13b   : > { %v4838_v45 = vadd.f32 %v4626_v53, %v4662_v2  ;;  %v2027_v59 = vadd.s32 %v2025_v43, %v2019_v4  ;;  %v2042_v6 = vand.u32 65535, %v4827_v32  ;;  %vm2489_vm2 = vcmp.ne.s32.totalorder %v1949_v21, 0  ;;  %v1346_v8 = vpop.f32.mrf.mxu3 }
 0x13c   : > { %vm2523_vm0 = vcmp.lt.s32.totalorder %v1949_v21, 0  ;;  %v1978_v24 = vsub.s32 %v4717_v25, %v1977_v27  ;;  %v2029_v14 = vsel %vm2028_vm15, 1, %v5821_v3  ;;  %v2948_v22 = vadd.f32 %v2947_v20, %v4783_v46 }
 0x13d   : > { %v2760_v35 = vsel %vm4829_vm14, %v4787_v23, 0.0  ;;  %v4849_v2 = vadd.f32 %v4626_v53, %v4721_v41  ;;  %v2043_v9 = vshrl.u32 %v4827_v32, 16  ;;  %v2591_v36 = vadd.s32 17, %v1949_v21  ;;  %vm4853_vm4 = vmand %vm2523_vm0, %vm2489_vm2 }
 0x13e   : > { %v1116_v0 = vpop.f32.mrf.mxu2  ;;  %v2005_v63 = vshrl.u32 %v2004_v34, 4  ;;  %v2021_v58 = vshrl.u32 %v4808_v26, 16  ;;  %v2046_v25 = vmul.u32 61680, %v2042_v6  ;;  %v2031_v46 = vadd.s32 %v2029_v14, %v2027_v59 }
 0x13f   : > { %v2045_v38 = vmul.u32 61681, %v2042_v6  ;;  %v4857_v29 = vmul.u32 61681, %v2043_v9  ;;  %v1171_v1 = vadd.f32 %v1116_v0, %v698_v19  ;;  %v2902_v41 = vsel %vm4829_vm14, %v2868_v49, 0.0  ;;  %v699_v6 = vpop.f32.mrf.mxu1  ;;  %v563_v0 = vpop.f32.mrf.mxu0 }
 0x140   : > { %vm2490_vm5 = vcmp.ne.s32.totalorder %v1978_v24, 0  ;;  %vm2524_vm3 = vcmp.lt.s32.totalorder %v1978_v24, 0  ;;  %v2049_v55 = vshll.u32 %v2046_v25, 16  ;;  %v2048_v10 = vmul.u32 61680, %v2043_v9 }
 0x141   : > { %v2051_v26 = vshll.u32 %v4857_v29, 16  ;;  %v4862_v27 = vadd.f32 %v1346_v8, %v1171_v1  ;;  %v4865_v4 = vadd.s32 160, %v3691_v47  ;;  %v2625_v52 = vsel %vm4853_vm4, %v2591_v36, %v1949_v21  ;;  %vm4870_vm1 = vmand %vm2524_vm3, %vm2490_vm5 }
 0x142   : > { %v2592_v43 = vadd.s32 17, %v1978_v24  ;;  %v2006_v33 = vmul.u32 17, %v2005_v63  ;;  %v2023_v13 = vshrl.u32 %v4810_v16, 16  ;;  %v2032_v37 = vadd.s32 %v2031_v46, %v2021_v58 }
 0x143   : > { %vm2053_vm6 = vc.u32 %v2045_v38, %v2049_v55  ;;  %v2055_v20 = vadd.s32 %v2049_v55, %v2045_v38  ;;  %v2071_v49 = vand.u32 65535, %v4865_v4  ;;  %v2808_v19 = vsel %vm2780_vm12, %v2760_v35, 0.0 }
 0x144   : > { %v2949_v51 = vsel %vm2780_vm12, %v2902_v41, 0.0  ;;  %v2869_v21 = vmul.f32 %v4838_v45, %v4838_v45  ;;  %v2054_v34 = vsel %vm2053_vm6, 1, %v5821_v3  ;;  %vm4880_vm7 = vcmp.lt.s32.totalorder %v2625_v52, 16 }
 0x145   : > { %v2056_v59 = vadd.s32 %v2054_v34, %v2048_v10  ;;  %vm2057_vm8 = vc.u32 %v2055_v20, %v2051_v26  ;;  %v2072_v14 = vshrl.u32 %v4865_v4, 16  ;;  %v2626_v35 = vsel %vm4870_vm1, %v2592_v43, %v1978_v24 }
 0x146   : > { %v2870_v9 = vmul.f32 %v4849_v2, %v4849_v2  ;;  %v2050_v36 = vshrl.u32 %v2046_v25, 16  ;;  %v2058_v63 = vsel %vm2057_vm8, 1, %v5821_v3  ;;  %v1118_v58 = vpop.f32.mrf.mxu2  ;;  %v2007_v44 = vsub.s32 %v4766_v61, %v2006_v33 }
 0x147   : > { %v2033_v46 = vadd.s32 %v2032_v37, %v2023_v13  ;;  %v2060_v38 = vadd.s32 %v2058_v63, %v2056_v59  ;;  %v2075_v1 = vmul.u32 61680, %v2071_v49  ;;  %v2809_v41 = vadd.f32 %v2808_v19, %v2807_v39  ;;  %v566_v63 = vpop.f32.mrf.mxu0 }
 0x148   : > { %v2950_v55 = vadd.f32 %v2949_v51, %v2948_v22  ;;  %v2761_v8 = vsel %vm4880_vm7, %v4838_v45, 0.0  ;;  %v2074_v10 = vmul.u32 61681, %v2071_v49  ;;  %v2903_v24 = vsel %vm4880_vm7, %v2869_v21, 0.0  ;;  %v1348_v22 = vpop.f32.mrf.mxu3 }
 0x149   : > { %vm4896_vm9 = vcmp.lt.s32.totalorder %v2626_v35, 16  ;;  %v2052_v26 = vshrl.u32 %v4857_v29, 16  ;;  %v2076_v61 = vmul.u32 61681, %v2072_v14  ;;  %v2061_v52 = vadd.s32 %v2060_v38, %v2050_v36 }
 0x14a   : > { %v2077_v43 = vmul.u32 61680, %v2072_v14  ;;  %v2078_v33 = vshll.u32 %v2075_v1, 16  ;;  %v700_v39 = vadd.f32 %v699_v6, %v563_v0  ;;  %v2810_v13 = vsel %vm2780_vm12, %v2761_v8, 0.0 }
 0x14b   : > { %vm2491_vm10 = vcmp.ne.s32.totalorder %v2007_v44, 0  ;;  %v2034_v40 = vshrl.u32 %v2033_v46, 4  ;;  %v2080_v37 = vshll.u32 %v2076_v61, 16  ;;  %vm2525_vm11 = vcmp.lt.s32.totalorder %v2007_v44, 0 }
 0x14c   : > { %vm2082_vm13 = vc.u32 %v2074_v10, %v2078_v33  ;;  %v2084_v20 = vadd.s32 %v2078_v33, %v2074_v10  ;;  %v1172_v49 = vadd.f32 %v1118_v58, %v700_v39  ;;  %v2951_v19 = vsel %vm2780_vm12, %v2903_v24, 0.0  ;;  %vm4914_vm15 = vmand %vm2525_vm11, %vm2491_vm10 }
 0x14d   : > { %v2762_v29 = vsel %vm4896_vm9, %v4849_v2, 0.0  ;;  %v4908_v51 = vadd.f32 %v4626_v53, %v4772_v57  ;;  %v2083_v21 = vsel %vm2082_vm13, 1, %v5821_v3  ;;  %v2593_v34 = vadd.s32 17, %v2007_v44  ;;  %v702_v57 = vpop.f32.mrf.mxu1 }
 0x14e   : > { %v2062_v16 = vadd.s32 %v2061_v52, %v2052_v26  ;;  %v2085_v59 = vadd.s32 %v2083_v21, %v2077_v43  ;;  %vm2086_vm14 = vc.u32 %v2084_v20, %v2080_v37  ;;  %v2904_v6 = vsel %vm4896_vm9, %v2870_v9, 0.0  ;;  %v1121_v10 = vpop.f32.mrf.mxu2 }
 0x14f   : > { %v2035_v0 = vmul.u32 17, %v2034_v40  ;;  %v2079_v35 = vshrl.u32 %v2075_v1, 16  ;;  %v2087_v36 = vsel %vm2086_vm14, 1, %v5821_v3  ;;  %v4919_v46 = vadd.f32 %v1348_v22, %v1172_v49 }
 0x150   : > { %v2089_v58 = vadd.s32 %v2087_v36, %v2085_v59  ;;  %v4922_v38 = vadd.s32 168, %v3691_v47  ;;  %v703_v8 = vadd.f32 %v702_v57, %v566_v63  ;;  %v2811_v9 = vadd.f32 %v2810_v13, %v2809_v41 }
 0x151   : > { %v2952_v24 = vadd.f32 %v2951_v19, %v2950_v55  ;;  %v2812_v25 = vsel %vm2780_vm12, %v2762_v29, 0.0  ;;  %v4927_v26 = vadd.f32 %v4626_v53, %v4795_v15  ;;  %v2627_v1 = vsel %vm4914_vm15, %v2593_v34, %v2007_v44  ;;  %v1351_v15 = vpop.f32.mrf.mxu3 }
 0x152   : > { %v2063_v52 = vshrl.u32 %v2062_v16, 4  ;;  %v2100_v43 = vand.u32 65535, %v4922_v38  ;;  %v2101_v33 = vshrl.u32 %v4922_v38, 16  ;;  %v2953_v39 = vsel %vm2780_vm12, %v2904_v6, 0.0 }
 0x153   : > { %v2081_v22 = vshrl.u32 %v2076_v61, 16  ;;  %v2090_v40 = vadd.s32 %v2089_v58, %v2079_v35  ;;  %v1173_v41 = vadd.f32 %v1121_v10, %v703_v8  ;;  %v2036_v55 = vsub.s32 %v4779_v31, %v2035_v0 }
 0x154   : > { %v2103_v13 = vmul.u32 61681, %v2100_v43  ;;  %v2104_v37 = vmul.u32 61680, %v2100_v43  ;;  %v2105_v20 = vmul.u32 61681, %v2101_v33  ;;  %vm4935_vm2 = vcmp.lt.s32.totalorder %v2627_v1, 16 }
 0x155   : > { %v2871_v44 = vmul.f32 %v4908_v51, %v4908_v51  ;;  %v4943_v19 = vmul.f32 %v4927_v26, %v4927_v26  ;;  %v4945_v61 = vadd.f32 %v1351_v15, %v1173_v41  ;;  %v2064_v29 = vmul.u32 17, %v2063_v52 }
 0x156   : > { %v2106_v21 = vmul.u32 61680, %v2101_v33  ;;  %v2107_v31 = vshll.u32 %v2104_v37, 16  ;;  %v4948_v34 = vadd.s32 176, %v3691_v47  ;;  %v2813_v16 = vadd.f32 %v2812_v25, %v2811_v9 }
 0x157   : > { %v2954_v59 = vadd.f32 %v2953_v39, %v2952_v24  ;;  %v2091_v6 = vadd.s32 %v2090_v40, %v2081_v22  ;;  %v2109_v14 = vshll.u32 %v2105_v20, 16  ;;  %vm2492_vm0 = vcmp.ne.s32.totalorder %v2036_v55, 0 }
 0x158   : > { %vm2526_vm4 = vcmp.lt.s32.totalorder %v2036_v55, 0  ;;  %v4952_v0 = vadd.f32 %v4626_v53, %v4833_v5  ;;  %vm2111_vm5 = vc.u32 %v2103_v13, %v2107_v31  ;;  %v2763_v35 = vsel %vm4935_vm2, %v4908_v51, 0.0 }
 0x159   : > { %v2905_v36 = vsel %vm4935_vm2, %v2871_v44, 0.0  ;;  %v2112_v57 = vsel %vm2111_vm5, 1, %v5821_v3  ;;  %v2113_v63 = vadd.s32 %v2107_v31, %v2103_v13  ;;  %v2594_v58 = vadd.s32 17, %v2036_v55  ;;  %vm4964_vm3 = vmand %vm2526_vm4, %vm2492_vm0 }
 0x15a   : > { %5904 = vst [vmem:[#allocation2_spill] sm:$0xff] %v4952_v0  ;;  %v4961_v8 = vsub.s32 %v4827_v32, %v2064_v29  ;;  %v2114_v10 = vadd.s32 %v2112_v57, %v2106_v21  ;;  %v2129_v9 = vand.u32 65535, %v4948_v34  ;;  %v2092_v24 = vshrl.u32 %v2091_v6, 4 }
 0x15b   : > { %v2108_v25 = vshrl.u32 %v2104_v37, 16  ;;  %vm2115_vm1 = vc.u32 %v2113_v63, %v2109_v14  ;;  %v2130_v1 = vshrl.u32 %v4948_v34, 16  ;;  %v2814_v52 = vsel %vm2780_vm12, %v2763_v35, 0.0 }
 0x15c   : > { %v2110_v43 = vshrl.u32 %v2105_v20, 16  ;;  %v2116_v33 = vsel %vm2115_vm1, 1, %v5821_v3  ;;  %v4972_v32 = vadd.s32 184, %v3691_v47  ;;  %v2132_v22 = vmul.u32 61681, %v2129_v9 }
 0x15d   : > { %v2118_v39 = vadd.s32 %v2116_v33, %v2114_v10  ;;  %v2133_v40 = vmul.u32 61680, %v2129_v9  ;;  %v2134_v41 = vmul.u32 61681, %v2130_v1  ;;  %v2955_v13 = vsel %vm2780_vm12, %v2905_v36, 0.0 }
 0x15e   : > { %v2628_v37 = vsel %vm4964_vm3, %v2594_v58, %v2036_v55  ;;  %vm2493_vm6 = vcmp.ne.s32.totalorder %v4961_v8, 0  ;;  %vm2527_vm7 = vcmp.lt.s32.totalorder %v4961_v8, 0  ;;  %v2093_v15 = vmul.u32 17, %v2092_v24 }
 0x15f   : > { %v2119_v20 = vadd.s32 %v2118_v39, %v2108_v25  ;;  %v2135_v49 = vmul.u32 61680, %v2130_v1  ;;  %v2136_v44 = vshll.u32 %v2133_v40, 16  ;;  %v4981_v29 = vmul.f32 %v4952_v0, %v4952_v0  ;;  %vm5001_vm10 = vmand %vm2527_vm7, %vm2493_vm6 }
 0x160   : > { %v4985_v21 = vadd.f32 %v4626_v53, %v4862_v27  ;;  %v2138_v31 = vshll.u32 %v2134_v41, 16  ;;  %v2158_v6 = vand.u32 65535, %v4972_v32  ;;  %v4988_v55 = vadd.f32 %v2814_v52, %v2813_v16 }
 0x161   : > { %v2595_v14 = vadd.s32 17, %v4961_v8  ;;  %v2120_v35 = vadd.s32 %v2119_v20, %v2110_v43  ;;  %vm2140_vm8 = vc.u32 %v2132_v22, %v2136_v44  ;;  %v4991_v36 = vadd.f32 %v2955_v13, %v2954_v59  ;;  %v5012_v43 = vpop.f32.mrf.mxu0 }
 0x162   : > { %5907 = vst [vmem:[#allocation3_spill] sm:$0xff] %v4985_v21  ;;  %vm4993_vm9 = vcmp.lt.s32.totalorder %v2628_v37, 16  ;;  %v2141_v16 = vsel %vm2140_vm8, 1, %v5821_v3  ;;  %v2142_v63 = vadd.s32 %v2136_v44, %v2132_v22  ;;  %v2094_v58 = vsub.s32 %v4865_v4, %v2093_v15  ;;  %v5017_v22 = vpop.f32.mrf.mxu1  ;;  %v1123_v44 = vpop.f32.mrf.mxu2 }
 0x163   : > { %v2121_v10 = vshrl.u32 %v2120_v35, 4  ;;  %v2143_v59 = vadd.s32 %v2141_v16, %v2135_v49  ;;  %v2159_v9 = vshrl.u32 %v4972_v32, 16  ;;  %v2137_v5 = vshrl.u32 %v2133_v40, 16 }
 0x164   : > { %vm2144_vm11 = vc.u32 %v2142_v63, %v2138_v31  ;;  %v2161_v24 = vmul.u32 61681, %v2158_v6  ;;  %v2162_v25 = vmul.u32 61680, %v2158_v6  ;;  %v2629_v1 = vsel %vm5001_vm10, %v2595_v14, %v4961_v8 }
 0x165   : > { %v2145_v52 = vsel %vm2144_vm11, 1, %v5821_v3  ;;  %v2163_v33 = vmul.u32 61681, %v2159_v9  ;;  %v5015_v39 = vadd.s32 192, %v3691_v47  ;;  %v2122_v4 = vmul.u32 17, %v2121_v10 }
 0x166   : > { %v2147_v13 = vadd.s32 %v2145_v52, %v2143_v59  ;;  %v2164_v40 = vmul.u32 61680, %v2159_v9  ;;  %v2165_v37 = vshll.u32 %v2162_v25, 16  ;;  %vm2494_vm13 = vcmp.ne.s32.totalorder %v2094_v58, 0 }
 0x167   : > { %vm2528_vm14 = vcmp.lt.s32.totalorder %v2094_v58, 0  ;;  %v2139_v15 = vshrl.u32 %v2134_v41, 16  ;;  %v2167_v20 = vshll.u32 %v2163_v33, 16  ;;  %v2764_v8 = vsel %vm4993_vm9, %v4927_v26, 0.0 }
 0x168   : > { %v2148_v49 = vadd.s32 %v2147_v13, %v2137_v5  ;;  %vm2169_vm15 = vc.u32 %v2161_v24, %v2165_v37  ;;  %v2171_v31 = vadd.s32 %v2165_v37, %v2161_v24  ;;  %v2906_v6 = vsel %vm4993_vm9, %v4943_v19, 0.0  ;;  %vm5030_vm0 = vmand %vm2528_vm14, %vm2494_vm13  ;;  %v1353_v37 = vpop.f32.mrf.mxu3 }
 0x169   : > { %vm5025_vm2 = vcmp.lt.s32.totalorder %v2629_v1, 16  ;;  %v2596_v35 = vadd.s32 17, %v2094_v58  ;;  %v2170_v41 = vsel %vm2169_vm15, 1, %v5821_v3  ;;  %v2123_v16 = vsub.s32 %v4922_v38, %v2122_v4 }
 0x16a   : > { %v2166_v63 = vshrl.u32 %v2162_v25, 16  ;;  %v2172_v10 = vadd.s32 %v2170_v41, %v2164_v40  ;;  %vm2173_vm4 = vc.u32 %v2171_v31, %v2167_v20  ;;  %v2149_v59 = vadd.s32 %v2148_v49, %v2139_v15  ;;  %v571_v49 = vpop.f32.mrf.mxu0  ;;  %v707_v14 = vpop.f32.mrf.mxu1 }
 0x16b   : > { %v2174_v57 = vsel %vm2173_vm4, 1, %v5821_v3  ;;  %v2187_v19 = vand.u32 65535, %v5015_v39  ;;  %v2188_v9 = vshrl.u32 %v5015_v39, 16  ;;  %v2816_v5 = vsel %vm2780_vm12, %v2764_v8, 0.0 }
 0x16c   : > { %v2765_v24 = vsel %vm5025_vm2, %v4952_v0, 0.0  ;;  %v2874_v1 = vmul.f32 %v4985_v21, %v4985_v21  ;;  %v2176_v38 = vadd.s32 %v2174_v57, %v2172_v10  ;;  %v2957_v25 = vsel %vm2780_vm12, %v2906_v6, 0.0 }
 0x16d   : > { %v2630_v52 = vsel %vm5030_vm0, %v2596_v35, %v2094_v58  ;;  %v2168_v4 = vshrl.u32 %v2163_v33, 16  ;;  %v5047_v13 = vmul.u32 61680, %v2187_v19  ;;  %v2907_v40 = vsel %vm5025_vm2, %v4981_v29, 0.0 }
 0x16e   : > { %vm2495_vm5 = vcmp.ne.s32.totalorder %v2123_v16, 0  ;;  %vm2529_vm3 = vcmp.lt.s32.totalorder %v2123_v16, 0  ;;  %v2177_v15 = vadd.s32 %v2176_v38, %v2166_v63  ;;  %v2818_v20 = vsel %vm2780_vm12, %v2765_v24, 0.0 }
 0x16f   : > { %v2150_v8 = vshrl.u32 %v2149_v59, 4  ;;  %v2190_v31 = vmul.u32 61681, %v2187_v19  ;;  %v5053_v6 = vmul.u32 61681, %v2188_v9  ;;  %v2817_v58 = vadd.f32 %v2816_v5, %v4988_v55  ;;  %vm5063_vm6 = vmand %vm2529_vm3, %vm2495_vm5 }
 0x170   : > { %vm5056_vm1 = vcmp.lt.s32.totalorder %v2630_v52, 16  ;;  %v2597_v35 = vadd.s32 17, %v2123_v16  ;;  %v2194_v29 = vshll.u32 %v5047_v13, 16  ;;  %v2958_v41 = vadd.f32 %v2957_v25, %v4991_v36  ;;  %v1126_v36 = vpop.f32.mrf.mxu2 }
 0x171   : > { %v2178_v63 = vadd.s32 %v2177_v15, %v2168_v4  ;;  %v2193_v10 = vmul.u32 61680, %v2188_v9  ;;  %v2196_v59 = vshll.u32 %v5053_v6, 16  ;;  %v2819_v55 = vadd.f32 %v2818_v20, %v2817_v58 }
 0x172   : > { %v2959_v57 = vsel %vm2780_vm12, %v2907_v40, 0.0  ;;  %v5071_v19 = vadd.f32 %v4626_v53, %v4919_v46  ;;  %v5075_v5 = vadd.f32 %v4626_v53, %v4945_v61  ;;  %v2766_v24 = vsel %vm5056_vm1, %v4985_v21, 0.0 }
 0x173   : > { %v2151_v38 = vmul.u32 17, %v2150_v8  ;;  %vm2198_vm7 = vc.u32 %v2190_v31, %v2194_v29  ;;  %v2200_v9 = vadd.s32 %v2194_v29, %v2190_v31  ;;  %v2908_v25 = vsel %vm5056_vm1, %v2874_v1, 0.0 }
 0x174   : > { %5920 = vst [vmem:[#allocation4_spill] sm:$0xff] %v5071_v19  ;;  %v2631_v52 = vsel %vm5063_vm6, %v2597_v35, %v2123_v16  ;;  %v705_v46 = vadd.f32 %v5017_v22, %v5012_v43  ;;  %v2199_v61 = vsel %vm2198_vm7, 1, %v5821_v3  ;;  %v2179_v4 = vshrl.u32 %v2178_v63, 4  ;;  %v573_v63 = vpop.f32.mrf.mxu0 }
 0x175   : > { %5921 = vst [vmem:[#allocation5_spill] sm:$0xff] %v5075_v5  ;;  %v2201_v40 = vadd.s32 %v2199_v61, %v2193_v10  ;;  %vm2202_vm8 = vc.u32 %v2200_v9, %v2196_v59  ;;  %v5088_v15 = vadd.s32 200, %v3691_v47  ;;  %v2820_v20 = vsel %vm2780_vm12, %v2766_v24, 0.0  ;;  %v709_v59 = vpop.f32.mrf.mxu1 }
 0x176   : > { %v1174_v8 = vadd.f32 %v1123_v44, %v705_v46  ;;  %v708_v31 = vadd.f32 %v707_v14, %v571_v49  ;;  %v2203_v1 = vsel %vm2202_vm8, 1, %v5821_v3  ;;  %vm5092_vm9 = vcmp.lt.s32.totalorder %v2631_v52, 16  ;;  %v1356_v49 = vpop.f32.mrf.mxu3 }
 0x177   : > { %v5097_v43 = vsub.s32 %v4948_v34, %v2151_v38  ;;  %v2195_v22 = vshrl.u32 %v5047_v13, 16  ;;  %v2205_v16 = vadd.s32 %v2203_v1, %v2201_v40  ;;  %v2960_v33 = vadd.f32 %v2959_v57, %v2958_v41 }
 0x178   : > { %v2961_v35 = vsel %vm2780_vm12, %v2908_v25, 0.0  ;;  %v2875_v29 = vmul.f32 %v5071_v19, %v5071_v19  ;;  %v5105_v44 = vmul.f32 %v5075_v5, %v5075_v5  ;;  %v2821_v14 = vadd.f32 %v2820_v20, %v2819_v55  ;;  %v1128_v25 = vpop.f32.mrf.mxu2 }
 0x179   : > { %v2180_v27 = vmul.u32 17, %v2179_v4  ;;  %v2216_v34 = vand.u32 65535, %v5088_v15  ;;  %v2217_v10 = vshrl.u32 %v5088_v15, 16  ;;  %v2767_v13 = vsel %vm5092_vm9, %v5071_v19, 0.0 }
 0x17a   : > { %v1404_v41 = vadd.f32 %v1353_v37, %v1174_v8  ;;  %v1175_v57 = vadd.f32 %v1126_v36, %v708_v31  ;;  %v2197_v24 = vshrl.u32 %v5053_v6, 16  ;;  %vm2496_vm10 = vcmp.ne.s32.totalorder %v5097_v43, 0 }
 0x17b   : > { %vm2530_vm11 = vcmp.lt.s32.totalorder %v5097_v43, 0  ;;  %v2206_v55 = vadd.s32 %v2205_v16, %v2195_v22  ;;  %v2220_v38 = vmul.u32 61680, %v2216_v34  ;;  %v2909_v9 = vsel %vm5092_vm9, %v2875_v29, 0.0 }
 0x17c   : > { %v2219_v52 = vmul.u32 61681, %v2216_v34  ;;  %v2221_v46 = vmul.u32 61681, %v2217_v10  ;;  %v5118_v61 = vadd.s32 208, %v3691_v47  ;;  %v2962_v37 = vadd.f32 %v2961_v35, %v2960_v33  ;;  %vm5124_vm13 = vmand %vm2530_vm11, %vm2496_vm10 }
 0x17d   : > { %v2598_v36 = vadd.s32 17, %v5097_v43  ;;  %v5122_v6 = vsub.s32 %v4972_v32, %v2180_v27  ;;  %v2223_v4 = vshll.u32 %v2220_v38, 16  ;;  %v5129_v20 = vadd.f32 %v4626_v53, %v1404_v41 }
 0x17e   : > { %v710_v8 = vadd.f32 %v709_v59, %v573_v63  ;;  %v2222_v31 = vmul.u32 61680, %v2217_v10  ;;  %v2225_v1 = vshll.u32 %v2221_v46, 16  ;;  %v2822_v58 = vsel %vm2780_vm12, %v2767_v13, 0.0  ;;  %v1358_v34 = vpop.f32.mrf.mxu3 }
 0x17f   : > { %5926 = vst [vmem:[#allocation6_spill] sm:$0xff] %v5129_v20  ;;  %v2963_v22 = vsel %vm2780_vm12, %v2909_v9, 0.0  ;;  %v1405_v16 = vadd.f32 %v1356_v49, %v1175_v57  ;;  %v2207_v33 = vadd.s32 %v2206_v55, %v2197_v24  ;;  %vm2227_vm14 = vc.u32 %v2219_v52, %v2223_v4  ;;  %v576_v57 = vpop.f32.mrf.mxu0  ;;  %v712_v55 = vpop.f32.mrf.mxu1 }
 0x180   : > { %v1176_v35 = vadd.f32 %v1128_v25, %v710_v8  ;;  %v2229_v32 = vadd.s32 %v2223_v4, %v2219_v52  ;;  %v2245_v29 = vand.u32 65535, %v5118_v61  ;;  %v2632_v27 = vsel %vm5124_vm13, %v2598_v36, %v5097_v43 }
 0x181   : > { %vm2497_vm15 = vcmp.ne.s32.totalorder %v5122_v6, 0  ;;  %v2228_v53 = vsel %vm2227_vm14, 1, %v5821_v3  ;;  %v2246_v63 = vshrl.u32 %v5118_v61, 16  ;;  %v2224_v10 = vshrl.u32 %v2220_v38, 16  ;;  %v5149_v38 = vld [vmem:[%s5817_s2] ss:$0 sm:$0xff] }
 0x182   : > { %v2230_v13 = vadd.s32 %v2228_v53, %v2222_v31  ;;  %vm2231_vm2 = vc.u32 %v2229_v32, %v2225_v1  ;;  %v2249_v49 = vmul.u32 61680, %v2245_v29  ;;  %vm2531_vm0 = vcmp.lt.s32.totalorder %v5122_v6, 0  ;;  %v1131_v1 = vpop.f32.mrf.mxu2 }
 0x183   : > { %v2208_v41 = vshrl.u32 %v2207_v33, 4  ;;  %v2232_v59 = vsel %vm2231_vm2, 1, %v5821_v3  ;;  %v2248_v24 = vmul.u32 61681, %v2245_v29  ;;  %v2226_v43 = vshrl.u32 %v2221_v46, 16  ;;  %vm5163_vm5 = vmand %vm2531_vm0, %vm2497_vm15 }
 0x184   : > { %v2234_v9 = vadd.s32 %v2232_v59, %v2230_v13  ;;  %v2250_v25 = vmul.u32 61681, %v2246_v63  ;;  %v2252_v52 = vshll.u32 %v2249_v49, 16  ;;  %v2823_v36 = vadd.f32 %v2822_v58, %v2821_v14 }
 0x185   : > { %v5144_v4 = vmul.f32 %v5129_v20, %v5129_v20  ;;  %v5152_v40 = vadd.f32 %v5149_v38, %v1405_v16  ;;  %v2251_v8 = vmul.u32 61680, %v2246_v63  ;;  %vm5154_vm4 = vcmp.lt.s32.totalorder %v2632_v27, 16 }
 0x186   : > { %v2599_v46 = vadd.s32 17, %v5122_v6  ;;  %v2235_v14 = vadd.s32 %v2234_v9, %v2224_v10  ;;  %v2254_v58 = vshll.u32 %v2250_v25, 16  ;;  %v2964_v33 = vadd.f32 %v2963_v22, %v2962_v37  ;;  %v1361_v9 = vpop.f32.mrf.mxu3 }
 0x187   : > { %5927 = vst [vmem:[#allocation7_spill] sm:$0xff] %v5152_v40  ;;  %v2209_v16 = vmul.u32 17, %v2208_v41  ;;  %vm2256_vm3 = vc.u32 %v2248_v24, %v2252_v52  ;;  %v2258_v29 = vadd.s32 %v2252_v52, %v2248_v24  ;;  %v1406_v27 = vadd.f32 %v1358_v34, %v1176_v35 }
 0x188   : > { %v2236_v53 = vadd.s32 %v2235_v14, %v2226_v43  ;;  %v713_v63 = vadd.f32 %v712_v55, %v576_v57  ;;  %v2257_v13 = vsel %vm2256_vm3, 1, %v5821_v3  ;;  %v2768_v37 = vsel %vm5154_vm4, %v5075_v5, 0.0  ;;  %v578_v14 = vpop.f32.mrf.mxu0 }
 0x189   : > { %v2253_v22 = vshrl.u32 %v2249_v49, 16  ;;  %v2259_v10 = vadd.s32 %v2257_v13, %v2251_v8  ;;  %vm2260_vm1 = vc.u32 %v2258_v29, %v2254_v58  ;;  %v2910_v59 = vsel %vm5154_vm4, %v5105_v44, 0.0  ;;  %v714_v58 = vpop.f32.mrf.mxu1 }
 0x18a   : > { %v2633_v41 = vsel %vm5163_vm5, %v2599_v46, %v5122_v6  ;;  %v2261_v35 = vsel %vm2260_vm1, 1, %v5821_v3  ;;  %v5179_v34 = vadd.s32 216, %v3691_v47  ;;  %v5182_v57 = vsub.s32 %v5015_v39, %v2209_v16 }
 0x18b   : > { %v2237_v24 = vshrl.u32 %v2236_v53, 4  ;;  %v2255_v49 = vshrl.u32 %v2250_v25, 16  ;;  %v2263_v55 = vadd.s32 %v2261_v35, %v2259_v10  ;;  %v2824_v43 = vsel %vm2780_vm12, %v2768_v37, 0.0 }
 0x18c   : > { %v2274_v44 = vand.u32 65535, %v5179_v34  ;;  %v2275_v52 = vshrl.u32 %v5179_v34, 16  ;;  %v5188_v6 = vadd.s32 224, %v3691_v47  ;;  %v2965_v8 = vsel %vm2780_vm12, %v2910_v59, 0.0 }
 0x18d   : > { %v5192_v31 = vadd.f32 %v5149_v38, %v1406_v27  ;;  %v1177_v39 = vadd.f32 %v1131_v1, %v713_v63  ;;  %v2264_v46 = vadd.s32 %v2263_v55, %v2253_v22  ;;  %vm5194_vm6 = vcmp.lt.s32.totalorder %v2633_v41, 16  ;;  %v1133_v27 = vpop.f32.mrf.mxu2 }
 0x18e   : > { %v2277_v32 = vmul.u32 61681, %v2274_v44  ;;  %v2278_v16 = vmul.u32 61680, %v2274_v44  ;;  %v2279_v29 = vmul.u32 61681, %v2275_v52  ;;  %vm2498_vm7 = vcmp.ne.s32.totalorder %v5182_v57, 0 }
 0x18f   : > { %5932 = vst [vmem:[#allocation8_spill] sm:$0xff] %v5192_v31  ;;  %vm2532_vm8 = vcmp.lt.s32.totalorder %v5182_v57, 0  ;;  %v2238_v53 = vmul.u32 17, %v2237_v24  ;;  %v2265_v13 = vadd.s32 %v2264_v46, %v2255_v49  ;;  %v2825_v37 = vadd.f32 %v2824_v43, %v2823_v36 }
 0x190   : > { %v2280_v10 = vmul.u32 61680, %v2275_v52  ;;  %v2281_v1 = vshll.u32 %v2278_v16, 16  ;;  %v2303_v63 = vand.u32 65535, %v5188_v6  ;;  %v2966_v22 = vadd.f32 %v2965_v8, %v2964_v33  ;;  %vm5205_vm9 = vmand %vm2532_vm8, %vm2498_vm7 }
 0x191   : > { %v2600_v59 = vadd.s32 17, %v5182_v57  ;;  %v1407_v41 = vadd.f32 %v1361_v9, %v1177_v39  ;;  %v2283_v35 = vshll.u32 %v2279_v29, 16  ;;  %v2769_v55 = vsel %vm5194_vm6, %v5129_v20, 0.0  ;;  %v717_v44 = vpop.f32.mrf.mxu1 }
 0x192   : > { %vm2285_vm10 = vc.u32 %v2277_v32, %v2281_v1  ;;  %v2287_v36 = vadd.s32 %v2281_v1, %v2277_v32  ;;  %v2304_v24 = vshrl.u32 %v5188_v6, 16  ;;  %v2911_v33 = vsel %vm5194_vm6, %v5144_v4, 0.0  ;;  %v1363_v4 = vpop.f32.mrf.mxu3 }
 0x193   : > { %v2239_v49 = vsub.s32 %v5088_v15, %v2238_v53  ;;  %v2266_v43 = vshrl.u32 %v2265_v13, 4  ;;  %v2286_v9 = vsel %vm2285_vm10, 1, %v5821_v3  ;;  %v2282_v52 = vshrl.u32 %v2278_v16, 16 }
 0x194   : > { %v2288_v8 = vadd.s32 %v2286_v9, %v2280_v10  ;;  %vm2289_vm11 = vc.u32 %v2287_v36, %v2283_v35  ;;  %v5215_v39 = vmul.u32 61680, %v2303_v63  ;;  %v2826_v46 = vsel %vm2780_vm12, %v2769_v55, 0.0  ;;  %v581_v35 = vpop.f32.mrf.mxu0 }
 0x195   : > { %v2634_v32 = vsel %vm5205_vm9, %v2600_v59, %v5182_v57  ;;  %v715_v1 = vadd.f32 %v714_v58, %v578_v14  ;;  %v2290_v25 = vsel %vm2289_vm11, 1, %v5821_v3  ;;  %v2284_v20 = vshrl.u32 %v2279_v29, 16 }
 0x196   : > { %v2292_v15 = vadd.s32 %v2290_v25, %v2288_v8  ;;  %v2306_v53 = vmul.u32 61681, %v2303_v63  ;;  %v5222_v13 = vmul.u32 61681, %v2304_v24  ;;  %v2967_v16 = vsel %vm2780_vm12, %v2911_v33, 0.0 }
 0x197   : > { %vm2499_vm13 = vcmp.ne.s32.totalorder %v2239_v49, 0  ;;  %vm2533_vm14 = vcmp.lt.s32.totalorder %v2239_v49, 0  ;;  %v2267_v10 = vmul.u32 17, %v2266_v43  ;;  %v5226_v55 = vadd.f32 %v5149_v38, %v1407_v41  ;;  %v1136_v43 = vpop.f32.mrf.mxu2 }
 0x198   : > { %v1178_v57 = vadd.f32 %v1133_v27, %v715_v1  ;;  %v2293_v14 = vadd.s32 %v2292_v15, %v2282_v52  ;;  %v2310_v58 = vshll.u32 %v5215_v39, 16  ;;  %vm5229_vm15 = vcmp.lt.s32.totalorder %v2634_v32, 16  ;;  %vm5237_vm2 = vmand %vm2533_vm14, %vm2499_vm13 }
 0x199   : > { %5937 = vst [vmem:[#allocation9_spill] sm:$0xff] %v5226_v55  ;;  %v2601_v63 = vadd.s32 17, %v2239_v49  ;;  %v2312_v59 = vshll.u32 %v5222_v13, 16  ;;  %v5235_v36 = vadd.s32 232, %v3691_v47  ;;  %v2309_v27 = vmul.u32 61680, %v2304_v24 }
 0x19a   : > { %v2294_v41 = vadd.s32 %v2293_v14, %v2284_v20  ;;  %vm2314_vm0 = vc.u32 %v2306_v53, %v2310_v58  ;;  %v2316_v9 = vadd.s32 %v2310_v58, %v2306_v53  ;;  %v2878_v52 = vmul.f32 %v5152_v40, %v5152_v40 }
 0x19b   : > { %v5245_v8 = vmul.f32 %v5192_v31, %v5192_v31  ;;  %v2268_v32 = vsub.s32 %v5118_v61, %v2267_v10  ;;  %v2315_v1 = vsel %vm2314_vm0, 1, %v5821_v3  ;;  %v2827_v25 = vadd.f32 %v2826_v46, %v2825_v37 }
 0x19c   : > { %v2968_v15 = vadd.f32 %v2967_v16, %v2966_v22  ;;  %v5251_v20 = vmul.f32 %v5226_v55, %v5226_v55  ;;  %v718_v24 = vadd.f32 %v717_v44, %v581_v35  ;;  %v2770_v53 = vsel %vm5229_vm15, %v5152_v40, 0.0  ;;  %v1366_v16 = vpop.f32.mrf.mxu3  ;;  %v583_v29 = vpop.f32.mrf.mxu0 }
 0x19d   : > { %v2635_v14 = vsel %vm5237_vm2, %v2601_v63, %v2239_v49  ;;  %v1408_v58 = vadd.f32 %v1363_v4, %v1178_v57  ;;  %vm2318_vm4 = vc.u32 %v2316_v9, %v2312_v59  ;;  %v2295_v5 = vshrl.u32 %v2294_v41, 4 }
 0x19e   : > { %v2317_v61 = vadd.s32 %v2315_v1, %v2309_v27  ;;  %v2332_v10 = vand.u32 65535, %v5235_v36  ;;  %v2333_v37 = vshrl.u32 %v5235_v36, 16  ;;  %v2912_v22 = vsel %vm5229_vm15, %v2878_v52, 0.0  ;;  %v719_v27 = vpop.f32.mrf.mxu1 }
 0x19f   : > { %vm2500_vm5 = vcmp.ne.s32.totalorder %v2268_v32, 0  ;;  %vm2534_vm3 = vcmp.lt.s32.totalorder %v2268_v32, 0  ;;  %v2319_v46 = vsel %vm2318_vm4, 1, %v5821_v3  ;;  %v1179_v35 = vadd.f32 %v1136_v43, %v718_v24  ;;  %v1138_v19 = vpop.f32.mrf.mxu2 }
 0x1a0   : > { %v2335_v44 = vmul.u32 61681, %v2332_v10  ;;  %v5263_v33 = vmul.u32 61680, %v2332_v10  ;;  %v5265_v49 = vmul.u32 61681, %v2333_v37  ;;  %v2828_v4 = vsel %vm2780_vm12, %v2770_v53, 0.0  ;;  %vm5275_vm6 = vmand %vm2534_vm3, %vm2500_vm5 }
 0x1a1   : > { %vm5268_vm1 = vcmp.lt.s32.totalorder %v2635_v14, 16  ;;  %v2602_v63 = vadd.s32 17, %v2268_v32  ;;  %v5273_v59 = vadd.s32 240, %v3691_v47  ;;  %v2296_v43 = vmul.u32 17, %v2295_v5 }
 0x1a2   : > { %v2311_v9 = vshrl.u32 %v5215_v39, 16  ;;  %v2321_v52 = vadd.s32 %v2319_v46, %v2317_v61  ;;  %v2339_v1 = vshll.u32 %v5263_v33, 16  ;;  %v2969_v24 = vsel %vm2780_vm12, %v2912_v22, 0.0 }
 0x1a3   : > { %v5283_v53 = vadd.f32 %v5149_v38, %v1408_v58  ;;  %v2338_v14 = vmul.u32 61680, %v2333_v37  ;;  %v2341_v10 = vshll.u32 %v5265_v49, 16  ;;  %v2829_v3 = vadd.f32 %v2828_v4, %v2827_v25 }
 0x1a4   : > { %v1409_v40 = vadd.f32 %v1366_v16, %v1179_v35  ;;  %vm2343_vm7 = vc.u32 %v2335_v44, %v2339_v1  ;;  %v2345_v21 = vadd.s32 %v2339_v1, %v2335_v44  ;;  %v2771_v5 = vsel %vm5268_vm1, %v5192_v31, 0.0 }
 0x1a5   : > { %5946 = vst [vmem:[#allocation10_spill] sm:$0xff] %v5283_v53  ;;  %v2636_v39 = vsel %vm5275_vm6, %v2602_v63, %v2268_v32  ;;  %v5947_v61 = vmov 0   ;;  %v2361_v58 = vand.u32 65535, %v5273_v59  ;;  %v2297_v37 = vsub.s32 %v5179_v34, %v2296_v43 }
 0x1a6   : > { %v2344_v22 = vsel %vm2343_vm7, 1, %v5947_v61  ;;  %v2313_v46 = vshrl.u32 %v5222_v13, 16  ;;  %v2322_v25 = vadd.s32 %v2321_v52, %v2311_v9  ;;  %vm2347_vm8 = vc.u32 %v2345_v21, %v2341_v10  ;;  %v586_v52 = vpop.f32.mrf.mxu0  ;;  %v722_v10 = vpop.f32.mrf.mxu1 }
 0x1a7   : > { %v2970_v16 = vadd.f32 %v2969_v24, %v2968_v15  ;;  %v5297_v35 = vmul.f32 %v5283_v53, %v5283_v53  ;;  %v720_v44 = vadd.f32 %v719_v27, %v583_v29  ;;  %v2346_v4 = vadd.s32 %v2344_v22, %v2338_v14  ;;  %v1368_v27 = vpop.f32.mrf.mxu3 }
 0x1a8   : > { %v2830_v41 = vsel %vm2780_vm12, %v2771_v5, 0.0  ;;  %v2913_v32 = vsel %vm5268_vm1, %v5245_v8, 0.0  ;;  %v5304_v63 = vadd.f32 %v5149_v38, %v1409_v40  ;;  %v2348_v34 = vsel %vm2347_vm8, 1, %v5947_v61 }
 0x1a9   : > { %vm5307_vm9 = vcmp.lt.s32.totalorder %v2636_v39, 16  ;;  %v1180_v13 = vadd.f32 %v1138_v19, %v720_v44  ;;  %v2362_v15 = vshrl.u32 %v5273_v59, 16  ;;  %v2365_v29 = vmul.u32 61680, %v2361_v58 }
 0x1aa   : > { %vm2501_vm10 = vcmp.ne.s32.totalorder %v2297_v37, 0  ;;  %vm2535_vm11 = vcmp.lt.s32.totalorder %v2297_v37, 0  ;;  %v2323_v43 = vadd.s32 %v2322_v25, %v2313_v46  ;;  %v2364_v9 = vmul.u32 61681, %v2361_v58  ;;  %v1141_v25 = vpop.f32.mrf.mxu2 }
 0x1ab   : > { %v2971_v8 = vsel %vm2780_vm12, %v2913_v32, 0.0  ;;  %v2340_v40 = vshrl.u32 %v5263_v33, 16  ;;  %v2350_v57 = vadd.s32 %v2348_v34, %v2346_v4  ;;  %v2366_v1 = vmul.u32 61681, %v2362_v15  ;;  %vm5322_vm13 = vmand %vm2535_vm11, %vm2501_vm10 }
 0x1ac   : > { %v2831_v24 = vadd.f32 %v2830_v41, %v2829_v3  ;;  %v2603_v14 = vadd.s32 17, %v2297_v37  ;;  %v2367_v5 = vmul.u32 61680, %v2362_v15  ;;  %v2368_v19 = vshll.u32 %v2365_v29, 16 }
 0x1ad   : > { %v2772_v39 = vsel %vm5307_vm9, %v5226_v55, 0.0  ;;  %v2914_v22 = vsel %vm5307_vm9, %v5251_v20, 0.0  ;;  %v1410_v58 = vadd.f32 %v1368_v27, %v1180_v13  ;;  %v2370_v3 = vshll.u32 %v2366_v1, 16 }
 0x1ae   : > { %v2324_v46 = vshrl.u32 %v2323_v43, 4  ;;  %vm2372_vm14 = vc.u32 %v2364_v9, %v2368_v19  ;;  %v2374_v44 = vadd.s32 %v2368_v19, %v2364_v9  ;;  %v5327_v4 = vadd.s32 248, %v3691_v47 }
 0x1af   : > { %v2972_v41 = vadd.f32 %v2971_v8, %v2970_v16  ;;  %v2342_v32 = vshrl.u32 %v5265_v49, 16  ;;  %v2351_v34 = vadd.s32 %v2350_v57, %v2340_v40  ;;  %v2373_v20 = vsel %vm2372_vm14, 1, %v5947_v61 }
 0x1b0   : > { %v2832_v21 = vsel %vm2780_vm12, %v2772_v39, 0.0  ;;  %v2637_v15 = vsel %vm5322_vm13, %v2603_v14, %v2297_v37  ;;  %v723_v13 = vadd.f32 %v722_v10, %v586_v52  ;;  %v2375_v27 = vadd.s32 %v2373_v20, %v2367_v5 }
 0x1b1   : > { %v2973_v43 = vsel %vm2780_vm12, %v2914_v22, 0.0  ;;  %v5336_v9 = vadd.f32 %v5149_v38, %v1410_v58  ;;  %v2369_v19 = vshrl.u32 %v2365_v29, 16  ;;  %vm2376_vm15 = vc.u32 %v2374_v44, %v2370_v3  ;;  %v1371_v29 = vpop.f32.mrf.mxu3  ;;  %v588_v58 = vpop.f32.mrf.mxu0 }
 0x1b2   : > { %v2325_v16 = vmul.u32 17, %v2324_v46  ;;  %v2377_v49 = vsel %vm2376_vm15, 1, %v5947_v61  ;;  %v2390_v8 = vand.u32 65535, %v5327_v4  ;;  %v2391_v40 = vshrl.u32 %v5327_v4, 16 }
 0x1b3   : > { %vm5341_vm2 = vcmp.lt.s32.totalorder %v2637_v15, 16  ;;  %v2352_v37 = vadd.s32 %v2351_v34, %v2342_v32  ;;  %v2371_v52 = vshrl.u32 %v2366_v1, 16  ;;  %v2379_v14 = vadd.s32 %v2377_v49, %v2375_v27 }
 0x1b4   : > { %v2833_v10 = vadd.f32 %v2832_v21, %v2831_v24  ;;  %v5347_v5 = vmul.f32 %v5304_v63, %v5304_v63  ;;  %v1181_v39 = vadd.f32 %v1141_v25, %v723_v13  ;;  %v5350_v22 = vadd.s32 256, %v3691_v47  ;;  %v724_v25 = vpop.f32.mrf.mxu1 }
 0x1b5   : > { %v2380_v33 = vadd.s32 %v2379_v14, %v2369_v19  ;;  %v2393_v3 = vmul.u32 61681, %v2390_v8  ;;  %v2394_v46 = vmul.u32 61680, %v2390_v8  ;;  %v2395_v44 = vmul.u32 61681, %v2391_v40  ;;  %v1143_v19 = vpop.f32.mrf.mxu2 }
 0x1b6   : > { %v5352_v20 = vadd.f32 %v2973_v43, %v2972_v41  ;;  %v2773_v1 = vsel %vm5341_vm2, %v5283_v53, 0.0  ;;  %v2326_v24 = vsub.s32 %v5188_v6, %v2325_v16  ;;  %v5360_v32 = vmul.f32 %v5336_v9, %v5336_v9 }
 0x1b7   : > { %v2353_v34 = vshrl.u32 %v2352_v37, 4  ;;  %v2381_v21 = vadd.s32 %v2380_v33, %v2371_v52  ;;  %v2396_v15 = vmul.u32 61680, %v2391_v40  ;;  %v2397_v13 = vshll.u32 %v2394_v46, 16 }
 0x1b8   : > { %v1411_v27 = vadd.f32 %v1371_v29, %v1181_v39  ;;  %v2399_v49 = vshll.u32 %v2395_v44, 16  ;;  %v2419_v41 = vand.u32 65535, %v5350_v22  ;;  %v2420_v43 = vshrl.u32 %v5350_v22, 16 }
 0x1b9   : > { %v2834_v8 = vsel %vm2780_vm12, %v2773_v1, 0.0  ;;  %v2915_v6 = vsel %vm5341_vm2, %v5297_v35, 0.0  ;;  %v2382_v16 = vshrl.u32 %v2381_v21, 4  ;;  %vm2401_vm0 = vc.u32 %v2393_v3, %v2397_v13 }
 0x1ba   : > { %vm2502_vm4 = vcmp.ne.s32.totalorder %v2326_v24, 0  ;;  %vm2536_vm5 = vcmp.lt.s32.totalorder %v2326_v24, 0  ;;  %v2402_v40 = vsel %vm2401_vm0, 1, %v5947_v61  ;;  %v2403_v37 = vadd.s32 %v2397_v13, %v2393_v3  ;;  %v1373_v3 = vpop.f32.mrf.mxu3 }
 0x1bb   : > { %v2604_v52 = vadd.s32 17, %v2326_v24  ;;  %v2354_v14 = vmul.u32 17, %v2353_v34  ;;  %v2398_v29 = vshrl.u32 %v2394_v46, 16  ;;  %v2404_v39 = vadd.s32 %v2402_v40, %v2396_v15  ;;  %vm5372_vm1 = vmand %vm2536_vm5, %vm2502_vm4 }
 0x1bc   : > { %vm2405_vm3 = vc.u32 %v2403_v37, %v2399_v49  ;;  %v2422_v33 = vmul.u32 61681, %v2419_v41  ;;  %v2423_v53 = vmul.u32 61680, %v2419_v41  ;;  %v2424_v55 = vmul.u32 61681, %v2420_v43  ;;  %v591_v37 = vpop.f32.mrf.mxu0 }
 0x1bd   : > { %v5370_v1 = vsel %vm2780_vm12, %v2915_v6, 0.0  ;;  %v2383_v57 = vmul.u32 17, %v2382_v16  ;;  %v2400_v21 = vshrl.u32 %v2395_v44, 16  ;;  %v2406_v31 = vsel %vm2405_vm3, 1, %v5947_v61  ;;  %v727_v16 = vpop.f32.mrf.mxu1 }
 0x1be   : > { %v2408_v13 = vadd.s32 %v2406_v31, %v2404_v39  ;;  %v2425_v34 = vmul.u32 61680, %v2420_v43  ;;  %v2426_v46 = vshll.u32 %v2423_v53, 16  ;;  %v2428_v15 = vshll.u32 %v2424_v55, 16 }
 0x1bf   : > { %v5377_v49 = vadd.f32 %v2834_v8, %v2833_v10  ;;  %v5380_v41 = vsub.s32 %v5235_v36, %v2354_v14  ;;  %v5383_v6 = vadd.f32 %v5149_v38, %v1411_v27  ;;  %v725_v40 = vadd.f32 %v724_v25, %v588_v58  ;;  %v1146_v14 = vpop.f32.mrf.mxu2 }
 0x1c0   : > { %v2638_v44 = vsel %vm5372_vm1, %v2604_v52, %v2326_v24  ;;  %v2409_v0 = vadd.s32 %v2408_v13, %v2398_v29  ;;  %vm2430_vm6 = vc.u32 %v2422_v33, %v2426_v46  ;;  %v2432_v31 = vadd.s32 %v2426_v46, %v2422_v33 }
 0x1c1   : > { %v5388_v43 = vsub.s32 %v5273_v59, %v2383_v57  ;;  %v728_v10 = vadd.f32 %v727_v16, %v591_v37  ;;  %v2431_v8 = vsel %vm2430_vm6, 1, %v5947_v61  ;;  %v5392_v36 = vadd.s32 264, %v3691_v47 }
 0x1c2   : > { %v2410_v27 = vadd.s32 %v2409_v0, %v2400_v21  ;;  %v2427_v58 = vshrl.u32 %v2423_v53, 16  ;;  %v2433_v25 = vadd.s32 %v2431_v8, %v2425_v34  ;;  %vm2434_vm7 = vc.u32 %v2432_v31, %v2428_v15  ;;  %v1376_v37 = vpop.f32.mrf.mxu3 }
 0x1c3   : > { %vm5394_vm8 = vcmp.lt.s32.totalorder %v2638_v44, 16  ;;  %vm2503_vm9 = vcmp.ne.s32.totalorder %v5380_v41, 0  ;;  %v1182_v52 = vadd.f32 %v1143_v19, %v725_v40  ;;  %v2435_v59 = vsel %vm2434_vm7, 1, %v5947_v61 }
 0x1c4   : > { %vm2537_vm10 = vcmp.lt.s32.totalorder %v5380_v41, 0  ;;  %v2411_v29 = vshrl.u32 %v2410_v27, 4  ;;  %v2429_v39 = vshrl.u32 %v2424_v55, 16  ;;  %v2437_v47 = vadd.s32 %v2435_v59, %v2433_v25  ;;  %v593_v27 = vpop.f32.mrf.mxu0 }
 0x1c5   : > { %v2605_v0 = vadd.s32 17, %v5380_v41  ;;  %vm2504_vm11 = vcmp.ne.s32.totalorder %v5388_v43, 0  ;;  %v1183_v53 = vadd.f32 %v1146_v14, %v728_v10  ;;  %v2448_v33 = vand.u32 65535, %v5392_v36  ;;  %vm5411_vm14 = vmand %vm2537_vm10, %vm2503_vm9 }
 0x1c6   : > { %vm2538_vm13 = vcmp.lt.s32.totalorder %v5388_v43, 0  ;;  %v2412_v35 = vmul.u32 17, %v2411_v29  ;;  %v2438_v57 = vadd.s32 %v2437_v47, %v2427_v58  ;;  %v2449_v19 = vshrl.u32 %v5392_v36, 16 }
 0x1c7   : > { %v2774_v21 = vsel %vm5394_vm8, %v5304_v63, 0.0  ;;  %v5417_v13 = vmul.f32 %v5383_v6, %v5383_v6  ;;  %v2451_v34 = vmul.u32 61681, %v2448_v33  ;;  %v2452_v46 = vmul.u32 61680, %v2448_v33  ;;  %vm5428_vm15 = vmand %vm2538_vm13, %vm2504_vm11  ;;  %v1148_v47 = vpop.f32.mrf.mxu2 }
 0x1c8   : > { %v2606_v15 = vadd.s32 17, %v5388_v43  ;;  %v2413_v40 = vsub.s32 %v5327_v4, %v2412_v35  ;;  %v2439_v44 = vadd.s32 %v2438_v57, %v2429_v39  ;;  %v2453_v16 = vmul.u32 61681, %v2449_v19 }
 0x1c9   : > { %v2916_v31 = vsel %vm5394_vm8, %v5347_v5, 0.0  ;;  %v1412_v8 = vadd.f32 %v1373_v3, %v1182_v52  ;;  %v2454_v14 = vmul.u32 61680, %v2449_v19  ;;  %v2455_v58 = vshll.u32 %v2452_v46, 16  ;;  %v729_v5 = vpop.f32.mrf.mxu1 }
 0x1ca   : > { %v2639_v4 = vsel %vm5411_vm14, %v2605_v0, %v5380_v41  ;;  %vm2505_vm2 = vcmp.ne.s32.totalorder %v2413_v40, 0  ;;  %v1413_v25 = vadd.f32 %v1376_v37, %v1183_v53  ;;  %v2440_v24 = vshrl.u32 %v2439_v44, 4 }
 0x1cb   : > { %vm2539_vm0 = vcmp.lt.s32.totalorder %v2413_v40, 0  ;;  %v2457_v59 = vshll.u32 %v2453_v16, 16  ;;  %vm2459_vm4 = vc.u32 %v2451_v34, %v2455_v58  ;;  %v2461_v29 = vadd.s32 %v2455_v58, %v2451_v34  ;;  %v1378_v58 = vpop.f32.mrf.mxu3 }
 0x1cc   : > { %v2640_v39 = vsel %vm5428_vm15, %v2606_v15, %v5388_v43  ;;  %v2441_v3 = vmul.u32 17, %v2440_v24  ;;  %v730_v52 = vadd.f32 %v729_v5, %v593_v27  ;;  %v2460_v33 = vsel %vm2459_vm4, 1, %v5947_v61  ;;  %vm5448_vm1 = vmand %vm2539_vm0, %vm2505_vm2 }
 0x1cd   : > { %v2607_v35 = vadd.s32 17, %v2413_v40  ;;  %v2456_v57 = vshrl.u32 %v2452_v46, 16  ;;  %v2462_v41 = vadd.s32 %v2460_v33, %v2454_v14  ;;  %vm2463_vm5 = vc.u32 %v2461_v29, %v2457_v59 }
 0x1ce   : > { %vm5439_vm3 = vcmp.lt.s32.totalorder %v2639_v4, 16  ;;  %v5444_v53 = vadd.f32 %v5149_v38, %v1412_v8  ;;  %v2442_v19 = vsub.s32 %v5350_v22, %v2441_v3  ;;  %v2464_v55 = vsel %vm2463_vm5, 1, %v5947_v61 }
 0x1cf   : > { %vm5454_vm6 = vcmp.lt.s32.totalorder %v2640_v39, 16  ;;  %v1184_v46 = vadd.f32 %v1148_v47, %v730_v52  ;;  %v2458_v15 = vshrl.u32 %v2453_v16, 16  ;;  %v2466_v37 = vadd.s32 %v2464_v55, %v2462_v41 }
 0x1d0   : > { %v2836_v44 = vsel %vm2780_vm12, %v2774_v21, 0.0  ;;  %v2977_v10 = vsel %vm2780_vm12, %v2916_v31, 0.0  ;;  %vm2506_vm7 = vcmp.ne.s32.totalorder %v2442_v19, 0  ;;  %vm2540_vm8 = vcmp.lt.s32.totalorder %v2442_v19, 0 }
 0x1d1   : > { %v2641_v8 = vsel %vm5448_vm1, %v2607_v35, %v2413_v40  ;;  %v5463_v22 = vadd.f32 %v5149_v38, %v1413_v25  ;;  %vm5465_vm9 = vmand %vm2540_vm8, %vm2506_vm7  ;;  %v2608_v27 = vadd.s32 17, %v2442_v19  ;;  %v2467_v14 = vadd.s32 %v2466_v37, %v2456_v57 }
 0x1d2   : > { %v2775_v21 = vsel %vm5439_vm3, %v5336_v9, 0.0  ;;  %v2917_v16 = vsel %vm5439_vm3, %v5360_v32, 0.0  ;;  %v2776_v40 = vsel %vm5454_vm6, %v5383_v6, 0.0  ;;  %v2885_v31 = vmul.f32 %v5444_v53, %v5444_v53 }
 0x1d3   : > { %v2918_v4 = vsel %vm5454_vm6, %v5417_v13, 0.0  ;;  %v2642_v25 = vsel %vm5465_vm9, %v2608_v27, %v2442_v19  ;;  %v1414_v24 = vadd.f32 %v1378_v58, %v1184_v46  ;;  %v2468_v5 = vadd.s32 %v2467_v14, %v2458_v15 }
 0x1d4   : > { %v2976_v32 = vadd.f32 %v5370_v1, %v5352_v20  ;;  %v2837_v59 = vadd.f32 %v2836_v44, %v5377_v49  ;;  %vm5488_vm10 = vcmp.lt.s32.totalorder %v2641_v8, 16  ;;  %v2838_v39 = vsel %vm2780_vm12, %v2775_v21, 0.0 }
 0x1d5   : > { %v2979_v3 = vsel %vm2780_vm12, %v2917_v16, 0.0  ;;  %v2886_v13 = vmul.f32 %v5463_v22, %v5463_v22  ;;  %v2469_v52 = vshrl.u32 %v2468_v5, 4  ;;  %v2840_v33 = vsel %vm2780_vm12, %v2776_v40, 0.0 }
 0x1d6   : > { %v2978_v47 = vadd.f32 %v2977_v10, %v2976_v32  ;;  %v2981_v35 = vsel %vm2780_vm12, %v2918_v4, 0.0  ;;  %vm5498_vm11 = vcmp.lt.s32.totalorder %v2642_v25, 16  ;;  %v2777_v1 = vsel %vm5488_vm10, %v5444_v53, 0.0 }
 0x1d7   : > { %v2919_v49 = vsel %vm5488_vm10, %v2885_v31, 0.0  ;;  %v5508_v57 = vadd.f32 %v5149_v38, %v1414_v24  ;;  %v2470_v41 = vmul.u32 17, %v2469_v52  ;;  %v2839_v0 = vadd.f32 %v2838_v39, %v2837_v59 }
 0x1d8   : > { %v2980_v43 = vadd.f32 %v2979_v3, %v2978_v47  ;;  %v2778_v19 = vsel %vm5498_vm11, %v5463_v22, 0.0  ;;  %v2920_v55 = vsel %vm5498_vm11, %v2886_v13, 0.0  ;;  %v2842_v37 = vsel %vm2780_vm12, %v2777_v1, 0.0 }
 0x1d9   : > { %v2471_v34 = vsub.s32 %v5392_v36, %v2470_v41  ;;  %v2841_v46 = vadd.f32 %v2840_v33, %v2839_v0  ;;  %v2983_v44 = vsel %vm2780_vm12, %v2919_v49, 0.0  ;;  %v2887_v10 = vmul.f32 %v5508_v57, %v5508_v57 }
 0x1da   : > { %v2982_v15 = vadd.f32 %v2981_v35, %v2980_v43  ;;  %v2844_v8 = vsel %vm2780_vm12, %v2778_v19, 0.0  ;;  %v2985_v61 = vsel %vm2780_vm12, %v2920_v55, 0.0 }
 0x1db   : > { %vm2507_vm13 = vcmp.ne.s32.totalorder %v2471_v34, 0  ;;  %vm2541_vm14 = vcmp.lt.s32.totalorder %v2471_v34, 0  ;;  %v2609_v38 = vadd.s32 17, %v2471_v34  ;;  %v2843_v27 = vadd.f32 %v2842_v37, %v2841_v46 }
 0x1dc   : > { %vm2575_vm15 = vmand %vm2541_vm14, %vm2507_vm13  ;;  %v2984_v14 = vadd.f32 %v2983_v44, %v2982_v15 }
 0x1dd   : > { %v2643_v36 = vsel %vm2575_vm15, %v2609_v38, %v2471_v34  ;;  %v2845_v21 = vadd.f32 %v2844_v8, %v2843_v27 }
 0x1de   : > { %vm2677_vm2 = vcmp.lt.s32.totalorder %v2643_v36, 16  ;;  %v2986_v16 = vadd.f32 %v2985_v61, %v2984_v14 }
 0x1df   : > { %v2779_v40 = vsel %vm2677_vm2, %v5508_v57, 0.0  ;;  %v2921_v31 = vsel %vm2677_vm2, %v2887_v10, 0.0 }
 0x1e0   : > { %v2846_v58 = vsel %vm2780_vm12, %v2779_v40, 0.0  ;;  %v2987_v4 = vsel %vm2780_vm12, %v2921_v31, 0.0  ;;  %v5976_v40 = vld [vmem:[#allocation4_spill] sm:$0xff]  ;;  %v5977_v31 = vld [vmem:[#allocation5_spill] sm:$0xff] }
 0x1e1   : > { %v2847_v25 = vadd.f32 %v2846_v58, %v2845_v21  ;;  %v2988_v24 = vadd.f32 %v2987_v4, %v2986_v16  ;;  %v5974_v21 = vld [vmem:[#allocation2_spill] sm:$0xff]  ;;  %v5975_v16 = vld [vmem:[#allocation3_spill] sm:$0xff] }
 0x1e2   : > { %v5978_v58 = vld [vmem:[#allocation6_spill] sm:$0xff]  ;;  %v5979_v4 = vld [vmem:[#allocation7_spill] sm:$0xff] }
 0x1e3   : > { %v2848_v5 = vrot.slane %v2847_v25, 4  ;;  %v2989_v32 = vrot.slane %v2988_v24, 4 }
 0x1e5   : > { %v2849_v59 = vadd.f32 %v2848_v5, %v2847_v25  ;;  %v2990_v29 = vadd.f32 %v2989_v32, %v2988_v24  ;;  %v5980_v24 = vld [vmem:[#allocation8_spill] sm:$0xff]  ;;  %v5981_v32 = vld [vmem:[#allocation9_spill] sm:$0xff] }
 0x1e7   : > { %v2850_v39 = vrot.slane %v2849_v59, 2  ;;  %v2991_v3 = vrot.slane %v2990_v29, 2 }
 0x1e9   : > { %v2851_v13 = vadd.f32 %v2850_v39, %v2849_v59  ;;  %v2992_v52 = vadd.f32 %v2991_v3, %v2990_v29  ;;  %v5982_v29 = vld [vmem:[#allocation10_spill] sm:$0xff] }
 0x1eb   : > { %v2852_v47 = vrot.slane %v2851_v13, 1  ;;  %v2993_v33 = vrot.slane %v2992_v52, 1 }
 0x1ed   : > { %v2853_v35 = vadd.f32 %v2852_v47, %v2851_v13  ;;  %v2994_v20 = vadd.f32 %v2993_v33, %v2992_v52 }
 0x1ef   : > { %v5525_v1 = vmul.f32 0.00390625, %v2853_v35  ;;  %v2996_v49 = vmul.f32 0.00390625, %v2994_v20 }
 0x1f1   : > { %v2997_v41 = vmul.f32 %v5525_v1, %v5525_v1  ;;  %v3032_v19 = vsub.f32 %v5463_v22, %v5525_v1  ;;  %v3033_v55 = vsub.f32 %v5508_v57, %v5525_v1  ;;  %v3000_v37 = vsub.f32 %v3938_v30, %v5525_v1 }
 0x1f2   : > { %v3001_v44 = vsub.f32 %v4014_v17, %v5525_v1  ;;  %v3002_v38 = vsub.f32 %v4059_v60, %v5525_v1  ;;  %v3003_v10 = vsub.f32 %v4111_v18, %v5525_v1  ;;  %v3004_v8 = vsub.f32 %v4194_v7, %v5525_v1 }
 0x1f3   : > { %v2998_v0 = vsub.f32 %v2996_v49, %v2997_v41  ;;  %v3005_v61 = vsub.f32 %v4215_v62, %v5525_v1  ;;  %v3006_v14 = vsub.f32 %v4278_v56, %v5525_v1  ;;  %v3007_v30 = vsub.f32 %v4353_v12, %v5525_v1 }
 0x1f4   : > { %v3008_v17 = vsub.f32 %v4436_v54, %v5525_v1  ;;  %v3009_v60 = vsub.f32 %v4490_v50, %v5525_v1  ;;  %v3010_v18 = vsub.f32 %v4566_v48, %v5525_v1  ;;  %v3011_v7 = vsub.f32 %v4630_v11, %v5525_v1 }
 0x1f5   : > { %v2999_v43 = vmax.f32 %v2998_v0, 0.0  ;;  %v3012_v62 = vsub.f32 %v4656_v42, %v5525_v1  ;;  %v3013_v56 = vsub.f32 %v4758_v28, %v5525_v1  ;;  %v3014_v12 = vsub.f32 %v4787_v23, %v5525_v1 }
 0x1f6   : > { %v3015_v54 = vsub.f32 %v4838_v45, %v5525_v1  ;;  %v3016_v50 = vsub.f32 %v4849_v2, %v5525_v1  ;;  %v3017_v48 = vsub.f32 %v4908_v51, %v5525_v1  ;;  %v3018_v11 = vsub.f32 %v4927_v26, %v5525_v1 }
 0x1f7   : > { %v3034_v34 = vadd.f32 1e-05, %v2999_v43  ;;  %v3019_v28 = vsub.f32 %v5974_v21, %v5525_v1  ;;  %v3020_v23 = vsub.f32 %v5975_v16, %v5525_v1  ;;  %v3021_v45 = vsub.f32 %v5976_v40, %v5525_v1 }
 0x1f8   : > { %v3022_v2 = vsub.f32 %v5977_v31, %v5525_v1  ;;  %v3023_v51 = vsub.f32 %v5978_v58, %v5525_v1  ;;  %v3024_v26 = vsub.f32 %v5979_v4, %v5525_v1  ;;  %v3025_v5 = vsub.f32 %v5980_v24, %v5525_v1 }
 0x1f9   : > { %3558 = vrsqrt.f32 %v3034_v34  ;;  %vm3041_vm4 = vweird.f32 %v3034_v34  ;;  %v3026_v59 = vsub.f32 %v5981_v32, %v5525_v1  ;;  %v3027_v39 = vsub.f32 %v5982_v29, %v5525_v1 }
 0x1fa   : > { %v3028_v3 = vsub.f32 %v5304_v63, %v5525_v1  ;;  %v3029_v13 = vsub.f32 %v5336_v9, %v5525_v1  ;;  %v3030_v52 = vsub.f32 %v5383_v6, %v5525_v1  ;;  %v3031_v47 = vsub.f32 %v5444_v53, %v5525_v1 }
 0x1ff   : > { %v3559_v46 = vpop.eup %3558 }
 0x200   : > { %v3036_v15 = vmul.f32 %v3559_v46, %v3034_v34  ;;  %vm3042_vm0 = vweird.f32 %v3559_v46 }
 0x201   : > { %vm3043_vm5 = vmor %vm3041_vm4, %vm3042_vm0 }
 0x202   : > { %v3037_v27 = vmul.f32 %v3559_v46, %v3036_v15 }
 0x204   : > { %v3038_v36 = vmul.f32 0.5, %v3037_v27 }
 0x206   : > { %v3039_v42 = vsub.f32 1.5, %v3038_v36 }
 0x208   : > { %v3040_v25 = vmul.f32 %v3559_v46, %v3039_v42 }
 0x20a   : > { %v3044_v33 = vsel %vm3043_vm5, %v3559_v46, %v3040_v25 }
 0x20b   : > { %v3045_v35 = vmul.f32 %v3044_v33, %v3000_v37  ;;  %v3046_v20 = vmul.f32 %v3044_v33, %v3001_v44  ;;  %v3047_v49 = vmul.f32 %v3044_v33, %v3002_v38  ;;  %v3048_v41 = vmul.f32 %v3044_v33, %v3003_v10 }
 0x20c   : > { %v3049_v0 = vmul.f32 %v3044_v33, %v3004_v8  ;;  %v3050_v43 = vmul.f32 %v3044_v33, %v3005_v61  ;;  %v3051_v34 = vmul.f32 %v3044_v33, %v3006_v14  ;;  %v5597_v15 = vmul.f32 %v3044_v33, %v3007_v30 }
 0x20d   : > { %v5599_v63 = vmul.f32 %v3044_v33, %v3008_v17  ;;  %v5601_v27 = vmul.f32 %v3044_v33, %v3009_v60  ;;  %v5603_v9 = vmul.f32 %v3044_v33, %v3010_v18  ;;  %v5605_v6 = vmul.f32 %v3044_v33, %v3011_v7 }
 0x20e   : > { %v5607_v36 = vmul.f32 %v3044_v33, %v3012_v62  ;;  %v5609_v53 = vmul.f32 %v3044_v33, %v3013_v56  ;;  %v5611_v46 = vmul.f32 %v3044_v33, %v3014_v12  ;;  %v5613_v37 = vmul.f32 %v3044_v33, %v3015_v54 }
 0x20f   : > { %v5615_v44 = vmul.f32 %v3044_v33, %v3016_v50  ;;  %v5617_v38 = vmul.f32 %v3044_v33, %v3017_v48  ;;  %v5619_v10 = vmul.f32 %v3044_v33, %v3018_v11  ;;  %v5621_v8 = vmul.f32 %v3044_v33, %v3019_v28 }
 0x210   : > { %v5623_v61 = vmul.f32 %v3044_v33, %v3020_v23  ;;  %v5625_v14 = vmul.f32 %v3044_v33, %v3021_v45  ;;  %v5627_v30 = vmul.f32 %v3044_v33, %v3022_v2  ;;  %v5629_v17 = vmul.f32 %v3044_v33, %v3023_v51 }
 0x211   : > { %v5631_v60 = vmul.f32 %v3044_v33, %v3024_v26  ;;  %v5633_v18 = vmul.f32 %v3044_v33, %v3025_v5  ;;  %v5635_v7 = vmul.f32 %v3044_v33, %v3026_v59  ;;  %v5637_v62 = vmul.f32 %v3044_v33, %v3027_v39 }
 0x212   : > { %v5639_v56 = vmul.f32 %v3044_v33, %v3028_v3  ;;  %v5641_v12 = vmul.f32 %v3044_v33, %v3029_v13  ;;  %v5643_v54 = vmul.f32 %v3044_v33, %v3030_v52  ;;  %v5645_v50 = vmul.f32 %v3044_v33, %v3031_v47 }
 0x213   : > { %v5650_v48 = vmul.f32 %v3044_v33, %v3032_v19  ;;  %v5655_v11 = vmul.f32 %v3044_v33, %v3033_v55  ;;  %v3113_v42 = vmul.f32 0.2, %v3045_v35  ;;  %vm3079_vm3 = vcmp.ge.f32.partialorder %v3045_v35, 0.0 }
 0x214   : > { %v3114_v21 = vmul.f32 0.2, %v3046_v20  ;;  %vm3080_vm1 = vcmp.ge.f32.partialorder %v3046_v20, 0.0  ;;  %v3115_v28 = vmul.f32 0.2, %v3047_v49  ;;  %vm3081_vm6 = vcmp.ge.f32.partialorder %v3047_v49, 0.0 }
 0x215   : > { %v3116_v16 = vmul.f32 0.2, %v3048_v41  ;;  %vm3082_vm7 = vcmp.ge.f32.partialorder %v3048_v41, 0.0  ;;  %v3117_v22 = vmul.f32 0.2, %v3049_v0  ;;  %v3147_v57 = vsel %vm3079_vm3, %v3045_v35, %v3113_v42 }
 0x216   : > { %vm3083_vm8 = vcmp.ge.f32.partialorder %v3049_v0, 0.0  ;;  %v3118_v1 = vmul.f32 0.2, %v3050_v43  ;;  %v3148_v19 = vsel %vm3080_vm1, %v3046_v20, %v3114_v21  ;;  %vm3084_vm9 = vcmp.ge.f32.partialorder %v3050_v43, 0.0  ;;  %3181 = vst.msk [vmem:[%s5661_s18] sm:$0xff] %vm2780_vm12, %v3147_v57 }
 0x217   : > { %v3119_v55 = vmul.f32 0.2, %v3051_v34  ;;  %v3149_v23 = vsel %vm3081_vm6, %v3047_v49, %v3115_v28  ;;  %vm3085_vm10 = vcmp.ge.f32.partialorder %v3051_v34, 0.0  ;;  %v3120_v40 = vmul.f32 0.2, %v5597_v15  ;;  %3182 = vst.msk [vmem:[%s5661_s18 + $0x8] sm:$0xff] %vm2780_vm12, %v3148_v19 }
 0x218   : > { %v3150_v45 = vsel %vm3082_vm7, %v3048_v41, %v3116_v16  ;;  %vm3086_vm11 = vcmp.ge.f32.partialorder %v5597_v15, 0.0  ;;  %v3121_v31 = vmul.f32 0.2, %v5599_v63  ;;  %v3151_v2 = vsel %vm3083_vm8, %v3049_v0, %v3117_v22  ;;  %3183 = vst.msk [vmem:[%s5661_s18 + $0x10] sm:$0xff] %vm2780_vm12, %v3149_v23 }
 0x219   : > { %vm3087_vm13 = vcmp.ge.f32.partialorder %v5599_v63, 0.0  ;;  %v3122_v58 = vmul.f32 0.2, %v5601_v27  ;;  %v3152_v51 = vsel %vm3084_vm9, %v3050_v43, %v3118_v1  ;;  %vm3088_vm14 = vcmp.ge.f32.partialorder %v5601_v27, 0.0  ;;  %3184 = vst.msk [vmem:[%s5661_s18 + $0x18] sm:$0xff] %vm2780_vm12, %v3150_v45 }
 0x21a   : > { %v3123_v4 = vmul.f32 0.2, %v5603_v9  ;;  %v3153_v26 = vsel %vm3085_vm10, %v3051_v34, %v3119_v55  ;;  %vm3089_vm15 = vcmp.ge.f32.partialorder %v5603_v9, 0.0  ;;  %v3124_v25 = vmul.f32 0.2, %v5605_v6  ;;  %3185 = vst.msk [vmem:[%s5661_s18 + $0x20] sm:$0xff] %vm2780_vm12, %v3151_v2 }
 0x21b   : > { %v3154_v24 = vsel %vm3086_vm11, %v5597_v15, %v3120_v40  ;;  %vm3090_vm2 = vcmp.ge.f32.partialorder %v5605_v6, 0.0  ;;  %v3125_v5 = vmul.f32 0.2, %v5607_v36  ;;  %v3155_v32 = vsel %vm3087_vm13, %v5599_v63, %v3121_v31  ;;  %3186 = vst.msk [vmem:[%s5661_s18 + $0x28] sm:$0xff] %vm2780_vm12, %v3152_v51 }
 0x21c   : > { %vm3091_vm0 = vcmp.ge.f32.partialorder %v5607_v36, 0.0  ;;  %v3126_v59 = vmul.f32 0.2, %v5609_v53  ;;  %v3156_v29 = vsel %vm3088_vm14, %v5601_v27, %v3122_v58  ;;  %3187 = vst.msk [vmem:[%s5661_s18 + $0x30] sm:$0xff] %vm2780_vm12, %v3153_v26  ;;  %vm3092_vm4 = vcmp.ge.f32.partialorder %v5609_v53, 0.0 }
 0x21d   : > { %v3127_v39 = vmul.f32 0.2, %v5611_v46  ;;  %v3157_v3 = vsel %vm3089_vm15, %v5603_v9, %v3123_v4  ;;  %3188 = vst.msk [vmem:[%s5661_s18 + $0x38] sm:$0xff] %vm2780_vm12, %v3154_v24  ;;  %vm3093_vm5 = vcmp.ge.f32.partialorder %v5611_v46, 0.0  ;;  %v3128_v13 = vmul.f32 0.2, %v5613_v37 }
 0x21e   : > { %v3158_v52 = vsel %vm3090_vm2, %v5605_v6, %v3124_v25  ;;  %3189 = vst.msk [vmem:[%s5661_s18 + $0x40] sm:$0xff] %vm2780_vm12, %v3155_v32  ;;  %vm3094_vm3 = vcmp.ge.f32.partialorder %v5613_v37, 0.0  ;;  %v3129_v47 = vmul.f32 0.2, %v5615_v44  ;;  %v3159_v33 = vsel %vm3091_vm0, %v5607_v36, %v3125_v5 }
 0x21f   : > { %3190 = vst.msk [vmem:[%s5661_s18 + $0x48] sm:$0xff] %vm2780_vm12, %v3156_v29  ;;  %vm3095_vm1 = vcmp.ge.f32.partialorder %v5615_v44, 0.0  ;;  %v3130_v35 = vmul.f32 0.2, %v5617_v38  ;;  %v3160_v20 = vsel %vm3092_vm4, %v5609_v53, %v3126_v59  ;;  %vm3096_vm6 = vcmp.ge.f32.partialorder %v5617_v38, 0.0 }
 0x220   : > { %3191 = vst.msk [vmem:[%s5661_s18 + $0x50] sm:$0xff] %vm2780_vm12, %v3157_v3  ;;  %v3131_v49 = vmul.f32 0.2, %v5619_v10  ;;  %v3161_v41 = vsel %vm3093_vm5, %v5611_v46, %v3127_v39  ;;  %vm3097_vm7 = vcmp.ge.f32.partialorder %v5619_v10, 0.0  ;;  %v3132_v0 = vmul.f32 0.2, %v5621_v8 }
 0x221   : > { %3192 = vst.msk [vmem:[%s5661_s18 + $0x58] sm:$0xff] %vm2780_vm12, %v3158_v52  ;;  %v3162_v43 = vsel %vm3094_vm3, %v5613_v37, %v3128_v13  ;;  %vm3098_vm8 = vcmp.ge.f32.partialorder %v5621_v8, 0.0  ;;  %v3133_v34 = vmul.f32 0.2, %v5623_v61  ;;  %v3163_v15 = vsel %vm3095_vm1, %v5615_v44, %v3129_v47 }
 0x222   : > { %3193 = vst.msk [vmem:[%s5661_s18 + $0x60] sm:$0xff] %vm2780_vm12, %v3159_v33  ;;  %vm3099_vm9 = vcmp.ge.f32.partialorder %v5623_v61, 0.0  ;;  %v3134_v63 = vmul.f32 0.2, %v5625_v14  ;;  %v3164_v27 = vsel %vm3096_vm6, %v5617_v38, %v3130_v35  ;;  %vm3100_vm10 = vcmp.ge.f32.partialorder %v5625_v14, 0.0 }
 0x223   : > { %3194 = vst.msk [vmem:[%s5661_s18 + $0x68] sm:$0xff] %vm2780_vm12, %v3160_v20  ;;  %v3135_v9 = vmul.f32 0.2, %v5627_v30  ;;  %v3165_v6 = vsel %vm3097_vm7, %v5619_v10, %v3131_v49  ;;  %vm3101_vm11 = vcmp.ge.f32.partialorder %v5627_v30, 0.0  ;;  %v3136_v36 = vmul.f32 0.2, %v5629_v17 }
 0x224   : > { %3195 = vst.msk [vmem:[%s5661_s18 + $0x70] sm:$0xff] %vm2780_vm12, %v3161_v41  ;;  %v3166_v53 = vsel %vm3098_vm8, %v5621_v8, %v3132_v0  ;;  %vm3102_vm13 = vcmp.ge.f32.partialorder %v5629_v17, 0.0  ;;  %v3137_v46 = vmul.f32 0.2, %v5631_v60  ;;  %v3167_v37 = vsel %vm3099_vm9, %v5623_v61, %v3133_v34 }
 0x225   : > { %3196 = vst.msk [vmem:[%s5661_s18 + $0x78] sm:$0xff] %vm2780_vm12, %v3162_v43  ;;  %vm3103_vm14 = vcmp.ge.f32.partialorder %v5631_v60, 0.0  ;;  %v3138_v44 = vmul.f32 0.2, %v5633_v18  ;;  %v3168_v38 = vsel %vm3100_vm10, %v5625_v14, %v3134_v63  ;;  %vm3104_vm15 = vcmp.ge.f32.partialorder %v5633_v18, 0.0 }
 0x226   : > { %3197 = vst.msk [vmem:[%s5661_s18 + $0x80] sm:$0xff] %vm2780_vm12, %v3163_v15  ;;  %v3139_v10 = vmul.f32 0.2, %v5635_v7  ;;  %v3169_v8 = vsel %vm3101_vm11, %v5627_v30, %v3135_v9  ;;  %vm3105_vm2 = vcmp.ge.f32.partialorder %v5635_v7, 0.0  ;;  %v3140_v61 = vmul.f32 0.2, %v5637_v62 }
 0x227   : > { %3198 = vst.msk [vmem:[%s5661_s18 + $0x88] sm:$0xff] %vm2780_vm12, %v3164_v27  ;;  %v3170_v42 = vsel %vm3102_vm13, %v5629_v17, %v3136_v36  ;;  %vm3106_vm0 = vcmp.ge.f32.partialorder %v5637_v62, 0.0  ;;  %v3141_v14 = vmul.f32 0.2, %v5639_v56  ;;  %v3171_v21 = vsel %vm3103_vm14, %v5631_v60, %v3137_v46 }
 0x228   : > { %3199 = vst.msk [vmem:[%s5661_s18 + $0x90] sm:$0xff] %vm2780_vm12, %v3165_v6  ;;  %vm3107_vm4 = vcmp.ge.f32.partialorder %v5639_v56, 0.0  ;;  %v3142_v30 = vmul.f32 0.2, %v5641_v12  ;;  %v3172_v28 = vsel %vm3104_vm15, %v5633_v18, %v3138_v44  ;;  %vm3108_vm5 = vcmp.ge.f32.partialorder %v5641_v12, 0.0 }
 0x229   : > { %3200 = vst.msk [vmem:[%s5661_s18 + $0x98] sm:$0xff] %vm2780_vm12, %v3166_v53  ;;  %v3143_v17 = vmul.f32 0.2, %v5643_v54  ;;  %v3173_v16 = vsel %vm3105_vm2, %v5635_v7, %v3139_v10  ;;  %vm3109_vm3 = vcmp.ge.f32.partialorder %v5643_v54, 0.0  ;;  %v3144_v60 = vmul.f32 0.2, %v5645_v50 }
 0x22a   : > { %3201 = vst.msk [vmem:[%s5661_s18 + $0xa0] sm:$0xff] %vm2780_vm12, %v3167_v37  ;;  %v3174_v22 = vsel %vm3106_vm0, %v5637_v62, %v3140_v61  ;;  %vm3110_vm1 = vcmp.ge.f32.partialorder %v5645_v50, 0.0  ;;  %v3145_v18 = vmul.f32 0.2, %v5650_v48  ;;  %v3175_v7 = vsel %vm3107_vm4, %v5639_v56, %v3141_v14 }
 0x22b   : > { %3202 = vst.msk [vmem:[%s5661_s18 + $0xa8] sm:$0xff] %vm2780_vm12, %v3168_v38  ;;  %vm3111_vm6 = vcmp.ge.f32.partialorder %v5650_v48, 0.0  ;;  %v3146_v57 = vmul.f32 0.2, %v5655_v11  ;;  %v3176_v62 = vsel %vm3108_vm5, %v5641_v12, %v3142_v30  ;;  %vm3112_vm7 = vcmp.ge.f32.partialorder %v5655_v11, 0.0 }
 0x22c   : > { %3203 = vst.msk [vmem:[%s5661_s18 + $0xb0] sm:$0xff] %vm2780_vm12, %v3169_v8  ;;  %v3177_v1 = vsel %vm3109_vm3, %v5643_v54, %v3143_v17  ;;  %v3178_v56 = vsel %vm3110_vm1, %v5645_v50, %v3144_v60  ;;  %v3179_v19 = vsel %vm3111_vm6, %v5650_v48, %v3145_v18 }
 0x22d   : > { %3204 = vst.msk [vmem:[%s5661_s18 + $0xb8] sm:$0xff] %vm2780_vm12, %v3170_v42  ;;  %v3180_v55 = vsel %vm3112_vm7, %v5655_v11, %v3146_v57 }
 0x22e   : > { %3205 = vst.msk [vmem:[%s5661_s18 + $0xc0] sm:$0xff] %vm2780_vm12, %v3171_v21 }
 0x22f   : > { %3206 = vst.msk [vmem:[%s5661_s18 + $0xc8] sm:$0xff] %vm2780_vm12, %v3172_v28 }
 0x230   : > { %3207 = vst.msk [vmem:[%s5661_s18 + $0xd0] sm:$0xff] %vm2780_vm12, %v3173_v16 }
 0x231   : > { %3208 = vst.msk [vmem:[%s5661_s18 + $0xd8] sm:$0xff] %vm2780_vm12, %v3174_v22 }
 0x232   : > { %3209 = vst.msk [vmem:[%s5661_s18 + $0xe0] sm:$0xff] %vm2780_vm12, %v3175_v7 }
 0x233   : > { %3210 = vst.msk [vmem:[%s5661_s18 + $0xe8] sm:$0xff] %vm2780_vm12, %v3176_v62 }
 0x234   : > { %3211 = vst.msk [vmem:[%s5661_s18 + $0xf0] sm:$0xff] %vm2780_vm12, %v3177_v1 }
 0x235   : > { %3212 = vst.msk [vmem:[%s5661_s18 + $0xf8] sm:$0xff] %vm2780_vm12, %v3178_v56 }
 0x236   : > { %3213 = vst.msk [vmem:[%s5661_s18 + $0x100] sm:$0xff] %vm2780_vm12, %v3179_v19 }
 0x237   : > { %3214 = vst.msk [vmem:[%s5661_s18 + $0x108] sm:$0xff] %vm2780_vm12, %v3180_v55 }
 0x238 PF: > { %s13_s12 = sadd.s32 1, %s3568_s12  }
 0x239   : > { %p10_p4 = scmp.ge.s32.totalorder %s13_s12, 4  }
 0x23b   :  { %12 = sbr.rel (!%p10_p4) target bundleno = 1 (0x1), region = 65 }

// kernel: discriminator_forward.6
= control target key start
LH: loop header
LB: loop body
LE: loop exit
PB: predicated region body
PF: predicated region fallthrough
CT: control target
= control target key end

     0   :  { %s1622_s12 = smov 0   ;;  %s2267_s0 = inlined_call_operand.vmem [shape: bf16[2,89,128], index: 0, kind: input, shape index: {}]   ;;  %s2268_s1 = inlined_call_operand.vmem [shape: bf16[4,128,64], index: 1, kind: input, shape index: {}]   ;;  %s2269_s2 = inlined_call_operand.vmem [shape: f32[1,64], index: 2, kind: input, shape index: {}]   ;;  %s2270_s3 = inlined_call_operand.vmem [shape: f32[2,72,64], index: 3, kind: output, shape index: {}]  }
   0x1 LB: > { %s1319_s13 = sadd.s32 4294967295, %s1599_s12   ;;  %p1323_p0 = scmp.ge.s32.totalorder %s1599_s12, 1  ;;  %s1599_s12 = sphi %s1622_s12, %s13_s12  }
   0x2   : > { %p137_p1 = scmp.lt.s32.totalorder %s1599_s12, 3 }
   0x4   : > { %p138_p2 = pnand %p1323_p0, %p137_p1 }
   0x5   : > { %p161_p3 = scmp.lt.s32.totalorder (!%p138_p2), %s1319_s13, 1 }
   0x6   : > { %141 = sbr.rel (%p138_p2) target bundleno = 306 (0x132), region = 32 }
   0xb   : > { %v1555_v0 = vld [vmem:[%s2268_s1 + $0x78] sm:$0xff]  ;;  %v1554_v4 = vld [vmem:[%s2268_s1 + $0x70] sm:$0xff]  ;;  %s2310_s13 = smov (!%p161_p3, %s1319_s13), 1  ;;  %v1553_v8 = vld [vmem:[%s2268_s1 + $0x68] sm:$0xff]  ;;  %vm239_vm0 = vsmask.f32 7424 }
   0xc   : > { %v1547_v1 = vld [vmem:[%s2268_s1 + $0x38] sm:$0xff]  ;;  %332 = vmatpush.bf16.msra.mxu0 %v1555_v0  ;;  %v1546_v5 = vld [vmem:[%s2268_s1 + $0x30] sm:$0xff]  ;;  %s1576_s30 = smul.u32 48, %s2310_s13  ;;  %v1545_v9 = vld [vmem:[%s2268_s1 + $0x28] sm:$0xff]  ;;  %vm659_vm1 = vcmask 1046528  }
   0xd   : > { %v1567_v2 = vld [vmem:[%s2268_s1 + $0xb8] sm:$0xff]  ;;  %419 = vmatpush.bf16.msra.mxu1 %v1547_v1  ;;  %v1566_v6 = vld [vmem:[%s2268_s1 + $0xb0] sm:$0xff]  ;;  %v1565_v10 = vld [vmem:[%s2268_s1 + $0xa8] sm:$0xff]  ;;  %s1577_s7 = smul.u32 72, %s2310_s13 }
   0xe   : > { %v1575_v3 = vld [vmem:[%s2268_s1 + $0xf8] sm:$0xff]  ;;  %596 = vmatpush.bf16.msra.mxu2 %v1567_v2  ;;  %v1574_v7 = vld [vmem:[%s2268_s1 + $0xf0] sm:$0xff]  ;;  %v1573_v11 = vld [vmem:[%s2268_s1 + $0xe8] sm:$0xff]  ;;  %s1672_s16 = scalar_lea.vmem %s2267_s0, %s1576_s30 }
   0xf   : > { %722 = vmatpush.bf16.msra.mxu3 %v1575_v3  ;;  %v1552_v12 = vld [vmem:[%s2268_s1 + $0x60] sm:$0xff]  ;;  %v1590_v17 = vld [vmem:[%s1672_s16 + $0x4] sm:$0xf0]  ;;  %v1551_v18 = vld [vmem:[%s2268_s1 + $0x58] sm:$0xff]  ;;  %s2238_s10 = scalar_lea.vmem %s2270_s3, %s1577_s7 }
  0x10   : > { %333 = vmatpush.bf16.msra.mxu0 %v1554_v4  ;;  %v1544_v13 = vld [vmem:[%s2268_s1 + $0x20] sm:$0xff]  ;;  %v1543_v19 = vld [vmem:[%s2268_s1 + $0x18] sm:$0xff]  ;;  %v1550_v24 = vld [vmem:[%s2268_s1 + $0x50] sm:$0xff] }
  0x11   : > { %420 = vmatpush.bf16.msra.mxu1 %v1546_v5  ;;  %v1564_v14 = vld [vmem:[%s2268_s1 + $0xa0] sm:$0xff]  ;;  %v1563_v21 = vld [vmem:[%s2268_s1 + $0x98] sm:$0xff]  ;;  %v1542_v25 = vld [vmem:[%s2268_s1 + $0x10] sm:$0xff] }
  0x12   : > { %597 = vmatpush.bf16.msra.mxu2 %v1566_v6  ;;  %v1572_v15 = vld [vmem:[%s2268_s1 + $0xe0] sm:$0xff]  ;;  %v1571_v22 = vld [vmem:[%s2268_s1 + $0xd8] sm:$0xff]  ;;  %v1709_v26 = vld [vmem:[%s1672_s16 + $0x8] sm:$0xff] }
  0x13   : > { %723 = vmatpush.bf16.msra.mxu3 %v1574_v7  ;;  %v452_v16 = vld [vmem:[%s1672_s16 + $0x4] sm:$0xff]   ;;  %v1562_v28 = vld [vmem:[%s2268_s1 + $0x90] sm:$0xff]  ;;  %v248_v36 = vshll.u32 %v1709_v26, 16  ;;  %v252_v58 = vshrl.u32 %v1709_v26, 16  ;;  %v1539_v6 = vld [vmem:[%s1672_s16 + $0x18] sm:$0xff] }
  0x14   : > { %334 = vmatpush.bf16.msra.mxu0 %v1553_v8  ;;  %v1536_v20 = vld [vmem:[%s1672_s16] sm:$0xff]  ;;  %v1570_v29 = vld [vmem:[%s2268_s1 + $0xd0] sm:$0xff]  ;;  %v507_v31 = vshll.u32 %v452_v16, 16  ;;  %v1549_v32 = vld [vmem:[%s2268_s1 + $0x48] sm:$0xff]  ;;  %v505_v39 = vshrl.u32 %v452_v16, 16 }
  0x15   : > { %421 = vmatpush.bf16.msra.mxu1 %v1545_v9  ;;  %v1591_v23 = vld [vmem:[%s1672_s16 + $0x4] sm:$0xe]  ;;  %v243_v27 = vshll.u32 %v1536_v20, 16  ;;  %v1556_v30 = vld [vmem:[%s1672_s16 + $0xc] sm:$0xff]  ;;  %v241_v34 = vshrl.u32 %v1536_v20, 16  ;;  %v250_v46 = vrot.slane %v248_v36, 1 }
  0x16   : > { %598 = vmatpush.bf16.msra.mxu2 %v1565_v10  ;;  %v1541_v33 = vld [vmem:[%s2268_s1 + $0x8] sm:$0xff]  ;;  %v509_v40 = vrot.slane %v507_v31, 1  ;;  %v512_v41 = vshll.u32 %v1556_v30, 16  ;;  %v1592_v42 = vor.u32 %v1591_v23, %v1590_v17  ;;  %v1548_v43 = vld [vmem:[%s2268_s1 + $0x40] sm:$0xff]  ;;  %v661_v52 = vrot.slane %v1556_v30, 1  ;;  %v1538_v56 = vld [vmem:[%s1672_s16 + $0x10] sm:$0xff] }
  0x17   : > { %724 = vmatpush.bf16.msra.mxu3 %v1573_v11  ;;  %v245_v35 = vrot.slane %v243_v27, 1  ;;  %v1561_v37 = vld [vmem:[%s2268_s1 + $0x88] sm:$0xff]  ;;  %v1540_v44 = vld [vmem:[%s2268_s1] sm:$0xff]  ;;  %v1557_v57 = vld [vmem:[%s1672_s16 + $0x14] sm:$0xff]  ;;  %v256_v59 = vshll.u32 %v1538_v56, 16  ;;  %v516_v60 = vshrl.u32 %v1556_v30, 16  ;;  %v254_v62 = vor.u32 %v252_v58, %v250_v46 }
  0x18   : > { %335 = vmatpush.bf16.msra.mxu0 %v1552_v12  ;;  %v1569_v38 = vld [vmem:[%s2268_s1 + $0xc8] sm:$0xff]  ;;  %v1560_v47 = vld [vmem:[%s2268_s1 + $0x80] sm:$0xff]  ;;  %v510_v49 = vor.u32 %v509_v40, %v505_v39  ;;  %v514_v50 = vrot.slane %v512_v41, 1  ;;  %v660_v51 = vrot.slane %v1592_v42, 1  ;;  %v520_v61 = vshll.u32 %v1557_v57, 16 }
  0x19   : > { %422 = vmatpush.bf16.msra.mxu1 %v1544_v13  ;;  %v246_v45 = vor.u32 %v245_v35, %v241_v34  ;;  %v1568_v48 = vld [vmem:[%s2268_s1 + $0xc0] sm:$0xff]  ;;  %v258_v63 = vrot.slane %v256_v59, 1  ;;  %v663_v2 = vrot.slane %v1557_v57, 1  ;;  %v260_v8 = vshrl.u32 %v1538_v56, 16 }
  0x1a   : > { %599 = vmatpush.bf16.msra.mxu2 %v1564_v14  ;;  %v515_v54 = vsel %vm239_vm0, %v510_v49, %v514_v50  ;;  %v662_v55 = vsel %vm659_vm1, %v660_v51, %v661_v52  ;;  %v518_v0 = vor.u32 %v516_v60, %v514_v50  ;;  %v522_v1 = vrot.slane %v520_v61, 1  ;;  %v1558_v7 = vld [vmem:[%s1672_s16 + $0x1c] sm:$0xff] }
  0x1b   : > { %725 = vmatpush.bf16.msra.mxu3 %v1572_v15  ;;  %v251_v53 = vsel %vm239_vm0, %v246_v45, %v250_v46  ;;  %v259_v3 = vsel %vm239_vm0, %v254_v62, %v258_v63  ;;  %v664_v5 = vsel %vm659_vm1, %v661_v52, %v663_v2  ;;  %v264_v9 = vshll.u32 %v1539_v6, 16  ;;  %v179_v17 = vld [vmem:[%s1672_s16 + $0x20] sm:$0xf] }
  0x1c   : > { %336 = vmatpush.bf16.msra.mxu0 %v1551_v18  ;;  %v523_v4 = vsel %vm239_vm0, %v518_v0, %v522_v1  ;;  %v524_v10 = vshrl.u32 %v1557_v57, 16  ;;  %v528_v11 = vshll.u32 %v1558_v7, 16  ;;  %v262_v12 = vor.u32 %v260_v8, %v258_v63  ;;  %v196_v18 = vld [vmem:[%s1672_s16 + $0x24] sm:$0x1] }
  0x1d   : > { %423 = vmatpush.bf16.msra.mxu1 %v1543_v19  ;;  %v266_v13 = vrot.slane %v264_v9, 1  ;;  %v665_v16 = vrot.slane %v1558_v7, 1  ;;  %v532_v30 = vshrl.u32 %v1558_v7, 16  ;;  %v777_v45 = vlaneseq }
  0x1e   : > { %600 = vmatpush.bf16.msra.mxu2 %v1563_v21  ;;  %v526_v14 = vor.u32 %v524_v10, %v522_v1  ;;  %v530_v15 = vrot.slane %v528_v11, 1  ;;  %v233_v21 = vunpack.c.l.b16 %v196_v18  ;;  %v1601_v58 = vmov 0  }
  0x1f   : > { %726 = vmatpush.bf16.msra.mxu3 %v1571_v22  ;;  %v267_v19 = vsel %vm239_vm0, %v262_v12, %v266_v13  ;;  %v666_v23 = vsel %vm659_vm1, %v663_v2, %v665_v16  ;;  %v1765_v46 = vshrl.u32 %v777_v45, 7 }
  0x20   : > { %337 = vmatpush.bf16.msra.mxu0 %v1550_v24  ;;  %v531_v22 = vsel %vm239_vm0, %v526_v14, %v530_v15  ;;  %v1452_v24 = vld [vmem:[%s1672_s16 + $0x24] sm:$0xf]  ;;  %v534_v34 = vor.u32 %v532_v30, %v530_v15 }
  0x21   : > { %424 = vmatpush.bf16.msra.mxu1 %v1542_v25  ;;  %v1559_v25 = vld [vmem:[%s1672_s16 + $0x24] sm:$0x10] }
  0x22   : > { %601 = vmatpush.bf16.msra.mxu2 %v1562_v28  ;;  %v1453_v27 = vor.u32 %v1559_v25, %v1452_v24  ;;  %v268_v28 = vshrl.u32 %v1539_v6, 16 }
  0x23   : > { %727 = vmatpush.bf16.msra.mxu3 %v1570_v29 }
  0x24   : > { %338 = vmatpush.bf16.msra.mxu0 %v1549_v32  ;;  %v536_v31 = vshll.u32 %v1453_v27, 16  ;;  %v270_v32 = vor.u32 %v268_v28, %v266_v13  ;;  %v667_v36 = vrot.slane %v1453_v27, 1  ;;  %v540_v41 = vshrl.u32 %v1453_v27, 16 }
  0x25   : > { %425 = vmatpush.bf16.msra.mxu1 %v1541_v33  ;;  %v1795_v13 = vadd.s32 32, %v1765_v46 }
  0x26   : > { %602 = vmatpush.bf16.msra.mxu2 %v1561_v37  ;;  %v538_v35 = vrot.slane %v536_v31, 1  ;;  %v668_v39 = vsel %vm659_vm1, %v665_v16, %v667_v36 }
  0x27   : > { %728 = vmatpush.bf16.msra.mxu3 %v1569_v38  ;;  %v907_v31 = vshrl.u32 %v1795_v13, 16 }
  0x28   : > { %339 = vmatpush.bf16.msra.mxu0 %v1548_v43  ;;  %v539_v38 = vsel %vm239_vm0, %v534_v34, %v538_v35 }
  0x29   : > { %426 = vmatpush.bf16.msra.mxu1 %v1540_v44  ;;  %v542_v44 = vor.u32 %v540_v41, %v538_v35 }
  0x2a   : > { %603 = vmatpush.bf16.msra.mxu2 %v1560_v47  ;;  %v790_v47 = vand.u32 65535, %v1765_v46 }
  0x2b   : > { %729 = vmatpush.bf16.msra.mxu3 %v1568_v48  ;;  %340 = vmatmul.bf16.vlgmr.msra.gmra.mxu0 %v251_v53  ;;  %v791_v48 = vshrl.u32 %v1765_v46, 16 }
  0x2c   : > { %427 = vmatmul.bf16.vlgmr.msra.gmra.mxu1 %v1536_v20  ;;  %v232_v20 = vunpack.c.l.b16 %v179_v17  ;;  %v794_v49 = vmul.u32 58254, %v790_v47  ;;  %v793_v51 = vmul.u32 14564, %v790_v47 }
  0x2d   : > { %604 = vmatmul.bf16.vlgmr.msra.gmra.mxu2 %v515_v54  ;;  %v795_v50 = vmul.u32 14564, %v791_v48  ;;  %v1770_v54 = vadd.s32 8, %v1765_v46  ;;  %v796_v57 = vmul.u32 58254, %v791_v48 }
  0x2e   : > { %730 = vmatmul.bf16.vlgmr.msra.gmra.mxu3 %v662_v55  ;;  %v365_v43 = vpack.c.b16 %v232_v20, %v232_v20  ;;  %v797_v52 = vshll.u32 %v794_v49, 16 }
  0x2f   : > { %v799_v53 = vshll.u32 %v795_v50, 16  ;;  %v819_v60 = vand.u32 65535, %v1770_v54  ;;  %v820_v0 = vshrl.u32 %v1770_v54, 16  ;;  %v800_v15 = vshrl.u32 %v795_v50, 16 }
  0x30   : > { %vm801_vm2 = vc.u32 %v793_v51, %v797_v52  ;;  %v803_v55 = vadd.s32 %v797_v52, %v793_v51 }
  0x31   : > { %v802_v59 = vsel %vm801_vm2, 1, %v1601_v58  ;;  %v1780_v1 = vmul.u32 58254, %v819_v60  ;;  %v822_v7 = vmul.u32 14564, %v819_v60  ;;  %v1788_v8 = vmul.u32 14564, %v820_v0 }
  0x32   : > { %vm805_vm3 = vc.u32 %v803_v55, %v799_v53  ;;  %v804_v62 = vadd.s32 %v802_v59, %v796_v57  ;;  %v825_v27 = vmul.u32 58254, %v820_v0 }
  0x33   : > { %v806_v63 = vsel %vm805_vm3, 1, %v1601_v58  ;;  %v826_v9 = vshll.u32 %v1780_v1, 16  ;;  %v828_v17 = vshll.u32 %v1788_v8, 16  ;;  %v827_v57 = vshrl.u32 %v1780_v1, 16 }
  0x34   : > { %v1847_v1 = vadd.s32 56, %v1765_v46 }
  0x35   : > { %v832_v18 = vadd.s32 %v826_v9, %v822_v7  ;;  %vm830_vm4 = vc.u32 %v822_v7, %v826_v9 }
  0x36   : > { %v831_v28 = vsel %vm830_vm4, 1, %v1601_v58 }
  0x37   : > { %vm834_vm6 = vc.u32 %v832_v18, %v828_v17 }
  0x3b   : > { %345 = vmatmul.bf16.gmra.mxu0 %v259_v3 }
  0x3c   : > { %432 = vmatmul.bf16.gmra.mxu1 %v1709_v26  ;;  %v238_v26 = vpack.c.b16 %v233_v21, %v232_v20  ;;  %v906_v21 = vand.u32 65535, %v1795_v13 }
  0x3d   : > { %609 = vmatmul.bf16.gmra.mxu2 %v523_v4  ;;  %v1786_v4 = vadd.s32 24, %v1765_v46 }
  0x3e   : > { %735 = vmatmul.bf16.gmra.mxu3 %v664_v5  ;;  %v272_v29 = vshll.u32 %v238_v26, 16  ;;  %v276_v40 = vshrl.u32 %v238_v26, 16  ;;  %v798_v5 = vshrl.u32 %v794_v49, 16 }
  0x3f   : > { %v877_v14 = vand.u32 65535, %v1786_v4 }
  0x40   : > { %v274_v33 = vrot.slane %v272_v29, 1 }
  0x42   : > { %v275_v37 = vsel %vm239_vm0, %v270_v32, %v274_v33  ;;  %v278_v42 = vor.u32 %v276_v40, %v274_v33  ;;  %v1811_v32 = vmul.u32 58254, %v906_v21  ;;  %v880_v33 = vmul.u32 14564, %v877_v14 }
  0x43   : > { %v835_v40 = vsel %vm834_vm6, 1, %v1601_v58 }
  0x44   : > { %v913_v45 = vshll.u32 %v1811_v32, 16 }
  0x4b   : > { %350 = vmatmul.bf16.gmra.mxu0 %v267_v19 }
  0x4c   : > { %437 = vmatmul.bf16.gmra.mxu1 %v1538_v56  ;;  %v1773_v56 = vadd.s32 16, %v1765_v46 }
  0x4d   : > { %614 = vmatmul.bf16.gmra.mxu2 %v531_v22  ;;  %v878_v22 = vshrl.u32 %v1786_v4, 16 }
  0x4e   : > { %740 = vmatmul.bf16.gmra.mxu3 %v666_v23  ;;  %v848_v61 = vand.u32 65535, %v1773_v56  ;;  %v849_v2 = vshrl.u32 %v1773_v56, 16  ;;  %v1802_v23 = vmul.u32 58254, %v877_v14 }
  0x4f   : > { %v1813_v34 = vmul.u32 14564, %v878_v22  ;;  %v883_v0 = vmul.u32 58254, %v878_v22 }
  0x50   : > { %v1783_v3 = vmul.u32 58254, %v848_v61  ;;  %v851_v10 = vmul.u32 14564, %v848_v61  ;;  %v1791_v11 = vmul.u32 14564, %v849_v2  ;;  %v854_v29 = vmul.u32 58254, %v849_v2 }
  0x51   : > { %v884_v35 = vshll.u32 %v1802_v23, 16  ;;  %v886_v49 = vshll.u32 %v1813_v34, 16  ;;  %v829_v61 = vshrl.u32 %v1788_v8, 16 }
  0x52   : > { %v855_v12 = vshll.u32 %v1783_v3, 16  ;;  %v857_v19 = vshll.u32 %v1791_v11, 16 }
  0x53   : > { %vm888_vm8 = vc.u32 %v880_v33, %v884_v35  ;;  %v890_v50 = vadd.s32 %v884_v35, %v880_v33 }
  0x54   : > { %v861_v20 = vadd.s32 %v855_v12, %v851_v10  ;;  %vm859_vm5 = vc.u32 %v851_v10, %v855_v12  ;;  %v889_v2 = vsel %vm888_vm8, 1, %v1601_v58 }
  0x55   : > { %v860_v30 = vsel %vm859_vm5, 1, %v1601_v58  ;;  %vm892_vm10 = vc.u32 %v890_v50, %v886_v49  ;;  %v891_v18 = vadd.s32 %v889_v2, %v883_v0  ;;  %v994_v49 = vshrl.u32 %v1847_v1, 16 }
  0x56   : > { %vm863_vm7 = vc.u32 %v861_v20, %v857_v19  ;;  %v862_v41 = vadd.s32 %v860_v30, %v854_v29  ;;  %v893_v19 = vsel %vm892_vm10, 1, %v1601_v58 }
  0x5b   : > { %355 = vmatmul.bf16.gmra.mxu0 %v275_v37 }
  0x5c   : > { %442 = vmatmul.bf16.gmra.mxu1 %v1539_v6  ;;  %v808_v6 = vadd.s32 %v806_v63, %v804_v62  ;;  %v856_v62 = vshrl.u32 %v1783_v3, 16  ;;  %v912_v3 = vmul.u32 58254, %v907_v31 }
  0x5d   : > { %619 = vmatmul.bf16.gmra.mxu2 %v539_v38  ;;  %v833_v38 = vadd.s32 %v831_v28, %v825_v27 }
  0x5e   : > { %745 = vmatmul.bf16.gmra.mxu3 %v668_v39  ;;  %v809_v16 = vadd.s32 %v808_v6, %v798_v5  ;;  %v1820_v39 = vadd.s32 48, %v1765_v46 }
  0x5f   : > { %v837_v59 = vadd.s32 %v835_v40, %v833_v38 }
  0x60   : > { %v810_v26 = vadd.s32 %v809_v16, %v800_v15  ;;  %v964_v60 = vand.u32 65535, %v1820_v39  ;;  %v965_v10 = vshrl.u32 %v1820_v39, 16  ;;  %v858_v15 = vshrl.u32 %v1791_v11, 16 }
  0x61   : > { %v838_v14 = vadd.s32 %v837_v59, %v827_v57  ;;  %v993_v11 = vand.u32 65535, %v1847_v1 }
  0x62   : > { %v811_v37 = vshrl.u32 %v810_v26, 3  ;;  %v1853_v12 = vmul.u32 58254, %v964_v60  ;;  %v967_v33 = vmul.u32 14564, %v964_v60  ;;  %v1874_v35 = vmul.u32 14564, %v965_v10 }
  0x63   : > { %v839_v38 = vadd.s32 %v838_v14, %v829_v61 }
  0x64   : > { %v812_v52 = vmul.u32 9, %v811_v37  ;;  %v971_v37 = vshll.u32 %v1853_v12, 16  ;;  %v973_v59 = vshll.u32 %v1874_v35, 16 }
  0x66   : > { %v1850_v8 = vsub.s32 %v1765_v46, %v812_v52  ;;  %v1886_v52 = vmul.u32 58254, %v993_v11  ;;  %vm975_vm15 = vc.u32 %v967_v33, %v971_v37  ;;  %v977_v60 = vadd.s32 %v971_v37, %v967_v33 }
  0x67   : > { %v999_v37 = vmul.u32 58254, %v994_v49 }
  0x68   : > { %vm1048_vm12 = vcmp.ne.s32.totalorder %v1850_v8, 0  ;;  %vm1057_vm13 = vcmp.lt.s32.totalorder %v1850_v8, 0  ;;  %vm979_vm1 = vc.u32 %v977_v60, %v973_v59  ;;  %v972_v59 = vshrl.u32 %v1853_v12, 16 }
  0x69   : > { %v980_v33 = vsel %vm979_vm1, 1, %v1601_v58  ;;  %vm1919_vm3 = vmand %vm1057_vm13, %vm1048_vm12 }
  0x6b   : > { %360 = vmatmul.bf16.gmra.mxu0 %v278_v42  ;;  %v864_v42 = vsel %vm863_vm7, 1, %v1601_v58 }
  0x6c   : > { %447 = vmatmul.bf16.gmra.mxu1 %v365_v43  ;;  %v909_v43 = vmul.u32 14564, %v906_v21  ;;  %v866_v63 = vadd.s32 %v864_v42, %v862_v41  ;;  %v885_v42 = vshrl.u32 %v1802_v23, 16  ;;  %v1000_v23 = vshll.u32 %v1886_v52, 16 }
  0x6d   : > { %624 = vmatmul.bf16.gmra.mxu2 %v542_v44  ;;  %v1824_v44 = vmul.u32 14564, %v907_v31 }
  0x6e   : > { %750 = vmatmul.bf16.gmra.mxu3 %v667_v36  ;;  %v1817_v36 = vadd.s32 40, %v1765_v46  ;;  %vm917_vm9 = vc.u32 %v909_v43, %v913_v45  ;;  %v919_v6 = vadd.s32 %v913_v45, %v909_v43  ;;  %v867_v16 = vadd.s32 %v866_v63, %v856_v62 }
  0x6f   : > { %v915_v5 = vshll.u32 %v1824_v44, 16  ;;  %v918_v17 = vsel %vm917_vm9, 1, %v1601_v58  ;;  %v895_v43 = vadd.s32 %v893_v19, %v891_v18  ;;  %v914_v45 = vshrl.u32 %v1811_v32, 16 }
  0x70   : > { %v935_v51 = vand.u32 65535, %v1817_v36  ;;  %v936_v7 = vshrl.u32 %v1817_v36, 16  ;;  %v920_v31 = vadd.s32 %v918_v17, %v912_v3  ;;  %v868_v40 = vadd.s32 %v867_v16, %v858_v15 }
  0x71   : > { %vm1858_vm11 = vc.u32 %v919_v6, %v915_v5  ;;  %v996_v62 = vmul.u32 14564, %v993_v11  ;;  %v1889_v63 = vmul.u32 14564, %v994_v49  ;;  %v887_v32 = vshrl.u32 %v1813_v34, 16 }
  0x72   : > { %v1844_v9 = vmul.u32 58254, %v935_v51  ;;  %v938_v26 = vmul.u32 14564, %v935_v51  ;;  %v1866_v27 = vmul.u32 14564, %v936_v7  ;;  %v922_v41 = vsel %vm1858_vm11, 1, %v1601_v58 }
  0x73   : > { %v924_v57 = vadd.s32 %v922_v41, %v920_v31  ;;  %v941_v61 = vmul.u32 58254, %v936_v7  ;;  %v896_v0 = vadd.s32 %v895_v43, %v885_v42  ;;  %v970_v5 = vmul.u32 58254, %v965_v10 }
  0x74   : > { %v942_v28 = vshll.u32 %v1844_v9, 16  ;;  %v944_v50 = vshll.u32 %v1866_v27, 16  ;;  %v840_v6 = vshrl.u32 %v839_v38, 3  ;;  %v976_v15 = vsel %vm975_vm15, 1, %v1601_v58 }
  0x75   : > { %v1900_v7 = vadd.s32 64, %v1765_v46  ;;  %v869_v16 = vshrl.u32 %v868_v40, 3  ;;  %v916_v34 = vshrl.u32 %v1824_v44, 16  ;;  %v925_v19 = vadd.s32 %v924_v57, %v914_v45 }
  0x76   : > { %vm946_vm14 = vc.u32 %v938_v26, %v942_v28  ;;  %v948_v51 = vadd.s32 %v942_v28, %v938_v26  ;;  %v1908_v10 = vadd.s32 9, %v1850_v8  ;;  %v1002_v26 = vshll.u32 %v1889_v63, 16 }
  0x77   : > { %v947_v2 = vsel %vm946_vm14, 1, %v1601_v58  ;;  %vm1004_vm2 = vc.u32 %v996_v62, %v1000_v23  ;;  %v897_v28 = vadd.s32 %v896_v0, %v887_v32  ;;  %v978_v11 = vadd.s32 %v976_v15, %v970_v5 }
  0x78   : > { %vm950_vm0 = vc.u32 %v948_v51, %v944_v50  ;;  %v949_v20 = vadd.s32 %v947_v2, %v941_v61  ;;  %v1006_v31 = vadd.s32 %v1000_v23, %v996_v62  ;;  %v1022_v38 = vand.u32 65535, %v1900_v7 }
  0x79   : > { %v951_v46 = vsel %vm950_vm0, 1, %v1601_v58  ;;  %v1023_v44 = vshrl.u32 %v1900_v7, 16  ;;  %v841_v41 = vmul.u32 9, %v840_v6  ;;  %v870_v42 = vmul.u32 9, %v869_v16 }
  0x7a   : > { %v926_v43 = vadd.s32 %v925_v19, %v916_v34  ;;  %v1005_v45 = vsel %vm1004_vm2, 1, %v1601_v58  ;;  %v943_v50 = vshrl.u32 %v1844_v9, 16  ;;  %v953_v49 = vadd.s32 %v951_v46, %v949_v20 }
  0x7b   : > { %vm1008_vm4 = vc.u32 %v1006_v31, %v1002_v26  ;;  %v1925_v51 = vmul.u32 58254, %v1022_v38  ;;  %v898_v57 = vshrl.u32 %v897_v28, 3  ;;  %v982_v60 = vadd.s32 %v980_v33, %v978_v11 }
  0x7c   : > { %v1084_v61 = vsel %vm1919_vm3, %v1908_v10, %v1850_v8  ;;  %v1007_v32 = vadd.s32 %v1005_v45, %v999_v37  ;;  %v1025_v0 = vmul.u32 14564, %v1022_v38  ;;  %v1936_v9 = vmul.u32 14564, %v1023_v44 }
  0x7d   : > { %v927_v6 = vshrl.u32 %v926_v43, 3  ;;  %v1009_v15 = vsel %vm1008_vm4, 1, %v1601_v58  ;;  %v1029_v8 = vshll.u32 %v1925_v51, 16  ;;  %v1947_v16 = vsub.s32 %v1770_v54, %v841_v41 }
  0x7e   : > { %v1950_v34 = vsub.s32 %v1773_v56, %v870_v42  ;;  %v945_v19 = vshrl.u32 %v1866_v27, 16  ;;  %v954_v10 = vadd.s32 %v953_v49, %v943_v50  ;;  %v899_v20 = vmul.u32 9, %v898_v57  ;;  %v1972_v50 = vld [vmem:[%s2269_s2] ss:$0 sm:$0xff] }
  0x7f   : > { %v1028_v26 = vmul.u32 58254, %v1023_v44  ;;  %v1001_v28 = vshrl.u32 %v1886_v52, 16  ;;  %v1011_v46 = vadd.s32 %v1009_v15, %v1007_v32  ;;  %v1031_v11 = vshll.u32 %v1936_v9, 16 }
  0x80   : > { %vm1033_vm5 = vc.u32 %v1025_v0, %v1029_v8  ;;  %v928_v31 = vmul.u32 9, %v927_v6  ;;  %v1035_v33 = vadd.s32 %v1029_v8, %v1025_v0  ;;  %vm1049_vm6 = vcmp.ne.s32.totalorder %v1947_v16, 0 }
  0x81   : > { %v1034_v56 = vsel %vm1033_vm5, 1, %v1601_v58  ;;  %vm1058_vm7 = vcmp.lt.s32.totalorder %v1947_v16, 0  ;;  %v1076_v27 = vadd.s32 9, %v1947_v16  ;;  %v900_v37 = vsub.s32 %v1786_v4, %v899_v20 }
  0x82   : > { %v1036_v38 = vadd.s32 %v1034_v56, %v1028_v26  ;;  %vm1037_vm8 = vc.u32 %v1035_v33, %v1031_v11  ;;  %v1003_v41 = vshrl.u32 %v1889_v63, 16  ;;  %v1012_v42 = vadd.s32 %v1011_v46, %v1001_v28  ;;  %vm1984_vm11 = vmand %vm1058_vm7, %vm1049_vm6 }
  0x83   : > { %v1038_v43 = vsel %vm1037_vm8, 1, %v1601_v58  ;;  %vm1050_vm9 = vcmp.ne.s32.totalorder %v1950_v34, 0  ;;  %vm1059_vm10 = vcmp.lt.s32.totalorder %v1950_v34, 0  ;;  %v1977_v4 = vsub.s32 %v1795_v13, %v928_v31 }
  0x84   : > { %v1077_v49 = vadd.s32 9, %v1950_v34  ;;  %vm1051_vm12 = vcmp.ne.s32.totalorder %v900_v37, 0  ;;  %vm1060_vm13 = vcmp.lt.s32.totalorder %v900_v37, 0  ;;  %v1030_v13 = vshrl.u32 %v1925_v51, 16  ;;  %vm1998_vm15 = vmand %vm1059_vm10, %vm1050_vm9 }
  0x85   : > { %vm1992_vm14 = vcmp.lt.s32.totalorder %v1084_v61, 8  ;;  %v1085_v51 = vsel %vm1984_vm11, %v1076_v27, %v1947_v16  ;;  %v1078_v0 = vadd.s32 9, %v900_v37  ;;  %vm1052_vm0 = vcmp.ne.s32.totalorder %v1977_v4, 0  ;;  %vm2011_vm1 = vmand %vm1060_vm13, %vm1051_vm12 }
  0x86   : > { %vm1061_vm2 = vcmp.lt.s32.totalorder %v1977_v4, 0  ;;  %v1086_v8 = vsel %vm1998_vm15, %v1077_v49, %v1950_v34  ;;  %vm1129_vm4 = vcmask 523264   ;;  %vm2048_vm5 = vcmp.lt.s32.totalorder %v1085_v51, 8 }
  0x87   : > { %vm2034_vm3 = vmand %vm1061_vm2, %vm1052_vm0  ;;  %vm2052_vm6 = vcmp.lt.s32.totalorder %v1086_v8, 8 }
  0xa8   : > { %v1804_v24 = vpop.f32.mrf.mxu0 }
  0xa9   : > { %v1806_v25 = vpop.f32.mrf.mxu1 }
  0xaa   : > { %v429_v2 = vadd.f32 %v1806_v25, %v1804_v24  ;;  %v974_v24 = vshrl.u32 %v1874_v35, 16  ;;  %v983_v25 = vadd.s32 %v982_v60, %v972_v59  ;;  %v955_v35 = vadd.s32 %v954_v10, %v945_v19 }
  0xab   : > { %v1040_v59 = vadd.s32 %v1038_v43, %v1036_v38  ;;  %v1032_v19 = vshrl.u32 %v1936_v9, 16 }
  0xac   : > { %v984_v40 = vadd.s32 %v983_v25, %v974_v24  ;;  %v956_v57 = vshrl.u32 %v955_v35, 3 }
  0xad   : > { %v1041_v10 = vadd.s32 %v1040_v59, %v1030_v13 }
  0xae   : > { %v985_v32 = vshrl.u32 %v984_v40, 3  ;;  %v957_v15 = vmul.u32 9, %v956_v57 }
  0xaf   : > { %v1042_v56 = vadd.s32 %v1041_v10, %v1032_v19 }
  0xb0   : > { %v1827_v47 = vpop.f32.mrf.mxu2  ;;  %v1833_v53 = vpop.f32.mrf.mxu0  ;;  %v986_v25 = vmul.u32 9, %v985_v32 }
  0xb1   : > { %v1829_v48 = vpop.f32.mrf.mxu3  ;;  %v1835_v55 = vpop.f32.mrf.mxu1  ;;  %v629_v54 = vadd.f32 %v1827_v47, %v429_v2 }
  0xb2   : > { %v431_v52 = vadd.f32 %v1835_v55, %v1833_v53  ;;  %v2064_v27 = vsub.s32 %v1820_v39, %v986_v25 }
  0xb3   : > { %v755_v45 = vadd.f32 %v1829_v48, %v629_v54 }
  0xb4   : > { %vm1054_vm10 = vcmp.ne.s32.totalorder %v2064_v27, 0  ;;  %vm1063_vm11 = vcmp.lt.s32.totalorder %v2064_v27, 0  ;;  %v1081_v60 = vadd.s32 9, %v2064_v27 }
  0xb8   : > { %v1862_v21 = vpop.f32.mrf.mxu2  ;;  %v1870_v29 = vpop.f32.mrf.mxu0 }
  0xb9   : > { %v1864_v22 = vpop.f32.mrf.mxu3  ;;  %v1872_v30 = vpop.f32.mrf.mxu1  ;;  %v630_v63 = vadd.f32 %v1862_v21, %v431_v52 }
  0xba   : > { %v434_v48 = vadd.f32 %v1872_v30, %v1870_v29  ;;  %v1013_v29 = vadd.s32 %v1012_v42, %v1003_v41  ;;  %v2003_v30 = vadd.f32 %v1972_v50, %v755_v45 }
  0xbb   : > { %v756_v61 = vadd.f32 %v1864_v22, %v630_v63 }
  0xbc   : > { %v1014_v26 = vshrl.u32 %v1013_v29, 3  ;;  %v1153_v28 = vmul.f32 %v2003_v30, %v2003_v30  ;;  %v1120_v11 = vsel %vm1992_vm14, %v2003_v30, 0.0 }
  0xbd   : > { %v1130_v63 = vsel %vm1129_vm4, %v1120_v11, 0.0 }
  0xbe   : > { %v1015_v35 = vmul.u32 9, %v1014_v26  ;;  %v1162_v52 = vsel %vm1992_vm14, %v1153_v28, 0.0  ;;  %vm2114_vm14 = vmand %vm1063_vm11, %vm1054_vm10 }
  0xbf   : > { %v1171_v32 = vsel %vm1129_vm4, %v1162_v52, 0.0 }
  0xc0   : > { %v1894_v3 = vpop.f32.mrf.mxu2  ;;  %v1902_v17 = vpop.f32.mrf.mxu0 }
  0xc1   : > { %v1896_v14 = vpop.f32.mrf.mxu3  ;;  %v1904_v18 = vpop.f32.mrf.mxu1  ;;  %v631_v2 = vadd.f32 %v1894_v3, %v434_v48  ;;  %v1079_v3 = vadd.s32 9, %v1977_v4 }
  0xc2   : > { %v436_v16 = vadd.f32 %v1904_v18, %v1902_v17  ;;  %v1087_v17 = vsel %vm2011_vm1, %v1078_v0, %v900_v37 }
  0xc3   : > { %v757_v46 = vadd.f32 %v1896_v14, %v631_v2  ;;  %vm2056_vm7 = vcmp.lt.s32.totalorder %v1087_v17, 8 }
  0xc8   : > { %v1932_v62 = vpop.f32.mrf.mxu2  ;;  %v1940_v5 = vpop.f32.mrf.mxu0 }
  0xc9   : > { %v1934_v23 = vpop.f32.mrf.mxu3  ;;  %v1942_v12 = vpop.f32.mrf.mxu1  ;;  %v632_v34 = vadd.f32 %v1932_v62, %v436_v16  ;;  %v2043_v62 = vsub.s32 %v1817_v36, %v957_v15  ;;  %v1088_v36 = vsel %vm2034_vm3, %v1079_v3, %v1977_v4  ;;  %v1090_v3 = vsel %vm2114_vm14, %v1081_v60, %v2064_v27 }
  0xca   : > { %v439_v22 = vadd.f32 %v1942_v12, %v1940_v5  ;;  %v2039_v12 = vadd.f32 %v1972_v50, %v756_v61  ;;  %vm2090_vm12 = vcmp.lt.s32.totalorder %v1088_v36, 8  ;;  %vm2163_vm3 = vcmp.lt.s32.totalorder %v1090_v3, 8 }
  0xcb   : > { %v758_v37 = vadd.f32 %v1934_v23, %v632_v34  ;;  %vm1053_vm8 = vcmp.ne.s32.totalorder %v2043_v62, 0  ;;  %vm1062_vm9 = vcmp.lt.s32.totalorder %v2043_v62, 0  ;;  %v1080_v43 = vadd.s32 9, %v2043_v62 }
  0xcc   : > { %v1154_v41 = vmul.f32 %v2039_v12, %v2039_v12  ;;  %v1121_v39 = vsel %vm2048_vm5, %v2039_v12, 0.0  ;;  %v1043_v23 = vshrl.u32 %v1042_v56, 3  ;;  %vm2096_vm13 = vmand %vm1062_vm9, %vm1053_vm8 }
  0xcd   : > { %v2088_v58 = vadd.f32 %v1972_v50, %v758_v37  ;;  %v1131_v29 = vsel %vm1129_vm4, %v1121_v39, 0.0  ;;  %v1089_v6 = vsel %vm2096_vm13, %v1080_v43, %v2043_v62 }
  0xce   : > { %v1044_v61 = vmul.u32 9, %v1043_v23  ;;  %v1132_v10 = vadd.f32 %v1131_v29, %v1130_v63  ;;  %vm2149_vm2 = vcmp.lt.s32.totalorder %v1089_v6, 8 }
  0xcf   : > { %v1156_v16 = vmul.f32 %v2088_v58, %v2088_v58 }
  0xd0   : > { %v615_v44 = vpop.f32.mrf.mxu2  ;;  %v353_v53 = vpop.f32.mrf.mxu0  ;;  %v1045_v34 = vsub.s32 %v1900_v7, %v1044_v61 }
  0xd1   : > { %v1964_v47 = vpop.f32.mrf.mxu3  ;;  %v440_v55 = vpop.f32.mrf.mxu1  ;;  %v633_v14 = vadd.f32 %v615_v44, %v439_v22  ;;  %v2072_v44 = vadd.f32 %v1972_v50, %v757_v46  ;;  %v1165_v11 = vsel %vm2056_vm7, %v1156_v16, 0.0 }
  0xd2   : > { %v441_v38 = vadd.f32 %v440_v55, %v353_v53  ;;  %v2084_v55 = vsub.s32 %v1847_v1, %v1015_v35  ;;  %v1163_v1 = vsel %vm2048_vm5, %v1154_v41, 0.0  ;;  %vm1056_vm5 = vcmp.ne.s32.totalorder %v1045_v34, 0 }
  0xd3   : > { %v759_v45 = vadd.f32 %v1964_v47, %v633_v14  ;;  %v1122_v59 = vsel %vm2052_vm6, %v2072_v44, 0.0  ;;  %v1155_v21 = vmul.f32 %v2072_v44, %v2072_v44  ;;  %v1172_v15 = vsel %vm1129_vm4, %v1163_v1, 0.0 }
  0xd4   : > { %vm1055_vm15 = vcmp.ne.s32.totalorder %v2084_v55, 0  ;;  %vm1064_vm0 = vcmp.lt.s32.totalorder %v2084_v55, 0  ;;  %v1133_v8 = vsel %vm1129_vm4, %v1122_v59, 0.0  ;;  %v1173_v17 = vadd.f32 %v1172_v15, %v1171_v32 }
  0xd5   : > { %v2119_v2 = vadd.f32 %v1972_v50, %v759_v45  ;;  %v1164_v22 = vsel %vm2052_vm6, %v1155_v21, 0.0  ;;  %vm2142_vm1 = vmand %vm1064_vm0, %vm1055_vm15  ;;  %v1134_v18 = vadd.f32 %v1133_v8, %v1132_v10  ;;  %vm1065_vm6 = vcmp.lt.s32.totalorder %v1045_v34, 0 }
  0xd6   : > { %v1174_v36 = vsel %vm1129_vm4, %v1164_v22, 0.0  ;;  %v1083_v39 = vadd.s32 9, %v1045_v34  ;;  %vm2188_vm8 = vmand %vm1065_vm6, %vm1056_vm5 }
  0xd7   : > { %v1124_v54 = vsel %vm2090_vm12, %v2119_v2, 0.0 }
  0xd8   : > { %v617_v20 = vpop.f32.mrf.mxu2  ;;  %v356_v9 = vpop.f32.mrf.mxu0  ;;  %v1092_v0 = vsel %vm2188_vm8, %v1083_v39, %v1045_v34 }
  0xd9   : > { %v743_v24 = vpop.f32.mrf.mxu3  ;;  %v443_v5 = vpop.f32.mrf.mxu1  ;;  %v634_v42 = vadd.f32 %v617_v20, %v441_v38  ;;  %v1082_v20 = vadd.s32 9, %v2084_v55  ;;  %v1176_v38 = vsel %vm1129_vm4, %v1165_v11, 0.0  ;;  %vm2214_vm9 = vcmp.lt.s32.totalorder %v1092_v0, 8 }
  0xda   : > { %v444_v40 = vadd.f32 %v443_v5, %v356_v9  ;;  %v1157_v9 = vmul.f32 %v2119_v2, %v2119_v2 }
  0xdb   : > { %v760_v51 = vadd.f32 %v743_v24, %v634_v42  ;;  %v1123_v24 = vsel %vm2056_vm7, %v2088_v58, 0.0  ;;  %v1091_v33 = vsel %vm2142_vm1, %v1082_v20, %v2084_v55 }
  0xdc   : > { %v1135_v27 = vsel %vm1129_vm4, %v1123_v24, 0.0  ;;  %v1166_v41 = vsel %vm2090_vm12, %v1157_v9, 0.0  ;;  %vm2184_vm7 = vcmp.lt.s32.totalorder %v1091_v33, 8 }
  0xdd   : > { %v2140_v25 = vadd.f32 %v1972_v50, %v760_v51  ;;  %v1178_v1 = vsel %vm1129_vm4, %v1166_v41, 0.0 }
  0xdf   : > { %v1158_v52 = vmul.f32 %v2140_v25, %v2140_v25  ;;  %v1125_v42 = vsel %vm2149_vm2, %v2140_v25, 0.0 }
  0xe0   : > { %v620_v4 = vpop.f32.mrf.mxu2  ;;  %v358_v57 = vpop.f32.mrf.mxu0  ;;  %v1139_v59 = vsel %vm1129_vm4, %v1125_v42, 0.0 }
  0xe1   : > { %v746_v53 = vpop.f32.mrf.mxu3  ;;  %v635_v49 = vadd.f32 %v620_v4, %v444_v40  ;;  %v445_v13 = vpop.f32.mrf.mxu1  ;;  %v1137_v40 = vsel %vm1129_vm4, %v1124_v54, 0.0  ;;  %v1175_v4 = vadd.f32 %v1174_v36, %v1173_v17  ;;  %v1167_v48 = vsel %vm2149_vm2, %v1158_v52, 0.0 }
  0xe2   : > { %v446_v26 = vadd.f32 %v445_v13, %v358_v57  ;;  %v1180_v15 = vsel %vm1129_vm4, %v1167_v48, 0.0 }
  0xe3   : > { %v761_v19 = vadd.f32 %v746_v53, %v635_v49  ;;  %v1136_v53 = vadd.f32 %v1135_v27, %v1134_v18  ;;  %v1177_v57 = vadd.f32 %v1176_v38, %v1175_v4 }
  0xe5   : > { %v2159_v7 = vadd.f32 %v1972_v50, %v761_v19  ;;  %v1138_v13 = vadd.f32 %v1137_v40, %v1136_v53  ;;  %v1179_v16 = vadd.f32 %v1178_v1, %v1177_v57 }
  0xe7   : > { %v1159_v43 = vmul.f32 %v2159_v7, %v2159_v7  ;;  %v1126_v47 = vsel %vm2163_vm3, %v2159_v7, 0.0  ;;  %v1140_v19 = vadd.f32 %v1139_v59, %v1138_v13 }
  0xe8   : > { %v622_v46 = vpop.f32.mrf.mxu2  ;;  %v361_v56 = vpop.f32.mrf.mxu0  ;;  %v1141_v8 = vsel %vm1129_vm4, %v1126_v47, 0.0 }
  0xe9   : > { %v748_v62 = vpop.f32.mrf.mxu3  ;;  %v636_v31 = vadd.f32 %v622_v46, %v446_v26  ;;  %v448_v14 = vpop.f32.mrf.mxu1  ;;  %v1168_v32 = vsel %vm2163_vm3, %v1159_v43, 0.0  ;;  %v1181_v26 = vadd.f32 %v1180_v15, %v1179_v16  ;;  %v1142_v28 = vadd.f32 %v1141_v8, %v1140_v19 }
  0xea   : > { %v449_v45 = vadd.f32 %v448_v14, %v361_v56  ;;  %v1182_v3 = vsel %vm1129_vm4, %v1168_v32, 0.0 }
  0xeb   : > { %v762_v37 = vadd.f32 %v748_v62, %v636_v31  ;;  %v1183_v18 = vadd.f32 %v1182_v3, %v1181_v26 }
  0xed   : > { %v2182_v23 = vadd.f32 %v1972_v50, %v762_v37 }
  0xef   : > { %v1160_v49 = vmul.f32 %v2182_v23, %v2182_v23  ;;  %v1127_v29 = vsel %vm2184_vm7, %v2182_v23, 0.0 }
  0xf0   : > { %v625_v21 = vpop.f32.mrf.mxu2  ;;  %v363_v61 = vpop.f32.mrf.mxu0  ;;  %v1143_v20 = vsel %vm1129_vm4, %v1127_v29, 0.0 }
  0xf1   : > { %v751_v60 = vpop.f32.mrf.mxu3  ;;  %v637_v51 = vadd.f32 %v625_v21, %v449_v45  ;;  %v450_v6 = vpop.f32.mrf.mxu1  ;;  %v1169_v10 = vsel %vm2184_vm7, %v1160_v49, 0.0  ;;  %v1144_v9 = vadd.f32 %v1143_v20, %v1142_v28 }
  0xf2   : > { %v1184_v17 = vsel %vm1129_vm4, %v1169_v10, 0.0 }
  0xf3   : > { %v763_v22 = vadd.f32 %v751_v60, %v637_v51  ;;  %v1185_v31 = vadd.f32 %v1184_v17, %v1183_v18 }
  0xf5   : > { %v776_v34 = vadd.f32 %v1972_v50, %v763_v22 }
  0xf7   : > { %v1128_v5 = vsel %vm2214_vm9, %v776_v34, 0.0  ;;  %v1161_v46 = vmul.f32 %v776_v34, %v776_v34 }
  0xf8   : > { %v1145_v62 = vsel %vm1129_vm4, %v1128_v5, 0.0  ;;  %v627_v11 = vpop.f32.mrf.mxu2 }
  0xf9   : > { %v753_v54 = vpop.f32.mrf.mxu3  ;;  %v1146_v56 = vadd.f32 %v1145_v62, %v1144_v9  ;;  %v1170_v14 = vsel %vm2214_vm9, %v1161_v46, 0.0 }
  0xfa   : > { %v1186_v36 = vsel %vm1129_vm4, %v1170_v14, 0.0 }
  0xfb   : > { %v1147_v50 = vrot.slane %v1146_v56, 4  ;;  %v1187_v27 = vadd.f32 %v1186_v36, %v1185_v31 }
  0xfd   : > { %v1148_v35 = vadd.f32 %v1147_v50, %v1146_v56  ;;  %v1188_v33 = vrot.slane %v1187_v27, 4 }
  0xff   : > { %v1149_v52 = vrot.slane %v1148_v35, 2  ;;  %v1189_v37 = vadd.f32 %v1188_v33, %v1187_v27 }
 0x101   : > { %v1150_v38 = vadd.f32 %v1149_v52, %v1148_v35  ;;  %v1190_v40 = vrot.slane %v1189_v37, 2 }
 0x103   : > { %v1151_v41 = vrot.slane %v1150_v38, 1  ;;  %v1191_v39 = vadd.f32 %v1190_v40, %v1189_v37 }
 0x105   : > { %v1152_v42 = vadd.f32 %v1151_v41, %v1150_v38  ;;  %v1192_v43 = vrot.slane %v1191_v39, 1 }
 0x107   : > { %v1193_v45 = vadd.f32 %v1192_v43, %v1191_v39  ;;  %v1194_v4 = vmul.f32 0.015625, %v1152_v42 }
 0x109   : > { %v1195_v53 = vmul.f32 0.015625, %v1193_v45  ;;  %v1196_v55 = vmul.f32 %v1194_v4, %v1194_v4  ;;  %v1199_v21 = vsub.f32 %v2003_v30, %v1194_v4  ;;  %v1200_v60 = vsub.f32 %v2039_v12, %v1194_v4 }
 0x10a   : > { %v1201_v29 = vsub.f32 %v2072_v44, %v1194_v4  ;;  %v1202_v51 = vsub.f32 %v2088_v58, %v1194_v4  ;;  %v1203_v0 = vsub.f32 %v2119_v2, %v1194_v4  ;;  %v1204_v61 = vsub.f32 %v2140_v25, %v1194_v4 }
 0x10b   : > { %v1197_v63 = vsub.f32 %v1195_v53, %v1196_v55  ;;  %v1205_v6 = vsub.f32 %v2159_v7, %v1194_v4  ;;  %v1206_v15 = vsub.f32 %v2182_v23, %v1194_v4  ;;  %v1207_v8 = vsub.f32 %v776_v34, %v1194_v4 }
 0x10d   : > { %v1198_v48 = vmax.f32 %v1197_v63, 0.0 }
 0x10f   : > { %v1208_v47 = vadd.f32 1e-05, %v1198_v48 }
 0x111   : > { %1588 = vrsqrt.f32 %v1208_v47  ;;  %vm1215_vm11 = vweird.f32 %v1208_v47 }
 0x117   : > { %v1589_v49 = vpop.eup %1588 }
 0x118   : > { %v1210_v57 = vmul.f32 %v1589_v49, %v1208_v47  ;;  %vm1216_vm10 = vweird.f32 %v1589_v49 }
 0x119   : > { %vm1217_vm12 = vmor %vm1215_vm11, %vm1216_vm10 }
 0x11a   : > { %v1211_v13 = vmul.f32 %v1589_v49, %v1210_v57 }
 0x11c   : > { %v1212_v1 = vmul.f32 0.5, %v1211_v13 }
 0x11e   : > { %v1213_v59 = vsub.f32 1.5, %v1212_v1 }
 0x120   : > { %v1214_v32 = vmul.f32 %v1589_v49, %v1213_v59 }
 0x122   : > { %v1218_v16 = vsel %vm1217_vm12, %v1589_v49, %v1214_v32 }
 0x123   : > { %v1219_v30 = vmul.f32 %v1218_v16, %v1199_v21  ;;  %v1220_v12 = vmul.f32 %v1218_v16, %v1200_v60  ;;  %v1221_v19 = vmul.f32 %v1218_v16, %v1201_v29  ;;  %v1222_v10 = vmul.f32 %v1218_v16, %v1202_v51 }
 0x124   : > { %v1223_v22 = vmul.f32 %v1218_v16, %v1203_v0  ;;  %v1224_v44 = vmul.f32 %v1218_v16, %v1204_v61  ;;  %v1225_v3 = vmul.f32 %v1218_v16, %v1205_v6  ;;  %v1226_v58 = vmul.f32 %v1218_v16, %v1206_v15 }
 0x125   : > { %v1227_v20 = vmul.f32 %v1218_v16, %v1207_v8  ;;  %vm1228_vm13 = vcmp.ge.f32.partialorder %v1219_v30, 0.0  ;;  %vm1229_vm14 = vcmp.ge.f32.partialorder %v1220_v12, 0.0  ;;  %vm1230_vm15 = vcmp.ge.f32.partialorder %v1221_v19, 0.0 }
 0x126   : > { %vm1231_vm0 = vcmp.ge.f32.partialorder %v1222_v10, 0.0  ;;  %vm1232_vm1 = vcmp.ge.f32.partialorder %v1223_v22, 0.0  ;;  %vm1233_vm2 = vcmp.ge.f32.partialorder %v1224_v44, 0.0  ;;  %v1237_v2 = vmul.f32 0.2, %v1219_v30 }
 0x127   : > { %v1238_v25 = vmul.f32 0.2, %v1220_v12  ;;  %v1239_v7 = vmul.f32 0.2, %v1221_v19  ;;  %v1240_v23 = vmul.f32 0.2, %v1222_v10 }
 0x128   : > { %v1241_v24 = vmul.f32 0.2, %v1223_v22  ;;  %vm1234_vm3 = vcmp.ge.f32.partialorder %v1225_v3, 0.0  ;;  %v1242_v26 = vmul.f32 0.2, %v1224_v44  ;;  %v1246_v34 = vsel %vm1228_vm13, %v1219_v30, %v1237_v2 }
 0x129   : > { %v1243_v28 = vmul.f32 0.2, %v1225_v3  ;;  %v1244_v17 = vmul.f32 0.2, %v1226_v58  ;;  %v1247_v18 = vsel %vm1229_vm14, %v1220_v12, %v1238_v25  ;;  %v1248_v9 = vsel %vm1230_vm15, %v1221_v19, %v1239_v7  ;;  %1255 = vst.msk [vmem:[%s2238_s10] sm:$0xff] %vm1129_vm4, %v1246_v34 }
 0x12a   : > { %v1249_v5 = vsel %vm1231_vm0, %v1222_v10, %v1240_v23  ;;  %vm1235_vm5 = vcmp.ge.f32.partialorder %v1226_v58, 0.0  ;;  %v1245_v46 = vmul.f32 0.2, %v1227_v20  ;;  %v1250_v62 = vsel %vm1232_vm1, %v1223_v22, %v1241_v24  ;;  %1256 = vst.msk [vmem:[%s2238_s10 + $0x8] sm:$0xff] %vm1129_vm4, %v1247_v18 }
 0x12b   : > { %vm1236_vm6 = vcmp.ge.f32.partialorder %v1227_v20, 0.0  ;;  %v1251_v11 = vsel %vm1233_vm2, %v1224_v44, %v1242_v26  ;;  %1257 = vst.msk [vmem:[%s2238_s10 + $0x10] sm:$0xff] %vm1129_vm4, %v1248_v9  ;;  %v1252_v54 = vsel %vm1234_vm3, %v1225_v3, %v1243_v28  ;;  %v1253_v31 = vsel %vm1235_vm5, %v1226_v58, %v1244_v17 }
 0x12c   : > { %1258 = vst.msk [vmem:[%s2238_s10 + $0x18] sm:$0xff] %vm1129_vm4, %v1249_v5  ;;  %v1254_v56 = vsel %vm1236_vm6, %v1227_v20, %v1245_v46 }
 0x12d   : > { %1259 = vst.msk [vmem:[%s2238_s10 + $0x20] sm:$0xff] %vm1129_vm4, %v1250_v62 }
 0x12e   : > { %1260 = vst.msk [vmem:[%s2238_s10 + $0x28] sm:$0xff] %vm1129_vm4, %v1251_v11 }
 0x12f   : > { %1261 = vst.msk [vmem:[%s2238_s10 + $0x30] sm:$0xff] %vm1129_vm4, %v1252_v54 }
 0x130   : > { %1262 = vst.msk [vmem:[%s2238_s10 + $0x38] sm:$0xff] %vm1129_vm4, %v1253_v31 }
 0x131   : > { %1263 = vst.msk [vmem:[%s2238_s10 + $0x40] sm:$0xff] %vm1129_vm4, %v1254_v56 }
 0x132 PF: > { %s13_s12 = sadd.s32 1, %s1599_s12  }
 0x133   : > { %p10_p4 = scmp.ge.s32.totalorder %s13_s12, 4  }
 0x135   :  { %12 = sbr.rel (!%p10_p4) target bundleno = 1 (0x1), region = 65 }

// kernel: discriminator_forward.7
= control target key start
LH: loop header
LB: loop body
LE: loop exit
PB: predicated region body
PF: predicated region fallthrough
CT: control target
= control target key end

     0   :  { %s1700_s12 = smov 0   ;;  %s2070_s0 = inlined_call_operand.vmem [shape: bf16[2,33,256], index: 0, kind: input, shape index: {}]   ;;  %s2071_s1 = inlined_call_operand.vmem [shape: bf16[4,256,128], index: 1, kind: input, shape index: {}]   ;;  %s2072_s2 = inlined_call_operand.vmem [shape: f32[1,128], index: 2, kind: input, shape index: {}]   ;;  %s2073_s3 = inlined_call_operand.vmem [shape: f32[2,20,128], index: 3, kind: output, shape index: {}]  }
   0x1 LB: > { %s1212_s13 = sadd.s32 4294967295, %s1677_s12   ;;  %p1216_p0 = scmp.ge.s32.totalorder %s1677_s12, 1  ;;  %s1677_s12 = sphi %s1700_s12, %s13_s12  }
   0x2   : > { %p137_p1 = scmp.lt.s32.totalorder %s1677_s12, 3 }
   0x4   : > { %p138_p2 = pnand %p1216_p0, %p137_p1 }
   0x5   : > { %p161_p3 = scmp.lt.s32.totalorder (!%p138_p2), %s1212_s13, 1 }
   0x6   : > { %141 = sbr.rel (%p138_p2) target bundleno = 284 (0x11c), region = 32 }
   0xb   : > { %v1614_v0 = vld [vmem:[%s2071_s1 + $0xb8] sm:$0xff]  ;;  %v1613_v4 = vld [vmem:[%s2071_s1 + $0xb0] sm:$0xff]  ;;  %s2087_s13 = smov (!%p161_p3, %s1212_s13), 1  ;;  %v1612_v8 = vld [vmem:[%s2071_s1 + $0xa8] sm:$0xff]  ;;  %vm253_vm0 = vsmask.f32 7424 }
   0xc   : > { %v1622_v1 = vld [vmem:[%s2071_s1 + $0xf8] sm:$0xff]  ;;  %384 = vmatpush.bf16.msra.mxu0 %v1614_v0  ;;  %v1621_v5 = vld [vmem:[%s2071_s1 + $0xf0] sm:$0xff]  ;;  %s1657_s30 = smul.u32 40, %s2087_s13  ;;  %v1620_v9 = vld [vmem:[%s2071_s1 + $0xe8] sm:$0xff]  ;;  %vm614_vm1 = vsmask.f32 5376 }
   0xd   : > { %v1598_v2 = vld [vmem:[%s2071_s1 + $0x38] sm:$0xff]  ;;  %402 = vmatpush.bf16.msra.mxu1 %v1622_v1  ;;  %v1597_v6 = vld [vmem:[%s2071_s1 + $0x30] sm:$0xff]  ;;  %v1596_v10 = vld [vmem:[%s2071_s1 + $0x28] sm:$0xff]  ;;  %vm827_vm2 = vcmask 1044480   ;;  %s1658_s26 = smul.u32 24, %s2087_s13 }
   0xe   : > { %v1606_v3 = vld [vmem:[%s2071_s1 + $0x78] sm:$0xff]  ;;  %525 = vmatpush.bf16.msra.mxu2 %v1598_v2  ;;  %v1605_v7 = vld [vmem:[%s2071_s1 + $0x70] sm:$0xff]  ;;  %v1604_v11 = vld [vmem:[%s2071_s1 + $0x68] sm:$0xff]  ;;  %s1750_s16 = scalar_lea.vmem %s2070_s0, %s1657_s30 }
   0xf   : > { %543 = vmatpush.bf16.msra.mxu3 %v1606_v3  ;;  %v1611_v12 = vld [vmem:[%s2071_s1 + $0xa0] sm:$0xff]  ;;  %v1590_v17 = vld [vmem:[%s1750_s16 + $0x4] sm:$0xf0]  ;;  %v206_v18 = vld [vmem:[%s1750_s16 + $0x10] sm:$0x77]  ;;  %s170_s29 = scalar_lea.vmem %s2073_s3, %s1658_s26 }
  0x10   : > { %385 = vmatpush.bf16.msra.mxu0 %v1613_v4  ;;  %v1619_v13 = vld [vmem:[%s2071_s1 + $0xe0] sm:$0xff]  ;;  %v1255_v20 = vld [vmem:[%s1750_s16 + $0x8] sm:$0xf0]  ;;  %v1610_v21 = vld [vmem:[%s2071_s1 + $0x98] sm:$0xff]  ;;  %v247_v23 = vunpack.c.l.b16 %v206_v18  ;;  %v248_v25 = vunpack.c.h.b16 %v206_v18 }
  0x11   : > { %403 = vmatpush.bf16.msra.mxu1 %v1621_v5  ;;  %v1595_v14 = vld [vmem:[%s2071_s1 + $0x20] sm:$0xff]  ;;  %v1618_v22 = vld [vmem:[%s2071_s1 + $0xd8] sm:$0xff]  ;;  %v1609_v29 = vld [vmem:[%s2071_s1 + $0x90] sm:$0xff] }
  0x12   : > { %526 = vmatpush.bf16.msra.mxu2 %v1597_v6  ;;  %v1603_v15 = vld [vmem:[%s2071_s1 + $0x60] sm:$0xff]  ;;  %v1594_v27 = vld [vmem:[%s2071_s1 + $0x18] sm:$0xff]  ;;  %v1617_v30 = vld [vmem:[%s2071_s1 + $0xd0] sm:$0xff]  ;;  %v1787_v31 = vpack.c.b16 %v247_v23, %v247_v23  ;;  %v1789_v33 = vpack.c.b16 %v248_v25, %v248_v25 }
  0x13   : > { %544 = vmatpush.bf16.msra.mxu3 %v1605_v7  ;;  %v1253_v16 = vld [vmem:[%s1750_s16] sm:$0xf]  ;;  %v1589_v19 = vld [vmem:[%s1750_s16 + $0x4] sm:$0xf]  ;;  %v1602_v28 = vld [vmem:[%s2071_s1 + $0x58] sm:$0xff] }
  0x14   : > { %386 = vmatpush.bf16.msra.mxu0 %v1612_v8  ;;  %v1254_v24 = vor.u32 %v1590_v17, %v1253_v16  ;;  %v1258_v26 = vor.u32 %v1589_v19, %v1255_v20  ;;  %v1593_v35 = vld [vmem:[%s2071_s1 + $0x10] sm:$0xff]  ;;  %v1608_v39 = vld [vmem:[%s2071_s1 + $0x88] sm:$0xff]  ;;  %v262_v42 = vshll.u32 %v1787_v31, 16  ;;  %v274_v44 = vshll.u32 %v1789_v33, 16  ;;  %v1607_v47 = vld [vmem:[%s2071_s1 + $0x80] sm:$0xff] }
  0x15   : > { %404 = vmatpush.bf16.msra.mxu1 %v1620_v9  ;;  %v1601_v36 = vld [vmem:[%s2071_s1 + $0x50] sm:$0xff]  ;;  %v1616_v40 = vld [vmem:[%s2071_s1 + $0xc8] sm:$0xff]  ;;  %v1615_v48 = vld [vmem:[%s2071_s1 + $0xc0] sm:$0xff] }
  0x16   : > { %527 = vmatpush.bf16.msra.mxu2 %v1596_v10  ;;  %v257_v32 = vshll.u32 %v1254_v24, 16  ;;  %v269_v34 = vshll.u32 %v1258_v26, 16  ;;  %v255_v37 = vshrl.u32 %v1254_v24, 16  ;;  %v267_v38 = vshrl.u32 %v1258_v26, 16  ;;  %v1592_v45 = vld [vmem:[%s2071_s1 + $0x8] sm:$0xff]  ;;  %v1591_v53 = vld [vmem:[%s2071_s1] sm:$0xff] }
  0x17   : > { %545 = vmatpush.bf16.msra.mxu3 %v1604_v11  ;;  %v1600_v46 = vld [vmem:[%s2071_s1 + $0x48] sm:$0xff]  ;;  %v1817_v50 = vrot.slane %v262_v42, 1  ;;  %v1819_v52 = vrot.slane %v274_v44, 1  ;;  %v1599_v54 = vld [vmem:[%s2071_s1 + $0x40] sm:$0xff]  ;;  %v1648_v55 = vld [vmem:[%s2071_s1 + $0x1b8] sm:$0xff]  ;;  %v278_v10 = vshrl.u32 %v1787_v31, 16 }
  0x18   : > { %387 = vmatpush.bf16.msra.mxu0 %v1611_v12  ;;  %v259_v41 = vrot.slane %v257_v32, 1  ;;  %v271_v43 = vrot.slane %v269_v34, 1  ;;  %v1656_v56 = vld [vmem:[%s2071_s1 + $0x1f8] sm:$0xff]  ;;  %v1647_v61 = vld [vmem:[%s2071_s1 + $0x1b0] sm:$0xff]  ;;  %v1646_v1 = vld [vmem:[%s2071_s1 + $0x1a8] sm:$0xff]  ;;  %v281_v11 = vshrl.u32 %v1789_v33, 16 }
  0x19   : > { %405 = vmatpush.bf16.msra.mxu1 %v1619_v13  ;;  %v1632_v59 = vld [vmem:[%s2071_s1 + $0x138] sm:$0xff]  ;;  %v1655_v62 = vld [vmem:[%s2071_s1 + $0x1f0] sm:$0xff]  ;;  %v1654_v2 = vld [vmem:[%s2071_s1 + $0x1e8] sm:$0xff] }
  0x1a   : > { %528 = vmatpush.bf16.msra.mxu2 %v1595_v14  ;;  %v260_v49 = vor.u32 %v259_v41, %v255_v37  ;;  %v272_v51 = vor.u32 %v271_v43, %v267_v38  ;;  %v1640_v60 = vld [vmem:[%s2071_s1 + $0x178] sm:$0xff]  ;;  %v1631_v63 = vld [vmem:[%s2071_s1 + $0x130] sm:$0xff]  ;;  %v1630_v3 = vld [vmem:[%s2071_s1 + $0x128] sm:$0xff] }
  0x1b   : > { %546 = vmatpush.bf16.msra.mxu3 %v1603_v15  ;;  %v1639_v0 = vld [vmem:[%s2071_s1 + $0x170] sm:$0xff]  ;;  %v1638_v5 = vld [vmem:[%s2071_s1 + $0x168] sm:$0xff]  ;;  %v561_v6 = vld [vmem:[%s1750_s16] sm:$0xcc] }
  0x1c   : > { %388 = vmatpush.bf16.msra.mxu0 %v1610_v21  ;;  %v265_v57 = vsel %vm253_vm0, %v260_v49, %v1817_v50  ;;  %v277_v58 = vsel %vm253_vm0, %v272_v51, %v1819_v52  ;;  %v173_v4 = vld [vmem:[%s1750_s16 + $0x10] sm:$0x33]  ;;  %v1868_v7 = vld [vmem:[%s1750_s16 + $0x8] sm:$0xff]  ;;  %v1645_v8 = vld [vmem:[%s2071_s1 + $0x1a0] sm:$0xff]  ;;  %v602_v16 = vunpack.c.l.b16 %v561_v6  ;;  %v603_v18 = vunpack.c.h.b16 %v561_v6 }
  0x1d   : > { %406 = vmatpush.bf16.msra.mxu1 %v1618_v22  ;;  %v1653_v9 = vld [vmem:[%s2071_s1 + $0x1e0] sm:$0xff]  ;;  %v421_v12 = vunpack.c.l.b16 %v173_v4  ;;  %v422_v13 = vunpack.c.h.b16 %v173_v4  ;;  %v604_v17 = vunpack.c.l.b16 %v1868_v7  ;;  %v605_v19 = vunpack.c.h.b16 %v1868_v7  ;;  %v1644_v20 = vld [vmem:[%s2071_s1 + $0x198] sm:$0xff]  ;;  %v1421_v21 = vld [vmem:[%s1750_s16 + $0x10] sm:$0xf] }
  0x1e   : > { %529 = vmatpush.bf16.msra.mxu2 %v1594_v27  ;;  %v1629_v14 = vld [vmem:[%s2071_s1 + $0x120] sm:$0xff]  ;;  %v1624_v22 = vld [vmem:[%s1750_s16 + $0x14] sm:$0x10]  ;;  %v1423_v25 = vld [vmem:[%s1750_s16 + $0x18] sm:$0x10]  ;;  %v283_v27 = vor.u32 %v281_v11, %v1819_v52 }
  0x1f   : > { %547 = vmatpush.bf16.msra.mxu3 %v1602_v28  ;;  %v1637_v15 = vld [vmem:[%s2071_s1 + $0x160] sm:$0xff]  ;;  %v1652_v23 = vld [vmem:[%s2071_s1 + $0x1d8] sm:$0xff]  ;;  %v423_v28 = vpack.c.b16 %v421_v12, %v421_v12  ;;  %v1900_v31 = vor.u32 %v1624_v22, %v1421_v21  ;;  %v611_v32 = vpack.c.b16 %v605_v19, %v603_v18  ;;  %v1651_v37 = vld [vmem:[%s2071_s1 + $0x1d0] sm:$0xff] }
  0x20   : > { %389 = vmatpush.bf16.msra.mxu0 %v1609_v29  ;;  %v424_v29 = vpack.c.b16 %v422_v13, %v422_v13  ;;  %v1628_v33 = vld [vmem:[%s2071_s1 + $0x118] sm:$0xff]  ;;  %v788_v38 = vld [vmem:[%s1750_s16] sm:$0x88]  ;;  %v1627_v43 = vld [vmem:[%s2071_s1 + $0x110] sm:$0xff] }
  0x21   : > { %407 = vmatpush.bf16.msra.mxu1 %v1617_v30  ;;  %v610_v30 = vpack.c.b16 %v604_v17, %v602_v16  ;;  %v1636_v34 = vld [vmem:[%s2071_s1 + $0x158] sm:$0xff]  ;;  %v624_v41 = vshrl.u32 %v1900_v31, 16  ;;  %v633_v42 = vshrl.u32 %v611_v32, 16  ;;  %v1635_v44 = vld [vmem:[%s2071_s1 + $0x150] sm:$0xff]  ;;  %v1642_v49 = vld [vmem:[%s2071_s1 + $0x188] sm:$0xff]  ;;  %v823_v51 = vunpack.c.l.b16 %v788_v38 }
  0x22   : > { %530 = vmatpush.bf16.msra.mxu2 %v1593_v35  ;;  %v824_v52 = vunpack.c.h.b16 %v788_v38  ;;  %v1625_v4 = vld [vmem:[%s2071_s1 + $0x100] sm:$0xff]  ;;  %v829_v7 = vrot.slane %v1900_v31, 3 }
  0x23   : > { %548 = vmatpush.bf16.msra.mxu3 %v1601_v36  ;;  %v1643_v36 = vld [vmem:[%s2071_s1 + $0x190] sm:$0xff] }
  0x24   : > { %390 = vmatpush.bf16.msra.mxu0 %v1608_v39  ;;  %v616_v39 = vshrl.u32 %v610_v30, 16 }
  0x25   : > { %408 = vmatpush.bf16.msra.mxu1 %v1616_v40  ;;  %v619_v40 = vshll.u32 %v610_v30, 16 }
  0x26   : > { %531 = vmatpush.bf16.msra.mxu2 %v1592_v45  ;;  %v627_v45 = vshll.u32 %v1900_v31, 16 }
  0x27   : > { %549 = vmatpush.bf16.msra.mxu3 %v1600_v46  ;;  %v636_v46 = vshll.u32 %v611_v32, 16 }
  0x28   : > { %391 = vmatpush.bf16.msra.mxu0 %v1607_v47 }
  0x29   : > { %409 = vmatpush.bf16.msra.mxu1 %v1615_v48 }
  0x2a   : > { %532 = vmatpush.bf16.msra.mxu2 %v1591_v53  ;;  %v618_v53 = vrot.slane %v616_v39, 2 }
  0x2b   : > { %550 = vmatpush.bf16.msra.mxu3 %v1599_v54  ;;  %392 = vmatmul.bf16.vlgmr.msra.gmra.mxu0 %v265_v57  ;;  %v621_v54 = vrot.slane %v619_v40, 3  ;;  %v1626_v57 = vld [vmem:[%s2071_s1 + $0x108] sm:$0xff] }
  0x2c   : > { %410 = vmatmul.bf16.vlgmr.msra.gmra.mxu1 %v277_v58  ;;  %749 = vmatpush.bf16.msrb.mxu0 %v1632_v59  ;;  %v1634_v58 = vld [vmem:[%s2071_s1 + $0x148] sm:$0xff]  ;;  %v629_v59 = vrot.slane %v627_v45, 3 }
  0x2d   : > { %533 = vmatmul.bf16.vlgmr.msra.gmra.mxu2 %v1254_v24  ;;  %767 = vmatpush.bf16.msrb.mxu1 %v1640_v60  ;;  %v1623_v24 = vld [vmem:[%s1750_s16 + $0x14] sm:$0xf]  ;;  %v638_v60 = vrot.slane %v636_v46, 3 }
  0x2e   : > { %934 = vmatpush.bf16.msrb.mxu2 %v1648_v55  ;;  %551 = vmatmul.bf16.vlgmr.msra.gmra.mxu3 %v1258_v26  ;;  %v280_v26 = vor.u32 %v278_v10, %v1817_v50  ;;  %v1910_v35 = vor.u32 %v1623_v24, %v1423_v25  ;;  %v1650_v50 = vld [vmem:[%s2071_s1 + $0x1c8] sm:$0xff]  ;;  %v626_v55 = vrot.slane %v624_v41, 2 }
  0x2f   : > { %952 = vmatpush.bf16.msrb.mxu3 %v1656_v56  ;;  %v635_v56 = vrot.slane %v633_v42, 2 }
  0x30   : > { %750 = vmatpush.bf16.msrb.mxu0 %v1631_v63  ;;  %v641_v47 = vshrl.u32 %v1910_v35, 16  ;;  %v644_v48 = vshll.u32 %v1910_v35, 16  ;;  %v1641_v63 = vld [vmem:[%s2071_s1 + $0x180] sm:$0xff]  ;;  %v630_v6 = vor.u32 %v629_v59, %v626_v55  ;;  %v832_v12 = vrot.slane %v1910_v35, 3 }
  0x31   : > { %768 = vmatpush.bf16.msrb.mxu1 %v1639_v0  ;;  %v1649_v0 = vld [vmem:[%s2071_s1 + $0x1c0] sm:$0xff] }
  0x32   : > { %935 = vmatpush.bf16.msrb.mxu2 %v1647_v61  ;;  %v643_v61 = vrot.slane %v641_v47, 2 }
  0x33   : > { %953 = vmatpush.bf16.msrb.mxu3 %v1655_v62  ;;  %v646_v62 = vrot.slane %v644_v48, 3 }
  0x34   : > { %751 = vmatpush.bf16.msrb.mxu0 %v1630_v3  ;;  %v622_v3 = vor.u32 %v621_v54, %v618_v53  ;;  %v1679_v54 = vmov 0  }
  0x35   : > { %769 = vmatpush.bf16.msrb.mxu1 %v1638_v5  ;;  %v1633_v5 = vld [vmem:[%s2071_s1 + $0x140] sm:$0xff] }
  0x36   : > { %936 = vmatpush.bf16.msrb.mxu2 %v1646_v1  ;;  %v825_v1 = vpack.c.b16 %v604_v17, %v823_v51  ;;  %v631_v13 = vsel %vm614_vm1, %v622_v3, %v630_v6  ;;  %v980_v17 = vlaneseq }
  0x37   : > { %954 = vmatpush.bf16.msrb.mxu3 %v1654_v2  ;;  %v826_v2 = vpack.c.b16 %v605_v19, %v824_v52 }
  0x38   : > { %752 = vmatpush.bf16.msrb.mxu0 %v1629_v14  ;;  %v828_v10 = vrot.slane %v825_v1, 3  ;;  %v1959_v18 = vshrl.u32 %v980_v17, 7 }
  0x39   : > { %770 = vmatpush.bf16.msrb.mxu1 %v1637_v15  ;;  %v831_v11 = vrot.slane %v826_v2, 3 }
  0x3a   : > { %937 = vmatpush.bf16.msrb.mxu2 %v1645_v8  ;;  %v639_v8 = vor.u32 %v638_v60, %v635_v56  ;;  %v830_v15 = vsel %vm827_vm2, %v828_v10, %v829_v7  ;;  %v1962_v19 = vadd.s32 8, %v1959_v18  ;;  %v987_v24 = vand.u32 65535, %v1959_v18 }
  0x3b   : > { %955 = vmatpush.bf16.msrb.mxu3 %v1653_v9  ;;  %397 = vmatmul.bf16.gmra.mxu0 %v280_v26  ;;  %v647_v9 = vor.u32 %v646_v62, %v643_v61  ;;  %v833_v16 = vsel %vm827_vm2, %v831_v11, %v832_v12  ;;  %v988_v30 = vshrl.u32 %v1959_v18, 16 }
  0x3c   : > { %415 = vmatmul.bf16.gmra.mxu1 %v283_v27  ;;  %753 = vmatpush.bf16.msrb.mxu0 %v1628_v33  ;;  %v1016_v22 = vand.u32 65535, %v1962_v19  ;;  %v1017_v26 = vshrl.u32 %v1962_v19, 16  ;;  %v991_v33 = vmul.u32 52428, %v987_v24  ;;  %v990_v40 = vmul.u32 52429, %v987_v24 }
  0x3d   : > { %538 = vmatmul.bf16.gmra.mxu2 %v423_v28  ;;  %771 = vmatpush.bf16.msrb.mxu1 %v1636_v34  ;;  %v648_v14 = vsel %vm614_vm1, %v639_v8, %v647_v9  ;;  %v992_v39 = vmul.u32 52429, %v988_v30 }
  0x3e   : > { %938 = vmatpush.bf16.msrb.mxu2 %v1644_v20  ;;  %556 = vmatmul.bf16.gmra.mxu3 %v424_v29  ;;  %v1020_v27 = vmul.u32 52428, %v1016_v22  ;;  %v994_v41 = vshll.u32 %v991_v33, 16  ;;  %v1022_v53 = vmul.u32 52428, %v1017_v26 }
  0x3f   : > { %956 = vmatpush.bf16.msrb.mxu3 %v1652_v23  ;;  %v1970_v23 = vadd.s32 16, %v1959_v18 }
  0x40   : > { %754 = vmatpush.bf16.msrb.mxu0 %v1627_v43  ;;  %v1023_v38 = vshll.u32 %v1020_v27, 16  ;;  %vm998_vm4 = vc.u32 %v990_v40, %v994_v41  ;;  %v1000_v52 = vadd.s32 %v994_v41, %v990_v40  ;;  %v1024_v8 = vshrl.u32 %v1020_v27, 16 }
  0x41   : > { %772 = vmatpush.bf16.msrb.mxu1 %v1635_v44  ;;  %v1045_v25 = vand.u32 65535, %v1970_v23  ;;  %v1046_v34 = vshrl.u32 %v1970_v23, 16  ;;  %v999_v59 = vsel %vm998_vm4, 1, %v1679_v54 }
  0x42   : > { %939 = vmatpush.bf16.msrb.mxu2 %v1643_v36  ;;  %v1019_v36 = vmul.u32 52429, %v1016_v22 }
  0x43   : > { %957 = vmatpush.bf16.msrb.mxu3 %v1651_v37  ;;  %v1049_v35 = vmul.u32 52428, %v1045_v25  ;;  %v1021_v37 = vmul.u32 52429, %v1017_v26  ;;  %v1048_v42 = vmul.u32 52429, %v1045_v25  ;;  %v1050_v43 = vmul.u32 52429, %v1046_v34 }
  0x44   : > { %755 = vmatpush.bf16.msrb.mxu0 %v1626_v57  ;;  %vm1027_vm3 = vc.u32 %v1019_v36, %v1023_v38  ;;  %v1029_v46 = vadd.s32 %v1023_v38, %v1019_v36  ;;  %v1051_v60 = vmul.u32 52428, %v1046_v34 }
  0x45   : > { %773 = vmatpush.bf16.msrb.mxu1 %v1634_v58  ;;  %v1052_v44 = vshll.u32 %v1049_v35, 16  ;;  %v1025_v45 = vshll.u32 %v1021_v37, 16  ;;  %v1028_v55 = vsel %vm1027_vm3, 1, %v1679_v54  ;;  %v1054_v56 = vshll.u32 %v1050_v43, 16 }
  0x46   : > { %940 = vmatpush.bf16.msrb.mxu2 %v1642_v49  ;;  %v996_v49 = vshll.u32 %v992_v39, 16  ;;  %v993_v58 = vmul.u32 52428, %v988_v30  ;;  %v1030_v61 = vadd.s32 %v1028_v55, %v1022_v53  ;;  %v1055_v25 = vshrl.u32 %v1050_v43, 16 }
  0x47   : > { %958 = vmatpush.bf16.msrb.mxu3 %v1650_v50  ;;  %vm1056_vm5 = vc.u32 %v1048_v42, %v1052_v44  ;;  %v1058_v57 = vadd.s32 %v1052_v44, %v1048_v42  ;;  %vm1031_vm6 = vc.u32 %v1029_v46, %v1025_v45 }
  0x48   : > { %756 = vmatpush.bf16.msrb.mxu0 %v1625_v4  ;;  %vm1002_vm7 = vc.u32 %v1000_v52, %v996_v49  ;;  %v1057_v62 = vsel %vm1056_vm5, 1, %v1679_v54  ;;  %vm1099_vm5 = vcmask 1043456  }
  0x49   : > { %774 = vmatpush.bf16.msrb.mxu1 %v1633_v5  ;;  %vm1060_vm8 = vc.u32 %v1058_v57, %v1054_v56  ;;  %v1003_v3 = vsel %vm1002_vm7, 1, %v1679_v54  ;;  %v1059_v4 = vadd.s32 %v1057_v62, %v1051_v60 }
  0x4a   : > { %941 = vmatpush.bf16.msrb.mxu2 %v1641_v63  ;;  %v1032_v63 = vsel %vm1031_vm6, 1, %v1679_v54  ;;  %v1061_v10 = vsel %vm1060_vm8, 1, %v1679_v54 }
  0x4b   : > { %959 = vmatpush.bf16.msrb.mxu3 %v1649_v0  ;;  %757 = vmatmul.bf16.vlgmr.msrb.gmra.mxu0 %v631_v13  ;;  %v1001_v0 = vadd.s32 %v999_v59, %v993_v58  ;;  %v1063_v13 = vadd.s32 %v1061_v10, %v1059_v4 }
  0x4c   : > { %775 = vmatmul.bf16.vlgmr.msrb.gmra.mxu1 %v648_v14  ;;  %v1026_v14 = vshrl.u32 %v1021_v37, 16 }
  0x4d   : > { %942 = vmatmul.bf16.vlgmr.msrb.gmra.mxu2 %v830_v15  ;;  %v1005_v11 = vadd.s32 %v1003_v3, %v1001_v0 }
  0x4e   : > { %960 = vmatmul.bf16.vlgmr.msrb.gmra.mxu3 %v833_v16  ;;  %v997_v16 = vshrl.u32 %v992_v39, 16 }
  0x5b   : > { %762 = vmatmul.bf16.gmra.mxu0 %v630_v6 }
  0x5c   : > { %780 = vmatmul.bf16.gmra.mxu1 %v647_v9  ;;  %v1034_v9 = vadd.s32 %v1032_v63, %v1030_v61 }
  0x5d   : > { %947 = vmatmul.bf16.gmra.mxu2 %v829_v7  ;;  %v995_v7 = vshrl.u32 %v991_v33, 16 }
  0x5e   : > { %965 = vmatmul.bf16.gmra.mxu3 %v832_v12  ;;  %v1053_v12 = vshrl.u32 %v1049_v35, 16  ;;  %v1035_v15 = vadd.s32 %v1034_v9, %v1024_v8 }
  0x5f   : > { %v1006_v17 = vadd.s32 %v1005_v11, %v995_v7 }
  0x60   : > { %v1064_v26 = vadd.s32 %v1063_v13, %v1053_v12  ;;  %v1036_v30 = vadd.s32 %v1035_v15, %v1026_v14 }
  0x61   : > { %v1007_v38 = vadd.s32 %v1006_v17, %v997_v16 }
  0x62   : > { %v1065_v40 = vadd.s32 %v1064_v26, %v1055_v25  ;;  %v1037_v27 = vshrl.u32 %v1036_v30, 2 }
  0x63   : > { %v1008_v41 = vshrl.u32 %v1007_v38, 2 }
  0x64   : > { %v1066_v42 = vshrl.u32 %v1065_v40, 2  ;;  %v1038_v44 = vmul.u32 5, %v1037_v27 }
  0x65   : > { %v1009_v46 = vmul.u32 5, %v1008_v41 }
  0x66   : > { %v1067_v52 = vmul.u32 5, %v1066_v42  ;;  %v1039_v54 = vsub.s32 %v1962_v19, %v1038_v44 }
  0x67   : > { %v1010_v57 = vsub.s32 %v1959_v18, %v1009_v46 }
  0x68   : > { %vm1072_vm9 = vcmp.ne.s32.totalorder %v1039_v54, 0  ;;  %vm1075_vm10 = vcmp.lt.s32.totalorder %v1039_v54, 0  ;;  %v1081_v18 = vadd.s32 5, %v1039_v54 }
  0x69   : > { %vm1071_vm11 = vcmp.ne.s32.totalorder %v1010_v57, 0  ;;  %vm1074_vm12 = vcmp.lt.s32.totalorder %v1010_v57, 0  ;;  %vm2005_vm13 = vmand %vm1075_vm10, %vm1072_vm9 }
  0x6a   : > { %vm2012_vm0 = vmand %vm1074_vm12, %vm1071_vm11 }
  0xa8   : > { %v1964_v20 = vpop.f32.mrf.mxu0 }
  0xa9   : > { %v1966_v21 = vpop.f32.mrf.mxu1 }
  0xaa   : > { %v412_v33 = vadd.f32 %v1966_v21, %v1964_v20 }
  0xb0   : > { %v1975_v28 = vpop.f32.mrf.mxu2  ;;  %v1980_v31 = vpop.f32.mrf.mxu0 }
  0xb1   : > { %v1977_v29 = vpop.f32.mrf.mxu3  ;;  %v1982_v32 = vpop.f32.mrf.mxu1  ;;  %v535_v53 = vadd.f32 %v1975_v28, %v412_v33 }
  0xb2   : > { %v414_v39 = vadd.f32 %v1982_v32, %v1980_v31  ;;  %v1068_v31 = vsub.s32 %v1970_v23, %v1067_v52 }
  0xb3   : > { %v553_v32 = vadd.f32 %v1977_v29, %v535_v53  ;;  %v1668_v29 = vld [vmem:[%s2072_s2] ss:$0 sm:$0xff] }
  0xb4   : > { %vm1073_vm14 = vcmp.ne.s32.totalorder %v1068_v31, 0  ;;  %vm1076_vm15 = vcmp.lt.s32.totalorder %v1068_v31, 0  ;;  %v1082_v4 = vadd.s32 5, %v1068_v31 }
  0xb5   : > { %vm2020_vm1 = vmand %vm1076_vm15, %vm1073_vm14 }
  0xb6   : > { %v1085_v15 = vsel %vm2020_vm1, %v1082_v4, %v1068_v31 }
  0xb7   : > { %vm2046_vm4 = vcmp.lt.s32.totalorder %v1085_v15, 4 }
  0xb8   : > { %v536_v47 = vpop.f32.mrf.mxu2  ;;  %v1987_v50 = vpop.f32.mrf.mxu0 }
  0xb9   : > { %v1985_v48 = vpop.f32.mrf.mxu3  ;;  %v1989_v51 = vpop.f32.mrf.mxu1  ;;  %v537_v49 = vadd.f32 %v536_v47, %v414_v39 }
  0xba   : > { %v417_v21 = vadd.f32 %v1989_v51, %v1987_v50  ;;  %v1080_v51 = vadd.s32 5, %v1010_v57 }
  0xbb   : > { %v555_v20 = vadd.f32 %v1985_v48, %v537_v49 }
  0xbc   : > { %v1083_v10 = vsel %vm2012_vm0, %v1080_v51, %v1010_v57 }
  0xbd   : > { %vm2037_vm3 = vcmp.lt.s32.totalorder %v1083_v10, 4 }
  0xc0   : > { %v539_v1 = vpop.f32.mrf.mxu2  ;;  %v400_v5 = vpop.f32.mrf.mxu0 }
  0xc1   : > { %v1991_v2 = vpop.f32.mrf.mxu3  ;;  %v418_v6 = vpop.f32.mrf.mxu1  ;;  %v540_v48 = vadd.f32 %v539_v1, %v417_v21  ;;  %v1084_v5 = vsel %vm2005_vm13, %v1081_v18, %v1039_v54 }
  0xc2   : > { %vm2029_vm2 = vcmp.lt.s32.totalorder %v1084_v5, 4 }
  0xc3   : > { %v558_v8 = vadd.f32 %v1991_v2, %v540_v48 }
  0xc8   : > { %v541_v22 = vpop.f32.mrf.mxu2  ;;  %v758_v34 = vpop.f32.mrf.mxu0 }
  0xc9   : > { %v559_v24 = vpop.f32.mrf.mxu3  ;;  %v776_v36 = vpop.f32.mrf.mxu1 }
  0xca   : > { %v777_v56 = vadd.f32 %v776_v36, %v758_v34 }
  0xcc   : > { %v785_v62 = vadd.f32 %v777_v56, %v553_v32 }
  0xd0   : > { %v943_v35 = vpop.f32.mrf.mxu2  ;;  %v760_v45 = vpop.f32.mrf.mxu0 }
  0xd1   : > { %v961_v37 = vpop.f32.mrf.mxu3  ;;  %v778_v43 = vpop.f32.mrf.mxu1 }
  0xd2   : > { %v779_v55 = vadd.f32 %v778_v43, %v760_v45  ;;  %v962_v58 = vadd.f32 %v961_v37, %v943_v35 }
  0xd4   : > { %v786_v28 = vadd.f32 %v779_v55, %v555_v20  ;;  %v970_v23 = vadd.f32 %v962_v58, %v785_v62 }
  0xd6   : > { %v2025_v9 = vadd.f32 %v1668_v29, %v970_v23 }
  0xd8   : > { %v945_v47 = vpop.f32.mrf.mxu2  ;;  %v763_v60 = vpop.f32.mrf.mxu0  ;;  %v1108_v25 = vmul.f32 %v2025_v9, %v2025_v9  ;;  %v1095_v36 = vsel %vm2037_vm3, %v2025_v9, 0.0 }
  0xd9   : > { %v963_v59 = vpop.f32.mrf.mxu3  ;;  %v781_v61 = vpop.f32.mrf.mxu1 }
  0xda   : > { %v964_v19 = vadd.f32 %v963_v59, %v945_v47  ;;  %v782_v3 = vadd.f32 %v781_v61, %v763_v60  ;;  %v1111_v42 = vsel %vm2037_vm3, %v1108_v25, 0.0 }
  0xdc   : > { %v971_v63 = vadd.f32 %v964_v19, %v786_v28  ;;  %v787_v13 = vadd.f32 %v782_v3, %v558_v8 }
  0xde   : > { %v2016_v1 = vadd.f32 %v1668_v29, %v971_v63 }
  0xe0   : > { %v948_v7 = vpop.f32.mrf.mxu2  ;;  %v765_v16 = vpop.f32.mrf.mxu0  ;;  %v1109_v2 = vmul.f32 %v2016_v1, %v2016_v1  ;;  %v1096_v26 = vsel %vm2029_vm2, %v2016_v1, 0.0 }
  0xe1   : > { %v966_v11 = vpop.f32.mrf.mxu3  ;;  %v783_v17 = vpop.f32.mrf.mxu1  ;;  %v1098_v40 = vadd.f32 %v1096_v26, %v1095_v36 }
  0xe2   : > { %v967_v14 = vadd.f32 %v966_v11, %v948_v7  ;;  %v1112_v38 = vsel %vm2029_vm2, %v1109_v2, 0.0 }
  0xe3   : > { %v1114_v44 = vadd.f32 %v1112_v38, %v1111_v42 }
  0xe4   : > { %v972_v24 = vadd.f32 %v967_v14, %v787_v13 }
  0xe6   : > { %v979_v34 = vadd.f32 %v1668_v29, %v972_v24 }
  0xe8   : > { %v1097_v27 = vsel %vm2046_vm4, %v979_v34, 0.0  ;;  %v1110_v41 = vmul.f32 %v979_v34, %v979_v34  ;;  %v950_v35 = vpop.f32.mrf.mxu2 }
  0xe9   : > { %v1100_v33 = vsel %vm1099_vm5, %v1097_v27, 0.0  ;;  %v968_v37 = vpop.f32.mrf.mxu3 }
  0xea   : > { %v1101_v39 = vadd.f32 %v1100_v33, %v1098_v40  ;;  %v1113_v45 = vsel %vm2046_vm4, %v1110_v41, 0.0 }
  0xeb   : > { %v1115_v43 = vsel %vm1099_vm5, %v1113_v45, 0.0 }
  0xec   : > { %v1102_v46 = vrot.slane %v1101_v39, 4  ;;  %v1116_v49 = vadd.f32 %v1115_v43, %v1114_v44 }
  0xee   : > { %v1103_v52 = vadd.f32 %v1102_v46, %v1101_v39  ;;  %v1117_v53 = vrot.slane %v1116_v49, 4 }
  0xf0   : > { %v1104_v54 = vrot.slane %v1103_v52, 2  ;;  %v1118_v55 = vadd.f32 %v1117_v53, %v1116_v49 }
  0xf2   : > { %v1105_v56 = vadd.f32 %v1104_v54, %v1103_v52  ;;  %v1119_v57 = vrot.slane %v1118_v55, 2 }
  0xf4   : > { %v1106_v20 = vrot.slane %v1105_v56, 1  ;;  %v1120_v21 = vadd.f32 %v1119_v57, %v1118_v55 }
  0xf6   : > { %v1107_v31 = vadd.f32 %v1106_v20, %v1105_v56  ;;  %v1121_v32 = vrot.slane %v1120_v21, 1 }
  0xf8   : > { %v1122_v58 = vadd.f32 %v1121_v32, %v1120_v21  ;;  %v1123_v47 = vmul.f32 0.0625, %v1107_v31 }
  0xfa   : > { %v1124_v59 = vmul.f32 0.0625, %v1122_v58  ;;  %v1125_v28 = vmul.f32 %v1123_v47, %v1123_v47  ;;  %v1128_v29 = vsub.f32 %v2025_v9, %v1123_v47  ;;  %v1129_v51 = vsub.f32 %v2016_v1, %v1123_v47 }
  0xfb   : > { %v1130_v0 = vsub.f32 %v979_v34, %v1123_v47 }
  0xfc   : > { %v1126_v19 = vsub.f32 %v1124_v59, %v1125_v28 }
  0xfe   : > { %v1127_v60 = vmax.f32 %v1126_v19, 0.0 }
 0x100   : > { %v1131_v61 = vadd.f32 1e-05, %v1127_v60 }
 0x102   : > { %1669 = vrsqrt.f32 %v1131_v61  ;;  %vm1138_vm7 = vweird.f32 %v1131_v61 }
 0x108   : > { %v1670_v62 = vpop.eup %1669 }
 0x109   : > { %v1133_v18 = vmul.f32 %v1670_v62, %v1131_v61  ;;  %vm1139_vm6 = vweird.f32 %v1670_v62 }
 0x10a   : > { %vm1140_vm8 = vmor %vm1138_vm7, %vm1139_vm6 }
 0x10b   : > { %v1134_v48 = vmul.f32 %v1670_v62, %v1133_v18 }
 0x10d   : > { %v1135_v63 = vmul.f32 0.5, %v1134_v48 }
 0x10f   : > { %v1136_v50 = vsub.f32 1.5, %v1135_v63 }
 0x111   : > { %v1137_v23 = vmul.f32 %v1670_v62, %v1136_v50 }
 0x113   : > { %v1141_v3 = vsel %vm1140_vm8, %v1670_v62, %v1137_v23 }
 0x114   : > { %v1142_v4 = vmul.f32 %v1141_v3, %v1128_v29  ;;  %v1143_v5 = vmul.f32 %v1141_v3, %v1129_v51  ;;  %v1144_v6 = vmul.f32 %v1141_v3, %v1130_v0 }
 0x116   : > { %vm1145_vm9 = vcmp.ge.f32.partialorder %v1142_v4, 0.0  ;;  %vm1146_vm10 = vcmp.ge.f32.partialorder %v1143_v5, 0.0  ;;  %vm1147_vm11 = vcmp.ge.f32.partialorder %v1144_v6, 0.0  ;;  %v1148_v8 = vmul.f32 0.2, %v1142_v4 }
 0x117   : > { %v1149_v10 = vmul.f32 0.2, %v1143_v5  ;;  %v1150_v7 = vmul.f32 0.2, %v1144_v6 }
 0x118   : > { %v1151_v11 = vsel %vm1145_vm9, %v1142_v4, %v1148_v8 }
 0x119   : > { %v1152_v9 = vsel %vm1146_vm10, %v1143_v5, %v1149_v10  ;;  %v1153_v12 = vsel %vm1147_vm11, %v1144_v6, %v1150_v7  ;;  %1154 = vst [vmem:[%s170_s29] sm:$0xff] %v1151_v11 }
 0x11a   : > { %1155 = vst [vmem:[%s170_s29 + $0x8] sm:$0xff] %v1152_v9 }
 0x11b   : > { %1156 = vst [vmem:[%s170_s29 + $0x10] sm:$0xf] %v1153_v12 }
 0x11c PF: > { %s13_s12 = sadd.s32 1, %s1677_s12  }
 0x11d   : > { %p10_p4 = scmp.ge.s32.totalorder %s13_s12, 4  }
 0x11f   :  { %12 = sbr.rel (!%p10_p4) target bundleno = 1 (0x1), region = 65 }

// kernel: discriminator_forward.8
= control target key start
LH: loop header
LB: loop body
LE: loop exit
PB: predicated region body
PF: predicated region fallthrough
CT: control target
= control target key end

     0   :  { %s3973_s12 = smov 0   ;;  %s5686_s0 = inlined_call_operand.vmem [shape: bf16[2,17,512], index: 0, kind: input, shape index: {}]   ;;  %s5687_s1 = inlined_call_operand.vmem [shape: bf16[4,512,256], index: 1, kind: input, shape index: {}]   ;;  %s5688_s2 = inlined_call_operand.vmem [shape: f32[1,256], index: 2, kind: input, shape index: {}]   ;;  %s5689_s3 = inlined_call_operand.vmem [shape: f32[2,6,256], index: 3, kind: output, shape index: {}]  }
   0x1 LB: > { %s2447_s13 = sadd.s32 4294967295, %s3950_s12   ;;  %p2451_p0 = scmp.ge.s32.totalorder %s3950_s12, 1  ;;  %s3950_s12 = sphi %s3973_s12, %s13_s12  }
   0x2   : > { %p137_p1 = scmp.lt.s32.totalorder %s3950_s12, 3 }
   0x4   : > { %p138_p2 = pnand %p2451_p0, %p137_p1 }
   0x5   : > { %p161_p3 = scmp.lt.s32.totalorder (!%p138_p2), %s2447_s13, 1 }
   0x6   : > { %141 = sbr.rel (%p138_p2) target bundleno = 459 (0x1cb), region = 32 }
   0xb   : > { %v2577_v0 = vld [vmem:[%s5687_s1 + $0x270] sm:$0xf]  ;;  %v3753_v1 = vld [vmem:[%s5687_s1 + $0x274] sm:$0xf0]  ;;  %v2569_v11 = vld [vmem:[%s5687_s1 + $0x260] sm:$0xf] }
   0xc   : > { %v2641_v2 = vld [vmem:[%s5687_s1 + $0x2f0] sm:$0xf]  ;;  %v2578_v3 = vor.u32 %v3753_v1, %v2577_v0  ;;  %v3769_v4 = vld [vmem:[%s5687_s1 + $0x2f4] sm:$0xf0]  ;;  %v3751_v13 = vld [vmem:[%s5687_s1 + $0x264] sm:$0xf0] }
   0xd   : > { %v2705_v5 = vld [vmem:[%s5687_s1 + $0x370] sm:$0xf]  ;;  %v3785_v6 = vld [vmem:[%s5687_s1 + $0x374] sm:$0xf0]  ;;  %v2642_v7 = vor.u32 %v3769_v4, %v2641_v2  ;;  %v2633_v14 = vld [vmem:[%s5687_s1 + $0x2e0] sm:$0xf]  ;;  %v2570_v16 = vor.u32 %v3751_v13, %v2569_v11 }
   0xe   : > { %v2706_v8 = vor.u32 %v3785_v6, %v2705_v5  ;;  %v2769_v9 = vld [vmem:[%s5687_s1 + $0x3f0] sm:$0xf]  ;;  %v3801_v10 = vld [vmem:[%s5687_s1 + $0x3f4] sm:$0xf0]  ;;  %666 = vmatpush.bf16.msra.mxu0 %v2578_v3  ;;  %v3767_v15 = vld [vmem:[%s5687_s1 + $0x2e4] sm:$0xf0] }
   0xf   : > { %v2770_v12 = vor.u32 %v3801_v10, %v2769_v9  ;;  %679 = vmatpush.bf16.msra.mxu1 %v2642_v7  ;;  %v2634_v17 = vor.u32 %v3767_v15, %v2633_v14  ;;  %v2697_v18 = vld [vmem:[%s5687_s1 + $0x360] sm:$0xf]  ;;  %v3783_v19 = vld [vmem:[%s5687_s1 + $0x364] sm:$0xf0]  ;;  %v2561_v23 = vld [vmem:[%s5687_s1 + $0x250] sm:$0xf] }
  0x10   : > { %692 = vmatpush.bf16.msra.mxu2 %v2706_v8  ;;  %v2761_v20 = vld [vmem:[%s5687_s1 + $0x3e0] sm:$0xf]  ;;  %v2698_v21 = vor.u32 %v3783_v19, %v2697_v18  ;;  %v3799_v22 = vld [vmem:[%s5687_s1 + $0x3e4] sm:$0xf0]  ;;  %v3749_v24 = vld [vmem:[%s5687_s1 + $0x254] sm:$0xf0] }
  0x11   : > { %705 = vmatpush.bf16.msra.mxu3 %v2770_v12  ;;  %v2762_v25 = vor.u32 %v3799_v22, %v2761_v20  ;;  %v2625_v26 = vld [vmem:[%s5687_s1 + $0x2d0] sm:$0xf]  ;;  %v3765_v27 = vld [vmem:[%s5687_s1 + $0x2d4] sm:$0xf0]  ;;  %v2562_v29 = vor.u32 %v3749_v24, %v2561_v23  ;;  %v2553_v35 = vld [vmem:[%s5687_s1 + $0x240] sm:$0xf] }
  0x12   : > { %v2689_v28 = vld [vmem:[%s5687_s1 + $0x350] sm:$0xf]  ;;  %667 = vmatpush.bf16.msra.mxu0 %v2570_v16  ;;  %v3781_v30 = vld [vmem:[%s5687_s1 + $0x354] sm:$0xf0]  ;;  %v2626_v33 = vor.u32 %v3765_v27, %v2625_v26  ;;  %v3747_v36 = vld [vmem:[%s5687_s1 + $0x244] sm:$0xf0] }
  0x13   : > { %v2753_v31 = vld [vmem:[%s5687_s1 + $0x3d0] sm:$0xf]  ;;  %v3797_v32 = vld [vmem:[%s5687_s1 + $0x3d4] sm:$0xf0]  ;;  %680 = vmatpush.bf16.msra.mxu1 %v2634_v17  ;;  %v2690_v34 = vor.u32 %v3781_v30, %v2689_v28  ;;  %v2617_v37 = vld [vmem:[%s5687_s1 + $0x2c0] sm:$0xf]  ;;  %v2554_v44 = vor.u32 %v3747_v36, %v2553_v35 }
  0x14   : > { %693 = vmatpush.bf16.msra.mxu2 %v2698_v21  ;;  %v2754_v38 = vor.u32 %v3797_v32, %v2753_v31  ;;  %v3763_v39 = vld [vmem:[%s5687_s1 + $0x2c4] sm:$0xf0]  ;;  %v2681_v40 = vld [vmem:[%s5687_s1 + $0x340] sm:$0xf]  ;;  %v2545_v47 = vld [vmem:[%s5687_s1 + $0x230] sm:$0xf] }
  0x15   : > { %706 = vmatpush.bf16.msra.mxu3 %v2762_v25  ;;  %v3779_v41 = vld [vmem:[%s5687_s1 + $0x344] sm:$0xf0]  ;;  %v2745_v42 = vld [vmem:[%s5687_s1 + $0x3c0] sm:$0xf]  ;;  %v2618_v45 = vor.u32 %v3763_v39, %v2617_v37  ;;  %v3745_v48 = vld [vmem:[%s5687_s1 + $0x234] sm:$0xf0] }
  0x16   : > { %v3795_v43 = vld [vmem:[%s5687_s1 + $0x3c4] sm:$0xf0]  ;;  %668 = vmatpush.bf16.msra.mxu0 %v2562_v29  ;;  %v2682_v46 = vor.u32 %v3779_v41, %v2681_v40  ;;  %v2609_v49 = vld [vmem:[%s5687_s1 + $0x2b0] sm:$0xf]  ;;  %v3761_v51 = vld [vmem:[%s5687_s1 + $0x2b4] sm:$0xf0]  ;;  %v2546_v56 = vor.u32 %v3745_v48, %v2545_v47 }
  0x17   : > { %681 = vmatpush.bf16.msra.mxu1 %v2626_v33  ;;  %v2746_v50 = vor.u32 %v3795_v43, %v2745_v42  ;;  %v2673_v52 = vld [vmem:[%s5687_s1 + $0x330] sm:$0xf]  ;;  %v3777_v53 = vld [vmem:[%s5687_s1 + $0x334] sm:$0xf0]  ;;  %v2610_v57 = vor.u32 %v3761_v51, %v2609_v49  ;;  %v2537_v59 = vld [vmem:[%s5687_s1 + $0x220] sm:$0xf] }
  0x18   : > { %694 = vmatpush.bf16.msra.mxu2 %v2690_v34  ;;  %v2737_v54 = vld [vmem:[%s5687_s1 + $0x3b0] sm:$0xf]  ;;  %v3793_v55 = vld [vmem:[%s5687_s1 + $0x3b4] sm:$0xf0]  ;;  %v2674_v58 = vor.u32 %v3777_v53, %v2673_v52  ;;  %v3743_v60 = vld [vmem:[%s5687_s1 + $0x224] sm:$0xf0] }
  0x19   : > { %707 = vmatpush.bf16.msra.mxu3 %v2754_v38  ;;  %v2601_v61 = vld [vmem:[%s5687_s1 + $0x2a0] sm:$0xf]  ;;  %v2738_v62 = vor.u32 %v3793_v55, %v2737_v54  ;;  %v3759_v63 = vld [vmem:[%s5687_s1 + $0x2a4] sm:$0xf0]  ;;  %v2538_v4 = vor.u32 %v3743_v60, %v2537_v59  ;;  %v2529_v7 = vld [vmem:[%s5687_s1 + $0x210] sm:$0xf] }
  0x1a   : > { %669 = vmatpush.bf16.msra.mxu0 %v2554_v44  ;;  %v2665_v0 = vld [vmem:[%s5687_s1 + $0x320] sm:$0xf]  ;;  %v3775_v1 = vld [vmem:[%s5687_s1 + $0x324] sm:$0xf0]  ;;  %v2602_v5 = vor.u32 %v3759_v63, %v2601_v61  ;;  %v3741_v8 = vld [vmem:[%s5687_s1 + $0x214] sm:$0xf0] }
  0x1b   : > { %682 = vmatpush.bf16.msra.mxu1 %v2618_v45  ;;  %v2729_v2 = vld [vmem:[%s5687_s1 + $0x3a0] sm:$0xf]  ;;  %v3791_v3 = vld [vmem:[%s5687_s1 + $0x3a4] sm:$0xf0]  ;;  %v2666_v6 = vor.u32 %v3775_v1, %v2665_v0  ;;  %v2593_v9 = vld [vmem:[%s5687_s1 + $0x290] sm:$0xf]  ;;  %v2530_v16 = vor.u32 %v3741_v8, %v2529_v7 }
  0x1c   : > { %695 = vmatpush.bf16.msra.mxu2 %v2682_v46  ;;  %v2730_v10 = vor.u32 %v3791_v3, %v2729_v2  ;;  %v3757_v11 = vld [vmem:[%s5687_s1 + $0x294] sm:$0xf0]  ;;  %v2657_v12 = vld [vmem:[%s5687_s1 + $0x310] sm:$0xf]  ;;  %v2521_v17 = vld [vmem:[%s5687_s1 + $0x200] sm:$0xf] }
  0x1d   : > { %708 = vmatpush.bf16.msra.mxu3 %v2746_v50  ;;  %v3773_v13 = vld [vmem:[%s5687_s1 + $0x314] sm:$0xf0]  ;;  %v2721_v14 = vld [vmem:[%s5687_s1 + $0x390] sm:$0xf]  ;;  %v3739_v18 = vld [vmem:[%s5687_s1 + $0x204] sm:$0xf0]  ;;  %v2594_v19 = vor.u32 %v3757_v11, %v2593_v9 }
  0x1e   : > { %670 = vmatpush.bf16.msra.mxu0 %v2546_v56  ;;  %v3789_v15 = vld [vmem:[%s5687_s1 + $0x394] sm:$0xf0]  ;;  %v2658_v20 = vor.u32 %v3773_v13, %v2657_v12  ;;  %v2585_v21 = vld [vmem:[%s5687_s1 + $0x280] sm:$0xf]  ;;  %v3755_v22 = vld [vmem:[%s5687_s1 + $0x284] sm:$0xf0]  ;;  %v2522_v31 = vor.u32 %v3739_v18, %v2521_v17 }
  0x1f   : > { %683 = vmatpush.bf16.msra.mxu1 %v2610_v57  ;;  %v2649_v23 = vld [vmem:[%s5687_s1 + $0x300] sm:$0xf]  ;;  %v2722_v24 = vor.u32 %v3789_v15, %v2721_v14  ;;  %v3771_v25 = vld [vmem:[%s5687_s1 + $0x304] sm:$0xf0]  ;;  %v3752_v28 = vld [vmem:[%s5687_s1 + $0x274] sm:$0xf]  ;;  %v2586_v35 = vor.u32 %v3755_v22, %v2585_v21 }
  0x20   : > { %696 = vmatpush.bf16.msra.mxu2 %v2674_v58  ;;  %v2713_v26 = vld [vmem:[%s5687_s1 + $0x380] sm:$0xf]  ;;  %v3787_v27 = vld [vmem:[%s5687_s1 + $0x384] sm:$0xf0]  ;;  %v2579_v29 = vld [vmem:[%s5687_s1 + $0x278] sm:$0xf0]  ;;  %v2650_v36 = vor.u32 %v3771_v25, %v2649_v23 }
  0x21   : > { %709 = vmatpush.bf16.msra.mxu3 %v2738_v62  ;;  %v3768_v30 = vld [vmem:[%s5687_s1 + $0x2f4] sm:$0xf]  ;;  %v2643_v32 = vld [vmem:[%s5687_s1 + $0x2f8] sm:$0xf0]  ;;  %v2714_v39 = vor.u32 %v3787_v27, %v2713_v26  ;;  %v2582_v40 = vor.u32 %v3752_v28, %v2579_v29  ;;  %v3750_v43 = vld [vmem:[%s5687_s1 + $0x264] sm:$0xf] }
  0x22   : > { %671 = vmatpush.bf16.msra.mxu0 %v2538_v4  ;;  %v3784_v33 = vld [vmem:[%s5687_s1 + $0x374] sm:$0xf]  ;;  %v2707_v34 = vld [vmem:[%s5687_s1 + $0x378] sm:$0xf0]  ;;  %v2646_v41 = vor.u32 %v3768_v30, %v2643_v32  ;;  %v2571_v44 = vld [vmem:[%s5687_s1 + $0x268] sm:$0xf0] }
  0x23   : > { %684 = vmatpush.bf16.msra.mxu1 %v2602_v5  ;;  %v3800_v37 = vld [vmem:[%s5687_s1 + $0x3f4] sm:$0xf]  ;;  %v2771_v38 = vld [vmem:[%s5687_s1 + $0x3f8] sm:$0xf0]  ;;  %v2710_v42 = vor.u32 %v3784_v33, %v2707_v34  ;;  %v3766_v45 = vld [vmem:[%s5687_s1 + $0x2e4] sm:$0xf]  ;;  %v2574_v52 = vor.u32 %v3750_v43, %v2571_v44 }
  0x24   : > { %697 = vmatpush.bf16.msra.mxu2 %v2666_v6  ;;  %v2774_v46 = vor.u32 %v3800_v37, %v2771_v38  ;;  %v2635_v47 = vld [vmem:[%s5687_s1 + $0x2e8] sm:$0xf0]  ;;  %v3782_v48 = vld [vmem:[%s5687_s1 + $0x364] sm:$0xf]  ;;  %v3748_v55 = vld [vmem:[%s5687_s1 + $0x254] sm:$0xf] }
  0x25   : > { %710 = vmatpush.bf16.msra.mxu3 %v2730_v10  ;;  %v2699_v49 = vld [vmem:[%s5687_s1 + $0x368] sm:$0xf0]  ;;  %v3798_v50 = vld [vmem:[%s5687_s1 + $0x3e4] sm:$0xf]  ;;  %v2638_v53 = vor.u32 %v3766_v45, %v2635_v47  ;;  %v2563_v56 = vld [vmem:[%s5687_s1 + $0x258] sm:$0xf0] }
  0x26   : > { %672 = vmatpush.bf16.msra.mxu0 %v2530_v16  ;;  %v2763_v51 = vld [vmem:[%s5687_s1 + $0x3e8] sm:$0xf0]  ;;  %v2702_v54 = vor.u32 %v3782_v48, %v2699_v49  ;;  %v3764_v57 = vld [vmem:[%s5687_s1 + $0x2d4] sm:$0xf]  ;;  %v2627_v59 = vld [vmem:[%s5687_s1 + $0x2d8] sm:$0xf0]  ;;  %v2566_v0 = vor.u32 %v3748_v55, %v2563_v56 }
  0x27   : > { %685 = vmatpush.bf16.msra.mxu1 %v2594_v19  ;;  %v2766_v58 = vor.u32 %v3798_v50, %v2763_v51  ;;  %v3780_v60 = vld [vmem:[%s5687_s1 + $0x354] sm:$0xf]  ;;  %v2691_v61 = vld [vmem:[%s5687_s1 + $0x358] sm:$0xf0]  ;;  %v3746_v1 = vld [vmem:[%s5687_s1 + $0x244] sm:$0xf]  ;;  %v2630_v3 = vor.u32 %v3764_v57, %v2627_v59 }
  0x28   : > { %698 = vmatpush.bf16.msra.mxu2 %v2658_v20  ;;  %v3796_v62 = vld [vmem:[%s5687_s1 + $0x3d4] sm:$0xf]  ;;  %v2755_v63 = vld [vmem:[%s5687_s1 + $0x3d8] sm:$0xf0]  ;;  %v2555_v2 = vld [vmem:[%s5687_s1 + $0x248] sm:$0xf0]  ;;  %v2694_v4 = vor.u32 %v3780_v60, %v2691_v61 }
  0x29   : > { %711 = vmatpush.bf16.msra.mxu3 %v2722_v24  ;;  %v3762_v5 = vld [vmem:[%s5687_s1 + $0x2c4] sm:$0xf]  ;;  %v2619_v6 = vld [vmem:[%s5687_s1 + $0x2c8] sm:$0xf0]  ;;  %v2758_v8 = vor.u32 %v3796_v62, %v2755_v63  ;;  %s5693_s13 = smov (!%p161_p3, %s2447_s13), 1  ;;  %v2558_v14 = vor.u32 %v3746_v1, %v2555_v2  ;;  %vm2315_vm6 = vcmask 1045504  }
  0x2a   : > { %673 = vmatpush.bf16.msra.mxu0 %v2522_v31  ;;  %v3778_v7 = vld [vmem:[%s5687_s1 + $0x344] sm:$0xf]  ;;  %v2683_v9 = vld [vmem:[%s5687_s1 + $0x348] sm:$0xf0]  ;;  %v3744_v12 = vld [vmem:[%s5687_s1 + $0x234] sm:$0xf]  ;;  %v2622_v17 = vor.u32 %v3762_v5, %v2619_v6 }
  0x2b   : > { %686 = vmatpush.bf16.msra.mxu1 %v2586_v35  ;;  %v3794_v10 = vld [vmem:[%s5687_s1 + $0x3c4] sm:$0xf]  ;;  %v2747_v11 = vld [vmem:[%s5687_s1 + $0x3c8] sm:$0xf0]  ;;  %v2547_v13 = vld [vmem:[%s5687_s1 + $0x238] sm:$0xf0]  ;;  %v2686_v18 = vor.u32 %v3778_v7, %v2683_v9 }
  0x2c   : > { %699 = vmatpush.bf16.msra.mxu2 %v2650_v36  ;;  %v3760_v15 = vld [vmem:[%s5687_s1 + $0x2b4] sm:$0xf]  ;;  %v2611_v16 = vld [vmem:[%s5687_s1 + $0x2b8] sm:$0xf0]  ;;  %s3930_s14 = smul.u32 48, %s5693_s13  ;;  %v2750_v22 = vor.u32 %v3794_v10, %v2747_v11  ;;  %v2550_v26 = vor.u32 %v3744_v12, %v2547_v13  ;;  %s3673_s21 = sshll.u32 %s5693_s13, 4 }
  0x2d   : > { %712 = vmatpush.bf16.msra.mxu3 %v2714_v39  ;;  %v3776_v19 = vld [vmem:[%s5687_s1 + $0x334] sm:$0xf]  ;;  %v2675_v20 = vld [vmem:[%s5687_s1 + $0x338] sm:$0xf0]  ;;  %v3742_v24 = vld [vmem:[%s5687_s1 + $0x224] sm:$0xf]  ;;  %v2614_v37 = vor.u32 %v3760_v15, %v2611_v16  ;;  %s170_s24 = scalar_lea.vmem %s5689_s3, %s3673_s21 }
  0x2e   : > { %718 = vmatpush.bf16.msrb.mxu0 %v2582_v40  ;;  %v3792_v21 = vld [vmem:[%s5687_s1 + $0x3b4] sm:$0xf]  ;;  %v2739_v23 = vld [vmem:[%s5687_s1 + $0x3b8] sm:$0xf0]  ;;  %v2539_v25 = vld [vmem:[%s5687_s1 + $0x228] sm:$0xf0]  ;;  %s4309_s29 = scalar_lea.vmem %s5686_s0, %s3930_s14  ;;  %v2678_v38 = vor.u32 %v3776_v19, %v2675_v20 }
  0x2f   : > { %731 = vmatpush.bf16.msrb.mxu1 %v2646_v41  ;;  %v3758_v27 = vld [vmem:[%s5687_s1 + $0x2a4] sm:$0xf]  ;;  %v238_v28 = vld [vmem:[%s4309_s29 + $0x8] sm:$0xff]  ;;  %v2742_v39 = vor.u32 %v3792_v21, %v2739_v23  ;;  %v2542_v45 = vor.u32 %v3742_v24, %v2539_v25  ;;  %v3740_v49 = vld [vmem:[%s5687_s1 + $0x214] sm:$0xf] }
  0x30   : > { %744 = vmatpush.bf16.msrb.mxu2 %v2710_v42  ;;  %v237_v29 = vld [vmem:[%s4309_s29] sm:$0xff]  ;;  %v2603_v30 = vld [vmem:[%s5687_s1 + $0x2a8] sm:$0xf0]  ;;  %v308_v33 = vunpack.c.l.b16 %v238_v28  ;;  %v309_v34 = vunpack.c.h.b16 %v238_v28  ;;  %v2531_v50 = vld [vmem:[%s5687_s1 + $0x218] sm:$0xf0] }
  0x31   : > { %757 = vmatpush.bf16.msrb.mxu3 %v2774_v46  ;;  %v3774_v31 = vld [vmem:[%s5687_s1 + $0x324] sm:$0xf]  ;;  %v2667_v32 = vld [vmem:[%s5687_s1 + $0x328] sm:$0xf0]  ;;  %v306_v35 = vunpack.c.l.b16 %v237_v29  ;;  %v307_v36 = vunpack.c.h.b16 %v237_v29  ;;  %v2606_v46 = vor.u32 %v3758_v27, %v2603_v30  ;;  %v3756_v55 = vld [vmem:[%s5687_s1 + $0x294] sm:$0xf] }
  0x32   : > { %719 = vmatpush.bf16.msrb.mxu0 %v2574_v52  ;;  %v3790_v40 = vld [vmem:[%s5687_s1 + $0x3a4] sm:$0xf]  ;;  %v312_v41 = vpack.c.b16 %v308_v33, %v308_v33  ;;  %v313_v42 = vpack.c.b16 %v309_v34, %v309_v34  ;;  %v2670_v47 = vor.u32 %v3774_v31, %v2667_v32  ;;  %v2731_v48 = vld [vmem:[%s5687_s1 + $0x3a8] sm:$0xf0]  ;;  %v2595_v56 = vld [vmem:[%s5687_s1 + $0x298] sm:$0xf0] }
  0x33   : > { %732 = vmatpush.bf16.msrb.mxu1 %v2638_v53  ;;  %v310_v43 = vpack.c.b16 %v306_v35, %v306_v35  ;;  %v311_v44 = vpack.c.b16 %v307_v36, %v307_v36  ;;  %v2734_v61 = vor.u32 %v3790_v40, %v2731_v48  ;;  %v2659_v1 = vld [vmem:[%s5687_s1 + $0x318] sm:$0xf0]  ;;  %v3788_v2 = vld [vmem:[%s5687_s1 + $0x394] sm:$0xf]  ;;  %v2598_v9 = vor.u32 %v3756_v55, %v2595_v56  ;;  %v3738_v10 = vld [vmem:[%s5687_s1 + $0x204] sm:$0xf] }
  0x34   : > { %745 = vmatpush.bf16.msrb.mxu2 %v2702_v54  ;;  %v329_v51 = vshrl.u32 %v312_v41, 16  ;;  %v331_v52 = vshll.u32 %v312_v41, 16  ;;  %v336_v53 = vshrl.u32 %v313_v42, 16  ;;  %v338_v54 = vshll.u32 %v313_v42, 16  ;;  %v2523_v11 = vld [vmem:[%s5687_s1 + $0x208] sm:$0xf0] }
  0x35   : > { %758 = vmatpush.bf16.msrb.mxu3 %v2766_v58  ;;  %v315_v57 = vshrl.u32 %v310_v43, 16  ;;  %v317_v58 = vshll.u32 %v310_v43, 16  ;;  %v322_v59 = vshrl.u32 %v311_v44, 16  ;;  %v324_v60 = vshll.u32 %v311_v44, 16  ;;  %v3754_v15 = vld [vmem:[%s5687_s1 + $0x284] sm:$0xf] }
  0x36   : > { %720 = vmatpush.bf16.msrb.mxu0 %v2566_v0  ;;  %v333_v62 = vrot.slane %v331_v52, 1  ;;  %v340_v63 = vrot.slane %v338_v54, 1  ;;  %v3772_v0 = vld [vmem:[%s5687_s1 + $0x314] sm:$0xf]  ;;  %v2587_v16 = vld [vmem:[%s5687_s1 + $0x288] sm:$0xf0]  ;;  %v2526_v25 = vor.u32 %v3738_v10, %v2523_v11 }
  0x37   : > { %733 = vmatpush.bf16.msrb.mxu1 %v2630_v3  ;;  %v2723_v3 = vld [vmem:[%s5687_s1 + $0x398] sm:$0xf0]  ;;  %v326_v5 = vrot.slane %v324_v60, 1  ;;  %v2662_v12 = vor.u32 %v3772_v0, %v2659_v1  ;;  %v2651_v19 = vld [vmem:[%s5687_s1 + $0x308] sm:$0xf0]  ;;  %v2590_v29 = vor.u32 %v3754_v15, %v2587_v16 }
  0x38   : > { %746 = vmatpush.bf16.msrb.mxu2 %v2694_v4  ;;  %v319_v4 = vrot.slane %v317_v58, 1  ;;  %v4355_v6 = vor.u32 %v333_v62, %v329_v51  ;;  %v4357_v7 = vor.u32 %v340_v63, %v336_v53  ;;  %v3786_v20 = vld [vmem:[%s5687_s1 + $0x384] sm:$0xf]  ;;  %v2715_v21 = vld [vmem:[%s5687_s1 + $0x388] sm:$0xf0] }
  0x39   : > { %759 = vmatpush.bf16.msrb.mxu3 %v2758_v8  ;;  %v2534_v8 = vor.u32 %v3740_v49, %v2531_v50  ;;  %v3689_v23 = vld [vmem:[%s5687_s1 + $0x74] sm:$0xf0]  ;;  %v2897_v24 = vld [vmem:[%s5687_s1 + $0xf0] sm:$0xf]  ;;  %v2718_v33 = vor.u32 %v3786_v20, %v2715_v21  ;;  %v3703_v41 = vld [vmem:[%s5687_s1 + $0xe4] sm:$0xf0] }
  0x3a   : > { %721 = vmatpush.bf16.msrb.mxu0 %v2558_v14  ;;  %v4365_v13 = vor.u32 %v319_v4, %v315_v57  ;;  %v4367_v14 = vor.u32 %v326_v5, %v322_v59  ;;  %700 = vmatmul.bf16.vlgmr.msra.gmra.mxu2 %v4355_v6  ;;  %v2961_v27 = vld [vmem:[%s5687_s1 + $0x170] sm:$0xf]  ;;  %v3721_v28 = vld [vmem:[%s5687_s1 + $0x174] sm:$0xf0]  ;;  %v2953_v42 = vld [vmem:[%s5687_s1 + $0x160] sm:$0xf] }
  0x3b   : > { %734 = vmatpush.bf16.msrb.mxu1 %v2622_v17  ;;  %v3770_v17 = vld [vmem:[%s5687_s1 + $0x304] sm:$0xf]  ;;  %713 = vmatmul.bf16.vlgmr.msra.gmra.mxu3 %v4357_v7  ;;  %v3025_v31 = vld [vmem:[%s5687_s1 + $0x1f0] sm:$0xf]  ;;  %v3737_v32 = vld [vmem:[%s5687_s1 + $0x1f4] sm:$0xf0]  ;;  %v2962_v36 = vor.u32 %v3721_v28, %v2961_v27 }
  0x3c   : > { %747 = vmatpush.bf16.msrb.mxu2 %v2686_v18  ;;  %v2726_v18 = vor.u32 %v3788_v2, %v2723_v3  ;;  %674 = vmatmul.bf16.vlgmr.msra.gmra.mxu0 %v4365_v13  ;;  %v2654_v30 = vor.u32 %v3770_v17, %v2651_v19  ;;  %v3026_v40 = vor.u32 %v3737_v32, %v3025_v31  ;;  %v3719_v43 = vld [vmem:[%s5687_s1 + $0x164] sm:$0xf0]  ;;  %v3017_v44 = vld [vmem:[%s5687_s1 + $0x1e0] sm:$0xf]  ;;  %v2817_v49 = vld [vmem:[%s5687_s1 + $0x50] sm:$0xf] }
  0x3d   : > { %760 = vmatpush.bf16.msrb.mxu3 %v2750_v22  ;;  %v2833_v22 = vld [vmem:[%s5687_s1 + $0x70] sm:$0xf]  ;;  %687 = vmatmul.bf16.vlgmr.msra.gmra.mxu1 %v4367_v14  ;;  %v2954_v48 = vor.u32 %v3719_v43, %v2953_v42  ;;  %v3685_v50 = vld [vmem:[%s5687_s1 + $0x54] sm:$0xf0]  ;;  %v3683_v62 = vld [vmem:[%s5687_s1 + $0x44] sm:$0xf0] }
  0x3e   : > { %722 = vmatpush.bf16.msrb.mxu0 %v2550_v26  ;;  %v3705_v26 = vld [vmem:[%s5687_s1 + $0xf4] sm:$0xf0]  ;;  %v2834_v34 = vor.u32 %v3689_v23, %v2833_v22  ;;  %v2881_v51 = vld [vmem:[%s5687_s1 + $0xd0] sm:$0xf]  ;;  %v2818_v58 = vor.u32 %v3685_v50, %v2817_v49  ;;  %v2873_v63 = vld [vmem:[%s5687_s1 + $0xc0] sm:$0xf] }
  0x3f   : > { %735 = vmatpush.bf16.msrb.mxu1 %v2614_v37  ;;  %v2898_v35 = vor.u32 %v3705_v26, %v2897_v24  ;;  %v2825_v37 = vld [vmem:[%s5687_s1 + $0x60] sm:$0xf]  ;;  %v3701_v53 = vld [vmem:[%s5687_s1 + $0xd4] sm:$0xf0]  ;;  %v2945_v54 = vld [vmem:[%s5687_s1 + $0x150] sm:$0xf] }
  0x40   : > { %748 = vmatpush.bf16.msrb.mxu2 %v2678_v38  ;;  %v3687_v38 = vld [vmem:[%s5687_s1 + $0x64] sm:$0xf0]  ;;  %v3717_v55 = vld [vmem:[%s5687_s1 + $0x154] sm:$0xf0]  ;;  %v3009_v56 = vld [vmem:[%s5687_s1 + $0x1d0] sm:$0xf]  ;;  %v2882_v59 = vor.u32 %v3701_v53, %v2881_v51 }
  0x41   : > { %761 = vmatpush.bf16.msrb.mxu3 %v2742_v39  ;;  %v2889_v39 = vld [vmem:[%s5687_s1 + $0xe0] sm:$0xf]  ;;  %v3733_v57 = vld [vmem:[%s5687_s1 + $0x1d4] sm:$0xf0]  ;;  %v2946_v60 = vor.u32 %v3717_v55, %v2945_v54  ;;  %v3699_v1 = vld [vmem:[%s5687_s1 + $0xc4] sm:$0xf0] }
  0x42   : > { %723 = vmatpush.bf16.msrb.mxu0 %v2542_v45  ;;  %v3735_v45 = vld [vmem:[%s5687_s1 + $0x1e4] sm:$0xf0]  ;;  %v3010_v0 = vor.u32 %v3733_v57, %v3009_v56  ;;  %v2937_v2 = vld [vmem:[%s5687_s1 + $0x140] sm:$0xf]  ;;  %v2801_v11 = vld [vmem:[%s5687_s1 + $0x30] sm:$0xf] }
  0x43   : > { %736 = vmatpush.bf16.msrb.mxu1 %v2606_v46  ;;  %v2826_v46 = vor.u32 %v3687_v38, %v2825_v37  ;;  %v3018_v52 = vor.u32 %v3735_v45, %v3017_v44  ;;  %v3715_v3 = vld [vmem:[%s5687_s1 + $0x144] sm:$0xf0]  ;;  %v3001_v4 = vld [vmem:[%s5687_s1 + $0x1c0] sm:$0xf]  ;;  %v2865_v15 = vld [vmem:[%s5687_s1 + $0xb0] sm:$0xf] }
  0x44   : > { %749 = vmatpush.bf16.msrb.mxu2 %v2670_v47  ;;  %v2890_v47 = vor.u32 %v3703_v41, %v2889_v39  ;;  %v3731_v5 = vld [vmem:[%s5687_s1 + $0x1c4] sm:$0xf0]  ;;  %v2938_v10 = vor.u32 %v3715_v3, %v2937_v2  ;;  %v2929_v17 = vld [vmem:[%s5687_s1 + $0x130] sm:$0xf]  ;;  %v2793_v23 = vld [vmem:[%s5687_s1 + $0x20] sm:$0xf] }
  0x45   : > { %762 = vmatpush.bf16.msrb.mxu3 %v2734_v61  ;;  %v2809_v61 = vld [vmem:[%s5687_s1 + $0x40] sm:$0xf]  ;;  %v3002_v16 = vor.u32 %v3731_v5, %v3001_v4  ;;  %v2993_v19 = vld [vmem:[%s5687_s1 + $0x1b0] sm:$0xf]  ;;  %v3679_v24 = vld [vmem:[%s5687_s1 + $0x24] sm:$0xf0] }
  0x46   : > { %724 = vmatpush.bf16.msrb.mxu0 %v2534_v8  ;;  %v2810_v8 = vor.u32 %v3683_v62, %v2809_v61  ;;  %v2921_v26 = vld [vmem:[%s5687_s1 + $0x120] sm:$0xf]  ;;  %v3711_v27 = vld [vmem:[%s5687_s1 + $0x124] sm:$0xf0]  ;;  %v3693_v37 = vld [vmem:[%s5687_s1 + $0x94] sm:$0xf0] }
  0x47   : > { %737 = vmatpush.bf16.msrb.mxu1 %v2598_v9  ;;  %v2874_v9 = vor.u32 %v3699_v1, %v2873_v63  ;;  %v2985_v28 = vld [vmem:[%s5687_s1 + $0x1a0] sm:$0xf]  ;;  %v2922_v32 = vor.u32 %v3711_v27, %v2921_v26  ;;  %v2913_v38 = vld [vmem:[%s5687_s1 + $0x110] sm:$0xf]  ;;  %v3709_v39 = vld [vmem:[%s5687_s1 + $0x114] sm:$0xf0] }
  0x48   : > { %750 = vmatpush.bf16.msrb.mxu2 %v2662_v12  ;;  %v3681_v12 = vld [vmem:[%s5687_s1 + $0x34] sm:$0xf0]  ;;  %v2777_v42 = vld [vmem:[%s5687_s1] sm:$0xf]  ;;  %v3675_v44 = vld [vmem:[%s5687_s1 + $0x4] sm:$0xf0] }
  0x49   : > { %763 = vmatpush.bf16.msrb.mxu3 %v2726_v18  ;;  %v3713_v18 = vld [vmem:[%s5687_s1 + $0x134] sm:$0xf0]  ;;  %v2802_v20 = vor.u32 %v3681_v12, %v2801_v11  ;;  %v2841_v45 = vld [vmem:[%s5687_s1 + $0x80] sm:$0xf]  ;;  %v3707_v50 = vld [vmem:[%s5687_s1 + $0x104] sm:$0xf0] }
  0x4a   : > { %725 = vmatpush.bf16.msrb.mxu0 %v2526_v25  ;;  %v2930_v22 = vor.u32 %v3713_v18, %v2929_v17  ;;  %v3695_v25 = vld [vmem:[%s5687_s1 + $0xa4] sm:$0xf0]  ;;  %v3725_v41 = vld [vmem:[%s5687_s1 + $0x194] sm:$0xf0]  ;;  %v2905_v49 = vld [vmem:[%s5687_s1 + $0x100] sm:$0xf] }
  0x4b   : > { %738 = vmatpush.bf16.msrb.mxu1 %v2590_v29  ;;  %v3727_v29 = vld [vmem:[%s5687_s1 + $0x1a4] sm:$0xf0]  ;;  %v171_v51 = vld [vmem:[%s4309_s29] sm:$0x77]  ;;  %v3688_v56 = vld [vmem:[%s5687_s1 + $0x74] sm:$0xf]  ;;  %v2906_v1 = vor.u32 %v3707_v50, %v2905_v49 }
  0x4c   : > { %751 = vmatpush.bf16.msrb.mxu2 %v2654_v30  ;;  %v2794_v30 = vor.u32 %v3679_v24, %v2793_v23  ;;  %v2969_v53 = vld [vmem:[%s5687_s1 + $0x180] sm:$0xf]  ;;  %v3723_v54 = vld [vmem:[%s5687_s1 + $0x184] sm:$0xf0]  ;;  %v2835_v57 = vld [vmem:[%s5687_s1 + $0x78] sm:$0xf0]  ;;  %v772_v63 = vunpack.c.l.b16 %v171_v51  ;;  %v773_v5 = vunpack.c.h.b16 %v171_v51 }
  0x4d   : > { %764 = vmatpush.bf16.msrb.mxu3 %v2718_v33  ;;  %726 = vmatmul.bf16.vlgmr.msrb.gmra.mxu0 %v4365_v13  ;;  %v3729_v13 = vld [vmem:[%s5687_s1 + $0x1b4] sm:$0xf0]  ;;  %v2785_v33 = vld [vmem:[%s5687_s1 + $0x10] sm:$0xf]  ;;  %v172_v55 = vld [vmem:[%s4309_s29 + $0x8] sm:$0x77] }
  0x4e   : > { %1104 = vmatpush.bf16.msra.mxu0 %v2834_v34  ;;  %739 = vmatmul.bf16.vlgmr.msrb.gmra.mxu1 %v4367_v14  ;;  %v2857_v14 = vld [vmem:[%s5687_s1 + $0xa0] sm:$0xf]  ;;  %v3677_v34 = vld [vmem:[%s5687_s1 + $0x14] sm:$0xf0]  ;;  %v3720_v61 = vld [vmem:[%s5687_s1 + $0x174] sm:$0xf]  ;;  %v774_v4 = vunpack.c.l.b16 %v172_v55  ;;  %v4622_v18 = vpack.c.b16 %v772_v63, %v772_v63 }
  0x4f   : > { %1117 = vmatpush.bf16.msra.mxu1 %v2898_v35  ;;  %752 = vmatmul.bf16.vlgmr.msrb.gmra.mxu2 %v4355_v6  ;;  %v3697_v6 = vld [vmem:[%s5687_s1 + $0xb4] sm:$0xf0]  ;;  %v2858_v31 = vor.u32 %v3695_v25, %v2857_v14  ;;  %v2849_v35 = vld [vmem:[%s5687_s1 + $0x90] sm:$0xf]  ;;  %v2786_v43 = vor.u32 %v3677_v34, %v2785_v33  ;;  %v2963_v62 = vld [vmem:[%s5687_s1 + $0x178] sm:$0xf0] }
  0x50   : > { %1130 = vmatpush.bf16.msra.mxu2 %v2962_v36  ;;  %765 = vmatmul.bf16.vlgmr.msrb.gmra.mxu3 %v4357_v7  ;;  %v2866_v21 = vor.u32 %v3697_v6, %v2865_v15  ;;  %v2994_v7 = vor.u32 %v3729_v13, %v2993_v19  ;;  %v2986_v36 = vor.u32 %v3727_v29, %v2985_v28  ;;  %v3736_v2 = vld [vmem:[%s5687_s1 + $0x1f4] sm:$0xf]  ;;  %v3027_v3 = vld [vmem:[%s5687_s1 + $0x1f8] sm:$0xf0]  ;;  %v3686_v15 = vld [vmem:[%s5687_s1 + $0x64] sm:$0xf] }
  0x51   : > { %1143 = vmatpush.bf16.msra.mxu3 %v3026_v40  ;;  %v2977_v40 = vld [vmem:[%s5687_s1 + $0x190] sm:$0xf]  ;;  %v2966_v12 = vor.u32 %v3720_v61, %v2963_v62  ;;  %v3702_v6 = vld [vmem:[%s5687_s1 + $0xe4] sm:$0xf]  ;;  %v3030_v17 = vor.u32 %v3736_v2, %v3027_v3  ;;  %v2891_v19 = vld [vmem:[%s5687_s1 + $0xe8] sm:$0xf0] }
  0x52   : > { %1105 = vmatpush.bf16.msra.mxu0 %v2826_v46  ;;  %v3691_v46 = vld [vmem:[%s5687_s1 + $0x84] sm:$0xf0]  ;;  %v3718_v13 = vld [vmem:[%s5687_s1 + $0x164] sm:$0xf]  ;;  %v3019_v24 = vld [vmem:[%s5687_s1 + $0x1e8] sm:$0xf0]  ;;  %v2894_v25 = vor.u32 %v3702_v6, %v2891_v19 }
  0x53   : > { %1118 = vmatpush.bf16.msra.mxu1 %v2890_v47  ;;  %v2850_v47 = vor.u32 %v3693_v37, %v2849_v35  ;;  %v3734_v23 = vld [vmem:[%s5687_s1 + $0x1e4] sm:$0xf]  ;;  %v3684_v27 = vld [vmem:[%s5687_s1 + $0x54] sm:$0xf]  ;;  %v2819_v28 = vld [vmem:[%s5687_s1 + $0x58] sm:$0xf0] }
  0x54   : > { %1131 = vmatpush.bf16.msra.mxu2 %v2954_v48  ;;  %v2914_v48 = vor.u32 %v3709_v39, %v2913_v38  ;;  %v3700_v29 = vld [vmem:[%s5687_s1 + $0xd4] sm:$0xf]  ;;  %v2947_v33 = vld [vmem:[%s5687_s1 + $0x158] sm:$0xf0]  ;;  %v3682_v39 = vld [vmem:[%s5687_s1 + $0x44] sm:$0xf] }
  0x55   : > { %1144 = vmatpush.bf16.msra.mxu3 %v3018_v52  ;;  %v2978_v52 = vor.u32 %v3725_v41, %v2977_v40  ;;  %v3732_v34 = vld [vmem:[%s5687_s1 + $0x1d4] sm:$0xf]  ;;  %v3011_v35 = vld [vmem:[%s5687_s1 + $0x1d8] sm:$0xf0]  ;;  %v2811_v40 = vld [vmem:[%s5687_s1 + $0x48] sm:$0xf0] }
  0x56   : > { %1106 = vmatpush.bf16.msra.mxu0 %v2818_v58  ;;  %v3704_v58 = vld [vmem:[%s5687_s1 + $0xf4] sm:$0xf]  ;;  %v3698_v41 = vld [vmem:[%s5687_s1 + $0xc4] sm:$0xf]  ;;  %v2859_v3 = vld [vmem:[%s5687_s1 + $0xa8] sm:$0xf0] }
  0x57   : > { %1119 = vmatpush.bf16.msra.mxu1 %v2882_v59  ;;  %v2778_v59 = vor.u32 %v3675_v44, %v2777_v42  ;;  %v3014_v42 = vor.u32 %v3732_v34, %v3011_v35  ;;  %v3714_v44 = vld [vmem:[%s5687_s1 + $0x144] sm:$0xf]  ;;  %v3680_v51 = vld [vmem:[%s5687_s1 + $0x34] sm:$0xf]  ;;  %v2851_v19 = vld [vmem:[%s5687_s1 + $0x98] sm:$0xf0] }
  0x58   : > { %1132 = vmatpush.bf16.msra.mxu2 %v2946_v60  ;;  %v2899_v60 = vld [vmem:[%s5687_s1 + $0xf8] sm:$0xf0]  ;;  %v3678_v63 = vld [vmem:[%s5687_s1 + $0x24] sm:$0xf]  ;;  %v3692_v6 = vld [vmem:[%s5687_s1 + $0x94] sm:$0xf] }
  0x59   : > { %1145 = vmatpush.bf16.msra.mxu3 %v3010_v0  ;;  %v2842_v0 = vor.u32 %v3691_v46, %v2841_v45  ;;  %v2902_v11 = vor.u32 %v3704_v58, %v2899_v60  ;;  %v2939_v45 = vld [vmem:[%s5687_s1 + $0x148] sm:$0xf0]  ;;  %v3730_v46 = vld [vmem:[%s5687_s1 + $0x1c4] sm:$0xf]  ;;  %v3728_v58 = vld [vmem:[%s5687_s1 + $0x1b4] sm:$0xf] }
  0x5a   : > { %1107 = vmatpush.bf16.msra.mxu0 %v2810_v8  ;;  %v2970_v8 = vor.u32 %v3723_v54, %v2969_v53  ;;  %v2942_v50 = vor.u32 %v3714_v44, %v2939_v45  ;;  %v3696_v53 = vld [vmem:[%s5687_s1 + $0xb4] sm:$0xf]  ;;  %v3722_v34 = vld [vmem:[%s5687_s1 + $0x184] sm:$0xf]  ;;  %v2971_v35 = vld [vmem:[%s5687_s1 + $0x188] sm:$0xf0] }
  0x5b   : > { %1120 = vmatpush.bf16.msra.mxu1 %v2874_v9  ;;  %v2838_v9 = vor.u32 %v3688_v56, %v2835_v57  ;;  %v3712_v56 = vld [vmem:[%s5687_s1 + $0x134] sm:$0xf]  ;;  %v2931_v57 = vld [vmem:[%s5687_s1 + $0x138] sm:$0xf0]  ;;  %v3345_v45 = vld [vmem:[%s5687_s1 + $0x5f0] sm:$0xf] }
  0x5c   : > { %1133 = vmatpush.bf16.msra.mxu2 %v2938_v10  ;;  %v775_v10 = vunpack.c.h.b16 %v172_v55  ;;  %v2867_v55 = vld [vmem:[%s5687_s1 + $0xb8] sm:$0xf0]  ;;  %v2934_v62 = vor.u32 %v3712_v56, %v2931_v57  ;;  %v3273_v56 = vld [vmem:[%s5687_s1 + $0x560] sm:$0xf]  ;;  %v3847_v57 = vld [vmem:[%s5687_s1 + $0x564] sm:$0xf0] }
  0x5d   : > { %1146 = vmatpush.bf16.msra.mxu3 %v3002_v16  ;;  %v2827_v16 = vld [vmem:[%s5687_s1 + $0x68] sm:$0xf0]  ;;  %v2870_v61 = vor.u32 %v3696_v53, %v2867_v55  ;;  %v3209_v53 = vld [vmem:[%s5687_s1 + $0x4e0] sm:$0xf]  ;;  %v3831_v55 = vld [vmem:[%s5687_s1 + $0x4e4] sm:$0xf0] }
  0x5e   : > { %1108 = vmatpush.bf16.msra.mxu0 %v2802_v20  ;;  %v2955_v20 = vld [vmem:[%s5687_s1 + $0x168] sm:$0xf0]  ;;  %v4643_v14 = vpack.c.b16 %v775_v10, %v775_v10 }
  0x5f   : > { %1121 = vmatpush.bf16.msra.mxu1 %v2866_v21  ;;  %v4633_v21 = vpack.c.b16 %v774_v4, %v774_v4  ;;  %v2958_v26 = vor.u32 %v3718_v13, %v2955_v20  ;;  %v3710_v4 = vld [vmem:[%s5687_s1 + $0x124] sm:$0xf]  ;;  %v3708_v13 = vld [vmem:[%s5687_s1 + $0x114] sm:$0xf]  ;;  %v2915_v20 = vld [vmem:[%s5687_s1 + $0x118] sm:$0xf0] }
  0x60   : > { %1134 = vmatpush.bf16.msra.mxu2 %v2930_v22  ;;  %v4635_v22 = vpack.c.b16 %v773_v5, %v773_v5  ;;  %v2923_v5 = vld [vmem:[%s5687_s1 + $0x128] sm:$0xf0] }
  0x61   : > { %1147 = vmatpush.bf16.msra.mxu3 %v2994_v7  ;;  %v2830_v7 = vor.u32 %v3686_v15, %v2827_v16  ;;  %v3676_v15 = vld [vmem:[%s5687_s1 + $0x14] sm:$0xf]  ;;  %v2787_v16 = vld [vmem:[%s5687_s1 + $0x18] sm:$0xf0] }
  0x62   : > { %1109 = vmatpush.bf16.msra.mxu0 %v2794_v30  ;;  %v3022_v30 = vor.u32 %v3734_v23, %v3019_v24  ;;  %v3724_v23 = vld [vmem:[%s5687_s1 + $0x194] sm:$0xf]  ;;  %v2979_v24 = vld [vmem:[%s5687_s1 + $0x198] sm:$0xf0] }
  0x63   : > { %1122 = vmatpush.bf16.msra.mxu1 %v2858_v31  ;;  %v2883_v31 = vld [vmem:[%s5687_s1 + $0xd8] sm:$0xf0] }
  0x64   : > { %1135 = vmatpush.bf16.msra.mxu2 %v2922_v32  ;;  %v3716_v32 = vld [vmem:[%s5687_s1 + $0x154] sm:$0xf]  ;;  %v2886_v37 = vor.u32 %v3700_v29, %v2883_v31  ;;  %v3690_v29 = vld [vmem:[%s5687_s1 + $0x84] sm:$0xf] }
  0x65   : > { %1148 = vmatpush.bf16.msra.mxu3 %v2986_v36  ;;  %v2822_v36 = vor.u32 %v3684_v27, %v2819_v28  ;;  %v2950_v38 = vor.u32 %v3716_v32, %v2947_v33  ;;  %v2854_v27 = vor.u32 %v3692_v6, %v2851_v19  ;;  %v2918_v28 = vor.u32 %v3708_v13, %v2915_v20  ;;  %v3706_v31 = vld [vmem:[%s5687_s1 + $0x104] sm:$0xf]  ;;  %v2907_v33 = vld [vmem:[%s5687_s1 + $0x108] sm:$0xf0]  ;;  %v3843_v6 = vld [vmem:[%s5687_s1 + $0x544] sm:$0xf0] }
  0x66   : > { %1110 = vmatpush.bf16.msra.mxu0 %v2786_v43  ;;  %v2875_v43 = vld [vmem:[%s5687_s1 + $0xc8] sm:$0xf0]  ;;  %v2982_v32 = vor.u32 %v3724_v23, %v2979_v24  ;;  %v2910_v44 = vor.u32 %v3706_v31, %v2907_v33  ;;  %v3859_v19 = vld [vmem:[%s5687_s1 + $0x5c4] sm:$0xf0]  ;;  %v3121_v13 = vld [vmem:[%s5687_s1 + $0x430] sm:$0xf] }
  0x67   : > { %1123 = vmatpush.bf16.msra.mxu1 %v2850_v47  ;;  %v3003_v47 = vld [vmem:[%s5687_s1 + $0x1c8] sm:$0xf0]  ;;  %v2878_v49 = vor.u32 %v3698_v41, %v2875_v43  ;;  %v3281_v41 = vld [vmem:[%s5687_s1 + $0x570] sm:$0xf]  ;;  %v3809_v20 = vld [vmem:[%s5687_s1 + $0x434] sm:$0xf0] }
  0x68   : > { %1136 = vmatpush.bf16.msra.mxu2 %v2914_v48  ;;  %v2814_v48 = vor.u32 %v3682_v39, %v2811_v40  ;;  %v3006_v54 = vor.u32 %v3730_v46, %v3003_v47  ;;  %v3833_v40 = vld [vmem:[%s5687_s1 + $0x4f4] sm:$0xf0]  ;;  %v2974_v47 = vor.u32 %v3722_v34, %v2971_v35  ;;  %v3185_v24 = vld [vmem:[%s5687_s1 + $0x4b0] sm:$0xf]  ;;  %v3122_v34 = vor.u32 %v3809_v20, %v3121_v13  ;;  %v3851_v13 = vld [vmem:[%s5687_s1 + $0x584] sm:$0xf0] }
  0x69   : > { %1149 = vmatpush.bf16.msra.mxu3 %v2978_v52  ;;  %v2803_v52 = vld [vmem:[%s5687_s1 + $0x38] sm:$0xf0]  ;;  %v3865_v46 = vld [vmem:[%s5687_s1 + $0x5f4] sm:$0xf0]  ;;  %v4917_v33 = vld [vmem:[%s4309_s29 + $0x10] sm:$0x11] }
  0x6a   : > { %1111 = vmatpush.bf16.msra.mxu0 %v2778_v59  ;;  %v2995_v59 = vld [vmem:[%s5687_s1 + $0x1b8] sm:$0xf0]  ;;  %v2806_v60 = vor.u32 %v3680_v51, %v2803_v52  ;;  %v3145_v51 = vld [vmem:[%s5687_s1 + $0x460] sm:$0xf]  ;;  %v3815_v52 = vld [vmem:[%s5687_s1 + $0x464] sm:$0xf0] }
  0x6b   : > { %1124 = vmatpush.bf16.msra.mxu1 %v2842_v0  ;;  %v2795_v0 = vld [vmem:[%s5687_s1 + $0x28] sm:$0xf0]  ;;  %v2998_v2 = vor.u32 %v3728_v58, %v2995_v59  ;;  %v3337_v58 = vld [vmem:[%s5687_s1 + $0x5e0] sm:$0xf]  ;;  %v3863_v59 = vld [vmem:[%s5687_s1 + $0x5e4] sm:$0xf0] }
  0x6c   : > { %1137 = vmatpush.bf16.msra.mxu2 %v2906_v1  ;;  %v3694_v1 = vld [vmem:[%s5687_s1 + $0xa4] sm:$0xf]  ;;  %v2798_v10 = vor.u32 %v3678_v63, %v2795_v0  ;;  %v3137_v63 = vld [vmem:[%s5687_s1 + $0x450] sm:$0xf]  ;;  %v3813_v0 = vld [vmem:[%s5687_s1 + $0x454] sm:$0xf0] }
  0x6d   : > { %1150 = vmatpush.bf16.msra.mxu3 %v2970_v8  ;;  %1112 = vmatmul.bf16.vlgmr.msra.gmra.mxu0 %v4622_v18  ;;  %v3726_v8 = vld [vmem:[%s5687_s1 + $0x1a4] sm:$0xf]  ;;  %v3313_v35 = vld [vmem:[%s5687_s1 + $0x5b0] sm:$0xf] }
  0x6e   : > { %1156 = vmatpush.bf16.msrb.mxu0 %v2838_v9  ;;  %1125 = vmatmul.bf16.vlgmr.msra.gmra.mxu1 %v4635_v22  ;;  %v2987_v9 = vld [vmem:[%s5687_s1 + $0x1a8] sm:$0xf0] }
  0x6f   : > { %1169 = vmatpush.bf16.msrb.mxu1 %v2902_v11  ;;  %1138 = vmatmul.bf16.vlgmr.msra.gmra.mxu2 %v4633_v21  ;;  %v2862_v11 = vor.u32 %v3694_v1, %v2859_v3  ;;  %v3201_v1 = vld [vmem:[%s5687_s1 + $0x4d0] sm:$0xf]  ;;  %v3829_v3 = vld [vmem:[%s5687_s1 + $0x4d4] sm:$0xf0] }
  0x70   : > { %1182 = vmatpush.bf16.msrb.mxu2 %v2966_v12  ;;  %1151 = vmatmul.bf16.vlgmr.msra.gmra.mxu3 %v4643_v14  ;;  %v2926_v12 = vor.u32 %v3710_v4, %v2923_v5  ;;  %v3265_v4 = vld [vmem:[%s5687_s1 + $0x550] sm:$0xf]  ;;  %v3845_v5 = vld [vmem:[%s5687_s1 + $0x554] sm:$0xf0] }
  0x71   : > { %1195 = vmatpush.bf16.msrb.mxu3 %v3030_v17  ;;  %v2990_v17 = vor.u32 %v3726_v8, %v2987_v9  ;;  %v3861_v8 = vld [vmem:[%s5687_s1 + $0x5d4] sm:$0xf0]  ;;  %v3138_v9 = vor.u32 %v3813_v0, %v3137_v63  ;;  %v3233_v0 = vld [vmem:[%s5687_s1 + $0x510] sm:$0xf] }
  0x72   : > { %1157 = vmatpush.bf16.msrb.mxu0 %v2830_v7  ;;  %v2790_v7 = vor.u32 %v3676_v15, %v2787_v16  ;;  %v3257_v16 = vld [vmem:[%s5687_s1 + $0x540] sm:$0xf]  ;;  %v3821_v63 = vld [vmem:[%s5687_s1 + $0x494] sm:$0xf0] }
  0x73   : > { %1170 = vmatpush.bf16.msrb.mxu1 %v2894_v25  ;;  %v3674_v25 = vld [vmem:[%s5687_s1 + $0x4] sm:$0xf] }
  0x74   : > { %1183 = vmatpush.bf16.msrb.mxu2 %v2958_v26  ;;  %v2779_v26 = vld [vmem:[%s5687_s1 + $0x8] sm:$0xf0] }
  0x75   : > { %1196 = vmatpush.bf16.msrb.mxu3 %v3022_v30  ;;  %v2843_v30 = vld [vmem:[%s5687_s1 + $0x88] sm:$0xf0]  ;;  %v2782_v39 = vor.u32 %v3674_v25, %v2779_v26  ;;  %v3249_v25 = vld [vmem:[%s5687_s1 + $0x530] sm:$0xf] }
  0x76   : > { %1158 = vmatpush.bf16.msrb.mxu0 %v2822_v36  ;;  %v3153_v36 = vld [vmem:[%s5687_s1 + $0x470] sm:$0xf]  ;;  %v2846_v43 = vor.u32 %v3690_v29, %v2843_v30  ;;  %v1209_v29 = vld [vmem:[%s4309_s29 + $0x8] sm:$0xee]  ;;  %v4913_v30 = vld [vmem:[%s4309_s29 + $0x18] sm:$0x11] }
  0x77   : > { %1171 = vmatpush.bf16.msrb.mxu1 %v2886_v37  ;;  %v3817_v37 = vld [vmem:[%s5687_s1 + $0x474] sm:$0xf0] }
  0x78   : > { %1184 = vmatpush.bf16.msrb.mxu2 %v2950_v38  ;;  %v3217_v38 = vld [vmem:[%s5687_s1 + $0x4f0] sm:$0xf] }
  0x79   : > { %1197 = vmatpush.bf16.msrb.mxu3 %v3014_v42  ;;  %v3849_v42 = vld [vmem:[%s5687_s1 + $0x574] sm:$0xf0] }
  0x7a   : > { %1159 = vmatpush.bf16.msrb.mxu0 %v2814_v48  ;;  %v3154_v48 = vor.u32 %v3817_v37, %v3153_v36  ;;  %v3857_v36 = vld [vmem:[%s5687_s1 + $0x5b4] sm:$0xf0] }
  0x7b   : > { %1172 = vmatpush.bf16.msrb.mxu1 %v2878_v49  ;;  %v3218_v49 = vor.u32 %v3833_v40, %v3217_v38  ;;  %v1283_v40 = vunpack.c.l.b16 %v1209_v29 }
  0x7c   : > { %1185 = vmatpush.bf16.msrb.mxu2 %v2942_v50  ;;  %v3282_v50 = vor.u32 %v3849_v42, %v3281_v41  ;;  %v1287_v41 = vunpack.c.l.b16 %v4913_v30  ;;  %v3807_v42 = vld [vmem:[%s5687_s1 + $0x424] sm:$0xf0] }
  0x7d   : > { %1198 = vmatpush.bf16.msrb.mxu3 %v3006_v54  ;;  %v3346_v54 = vor.u32 %v3865_v46, %v3345_v45  ;;  %v1284_v45 = vunpack.c.h.b16 %v1209_v29  ;;  %v1288_v46 = vunpack.c.h.b16 %v4913_v30  ;;  %v3467_v30 = vld [vmem:[%s5687_s1 + $0x668] sm:$0xf0] }
  0x7e   : > { %1160 = vmatpush.bf16.msrb.mxu0 %v2806_v60  ;;  %v3146_v60 = vor.u32 %v3815_v52, %v3145_v51  ;;  %v3839_v51 = vld [vmem:[%s5687_s1 + $0x524] sm:$0xf0] }
  0x7f   : > { %1173 = vmatpush.bf16.msrb.mxu1 %v2870_v61  ;;  %v3210_v61 = vor.u32 %v3831_v55, %v3209_v53  ;;  %v1286_v53 = vunpack.c.h.b16 %v4917_v33  ;;  %v3855_v55 = vld [vmem:[%s5687_s1 + $0x5a4] sm:$0xf0] }
  0x80   : > { %1186 = vmatpush.bf16.msrb.mxu2 %v2934_v62  ;;  %v3274_v62 = vor.u32 %v3847_v57, %v3273_v56 }
  0x81   : > { %1199 = vmatpush.bf16.msrb.mxu3 %v2998_v2  ;;  %v3338_v2 = vor.u32 %v3863_v59, %v3337_v58  ;;  %v3105_v58 = vld [vmem:[%s5687_s1 + $0x410] sm:$0xf]  ;;  %v3805_v59 = vld [vmem:[%s5687_s1 + $0x414] sm:$0xf0] }
  0x82   : > { %1161 = vmatpush.bf16.msrb.mxu0 %v2798_v10  ;;  %v3129_v10 = vld [vmem:[%s5687_s1 + $0x440] sm:$0xf] }
  0x83   : > { %1174 = vmatpush.bf16.msrb.mxu1 %v2862_v11  ;;  %v3811_v11 = vld [vmem:[%s5687_s1 + $0x444] sm:$0xf0] }
  0x84   : > { %1187 = vmatpush.bf16.msrb.mxu2 %v2926_v12  ;;  %v3193_v12 = vld [vmem:[%s5687_s1 + $0x4c0] sm:$0xf]  ;;  %v3130_v23 = vor.u32 %v3811_v11, %v3129_v10  ;;  %v3106_v10 = vor.u32 %v3805_v59, %v3105_v58  ;;  %v3819_v11 = vld [vmem:[%s5687_s1 + $0x484] sm:$0xf0]  ;;  %v3147_v58 = vld [vmem:[%s5687_s1 + $0x468] sm:$0xf0] }
  0x85   : > { %1200 = vmatpush.bf16.msrb.mxu3 %v2990_v17  ;;  %v3321_v17 = vld [vmem:[%s5687_s1 + $0x5c0] sm:$0xf]  ;;  %v3830_v59 = vld [vmem:[%s5687_s1 + $0x4e4] sm:$0xf] }
  0x86   : > { %1162 = vmatpush.bf16.msrb.mxu0 %v2790_v7  ;;  %v3825_v7 = vld [vmem:[%s5687_s1 + $0x4b4] sm:$0xf0]  ;;  %v3322_v31 = vor.u32 %v3859_v19, %v3321_v17  ;;  %v3289_v19 = vld [vmem:[%s5687_s1 + $0x580] sm:$0xf] }
  0x87   : > { %1175 = vmatpush.bf16.msrb.mxu1 %v2854_v27  ;;  %v3258_v27 = vor.u32 %v3843_v6, %v3257_v16  ;;  %v3186_v37 = vor.u32 %v3825_v7, %v3185_v24  ;;  %v3835_v16 = vld [vmem:[%s5687_s1 + $0x504] sm:$0xf0] }
  0x88   : > { %1188 = vmatpush.bf16.msrb.mxu2 %v2918_v28  ;;  %v3841_v28 = vld [vmem:[%s5687_s1 + $0x534] sm:$0xf0] }
  0x89   : > { %1201 = vmatpush.bf16.msrb.mxu3 %v2982_v32  ;;  %v1208_v32 = vld [vmem:[%s4309_s29] sm:$0xee]  ;;  %v3250_v38 = vor.u32 %v3841_v28, %v3249_v25 }
  0x8a   : > { %1163 = vmatpush.bf16.msrb.mxu0 %v2782_v39  ;;  %v3113_v39 = vld [vmem:[%s5687_s1 + $0x420] sm:$0xf]  ;;  %v1282_v52 = vunpack.c.h.b16 %v1208_v32 }
  0x8b   : > { %1176 = vmatpush.bf16.msrb.mxu1 %v2846_v43  ;;  %v3177_v43 = vld [vmem:[%s5687_s1 + $0x4a0] sm:$0xf]  ;;  %v3114_v56 = vor.u32 %v3807_v42, %v3113_v39  ;;  %v3864_v39 = vld [vmem:[%s5687_s1 + $0x5f4] sm:$0xf] }
  0x8c   : > { %1189 = vmatpush.bf16.msrb.mxu2 %v2910_v44  ;;  %v3823_v44 = vld [vmem:[%s5687_s1 + $0x4a4] sm:$0xf0] }
  0x8d   : > { %1202 = vmatpush.bf16.msrb.mxu3 %v2974_v47  ;;  %1164 = vmatmul.bf16.vlgmr.msrb.gmra.mxu0 %v4622_v18  ;;  %v3329_v18 = vld [vmem:[%s5687_s1 + $0x5d0] sm:$0xf]  ;;  %v1281_v47 = vunpack.c.l.b16 %v1208_v32  ;;  %v3178_v57 = vor.u32 %v3823_v44, %v3177_v43  ;;  %v3832_v32 = vld [vmem:[%s5687_s1 + $0x4f4] sm:$0xf]  ;;  %v3347_v43 = vld [vmem:[%s5687_s1 + $0x5f8] sm:$0xf0] }
  0x8e   : > { %1649 = vmatpush.bf16.msra.mxu0 %v3154_v48  ;;  %1177 = vmatmul.bf16.vlgmr.msrb.gmra.mxu1 %v4635_v22  ;;  %v3266_v22 = vor.u32 %v3845_v5, %v3265_v4  ;;  %v3330_v15 = vor.u32 %v3861_v8, %v3329_v18  ;;  %v1285_v48 = vunpack.c.l.b16 %v4917_v33  ;;  %v3297_v5 = vld [vmem:[%s5687_s1 + $0x590] sm:$0xf]  ;;  %v3853_v18 = vld [vmem:[%s5687_s1 + $0x594] sm:$0xf0]  ;;  %v3097_v8 = vld [vmem:[%s5687_s1 + $0x400] sm:$0xf] }
  0x8f   : > { %1662 = vmatpush.bf16.msra.mxu1 %v3218_v49  ;;  %1190 = vmatmul.bf16.vlgmr.msrb.gmra.mxu2 %v4633_v21  ;;  %v3202_v21 = vor.u32 %v3829_v3, %v3201_v1  ;;  %v3314_v49 = vor.u32 %v3857_v36, %v3313_v35  ;;  %v3837_v1 = vld [vmem:[%s5687_s1 + $0x514] sm:$0xf0]  ;;  %v3298_v25 = vor.u32 %v3853_v18, %v3297_v5  ;;  %v3848_v35 = vld [vmem:[%s5687_s1 + $0x574] sm:$0xf] }
  0x90   : > { %1675 = vmatpush.bf16.msra.mxu2 %v3282_v50  ;;  %1203 = vmatmul.bf16.vlgmr.msrb.gmra.mxu3 %v4643_v14  ;;  %v3827_v14 = vld [vmem:[%s5687_s1 + $0x4c4] sm:$0xf0]  ;;  %v3241_v50 = vld [vmem:[%s5687_s1 + $0x520] sm:$0xf]  ;;  %v1289_v3 = vpack.c.b16 %v1285_v48, %v1281_v47 }
  0x91   : > { %1688 = vmatpush.bf16.msra.mxu3 %v3346_v54  ;;  %v3194_v26 = vor.u32 %v3827_v14, %v3193_v12  ;;  %v3305_v54 = vld [vmem:[%s5687_s1 + $0x5a0] sm:$0xf]  ;;  %v3234_v14 = vor.u32 %v3837_v1, %v3233_v0  ;;  %v3275_v0 = vld [vmem:[%s5687_s1 + $0x568] sm:$0xf0] }
  0x92   : > { %1650 = vmatpush.bf16.msra.mxu0 %v3146_v60  ;;  %v3169_v60 = vld [vmem:[%s5687_s1 + $0x490] sm:$0xf]  ;;  %v3306_v4 = vor.u32 %v3855_v55, %v3305_v54  ;;  %v1294_v24 = vshrl.u32 %v1289_v3, 16  ;;  %v1297_v7 = vshll.u32 %v1289_v3, 16  ;;  %v3339_v3 = vld [vmem:[%s5687_s1 + $0x5e8] sm:$0xf0] }
  0x93   : > { %1663 = vmatpush.bf16.msra.mxu1 %v3210_v61  ;;  %v1291_v61 = vpack.c.b16 %v1287_v41, %v1283_v40  ;;  %v3170_v12 = vor.u32 %v3821_v63, %v3169_v60  ;;  %v3350_v60 = vor.u32 %v3864_v39, %v3347_v43  ;;  %v3846_v63 = vld [vmem:[%s5687_s1 + $0x564] sm:$0xf]  ;;  %v3187_v39 = vld [vmem:[%s5687_s1 + $0x4b8] sm:$0xf0]  ;;  %v3856_v43 = vld [vmem:[%s5687_s1 + $0x5b4] sm:$0xf] }
  0x94   : > { %1676 = vmatpush.bf16.msra.mxu2 %v3274_v62  ;;  %v3242_v62 = vor.u32 %v3839_v51, %v3241_v50  ;;  %v1296_v47 = vrot.slane %v1294_v24, 1  ;;  %v3290_v50 = vor.u32 %v3851_v13, %v3289_v19  ;;  %v3826_v24 = vld [vmem:[%s5687_s1 + $0x4c4] sm:$0xf] }
  0x95   : > { %1689 = vmatpush.bf16.msra.mxu3 %v3338_v2  ;;  %v1292_v2 = vpack.c.b16 %v1288_v46, %v1284_v45  ;;  %v1310_v6 = vshrl.u32 %v1291_v61, 16  ;;  %v1313_v17 = vshll.u32 %v1291_v61, 16 }
  0x96   : > { %1651 = vmatpush.bf16.msra.mxu0 %v3138_v9  ;;  %v1290_v9 = vpack.c.b16 %v1286_v53, %v1282_v52 }
  0x97   : > { %1664 = vmatpush.bf16.msra.mxu1 %v3202_v21  ;;  %v3803_v21 = vld [vmem:[%s5687_s1 + $0x404] sm:$0xf0]  ;;  %v1318_v20 = vshrl.u32 %v1292_v2, 16  ;;  %v1312_v40 = vrot.slane %v1310_v6, 1  ;;  %v1315_v42 = vrot.slane %v1313_v17, 2 }
  0x98   : > { %1677 = vmatpush.bf16.msra.mxu2 %v3266_v22  ;;  %v3161_v22 = vld [vmem:[%s5687_s1 + $0x480] sm:$0xf]  ;;  %v1302_v28 = vshrl.u32 %v1290_v9, 16  ;;  %v1305_v29 = vshll.u32 %v1290_v9, 16  ;;  %v3278_v9 = vor.u32 %v3846_v63, %v3275_v0  ;;  %v3331_v6 = vld [vmem:[%s5687_s1 + $0x5d8] sm:$0xf0] }
  0x99   : > { %1690 = vmatpush.bf16.msra.mxu3 %v3330_v15  ;;  %v3225_v15 = vld [vmem:[%s5687_s1 + $0x500] sm:$0xf]  ;;  %v3162_v36 = vor.u32 %v3819_v11, %v3161_v22  ;;  %v1320_v44 = vrot.slane %v1318_v20, 1  ;;  %v5042_v61 = vor.u32 %v1315_v42, %v1312_v40  ;;  %v3828_v22 = vld [vmem:[%s5687_s1 + $0x4d4] sm:$0xf] }
  0x9a   : > { %1652 = vmatpush.bf16.msra.mxu0 %v3130_v23  ;;  %v1321_v23 = vshll.u32 %v1292_v2, 16  ;;  %v1304_v52 = vrot.slane %v1302_v28, 1  ;;  %v1307_v54 = vrot.slane %v1305_v29, 2  ;;  %v3862_v2 = vld [vmem:[%s5687_s1 + $0x5e4] sm:$0xf] }
  0x9b   : > { %1665 = vmatpush.bf16.msra.mxu1 %v3194_v26  ;;  %v3816_v26 = vld [vmem:[%s5687_s1 + $0x474] sm:$0xf]  ;;  %v3342_v11 = vor.u32 %v3862_v2, %v3339_v3  ;;  %v3810_v20 = vld [vmem:[%s5687_s1 + $0x444] sm:$0xf]  ;;  %v3323_v29 = vld [vmem:[%s5687_s1 + $0x5c8] sm:$0xf0] }
  0x9c   : > { %1678 = vmatpush.bf16.msra.mxu2 %v3258_v27  ;;  %v3155_v27 = vld [vmem:[%s5687_s1 + $0x478] sm:$0xf0]  ;;  %v1323_v45 = vrot.slane %v1321_v23, 2  ;;  %v5063_v18 = vor.u32 %v1307_v54, %v1304_v52  ;;  %v3131_v23 = vld [vmem:[%s5687_s1 + $0x448] sm:$0xf0] }
  0x9d   : > { %1691 = vmatpush.bf16.msra.mxu3 %v3322_v31  ;;  %v3098_v31 = vor.u32 %v3803_v21, %v3097_v8  ;;  %v3158_v51 = vor.u32 %v3816_v26, %v3155_v27  ;;  %v3139_v21 = vld [vmem:[%s5687_s1 + $0x458] sm:$0xf0]  ;;  %v3842_v26 = vld [vmem:[%s5687_s1 + $0x544] sm:$0xf]  ;;  %v3259_v27 = vld [vmem:[%s5687_s1 + $0x548] sm:$0xf0] }
  0x9e   : > { %1653 = vmatpush.bf16.msra.mxu0 %v3122_v34  ;;  %v3219_v34 = vld [vmem:[%s5687_s1 + $0x4f8] sm:$0xf0]  ;;  %v5053_v1 = vor.u32 %v1323_v45, %v1320_v44  ;;  %v3858_v28 = vld [vmem:[%s5687_s1 + $0x5c4] sm:$0xf]  ;;  %v3840_v40 = vld [vmem:[%s5687_s1 + $0x534] sm:$0xf] }
  0x9f   : > { %1666 = vmatpush.bf16.msra.mxu1 %v3186_v37  ;;  %v3226_v37 = vor.u32 %v3835_v16, %v3225_v15  ;;  %v3222_v55 = vor.u32 %v3832_v32, %v3219_v34  ;;  %v3267_v15 = vld [vmem:[%s5687_s1 + $0x558] sm:$0xf0]  ;;  %v3860_v16 = vld [vmem:[%s5687_s1 + $0x5d4] sm:$0xf]  ;;  %v3262_v34 = vor.u32 %v3842_v26, %v3259_v27  ;;  %v3822_v52 = vld [vmem:[%s5687_s1 + $0x4a4] sm:$0xf] }
  0xa0   : > { %1679 = vmatpush.bf16.msra.mxu2 %v3250_v38  ;;  %v3283_v38 = vld [vmem:[%s5687_s1 + $0x578] sm:$0xf0]  ;;  %v3804_v0 = vld [vmem:[%s5687_s1 + $0x414] sm:$0xf]  ;;  %v3537_v26 = vld [vmem:[%s5687_s1 + $0x6f0] sm:$0xf] }
  0xa1   : > { %1692 = vmatpush.bf16.msra.mxu3 %v3314_v49  ;;  %v1299_v49 = vrot.slane %v1297_v7, 2  ;;  %v3334_v7 = vor.u32 %v3860_v16, %v3331_v6  ;;  %v3251_v42 = vld [vmem:[%s5687_s1 + $0x538] sm:$0xf0]  ;;  %v3820_v3 = vld [vmem:[%s5687_s1 + $0x494] sm:$0xf] }
  0xa2   : > { %1654 = vmatpush.bf16.msra.mxu0 %v3114_v56  ;;  %v3286_v56 = vor.u32 %v3848_v35, %v3283_v38  ;;  %v3808_v35 = vld [vmem:[%s5687_s1 + $0x434] sm:$0xf]  ;;  %v3326_v38 = vor.u32 %v3858_v28, %v3323_v29  ;;  %v3315_v44 = vld [vmem:[%s5687_s1 + $0x5b8] sm:$0xf0]  ;;  %v3818_v6 = vld [vmem:[%s5687_s1 + $0x484] sm:$0xf] }
  0xa3   : > { %1667 = vmatpush.bf16.msra.mxu1 %v3178_v57  ;;  %v3814_v57 = vld [vmem:[%s5687_s1 + $0x464] sm:$0xf]  ;;  %v3318_v54 = vor.u32 %v3856_v43, %v3315_v44  ;;  %v3107_v2 = vld [vmem:[%s5687_s1 + $0x418] sm:$0xf0]  ;;  %v3897_v28 = vld [vmem:[%s5687_s1 + $0x6f4] sm:$0xf0] }
  0xa4   : > { %1680 = vmatpush.bf16.msra.mxu2 %v3242_v62  ;;  %v3211_v62 = vld [vmem:[%s5687_s1 + $0x4e8] sm:$0xf0]  ;;  %v3150_v5 = vor.u32 %v3814_v57, %v3147_v58  ;;  %v3854_v58 = vld [vmem:[%s5687_s1 + $0x5a4] sm:$0xf]  ;;  %v3601_v29 = vld [vmem:[%s5687_s1 + $0x770] sm:$0xf] }
  0xa5   : > { %1693 = vmatpush.bf16.msra.mxu3 %v3306_v4  ;;  %v5061_v4 = vor.u32 %v1299_v49, %v1296_v47  ;;  %v3214_v8 = vor.u32 %v3830_v59, %v3211_v62  ;;  %v3254_v49 = vor.u32 %v3840_v40, %v3251_v42  ;;  %v3243_v57 = vld [vmem:[%s5687_s1 + $0x528] sm:$0xf0]  ;;  %v3465_v42 = vld [vmem:[%s5687_s1 + $0x660] sm:$0xf]  ;;  %v3879_v43 = vld [vmem:[%s5687_s1 + $0x664] sm:$0xf0] }
  0xa6   : > { %1655 = vmatpush.bf16.msra.mxu0 %v3106_v10  ;;  %v3812_v10 = vld [vmem:[%s5687_s1 + $0x454] sm:$0xf]  ;;  %v3307_v59 = vld [vmem:[%s5687_s1 + $0x5a8] sm:$0xf0]  ;;  %v3529_v44 = vld [vmem:[%s5687_s1 + $0x6e0] sm:$0xf] }
  0xa7   : > { %1668 = vmatpush.bf16.msra.mxu1 %v3170_v12  ;;  %v3203_v12 = vld [vmem:[%s5687_s1 + $0x4d8] sm:$0xf0]  ;;  %v3142_v17 = vor.u32 %v3812_v10, %v3139_v21  ;;  %v3852_v21 = vld [vmem:[%s5687_s1 + $0x594] sm:$0xf] }
  0xa8   : > { %1681 = vmatpush.bf16.msra.mxu2 %v3234_v14  ;;  %v3844_v14 = vld [vmem:[%s5687_s1 + $0x554] sm:$0xf]  ;;  %v3206_v19 = vor.u32 %v3828_v22, %v3203_v12  ;;  %v3235_v10 = vld [vmem:[%s5687_s1 + $0x518] sm:$0xf0]  ;;  %v3802_v12 = vld [vmem:[%s5687_s1 + $0x404] sm:$0xf] }
  0xa9   : > { %1694 = vmatpush.bf16.msra.mxu3 %v3298_v25  ;;  %v3270_v13 = vor.u32 %v3844_v14, %v3267_v15  ;;  %v3195_v25 = vld [vmem:[%s5687_s1 + $0x4c8] sm:$0xf0]  ;;  %v3299_v22 = vld [vmem:[%s5687_s1 + $0x598] sm:$0xf0] }
  0xaa   : > { %1656 = vmatpush.bf16.msra.mxu0 %v3098_v31  ;;  %v3134_v31 = vor.u32 %v3810_v20, %v3131_v23  ;;  %v3198_v32 = vor.u32 %v3826_v24, %v3195_v25  ;;  %v3099_v14 = vld [vmem:[%s5687_s1 + $0x408] sm:$0xf0]  ;;  %v3850_v23 = vld [vmem:[%s5687_s1 + $0x584] sm:$0xf]  ;;  %v3881_v25 = vld [vmem:[%s5687_s1 + $0x674] sm:$0xf0] }
  0xab   : > { %1669 = vmatpush.bf16.msra.mxu1 %v3162_v36  ;;  %v3123_v36 = vld [vmem:[%s5687_s1 + $0x438] sm:$0xf0]  ;;  %v3227_v20 = vld [vmem:[%s5687_s1 + $0x508] sm:$0xf0]  ;;  %v3102_v27 = vor.u32 %v3802_v12, %v3099_v14  ;;  %v3875_v12 = vld [vmem:[%s5687_s1 + $0x644] sm:$0xf0] }
  0xac   : > { %1682 = vmatpush.bf16.msra.mxu2 %v3226_v37  ;;  %v3824_v37 = vld [vmem:[%s5687_s1 + $0x4b4] sm:$0xf]  ;;  %v3126_v45 = vor.u32 %v3808_v35, %v3123_v36  ;;  %v3291_v24 = vld [vmem:[%s5687_s1 + $0x588] sm:$0xf0]  ;;  %v3665_v35 = vld [vmem:[%s5687_s1 + $0x7f0] sm:$0xf] }
  0xad   : > { %1695 = vmatpush.bf16.msra.mxu3 %v3290_v50  ;;  %1657 = vmatmul.bf16.vlgmr.msra.gmra.mxu0 %v5061_v4  ;;  %v3190_v47 = vor.u32 %v3824_v37, %v3187_v39  ;;  %v3806_v50 = vld [vmem:[%s5687_s1 + $0x424] sm:$0xf]  ;;  %v3929_v36 = vld [vmem:[%s5687_s1 + $0x7f4] sm:$0xf0]  ;;  %v3294_v37 = vor.u32 %v3850_v23, %v3291_v24  ;;  %v3538_v39 = vor.u32 %v3897_v28, %v3537_v26  ;;  %v3513_v14 = vld [vmem:[%s5687_s1 + $0x6c0] sm:$0xf] }
  0xae   : > { %1701 = vmatpush.bf16.msrb.mxu0 %v3158_v51  ;;  %1670 = vmatmul.bf16.vlgmr.msra.gmra.mxu1 %v5063_v18  ;;  %v3115_v51 = vld [vmem:[%s5687_s1 + $0x428] sm:$0xf0]  ;;  %v3441_v26 = vld [vmem:[%s5687_s1 + $0x630] sm:$0xf] }
  0xaf   : > { %1714 = vmatpush.bf16.msrb.mxu1 %v3222_v55  ;;  %1683 = vmatmul.bf16.vlgmr.msra.gmra.mxu2 %v5042_v61  ;;  %v3179_v55 = vld [vmem:[%s5687_s1 + $0x4a8] sm:$0xf0]  ;;  %v3505_v28 = vld [vmem:[%s5687_s1 + $0x6b0] sm:$0xf] }
  0xb0   : > { %1727 = vmatpush.bf16.msrb.mxu2 %v3286_v56  ;;  %1696 = vmatmul.bf16.vlgmr.msra.gmra.mxu3 %v5053_v1  ;;  %v3838_v56 = vld [vmem:[%s5687_s1 + $0x524] sm:$0xf]  ;;  %v3182_v62 = vor.u32 %v3822_v52, %v3179_v55  ;;  %v3657_v52 = vld [vmem:[%s5687_s1 + $0x7e0] sm:$0xf] }
  0xb1   : > { %1740 = vmatpush.bf16.msrb.mxu3 %v3350_v60  ;;  %v3118_v60 = vor.u32 %v3806_v50, %v3115_v51  ;;  %v3246_v63 = vor.u32 %v3838_v56, %v3243_v57  ;;  %v3911_v50 = vld [vmem:[%s5687_s1 + $0x764] sm:$0xf0]  ;;  %v3466_v56 = vor.u32 %v3879_v43, %v3465_v42  ;;  %v3433_v43 = vld [vmem:[%s5687_s1 + $0x620] sm:$0xf] }
  0xb2   : > { %1702 = vmatpush.bf16.msrb.mxu0 %v3150_v5  ;;  %v3310_v5 = vor.u32 %v3854_v58, %v3307_v59 }
  0xb3   : > { %1715 = vmatpush.bf16.msrb.mxu1 %v3214_v8  ;;  %v3171_v8 = vld [vmem:[%s5687_s1 + $0x498] sm:$0xf0] }
  0xb4   : > { %1728 = vmatpush.bf16.msrb.mxu2 %v3278_v9  ;;  %v3836_v9 = vld [vmem:[%s5687_s1 + $0x514] sm:$0xf]  ;;  %v3174_v15 = vor.u32 %v3820_v3, %v3171_v8  ;;  %v3585_v3 = vld [vmem:[%s5687_s1 + $0x750] sm:$0xf] }
  0xb5   : > { %1741 = vmatpush.bf16.msrb.mxu3 %v3342_v11  ;;  %v3110_v11 = vor.u32 %v3804_v0, %v3107_v2  ;;  %v3238_v16 = vor.u32 %v3836_v9, %v3235_v10  ;;  %v3893_v2 = vld [vmem:[%s5687_s1 + $0x6d4] sm:$0xf0] }
  0xb6   : > { %1703 = vmatpush.bf16.msrb.mxu0 %v3142_v17  ;;  %v3163_v17 = vld [vmem:[%s5687_s1 + $0x488] sm:$0xf0]  ;;  %v3925_v9 = vld [vmem:[%s5687_s1 + $0x7d4] sm:$0xf0] }
  0xb7   : > { %1716 = vmatpush.bf16.msrb.mxu1 %v3206_v19  ;;  %v3834_v19 = vld [vmem:[%s5687_s1 + $0x504] sm:$0xf] }
  0xb8   : > { %1729 = vmatpush.bf16.msrb.mxu2 %v3270_v13  ;;  %v3302_v13 = vor.u32 %v3852_v21, %v3299_v22 }
  0xb9   : > { %1742 = vmatpush.bf16.msrb.mxu3 %v3334_v7  ;;  %v3473_v7 = vld [vmem:[%s5687_s1 + $0x670] sm:$0xf]  ;;  %v675_v51 = vpop.f32.mrf.mxu0 }
  0xba   : > { %1704 = vmatpush.bf16.msrb.mxu0 %v3134_v31  ;;  %v3913_v31 = vld [vmem:[%s5687_s1 + $0x774] sm:$0xf0]  ;;  %v688_v55 = vpop.f32.mrf.mxu1 }
  0xbb   : > { %1717 = vmatpush.bf16.msrb.mxu1 %v3198_v32  ;;  %v3166_v32 = vor.u32 %v3818_v6, %v3163_v17  ;;  %v3602_v40 = vor.u32 %v3913_v31, %v3601_v29  ;;  %v689_v57 = vadd.f32 %v688_v55, %v675_v51  ;;  %v3577_v6 = vld [vmem:[%s5687_s1 + $0x740] sm:$0xf]  ;;  %v3907_v17 = vld [vmem:[%s5687_s1 + $0x744] sm:$0xf0]  ;;  %v3889_v31 = vld [vmem:[%s5687_s1 + $0x6b4] sm:$0xf0] }
  0xbc   : > { %1730 = vmatpush.bf16.msrb.mxu2 %v3262_v34  ;;  %v3230_v34 = vor.u32 %v3834_v19, %v3227_v20  ;;  %v3923_v20 = vld [vmem:[%s5687_s1 + $0x7c4] sm:$0xf0] }
  0xbd   : > { %1743 = vmatpush.bf16.msrb.mxu3 %v3326_v38  ;;  %v3474_v38 = vor.u32 %v3881_v25, %v3473_v7  ;;  %v701_v8 = vpop.f32.mrf.mxu2  ;;  %v3578_v25 = vor.u32 %v3907_v17, %v3577_v6  ;;  %v3903_v51 = vld [vmem:[%s5687_s1 + $0x724] sm:$0xf0]  ;;  %v3481_v6 = vld [vmem:[%s5687_s1 + $0x680] sm:$0xf] }
  0xbe   : > { %1705 = vmatpush.bf16.msrb.mxu0 %v3126_v45  ;;  %v3666_v45 = vor.u32 %v3929_v36, %v3665_v35  ;;  %v702_v10 = vadd.f32 %v701_v8, %v689_v57  ;;  %v714_v22 = vpop.f32.mrf.mxu3  ;;  %v3633_v36 = vld [vmem:[%s5687_s1 + $0x7b0] sm:$0xf]  ;;  %v3883_v17 = vld [vmem:[%s5687_s1 + $0x684] sm:$0xf0] }
  0xbf   : > { %1718 = vmatpush.bf16.msrb.mxu1 %v3190_v47  ;;  %v3895_v47 = vld [vmem:[%s5687_s1 + $0x6e4] sm:$0xf0]  ;;  %v3425_v57 = vld [vmem:[%s5687_s1 + $0x610] sm:$0xf] }
  0xc0   : > { %1731 = vmatpush.bf16.msrb.mxu2 %v3254_v49  ;;  %v3593_v49 = vld [vmem:[%s5687_s1 + $0x760] sm:$0xf]  ;;  %v3530_v58 = vor.u32 %v3895_v47, %v3529_v44  ;;  %v3871_v44 = vld [vmem:[%s5687_s1 + $0x624] sm:$0xf0]  ;;  %v3553_v8 = vld [vmem:[%s5687_s1 + $0x710] sm:$0xf] }
  0xc1   : > { %1744 = vmatpush.bf16.msrb.mxu3 %v3318_v54  ;;  %v3927_v54 = vld [vmem:[%s5687_s1 + $0x7e4] sm:$0xf0]  ;;  %v3594_v59 = vor.u32 %v3911_v50, %v3593_v49  ;;  %v677_v19 = vpop.f32.mrf.mxu0  ;;  %v3561_v50 = vld [vmem:[%s5687_s1 + $0x720] sm:$0xf] }
  0xc2   : > { %1706 = vmatpush.bf16.msrb.mxu0 %v3118_v60  ;;  %v3457_v60 = vld [vmem:[%s5687_s1 + $0x650] sm:$0xf]  ;;  %v3658_v0 = vor.u32 %v3927_v54, %v3657_v52  ;;  %v690_v23 = vpop.f32.mrf.mxu1  ;;  %v3887_v49 = vld [vmem:[%s5687_s1 + $0x6a4] sm:$0xf0]  ;;  %v3625_v52 = vld [vmem:[%s5687_s1 + $0x7a0] sm:$0xf] }
  0xc3   : > { %1719 = vmatpush.bf16.msrb.mxu1 %v3182_v62  ;;  %v3877_v62 = vld [vmem:[%s5687_s1 + $0x654] sm:$0xf0]  ;;  %v3919_v54 = vld [vmem:[%s5687_s1 + $0x7a4] sm:$0xf0]  ;;  %v3545_v19 = vld [vmem:[%s5687_s1 + $0x700] sm:$0xf] }
  0xc4   : > { %1732 = vmatpush.bf16.msrb.mxu2 %v3246_v63  ;;  %v3521_v63 = vld [vmem:[%s5687_s1 + $0x6d0] sm:$0xf]  ;;  %v3458_v21 = vor.u32 %v3877_v62, %v3457_v60  ;;  %v3562_v62 = vor.u32 %v3903_v51, %v3561_v50  ;;  %v3878_v51 = vld [vmem:[%s5687_s1 + $0x664] sm:$0xf] }
  0xc5   : > { %1745 = vmatpush.bf16.msrb.mxu3 %v3310_v5  ;;  %v3909_v5 = vld [vmem:[%s5687_s1 + $0x754] sm:$0xf0]  ;;  %v703_v35 = vpop.f32.mrf.mxu2 }
  0xc6   : > { %1707 = vmatpush.bf16.msrb.mxu0 %v3110_v11  ;;  %v3586_v11 = vor.u32 %v3909_v5, %v3585_v3  ;;  %v1756_v3 = vld [vmem:[%s4309_s29 + $0x8] sm:$0xcc]  ;;  %v3626_v5 = vor.u32 %v3919_v54, %v3625_v52 }
  0xc7   : > { %1720 = vmatpush.bf16.msrb.mxu1 %v3174_v15  ;;  %v5298_v15 = vadd.f32 %v714_v22, %v702_v10  ;;  %v3617_v10 = vld [vmem:[%s5687_s1 + $0x790] sm:$0xf] }
  0xc8   : > { %1733 = vmatpush.bf16.msrb.mxu2 %v3238_v16  ;;  %v3891_v16 = vld [vmem:[%s5687_s1 + $0x6c4] sm:$0xf0] }
  0xc9   : > { %1746 = vmatpush.bf16.msrb.mxu3 %v3302_v13  ;;  %v3641_v13 = vld [vmem:[%s5687_s1 + $0x7c0] sm:$0xf]  ;;  %v3514_v7 = vor.u32 %v3891_v16, %v3513_v14  ;;  %v1826_v14 = vunpack.c.l.b16 %v1756_v3 }
  0xca   : > { %1708 = vmatpush.bf16.msrb.mxu0 %v3102_v27  ;;  %v3873_v27 = vld [vmem:[%s5687_s1 + $0x634] sm:$0xf0]  ;;  %v3642_v29 = vor.u32 %v3923_v20, %v3641_v13  ;;  %v727_v55 = vpop.f32.mrf.mxu0  ;;  %v1827_v13 = vunpack.c.h.b16 %v1756_v3 }
  0xcb   : > { %1721 = vmatpush.bf16.msrb.mxu1 %v3166_v32  ;;  %v3569_v32 = vld [vmem:[%s5687_s1 + $0x730] sm:$0xf] }
  0xcc   : > { %1734 = vmatpush.bf16.msrb.mxu2 %v3230_v34  ;;  %v3905_v34 = vld [vmem:[%s5687_s1 + $0x734] sm:$0xf0] }
  0xcd   : > { %1747 = vmatpush.bf16.msrb.mxu3 %v3294_v37  ;;  %1709 = vmatmul.bf16.vlgmr.msrb.gmra.mxu0 %v5061_v4  ;;  %v3449_v4 = vld [vmem:[%s5687_s1 + $0x640] sm:$0xf]  ;;  %v3921_v37 = vld [vmem:[%s5687_s1 + $0x7b4] sm:$0xf0]  ;;  %v3570_v42 = vor.u32 %v3905_v34, %v3569_v32 }
  0xce   : > { %2160 = vmatpush.bf16.msra.mxu0 %v3474_v38  ;;  %1722 = vmatmul.bf16.vlgmr.msrb.gmra.mxu1 %v5063_v18  ;;  %v3450_v24 = vor.u32 %v3875_v12, %v3449_v4  ;;  %v3442_v38 = vor.u32 %v3873_v27, %v3441_v26  ;;  %v3634_v47 = vor.u32 %v3921_v37, %v3633_v36  ;;  %v3867_v4 = vld [vmem:[%s5687_s1 + $0x604] sm:$0xf0]  ;;  %v3539_v37 = vld [vmem:[%s5687_s1 + $0x6f8] sm:$0xf0] }
  0xcf   : > { %2173 = vmatpush.bf16.msra.mxu1 %v3538_v39  ;;  %1735 = vmatmul.bf16.vlgmr.msrb.gmra.mxu2 %v5042_v61  ;;  %v3649_v61 = vld [vmem:[%s5687_s1 + $0x7d0] sm:$0xf]  ;;  %v716_v39 = vpop.f32.mrf.mxu3  ;;  %v3482_v36 = vor.u32 %v3883_v17, %v3481_v6  ;;  %v3874_v6 = vld [vmem:[%s5687_s1 + $0x644] sm:$0xf]  ;;  %v3451_v17 = vld [vmem:[%s5687_s1 + $0x648] sm:$0xf0] }
  0xd0   : > { %2186 = vmatpush.bf16.msra.mxu2 %v3602_v40  ;;  %1748 = vmatmul.bf16.vlgmr.msrb.gmra.mxu3 %v5053_v1  ;;  %v3522_v1 = vor.u32 %v3893_v2, %v3521_v63  ;;  %v3650_v18 = vor.u32 %v3925_v9, %v3649_v61  ;;  %v3506_v40 = vor.u32 %v3889_v31, %v3505_v28  ;;  %v3489_v63 = vld [vmem:[%s5687_s1 + $0x690] sm:$0xf]  ;;  %v3901_v61 = vld [vmem:[%s5687_s1 + $0x714] sm:$0xf0]  ;;  %v1755_v9 = vld [vmem:[%s4309_s29] sm:$0xcc] }
  0xd1   : > { %2199 = vmatpush.bf16.msra.mxu3 %v3666_v45  ;;  %v3497_v45 = vld [vmem:[%s5687_s1 + $0x6a0] sm:$0xf]  ;;  %v3554_v16 = vor.u32 %v3901_v61, %v3553_v8  ;;  %v1824_v20 = vunpack.c.l.b16 %v1755_v9  ;;  %v1825_v27 = vunpack.c.h.b16 %v1755_v9  ;;  %v3880_v28 = vld [vmem:[%s5687_s1 + $0x674] sm:$0xf]  ;;  %v3603_v39 = vld [vmem:[%s5687_s1 + $0x778] sm:$0xf0] }
  0xd2   : > { %2161 = vmatpush.bf16.msra.mxu0 %v3466_v56  ;;  %v3434_v56 = vor.u32 %v3871_v44, %v3433_v43  ;;  %v3498_v60 = vor.u32 %v3887_v49, %v3497_v45  ;;  %v753_v22 = vpop.f32.mrf.mxu2  ;;  %v3896_v31 = vld [vmem:[%s5687_s1 + $0x6f4] sm:$0xf]  ;;  %v729_v32 = vpop.f32.mrf.mxu0  ;;  %v3667_v45 = vld [vmem:[%s5687_s1 + $0x7f8] sm:$0xf0] }
  0xd3   : > { %2174 = vmatpush.bf16.msra.mxu1 %v3530_v58  ;;  %v3869_v58 = vld [vmem:[%s5687_s1 + $0x614] sm:$0xf0]  ;;  %v3928_v44 = vld [vmem:[%s5687_s1 + $0x7f4] sm:$0xf]  ;;  %v5456_v52 = vpack.c.b16 %v1286_v53, %v1825_v27  ;;  %v3542_v54 = vor.u32 %v3896_v31, %v3539_v37  ;;  %v3910_v53 = vld [vmem:[%s5687_s1 + $0x764] sm:$0xf] }
  0xd4   : > { %2187 = vmatpush.bf16.msra.mxu2 %v3594_v59  ;;  %v740_v59 = vpop.f32.mrf.mxu1  ;;  %v3876_v61 = vld [vmem:[%s5687_s1 + $0x654] sm:$0xf]  ;;  %v3459_v9 = vld [vmem:[%s5687_s1 + $0x658] sm:$0xf0] }
  0xd5   : > { %2200 = vmatpush.bf16.msra.mxu3 %v3658_v0  ;;  %v3885_v0 = vld [vmem:[%s5687_s1 + $0x694] sm:$0xf0]  ;;  %v741_v2 = vadd.f32 %v740_v59, %v727_v55  ;;  %v3888_v37 = vld [vmem:[%s5687_s1 + $0x6b4] sm:$0xf] }
  0xd6   : > { %2162 = vmatpush.bf16.msra.mxu0 %v3458_v21  ;;  %v3917_v21 = vld [vmem:[%s5687_s1 + $0x794] sm:$0xf0] }
  0xd7   : > { %2175 = vmatpush.bf16.msra.mxu1 %v3522_v1  ;;  %v3426_v1 = vor.u32 %v3869_v58, %v3425_v57  ;;  %v754_v12 = vadd.f32 %v753_v22, %v741_v2  ;;  %v3618_v23 = vor.u32 %v3917_v21, %v3617_v10  ;;  %v766_v26 = vpop.f32.mrf.mxu3  ;;  %v3670_v57 = vor.u32 %v3928_v44, %v3667_v45  ;;  %v3595_v58 = vld [vmem:[%s5687_s1 + $0x768] sm:$0xf0]  ;;  %v3892_v10 = vld [vmem:[%s5687_s1 + $0x6d4] sm:$0xf]  ;;  %v3523_v22 = vld [vmem:[%s5687_s1 + $0x6d8] sm:$0xf0] }
  0xd8   : > { %2188 = vmatpush.bf16.msra.mxu2 %v3586_v11  ;;  %v3417_v11 = vld [vmem:[%s5687_s1 + $0x600] sm:$0xf]  ;;  %v1833_v2 = vrot.slane %v5456_v52, 2  ;;  %v3598_v8 = vor.u32 %v3910_v53, %v3595_v58  ;;  %v3920_v44 = vld [vmem:[%s5687_s1 + $0x7b4] sm:$0xf] }
  0xd9   : > { %2201 = vmatpush.bf16.msra.mxu3 %v3650_v18  ;;  %v3490_v18 = vor.u32 %v3885_v0, %v3489_v63  ;;  %v5422_v34 = vadd.f32 %v766_v26, %v754_v12  ;;  %v3418_v35 = vor.u32 %v3867_v4, %v3417_v11  ;;  %v3470_v0 = vor.u32 %v3878_v51, %v3467_v30  ;;  %v3587_v11 = vld [vmem:[%s5687_s1 + $0x758] sm:$0xf0]  ;;  %v3924_v4 = vld [vmem:[%s5687_s1 + $0x7d4] sm:$0xf]  ;;  %v3643_v26 = vld [vmem:[%s5687_s1 + $0x7c8] sm:$0xf0] }
  0xda   : > { %2163 = vmatpush.bf16.msra.mxu0 %v3450_v24  ;;  %v3899_v24 = vld [vmem:[%s5687_s1 + $0x704] sm:$0xf0]  ;;  %v3651_v12 = vld [vmem:[%s5687_s1 + $0x7d8] sm:$0xf0]  ;;  %v3886_v30 = vld [vmem:[%s5687_s1 + $0x6a4] sm:$0xf] }
  0xdb   : > { %2176 = vmatpush.bf16.msra.mxu1 %v3514_v7  ;;  %v3609_v7 = vld [vmem:[%s5687_s1 + $0x780] sm:$0xf]  ;;  %v3546_v43 = vor.u32 %v3899_v24, %v3545_v19  ;;  %v3890_v19 = vld [vmem:[%s5687_s1 + $0x6c4] sm:$0xf]  ;;  %v3579_v24 = vld [vmem:[%s5687_s1 + $0x748] sm:$0xf0] }
  0xdc   : > { %2189 = vmatpush.bf16.msra.mxu2 %v3578_v25  ;;  %v3915_v25 = vld [vmem:[%s5687_s1 + $0x784] sm:$0xf0]  ;;  %v3635_v45 = vld [vmem:[%s5687_s1 + $0x7b8] sm:$0xf0]  ;;  %v3563_v53 = vld [vmem:[%s5687_s1 + $0x728] sm:$0xf0] }
  0xdd   : > { %2202 = vmatpush.bf16.msra.mxu3 %v3642_v29  ;;  %v3475_v29 = vld [vmem:[%s5687_s1 + $0x678] sm:$0xf0]  ;;  %v3610_v49 = vor.u32 %v3915_v25, %v3609_v7  ;;  %v3922_v25 = vld [vmem:[%s5687_s1 + $0x7c4] sm:$0xf] }
  0xde   : > { %2164 = vmatpush.bf16.msra.mxu0 %v3442_v38  ;;  %v3912_v38 = vld [vmem:[%s5687_s1 + $0x774] sm:$0xf]  ;;  %v3478_v50 = vor.u32 %v3880_v28, %v3475_v29  ;;  %v3454_v28 = vor.u32 %v3874_v6, %v3451_v17 }
  0xdf   : > { %2177 = vmatpush.bf16.msra.mxu1 %v3506_v40  ;;  %v5435_v40 = vpack.c.b16 %v1287_v41, %v1826_v14  ;;  %v5449_v41 = vpack.c.b16 %v1285_v48, %v1824_v20  ;;  %v3606_v55 = vor.u32 %v3912_v38, %v3603_v39  ;;  %v3531_v48 = vld [vmem:[%s5687_s1 + $0x6e8] sm:$0xf0]  ;;  %v768_v3 = vpop.f32.mrf.mxu3  ;;  %v3462_v14 = vor.u32 %v3876_v61, %v3459_v9  ;;  %v3507_v39 = vld [vmem:[%s5687_s1 + $0x6b8] sm:$0xf0] }
  0xe0   : > { %2190 = vmatpush.bf16.msra.mxu2 %v3570_v42  ;;  %v742_v42 = vpop.f32.mrf.mxu1  ;;  %v3515_v20 = vld [vmem:[%s5687_s1 + $0x6c8] sm:$0xf0] }
  0xe1   : > { %2203 = vmatpush.bf16.msra.mxu3 %v3634_v47  ;;  %v5445_v47 = vpack.c.b16 %v1288_v46, %v1827_v13  ;;  %v3894_v46 = vld [vmem:[%s5687_s1 + $0x6e4] sm:$0xf]  ;;  %v1834_v33 = vrot.slane %v5435_v40, 2  ;;  %v1832_v63 = vrot.slane %v5449_v41, 2  ;;  %v3654_v13 = vor.u32 %v3924_v4, %v3651_v12  ;;  %v3904_v42 = vld [vmem:[%s5687_s1 + $0x734] sm:$0xf] }
  0xe2   : > { %2165 = vmatpush.bf16.msra.mxu0 %v3434_v56  ;;  %v755_v56 = vpop.f32.mrf.mxu2  ;;  %v3518_v31 = vor.u32 %v3890_v19, %v3515_v20  ;;  %v3491_v4 = vld [vmem:[%s5687_s1 + $0x698] sm:$0xf0]  ;;  %v3900_v12 = vld [vmem:[%s5687_s1 + $0x714] sm:$0xf]  ;;  %v3419_v20 = vld [vmem:[%s5687_s1 + $0x608] sm:$0xf0] }
  0xe3   : > { %2178 = vmatpush.bf16.msra.mxu1 %v3498_v60  ;;  %v1835_v59 = vrot.slane %v5445_v47, 2  ;;  %v3926_v60 = vld [vmem:[%s5687_s1 + $0x7e4] sm:$0xf]  ;;  %v3499_v56 = vld [vmem:[%s5687_s1 + $0x6a8] sm:$0xf0] }
  0xe4   : > { %2191 = vmatpush.bf16.msra.mxu2 %v3562_v62  ;;  %v3659_v62 = vld [vmem:[%s5687_s1 + $0x7e8] sm:$0xf0]  ;;  %v3502_v9 = vor.u32 %v3886_v30, %v3499_v56 }
  0xe5   : > { %2204 = vmatpush.bf16.msra.mxu3 %v3626_v5  ;;  %v3534_v5 = vor.u32 %v3894_v46, %v3531_v48  ;;  %v3662_v21 = vor.u32 %v3926_v60, %v3659_v62  ;;  %v3638_v46 = vor.u32 %v3920_v44, %v3635_v45  ;;  %v3918_v62 = vld [vmem:[%s5687_s1 + $0x7a4] sm:$0xf] }
  0xe6   : > { %2166 = vmatpush.bf16.msra.mxu0 %v3426_v1  ;;  %v3908_v1 = vld [vmem:[%s5687_s1 + $0x754] sm:$0xf] }
  0xe7   : > { %2179 = vmatpush.bf16.msra.mxu1 %v3490_v18  ;;  %v3526_v18 = vor.u32 %v3892_v10, %v3523_v22  ;;  %v3427_v22 = vld [vmem:[%s5687_s1 + $0x618] sm:$0xf0] }
  0xe8   : > { %2192 = vmatpush.bf16.msra.mxu2 %v3554_v16  ;;  %v3590_v16 = vor.u32 %v3908_v1, %v3587_v11  ;;  %v3884_v1 = vld [vmem:[%s5687_s1 + $0x694] sm:$0xf] }
  0xe9   : > { %2205 = vmatpush.bf16.msra.mxu3 %v3618_v23  ;;  %v3906_v23 = vld [vmem:[%s5687_s1 + $0x744] sm:$0xf]  ;;  %v3494_v17 = vor.u32 %v3884_v1, %v3491_v4 }
  0xea   : > { %2167 = vmatpush.bf16.msra.mxu0 %v3418_v35  ;;  %v1113_v7 = vpop.f32.mrf.mxu0  ;;  %v3582_v32 = vor.u32 %v3906_v23, %v3579_v24  ;;  %v3872_v35 = vld [vmem:[%s5687_s1 + $0x634] sm:$0xf]  ;;  %v3882_v23 = vld [vmem:[%s5687_s1 + $0x684] sm:$0xf] }
  0xeb   : > { %2180 = vmatpush.bf16.msra.mxu1 %v3482_v36  ;;  %v1114_v27 = vadd.f32 %v1113_v7, %v5298_v15  ;;  %v1126_v29 = vpop.f32.mrf.mxu1  ;;  %v3443_v36 = vld [vmem:[%s5687_s1 + $0x638] sm:$0xf0]  ;;  %v3646_v15 = vor.u32 %v3922_v25, %v3643_v26  ;;  %v3483_v7 = vld [vmem:[%s5687_s1 + $0x688] sm:$0xf0]  ;;  %v3898_v25 = vld [vmem:[%s5687_s1 + $0x704] sm:$0xf] }
  0xec   : > { %2193 = vmatpush.bf16.msra.mxu2 %v3546_v43  ;;  %v3571_v43 = vld [vmem:[%s5687_s1 + $0x738] sm:$0xf0]  ;;  %v3547_v26 = vld [vmem:[%s5687_s1 + $0x708] sm:$0xf0] }
  0xed   : > { %2206 = vmatpush.bf16.msra.mxu3 %v3610_v49  ;;  %2168 = vmatmul.bf16.vlgmr.msra.gmra.mxu0 %v1832_v63  ;;  %v1127_v38 = vadd.f32 %v1126_v29, %v1114_v27  ;;  %v3446_v49 = vor.u32 %v3872_v35, %v3443_v36  ;;  %v3574_v51 = vor.u32 %v3904_v42, %v3571_v43  ;;  %v3611_v29 = vld [vmem:[%s5687_s1 + $0x788] sm:$0xf0] }
  0xee   : > { %2212 = vmatpush.bf16.msrb.mxu0 %v3478_v50  ;;  %2181 = vmatmul.bf16.vlgmr.msra.gmra.mxu1 %v1833_v2  ;;  %v3510_v50 = vor.u32 %v3888_v37, %v3507_v39  ;;  %v3486_v35 = vor.u32 %v3882_v23, %v3483_v7  ;;  %v3550_v36 = vor.u32 %v3898_v25, %v3547_v26 }
  0xef   : > { %2225 = vmatpush.bf16.msrb.mxu1 %v3542_v54  ;;  %2194 = vmatmul.bf16.vlgmr.msra.gmra.mxu2 %v1834_v33  ;;  %v3870_v54 = vld [vmem:[%s5687_s1 + $0x624] sm:$0xf] }
  0xf0   : > { %2238 = vmatpush.bf16.msrb.mxu2 %v3606_v55  ;;  %2207 = vmatmul.bf16.vlgmr.msra.gmra.mxu3 %v1835_v59  ;;  %v3435_v55 = vld [vmem:[%s5687_s1 + $0x628] sm:$0xf0] }
  0xf1   : > { %2251 = vmatpush.bf16.msrb.mxu3 %v3670_v57  ;;  %v3902_v57 = vld [vmem:[%s5687_s1 + $0x724] sm:$0xf] }
  0xf2   : > { %2213 = vmatpush.bf16.msrb.mxu0 %v3470_v0  ;;  %v1139_v48 = vpop.f32.mrf.mxu2  ;;  %v3627_v0 = vld [vmem:[%s5687_s1 + $0x7a8] sm:$0xf0]  ;;  %v1115_v3 = vpop.f32.mrf.mxu0  ;;  %v3566_v10 = vor.u32 %v3902_v57, %v3563_v53 }
  0xf3   : > { %2226 = vmatpush.bf16.msrb.mxu1 %v3534_v5  ;;  %v1140_v58 = vadd.f32 %v1139_v48, %v1127_v38  ;;  %v1152_v60 = vpop.f32.mrf.mxu3  ;;  %v3438_v5 = vor.u32 %v3870_v54, %v3435_v55  ;;  %v3630_v11 = vor.u32 %v3918_v62, %v3627_v0 }
  0xf4   : > { %2239 = vmatpush.bf16.msrb.mxu2 %v3598_v8  ;;  %v1128_v8 = vpop.f32.mrf.mxu1 }
  0xf5   : > { %2252 = vmatpush.bf16.msrb.mxu3 %v3662_v21  ;;  %v5588_v61 = vadd.f32 %v1152_v60, %v1140_v58  ;;  %v3868_v21 = vld [vmem:[%s5687_s1 + $0x614] sm:$0xf]  ;;  %v3952_v8 = vmov 0  }
  0xf6   : > { %2214 = vmatpush.bf16.msrb.mxu0 %v3462_v14  ;;  %v3555_v14 = vld [vmem:[%s5687_s1 + $0x718] sm:$0xf0]  ;;  %v3430_v6 = vor.u32 %v3868_v21, %v3427_v22 }
  0xf7   : > { %2227 = vmatpush.bf16.msrb.mxu1 %v3526_v18  ;;  %v3916_v18 = vld [vmem:[%s5687_s1 + $0x794] sm:$0xf]  ;;  %v3558_v19 = vor.u32 %v3900_v12, %v3555_v14 }
  0xf8   : > { %2240 = vmatpush.bf16.msrb.mxu2 %v3590_v16  ;;  %v3619_v16 = vld [vmem:[%s5687_s1 + $0x798] sm:$0xf0] }
  0xf9   : > { %2253 = vmatpush.bf16.msrb.mxu3 %v3654_v13  ;;  %v3866_v13 = vld [vmem:[%s5687_s1 + $0x604] sm:$0xf]  ;;  %v3622_v24 = vor.u32 %v3916_v18, %v3619_v16 }
  0xfa   : > { %2215 = vmatpush.bf16.msrb.mxu0 %v3454_v28  ;;  %v1141_v27 = vpop.f32.mrf.mxu2  ;;  %v3914_v28 = vld [vmem:[%s5687_s1 + $0x784] sm:$0xf] }
  0xfb   : > { %2228 = vmatpush.bf16.msrb.mxu1 %v3518_v31  ;;  %v1154_v31 = vpop.f32.mrf.mxu3  ;;  %v3614_v37 = vor.u32 %v3914_v28, %v3611_v29 }
  0xfc   : > { %2241 = vmatpush.bf16.msrb.mxu2 %v3582_v32  ;;  %v3422_v32 = vor.u32 %v3866_v13, %v3419_v20 }
  0xfd   : > { %2254 = vmatpush.bf16.msrb.mxu3 %v3646_v15 }
  0xfe   : > { %2216 = vmatpush.bf16.msrb.mxu0 %v3446_v49 }
  0xff   : > { %2229 = vmatpush.bf16.msrb.mxu1 %v3510_v50 }
 0x100   : > { %2242 = vmatpush.bf16.msrb.mxu2 %v3574_v51 }
 0x101   : > { %2255 = vmatpush.bf16.msrb.mxu3 %v3638_v46 }
 0x102   : > { %2217 = vmatpush.bf16.msrb.mxu0 %v3438_v5 }
 0x103   : > { %2230 = vmatpush.bf16.msrb.mxu1 %v3502_v9 }
 0x104   : > { %2243 = vmatpush.bf16.msrb.mxu2 %v3566_v10 }
 0x105   : > { %2256 = vmatpush.bf16.msrb.mxu3 %v3630_v11 }
 0x106   : > { %2218 = vmatpush.bf16.msrb.mxu0 %v3430_v6 }
 0x107   : > { %2231 = vmatpush.bf16.msrb.mxu1 %v3494_v17 }
 0x108   : > { %2244 = vmatpush.bf16.msrb.mxu2 %v3558_v19 }
 0x109   : > { %2257 = vmatpush.bf16.msrb.mxu3 %v3622_v24 }
 0x10a   : > { %2219 = vmatpush.bf16.msrb.mxu0 %v3422_v32  ;;  %v1165_v15 = vpop.f32.mrf.mxu0  ;;  %v2266_v32 = vld [vmem:[%s5688_s2] sm:$0x3] }
 0x10b   : > { %2232 = vmatpush.bf16.msrb.mxu1 %v3486_v35  ;;  %v1166_v38 = vadd.f32 %v1165_v15, %v5422_v34  ;;  %v1178_v39 = vpop.f32.mrf.mxu1  ;;  %v2274_v34 = vlaneseq }
 0x10c   : > { %2245 = vmatpush.bf16.msrb.mxu2 %v3550_v36 }
 0x10d   : > { %2258 = vmatpush.bf16.msrb.mxu3 %v3614_v37  ;;  %2220 = vmatmul.bf16.vlgmr.msrb.gmra.mxu0 %v1832_v63  ;;  %v1179_v42 = vadd.f32 %v1178_v39, %v1166_v38  ;;  %v2275_v30 = vshrl.u32 %v2274_v34, 7  ;;  %v2268_v38 = vperm.slane %v2266_v32, 0 }
 0x10e   : > { %2233 = vmatmul.bf16.vlgmr.msrb.gmra.mxu1 %v1833_v2 }
 0x10f   : > { %2246 = vmatmul.bf16.vlgmr.msrb.gmra.mxu2 %v1834_v33  ;;  %v2279_v46 = vand.u32 65535, %v2275_v30  ;;  %v2280_v48 = vshrl.u32 %v2275_v30, 16 }
 0x110   : > { %2259 = vmatmul.bf16.vlgmr.msrb.gmra.mxu3 %v1835_v59 }
 0x111   : > { %v2283_v56 = vmul.u32 43690, %v2279_v46  ;;  %v2282_v57 = vmul.u32 43691, %v2279_v46  ;;  %v2284_v53 = vmul.u32 43691, %v2280_v48  ;;  %v2285_v3 = vmul.u32 43690, %v2280_v48 }
 0x112   : > { %v1191_v43 = vpop.f32.mrf.mxu2  ;;  %v1167_v49 = vpop.f32.mrf.mxu0 }
 0x113   : > { %v1192_v44 = vadd.f32 %v1191_v43, %v1179_v42  ;;  %v1204_v45 = vpop.f32.mrf.mxu3  ;;  %v1180_v41 = vpop.f32.mrf.mxu1  ;;  %v2286_v58 = vshll.u32 %v2283_v56, 16  ;;  %v2288_v60 = vshll.u32 %v2284_v53, 16  ;;  %v2287_v4 = vshrl.u32 %v2283_v56, 16 }
 0x114   : > { %v2289_v18 = vshrl.u32 %v2284_v53, 16 }
 0x115   : > { %v5647_v63 = vadd.f32 %v1204_v45, %v1192_v44  ;;  %vm2290_vm0 = vc.u32 %v2282_v57, %v2286_v58  ;;  %v2292_v62 = vadd.s32 %v2286_v58, %v2282_v57 }
 0x116   : > { %v2291_v9 = vsel %vm2290_vm0, 1, %v3952_v8 }
 0x117   : > { %vm2294_vm1 = vc.u32 %v2292_v62, %v2288_v60  ;;  %v2293_v10 = vadd.s32 %v2291_v9, %v2285_v3 }
 0x118   : > { %v2295_v22 = vsel %vm2294_vm1, 1, %v3952_v8 }
 0x119   : > { %v2297_v12 = vadd.s32 %v2295_v22, %v2293_v10 }
 0x11a   : > { %v1193_v52 = vpop.f32.mrf.mxu2 }
 0x11b   : > { %v1206_v2 = vpop.f32.mrf.mxu3  ;;  %v2298_v16 = vadd.s32 %v2297_v12, %v2287_v4 }
 0x11d   : > { %v2299_v19 = vadd.s32 %v2298_v16, %v2289_v18 }
 0x11f   : > { %v2300_v13 = vshrl.u32 %v2299_v19, 1 }
 0x121   : > { %v2301_v20 = vmul.u32 3, %v2300_v13  ;;  %v2269_v13 = vperm.slane %v2266_v32, 1 }
 0x123   : > { %v2302_v24 = vsub.s32 %v2275_v30, %v2301_v20 }
 0x125   : > { %vm2305_vm2 = vcmp.ne.s32.totalorder %v2302_v24, 0  ;;  %vm2306_vm3 = vcmp.lt.s32.totalorder %v2302_v24, 0  ;;  %v2308_v29 = vadd.s32 3, %v2302_v24 }
 0x126   : > { %vm2307_vm4 = vmand %vm2306_vm3, %vm2305_vm2 }
 0x127   : > { %v2309_v39 = vsel %vm2307_vm4, %v2308_v29, %v2302_v24 }
 0x128   : > { %vm5655_vm5 = vcmp.lt.s32.totalorder %v2309_v39, 2 }
 0x12a   : > { %v1658_v50 = vpop.f32.mrf.mxu0 }
 0x12b   : > { %v1671_v40 = vpop.f32.mrf.mxu1 }
 0x12c   : > { %v1672_v23 = vadd.f32 %v1671_v40, %v1658_v50 }
 0x132   : > { %v1684_v33 = vpop.f32.mrf.mxu2  ;;  %v1660_v47 = vpop.f32.mrf.mxu0 }
 0x133   : > { %v1697_v51 = vpop.f32.mrf.mxu3  ;;  %v1673_v59 = vpop.f32.mrf.mxu1  ;;  %v1685_v7 = vadd.f32 %v1684_v33, %v1672_v23 }
 0x135   : > { %v1698_v28 = vadd.f32 %v1697_v51, %v1685_v7 }
 0x137   : > { %v1753_v37 = vadd.f32 %v1698_v28, %v5588_v61 }
 0x13a   : > { %v1686_v54 = vpop.f32.mrf.mxu2 }
 0x13b   : > { %v1699_v55 = vpop.f32.mrf.mxu3 }
 0x14a   : > { %v1710_v0 = vpop.f32.mrf.mxu0 }
 0x14b   : > { %v1723_v5 = vpop.f32.mrf.mxu1 }
 0x14c   : > { %v1724_v56 = vadd.f32 %v1723_v5, %v1710_v0 }
 0x152   : > { %v1736_v21 = vpop.f32.mrf.mxu2  ;;  %v1712_v11 = vpop.f32.mrf.mxu0 }
 0x153   : > { %v5649_v1 = vpop.f32.mrf.mxu3  ;;  %v1725_v14 = vpop.f32.mrf.mxu1  ;;  %v1737_v8 = vadd.f32 %v1736_v21, %v1724_v56 }
 0x155   : > { %v1750_v4 = vadd.f32 %v5649_v1, %v1737_v8 }
 0x157   : > { %v1754_v5 = vadd.f32 %v1750_v4, %v5647_v63 }
 0x15a   : > { %v1738_v6 = vpop.f32.mrf.mxu2 }
 0x15b   : > { %v1751_v17 = vpop.f32.mrf.mxu3 }
 0x16a   : > { %v2169_v25 = vpop.f32.mrf.mxu0 }
 0x16b   : > { %v2182_v26 = vpop.f32.mrf.mxu1 }
 0x16c   : > { %v2183_v27 = vadd.f32 %v2182_v26, %v2169_v25 }
 0x172   : > { %v2195_v31 = vpop.f32.mrf.mxu2  ;;  %v2171_v42 = vpop.f32.mrf.mxu0 }
 0x173   : > { %v2196_v35 = vadd.f32 %v2195_v31, %v2183_v27  ;;  %v2208_v36 = vpop.f32.mrf.mxu3  ;;  %v2184_v43 = vpop.f32.mrf.mxu1 }
 0x175   : > { %v2209_v15 = vadd.f32 %v2208_v36, %v2196_v35 }
 0x177   : > { %v2264_v44 = vadd.f32 %v2209_v15, %v1753_v37 }
 0x179   : > { %v5659_v49 = vadd.f32 %v2268_v38, %v2264_v44 }
 0x17a   : > { %v2197_v41 = vpop.f32.mrf.mxu2 }
 0x17b   : > { %v2313_v52 = vsel %vm5655_vm5, %v5659_v49, 0.0  ;;  %v2330_v61 = vmul.f32 %v5659_v49, %v5659_v49  ;;  %v2210_v2 = vpop.f32.mrf.mxu3 }
 0x17c   : > { %v2316_v50 = vsel %vm2315_vm6, %v2313_v52, 0.0 }
 0x17d   : > { %v2317_v40 = vrot.slane %v2316_v50, 4  ;;  %v2332_v33 = vsel %vm5655_vm5, %v2330_v61, 0.0 }
 0x17e   : > { %v2334_v51 = vsel %vm2315_vm6, %v2332_v33, 0.0 }
 0x17f   : > { %v2318_v47 = vadd.f32 %v2317_v40, %v2316_v50  ;;  %v2335_v59 = vrot.slane %v2334_v51, 4 }
 0x181   : > { %v2319_v54 = vrot.slane %v2318_v47, 2  ;;  %v2336_v55 = vadd.f32 %v2335_v59, %v2334_v51 }
 0x183   : > { %v2320_v34 = vadd.f32 %v2319_v54, %v2318_v47  ;;  %v2337_v30 = vrot.slane %v2336_v55, 2 }
 0x185   : > { %v2321_v46 = vrot.slane %v2320_v34, 1  ;;  %v2338_v48 = vadd.f32 %v2337_v30, %v2336_v55 }
 0x187   : > { %v2322_v57 = vadd.f32 %v2321_v46, %v2320_v34  ;;  %v2339_v53 = vrot.slane %v2338_v48, 1 }
 0x189   : > { %v2340_v58 = vadd.f32 %v2339_v53, %v2338_v48  ;;  %v2348_v60 = vmul.f32 0.25, %v2322_v57 }
 0x18a   : > { %v2221_v62 = vpop.f32.mrf.mxu0 }
 0x18b   : > { %v2234_v3 = vpop.f32.mrf.mxu1  ;;  %v2350_v9 = vmul.f32 0.25, %v2340_v58  ;;  %v2352_v10 = vmul.f32 %v2348_v60, %v2348_v60  ;;  %v2358_v44 = vsub.f32 %v5659_v49, %v2348_v60 }
 0x18c   : > { %v2235_v11 = vadd.f32 %v2234_v3, %v2221_v62 }
 0x18d   : > { %v2354_v22 = vsub.f32 %v2350_v9, %v2352_v10 }
 0x18f   : > { %v2356_v12 = vmax.f32 %v2354_v22, 0.0 }
 0x191   : > { %v2360_v18 = vadd.f32 1e-05, %v2356_v12 }
 0x192   : > { %v2247_v14 = vpop.f32.mrf.mxu2  ;;  %v2223_v17 = vpop.f32.mrf.mxu0 }
 0x193   : > { %v2248_v16 = vadd.f32 %v2247_v14, %v2235_v11  ;;  %v2260_v6 = vpop.f32.mrf.mxu3  ;;  %v2236_v0 = vpop.f32.mrf.mxu1  ;;  %3940 = vrsqrt.f32 %v2360_v18  ;;  %vm2368_vm8 = vweird.f32 %v2360_v18 }
 0x195   : > { %v2261_v19 = vadd.f32 %v2260_v6, %v2248_v16 }
 0x197   : > { %v2265_v20 = vadd.f32 %v2261_v19, %v1754_v5 }
 0x199   : > { %v2273_v21 = vadd.f32 %v2269_v13, %v2265_v20  ;;  %v3941_v24 = vpop.eup %3940 }
 0x19a   : > { %v2249_v23 = vpop.f32.mrf.mxu2  ;;  %v2363_v26 = vmul.f32 %v3941_v24, %v2360_v18  ;;  %vm2369_vm7 = vweird.f32 %v3941_v24 }
 0x19b   : > { %v2314_v7 = vsel %vm5655_vm5, %v2273_v21, 0.0  ;;  %v2331_v1 = vmul.f32 %v2273_v21, %v2273_v21  ;;  %v2262_v25 = vpop.f32.mrf.mxu3  ;;  %vm2370_vm9 = vmor %vm2368_vm8, %vm2369_vm7 }
 0x19c   : > { %v2323_v27 = vsel %vm2315_vm6, %v2314_v7, 0.0  ;;  %v2364_v63 = vmul.f32 %v3941_v24, %v2363_v26 }
 0x19d   : > { %v2324_v28 = vrot.slane %v2323_v27, 4  ;;  %v2333_v29 = vsel %vm5655_vm5, %v2331_v1, 0.0 }
 0x19e   : > { %v2341_v31 = vsel %vm2315_vm6, %v2333_v29, 0.0  ;;  %v2365_v36 = vmul.f32 0.5, %v2364_v63 }
 0x19f   : > { %v2325_v32 = vadd.f32 %v2324_v28, %v2323_v27  ;;  %v2342_v35 = vrot.slane %v2341_v31, 4 }
 0x1a0   : > { %v2366_v38 = vsub.f32 1.5, %v2365_v36 }
 0x1a1   : > { %v2326_v37 = vrot.slane %v2325_v32, 2  ;;  %v2343_v15 = vadd.f32 %v2342_v35, %v2341_v31 }
 0x1a2   : > { %v2367_v43 = vmul.f32 %v3941_v24, %v2366_v38 }
 0x1a3   : > { %v2327_v39 = vadd.f32 %v2326_v37, %v2325_v32  ;;  %v2344_v42 = vrot.slane %v2343_v15, 2 }
 0x1a4   : > { %v2371_v52 = vsel %vm2370_vm9, %v3941_v24, %v2367_v43 }
 0x1a5   : > { %v2328_v45 = vrot.slane %v2327_v39, 1  ;;  %v2345_v41 = vadd.f32 %v2344_v42, %v2343_v15  ;;  %v2382_v61 = vmul.f32 %v2371_v52, %v2358_v44 }
 0x1a7   : > { %v2329_v2 = vadd.f32 %v2328_v45, %v2327_v39  ;;  %v2346_v50 = vrot.slane %v2345_v41, 1  ;;  %vm2384_vm10 = vcmp.ge.f32.partialorder %v2382_v61, 0.0  ;;  %v2386_v40 = vmul.f32 0.2, %v2382_v61 }
 0x1a9   : > { %v2347_v33 = vadd.f32 %v2346_v50, %v2345_v41  ;;  %v2349_v51 = vmul.f32 0.25, %v2329_v2  ;;  %v2388_v47 = vsel %vm2384_vm10, %v2382_v61, %v2386_v40 }
 0x1aa   : > { %2390 = vst [vmem:[%s170_s24] sm:$0x3f] %v2388_v47 }
 0x1ab   : > { %v2351_v59 = vmul.f32 0.25, %v2347_v33  ;;  %v2353_v54 = vmul.f32 %v2349_v51, %v2349_v51  ;;  %v2359_v58 = vsub.f32 %v2273_v21, %v2349_v51 }
 0x1ad   : > { %v2355_v49 = vsub.f32 %v2351_v59, %v2353_v54 }
 0x1af   : > { %v2357_v55 = vmax.f32 %v2355_v49, 0.0 }
 0x1b1   : > { %v2361_v34 = vadd.f32 1e-05, %v2357_v55 }
 0x1b3   : > { %3942 = vrsqrt.f32 %v2361_v34  ;;  %vm2378_vm12 = vweird.f32 %v2361_v34 }
 0x1b9   : > { %v3943_v30 = vpop.eup %3942 }
 0x1ba   : > { %v2373_v46 = vmul.f32 %v3943_v30, %v2361_v34  ;;  %vm2379_vm11 = vweird.f32 %v3943_v30 }
 0x1bb   : > { %vm2380_vm13 = vmor %vm2378_vm12, %vm2379_vm11 }
 0x1bc   : > { %v2374_v48 = vmul.f32 %v3943_v30, %v2373_v46 }
 0x1be   : > { %v2375_v56 = vmul.f32 0.5, %v2374_v48 }
 0x1c0   : > { %v2376_v57 = vsub.f32 1.5, %v2375_v56 }
 0x1c2   : > { %v2377_v53 = vmul.f32 %v3943_v30, %v2376_v57 }
 0x1c4   : > { %v2381_v60 = vsel %vm2380_vm13, %v3943_v30, %v2377_v53 }
 0x1c5   : > { %v2383_v62 = vmul.f32 %v2381_v60, %v2359_v58 }
 0x1c7   : > { %vm2385_vm14 = vcmp.ge.f32.partialorder %v2383_v62, 0.0  ;;  %v2387_v3 = vmul.f32 0.2, %v2383_v62 }
 0x1c9   : > { %v2389_v8 = vsel %vm2385_vm14, %v2383_v62, %v2387_v3 }
 0x1ca   : > { %2391 = vst [vmem:[%s170_s24 + $0x8] sm:$0x3f] %v2389_v8 }
 0x1cb PF: > { %s13_s12 = sadd.s32 1, %s3950_s12  }
 0x1cc   : > { %p10_p4 = scmp.ge.s32.totalorder %s13_s12, 4  }
 0x1ce   :  { %12 = sbr.rel (!%p10_p4) target bundleno = 1 (0x1), region = 65 }

// kernel: discriminator_forward.9
= control target key start
LH: loop header
LB: loop body
LE: loop exit
PB: predicated region body
PF: predicated region fallthrough
CT: control target
= control target key end

     0   :  { %s4891_s12 = smov 0   ;;  %s5788_s0 = inlined_call_operand.vmem [shape: bf16[2,33,256], index: 0, kind: input, shape index: {}]   ;;  %s5789_s1 = inlined_call_operand.vmem [shape: bf16[16,256,8], index: 1, kind: input, shape index: {}]   ;;  %s5790_s2 = inlined_call_operand.vmem [shape: f32[1,8], index: 2, kind: input, shape index: {}]   ;;  %s5791_s3 = inlined_call_operand.vmem [shape: f32[2,10,8], index: 3, kind: output, shape index: {}]  }
   0x1 LB: > { %s3082_s13 = sadd.s32 4294967295, %s4869_s12   ;;  %p3086_p0 = scmp.ge.s32.totalorder %s4869_s12, 1  ;;  %s4869_s12 = sphi %s4891_s12, %s13_s12  }
   0x2   : > { %p137_p1 = scmp.lt.s32.totalorder %s4869_s12, 3 }
   0x4   : > { %p138_p2 = pnand %p3086_p0, %p137_p1 }
   0x5   : > { %p161_p3 = scmp.lt.s32.totalorder (!%p138_p2), %s3082_s13, 1 }
   0x6   : > { %141 = sbr.rel (%p138_p2) target bundleno = 417 (0x1a1), region = 32 }
   0xb   : > { %v4620_v0 = vld [vmem:[%s5789_s1 + $0xb8] sm:$0xff]  ;;  %v4619_v4 = vld [vmem:[%s5789_s1 + $0xb0] sm:$0xff]  ;;  %s5793_s13 = smov (!%p161_p3, %s3082_s13), 1  ;;  %v4618_v8 = vld [vmem:[%s5789_s1 + $0xa8] sm:$0xff]  ;;  %vm1275_vm0 = vsmask.f32 4352 }
   0xc   : > { %v4628_v1 = vld [vmem:[%s5789_s1 + $0xf8] sm:$0xff]  ;;  %359 = vmatpush.bf16.msra.mxu0 %v4620_v0  ;;  %v4627_v5 = vld [vmem:[%s5789_s1 + $0xf0] sm:$0xff]  ;;  %v4626_v9 = vld [vmem:[%s5789_s1 + $0xe8] sm:$0xff]  ;;  %s4853_s11 = smul.u32 40, %s5793_s13  ;;  %s4596_s23 = sshll.u32 %s5793_s13, 4  ;;  %vm3023_vm1 = vcmask 64512  }
   0xd   : > { %v4604_v2 = vld [vmem:[%s5789_s1 + $0x38] sm:$0xff]  ;;  %373 = vmatpush.bf16.msra.mxu1 %v4628_v1  ;;  %v4603_v6 = vld [vmem:[%s5789_s1 + $0x30] sm:$0xff]  ;;  %v4602_v10 = vld [vmem:[%s5789_s1 + $0x28] sm:$0xff]  ;;  %s170_s29 = scalar_lea.vmem %s5791_s3, %s4596_s23  ;;  %vm3025_vm2 = vcmask 58368  }
   0xe   : > { %v4612_v3 = vld [vmem:[%s5789_s1 + $0x78] sm:$0xff]  ;;  %490 = vmatpush.bf16.msra.mxu2 %v4604_v2  ;;  %v4611_v7 = vld [vmem:[%s5789_s1 + $0x70] sm:$0xff]  ;;  %v4610_v11 = vld [vmem:[%s5789_s1 + $0x68] sm:$0xff]  ;;  %s4953_s24 = scalar_lea.vmem %s5788_s0, %s4853_s11 }
   0xf   : > { %504 = vmatpush.bf16.msra.mxu3 %v4612_v3  ;;  %v4617_v12 = vld [vmem:[%s5789_s1 + $0xa0] sm:$0xff]  ;;  %v4616_v16 = vld [vmem:[%s5789_s1 + $0x98] sm:$0xff]  ;;  %v4969_v21 = vld [vmem:[%s4953_s24 + $0x8] sm:$0x33] }
  0x10   : > { %360 = vmatpush.bf16.msra.mxu0 %v4619_v4  ;;  %v4625_v13 = vld [vmem:[%s5789_s1 + $0xe0] sm:$0xff]  ;;  %v4624_v17 = vld [vmem:[%s5789_s1 + $0xd8] sm:$0xff]  ;;  %v243_v23 = vunpack.c.l.b16 %v4969_v21  ;;  %v244_v25 = vunpack.c.h.b16 %v4969_v21  ;;  %v4615_v26 = vld [vmem:[%s5789_s1 + $0x90] sm:$0xff] }
  0x11   : > { %374 = vmatpush.bf16.msra.mxu1 %v4627_v5  ;;  %v4601_v14 = vld [vmem:[%s5789_s1 + $0x20] sm:$0xff]  ;;  %v4600_v18 = vld [vmem:[%s5789_s1 + $0x18] sm:$0xff]  ;;  %v4623_v27 = vld [vmem:[%s5789_s1 + $0xd0] sm:$0xff] }
  0x12   : > { %491 = vmatpush.bf16.msra.mxu2 %v4603_v6  ;;  %v4609_v15 = vld [vmem:[%s5789_s1 + $0x60] sm:$0xff]  ;;  %v4608_v19 = vld [vmem:[%s5789_s1 + $0x58] sm:$0xff]  ;;  %v4599_v28 = vld [vmem:[%s5789_s1 + $0x10] sm:$0xff] }
  0x13   : > { %505 = vmatpush.bf16.msra.mxu3 %v4611_v7  ;;  %v171_v20 = vld [vmem:[%s4953_s24] sm:$0xff]  ;;  %v4607_v29 = vld [vmem:[%s5789_s1 + $0x50] sm:$0xff]  ;;  %v4614_v32 = vld [vmem:[%s5789_s1 + $0x88] sm:$0xff] }
  0x14   : > { %361 = vmatpush.bf16.msra.mxu0 %v4618_v8  ;;  %v241_v22 = vunpack.c.l.b16 %v171_v20  ;;  %v242_v24 = vunpack.c.h.b16 %v171_v20  ;;  %v4622_v33 = vld [vmem:[%s5789_s1 + $0xc8] sm:$0xff]  ;;  %v4613_v39 = vld [vmem:[%s5789_s1 + $0x80] sm:$0xff]  ;;  %v4636_v49 = vld [vmem:[%s5789_s1 + $0x138] sm:$0xff] }
  0x15   : > { %375 = vmatpush.bf16.msra.mxu1 %v4626_v9  ;;  %v4598_v36 = vld [vmem:[%s5789_s1 + $0x8] sm:$0xff]  ;;  %v4621_v40 = vld [vmem:[%s5789_s1 + $0xc0] sm:$0xff]  ;;  %v4644_v50 = vld [vmem:[%s5789_s1 + $0x178] sm:$0xff] }
  0x16   : > { %492 = vmatpush.bf16.msra.mxu2 %v4602_v10  ;;  %v245_v30 = vpack.c.b16 %v243_v23, %v241_v22  ;;  %v246_v31 = vpack.c.b16 %v244_v25, %v242_v24  ;;  %v4606_v37 = vld [vmem:[%s5789_s1 + $0x48] sm:$0xff]  ;;  %v4597_v45 = vld [vmem:[%s5789_s1] sm:$0xff]  ;;  %v4652_v51 = vld [vmem:[%s5789_s1 + $0x1b8] sm:$0xff] }
  0x17   : > { %506 = vmatpush.bf16.msra.mxu3 %v4610_v11  ;;  %v172_v38 = vld [vmem:[%s4953_s24 + $0x8] sm:$0x11]  ;;  %v4605_v46 = vld [vmem:[%s5789_s1 + $0x40] sm:$0xff]  ;;  %v4660_v52 = vld [vmem:[%s5789_s1 + $0x1f8] sm:$0xff] }
  0x18   : > { %362 = vmatpush.bf16.msra.mxu0 %v4617_v12  ;;  %v250_v34 = vshll.u32 %v245_v30, 16  ;;  %v257_v35 = vshll.u32 %v246_v31, 16  ;;  %v248_v41 = vshrl.u32 %v245_v30, 16  ;;  %v255_v43 = vshrl.u32 %v246_v31, 16  ;;  %v4635_v57 = vld [vmem:[%s5789_s1 + $0x130] sm:$0xff]  ;;  %v4634_v61 = vld [vmem:[%s5789_s1 + $0x128] sm:$0xff] }
  0x19   : > { %376 = vmatpush.bf16.msra.mxu1 %v4625_v13  ;;  %v388_v47 = vunpack.c.l.b16 %v172_v38  ;;  %v389_v48 = vunpack.c.h.b16 %v172_v38  ;;  %v4643_v58 = vld [vmem:[%s5789_s1 + $0x170] sm:$0xff]  ;;  %v4642_v62 = vld [vmem:[%s5789_s1 + $0x168] sm:$0xff]  ;;  %v4633_v1 = vld [vmem:[%s5789_s1 + $0x120] sm:$0xff] }
  0x1a   : > { %493 = vmatpush.bf16.msra.mxu2 %v4601_v14  ;;  %v252_v42 = vrot.slane %v250_v34, 1  ;;  %v259_v44 = vrot.slane %v257_v35, 1  ;;  %v4651_v59 = vld [vmem:[%s5789_s1 + $0x1b0] sm:$0xff]  ;;  %v4650_v63 = vld [vmem:[%s5789_s1 + $0x1a8] sm:$0xff]  ;;  %v4641_v2 = vld [vmem:[%s5789_s1 + $0x160] sm:$0xff] }
  0x1b   : > { %507 = vmatpush.bf16.msra.mxu3 %v4609_v15  ;;  %v390_v55 = vpack.c.b16 %v388_v47, %v241_v22  ;;  %v391_v56 = vpack.c.b16 %v389_v48, %v242_v24  ;;  %v4659_v60 = vld [vmem:[%s5789_s1 + $0x1f0] sm:$0xff]  ;;  %v4658_v0 = vld [vmem:[%s5789_s1 + $0x1e8] sm:$0xff]  ;;  %v4649_v3 = vld [vmem:[%s5789_s1 + $0x1a0] sm:$0xff] }
  0x1c   : > { %363 = vmatpush.bf16.msra.mxu0 %v4616_v16  ;;  %v253_v53 = vor.u32 %v252_v42, %v248_v41  ;;  %v260_v54 = vor.u32 %v259_v44, %v255_v43  ;;  %v4657_v4 = vld [vmem:[%s5789_s1 + $0x1e0] sm:$0xff]  ;;  %v687_v6 = vld [vmem:[%s4953_s24 + $0x8] sm:$0x77]  ;;  %v4632_v7 = vld [vmem:[%s5789_s1 + $0x118] sm:$0xff] }
  0x1d   : > { %377 = vmatpush.bf16.msra.mxu1 %v4624_v17  ;;  %v518_v5 = vld [vmem:[%s4953_s24] sm:$0xee]  ;;  %v4640_v8 = vld [vmem:[%s5789_s1 + $0x158] sm:$0xff]  ;;  %v722_v13 = vunpack.c.l.b16 %v687_v6  ;;  %v723_v14 = vunpack.c.h.b16 %v687_v6  ;;  %v4631_v15 = vld [vmem:[%s5789_s1 + $0x110] sm:$0xff] }
  0x1e   : > { %494 = vmatpush.bf16.msra.mxu2 %v4600_v18  ;;  %v4648_v9 = vld [vmem:[%s5789_s1 + $0x198] sm:$0xff]  ;;  %v553_v11 = vunpack.c.l.b16 %v518_v5  ;;  %v554_v12 = vunpack.c.h.b16 %v518_v5  ;;  %v4639_v16 = vld [vmem:[%s5789_s1 + $0x150] sm:$0xff]  ;;  %v4630_v22 = vld [vmem:[%s5789_s1 + $0x108] sm:$0xff] }
  0x1f   : > { %508 = vmatpush.bf16.msra.mxu3 %v4608_v19  ;;  %v4656_v10 = vld [vmem:[%s5789_s1 + $0x1d8] sm:$0xff]  ;;  %v4647_v17 = vld [vmem:[%s5789_s1 + $0x190] sm:$0xff]  ;;  %v4638_v24 = vld [vmem:[%s5789_s1 + $0x148] sm:$0xff] }
  0x20   : > { %364 = vmatpush.bf16.msra.mxu0 %v4615_v26  ;;  %v4655_v18 = vld [vmem:[%s5789_s1 + $0x1d0] sm:$0xff]  ;;  %v724_v19 = vpack.c.b16 %v722_v13, %v553_v11  ;;  %v725_v20 = vpack.c.b16 %v723_v14, %v554_v12  ;;  %v4646_v26 = vld [vmem:[%s5789_s1 + $0x188] sm:$0xff]  ;;  %v555_v34 = vpack.c.b16 %v243_v23, %v553_v11  ;;  %v556_v35 = vpack.c.b16 %v244_v25, %v554_v12  ;;  %v4668_v23 = vld [vmem:[%s5789_s1 + $0x238] sm:$0xff] }
  0x21   : > { %378 = vmatpush.bf16.msra.mxu1 %v4623_v27  ;;  %v4654_v27 = vld [vmem:[%s5789_s1 + $0x1c8] sm:$0xff]  ;;  %v4676_v21 = vld [vmem:[%s5789_s1 + $0x278] sm:$0xff]  ;;  %v4667_v47 = vld [vmem:[%s5789_s1 + $0x230] sm:$0xff] }
  0x22   : > { %495 = vmatpush.bf16.msra.mxu2 %v4599_v28  ;;  %v727_v28 = vshrl.u32 %v724_v19, 16  ;;  %v735_v30 = vshrl.u32 %v725_v20, 16  ;;  %v738_v31 = vshll.u32 %v725_v20, 16  ;;  %v4684_v25 = vld [vmem:[%s5789_s1 + $0x2b8] sm:$0xff]  ;;  %v557_v43 = vrot.slane %v555_v34, 1  ;;  %v4675_v48 = vld [vmem:[%s5789_s1 + $0x270] sm:$0xff] }
  0x23   : > { %509 = vmatpush.bf16.msra.mxu3 %v4607_v29  ;;  %v730_v29 = vshll.u32 %v724_v19, 16  ;;  %v4692_v42 = vld [vmem:[%s5789_s1 + $0x2f8] sm:$0xff]  ;;  %v558_v44 = vrot.slane %v556_v35, 1  ;;  %v4663_v5 = vld [vmem:[%s5789_s1 + $0x210] sm:$0xff]  ;;  %v1057_v11 = vld [vmem:[%s4953_s24] sm:$0x88] }
  0x24   : > { %365 = vmatpush.bf16.msra.mxu0 %v4614_v32  ;;  %v4629_v32 = vld [vmem:[%s5789_s1 + $0x100] sm:$0xff]  ;;  %v729_v38 = vrot.slane %v727_v28, 1  ;;  %v740_v41 = vrot.slane %v738_v31, 2  ;;  %v4671_v6 = vld [vmem:[%s5789_s1 + $0x250] sm:$0xff]  ;;  %v4662_v12 = vld [vmem:[%s5789_s1 + $0x208] sm:$0xff]  ;;  %v1092_v20 = vunpack.c.l.b16 %v1057_v11 }
  0x25   : > { %379 = vmatpush.bf16.msra.mxu1 %v4622_v33  ;;  %v4637_v33 = vld [vmem:[%s5789_s1 + $0x140] sm:$0xff]  ;;  %v4670_v13 = vld [vmem:[%s5789_s1 + $0x248] sm:$0xff]  ;;  %v4700_v35 = vld [vmem:[%s5789_s1 + $0x338] sm:$0xff] }
  0x26   : > { %496 = vmatpush.bf16.msra.mxu2 %v4598_v36  ;;  %v4645_v36 = vld [vmem:[%s5789_s1 + $0x180] sm:$0xff]  ;;  %v4686_v19 = vld [vmem:[%s5789_s1 + $0x2c8] sm:$0xff] }
  0x27   : > { %510 = vmatpush.bf16.msra.mxu3 %v4606_v37  ;;  %v4653_v37 = vld [vmem:[%s5789_s1 + $0x1c0] sm:$0xff] }
  0x28   : > { %366 = vmatpush.bf16.msra.mxu0 %v4613_v39  ;;  %v732_v39 = vrot.slane %v730_v29, 2  ;;  %v4677_v31 = vld [vmem:[%s5789_s1 + $0x280] sm:$0xff] }
  0x29   : > { %380 = vmatpush.bf16.msra.mxu1 %v4621_v40  ;;  %v737_v40 = vrot.slane %v735_v30, 1 }
  0x2a   : > { %497 = vmatpush.bf16.msra.mxu2 %v4597_v45  ;;  %v733_v45 = vor.u32 %v732_v39, %v729_v38  ;;  %v4724_v38 = vld [vmem:[%s5789_s1 + $0x3f8] sm:$0xff] }
  0x2b   : > { %511 = vmatpush.bf16.msra.mxu3 %v4605_v46  ;;  %367 = vmatmul.bf16.vlgmr.msra.gmra.mxu0 %v253_v53  ;;  %v741_v46 = vor.u32 %v740_v41, %v737_v40  ;;  %v4682_v53 = vld [vmem:[%s5789_s1 + $0x2a8] sm:$0xff] }
  0x2c   : > { %657 = vmatpush.bf16.msrb.mxu0 %v4636_v49  ;;  %381 = vmatmul.bf16.vlgmr.msra.gmra.mxu1 %v260_v54  ;;  %v4683_v49 = vld [vmem:[%s5789_s1 + $0x2b0] sm:$0xff]  ;;  %v4690_v54 = vld [vmem:[%s5789_s1 + $0x2e8] sm:$0xff] }
  0x2d   : > { %671 = vmatpush.bf16.msrb.mxu1 %v4644_v50  ;;  %498 = vmatmul.bf16.vlgmr.msra.gmra.mxu2 %v390_v55  ;;  %v4691_v50 = vld [vmem:[%s5789_s1 + $0x2f0] sm:$0xff]  ;;  %v4665_v55 = vld [vmem:[%s5789_s1 + $0x220] sm:$0xff] }
  0x2e   : > { %840 = vmatpush.bf16.msrb.mxu2 %v4652_v51  ;;  %512 = vmatmul.bf16.vlgmr.msra.gmra.mxu3 %v391_v56  ;;  %v4666_v51 = vld [vmem:[%s5789_s1 + $0x228] sm:$0xff]  ;;  %v4673_v56 = vld [vmem:[%s5789_s1 + $0x260] sm:$0xff] }
  0x2f   : > { %854 = vmatpush.bf16.msrb.mxu3 %v4660_v52  ;;  %v4674_v52 = vld [vmem:[%s5789_s1 + $0x268] sm:$0xff] }
  0x30   : > { %658 = vmatpush.bf16.msrb.mxu0 %v4635_v57  ;;  %v4681_v57 = vld [vmem:[%s5789_s1 + $0x2a0] sm:$0xff] }
  0x31   : > { %672 = vmatpush.bf16.msrb.mxu1 %v4643_v58  ;;  %v4689_v58 = vld [vmem:[%s5789_s1 + $0x2e0] sm:$0xff] }
  0x32   : > { %841 = vmatpush.bf16.msrb.mxu2 %v4651_v59  ;;  %v870_v59 = vld [vmem:[%s4953_s24] sm:$0xcc] }
  0x33   : > { %855 = vmatpush.bf16.msrb.mxu3 %v4659_v60  ;;  %v871_v60 = vld [vmem:[%s4953_s24 + $0x8] sm:$0xff] }
  0x34   : > { %659 = vmatpush.bf16.msrb.mxu0 %v4634_v61  ;;  %v4664_v61 = vld [vmem:[%s5789_s1 + $0x218] sm:$0xff] }
  0x35   : > { %673 = vmatpush.bf16.msrb.mxu1 %v4642_v62  ;;  %v4672_v62 = vld [vmem:[%s5789_s1 + $0x258] sm:$0xff] }
  0x36   : > { %842 = vmatpush.bf16.msrb.mxu2 %v4650_v63  ;;  %v907_v63 = vunpack.c.l.b16 %v870_v59 }
  0x37   : > { %856 = vmatpush.bf16.msrb.mxu3 %v4658_v0  ;;  %v5172_v0 = vunpack.c.l.b16 %v871_v60 }
  0x38   : > { %660 = vmatpush.bf16.msrb.mxu0 %v4633_v1  ;;  %v908_v1 = vunpack.c.h.b16 %v870_v59  ;;  %v4712_v59 = vld [vmem:[%s5789_s1 + $0x398] sm:$0xff] }
  0x39   : > { %674 = vmatpush.bf16.msrb.mxu1 %v4641_v2  ;;  %v5174_v2 = vunpack.c.h.b16 %v871_v60  ;;  %v4720_v60 = vld [vmem:[%s5789_s1 + $0x3d8] sm:$0xff] }
  0x3a   : > { %843 = vmatpush.bf16.msrb.mxu2 %v4649_v3  ;;  %v4680_v3 = vld [vmem:[%s5789_s1 + $0x298] sm:$0xff] }
  0x3b   : > { %857 = vmatpush.bf16.msrb.mxu3 %v4657_v4  ;;  %v4688_v4 = vld [vmem:[%s5789_s1 + $0x2d8] sm:$0xff] }
  0x3c   : > { %661 = vmatpush.bf16.msrb.mxu0 %v4632_v7  ;;  %v911_v7 = vpack.c.b16 %v5172_v0, %v907_v63 }
  0x3d   : > { %675 = vmatpush.bf16.msrb.mxu1 %v4640_v8  ;;  %v912_v8 = vpack.c.b16 %v5174_v2, %v908_v1  ;;  %v4695_v1 = vld [vmem:[%s5789_s1 + $0x310] sm:$0xff] }
  0x3e   : > { %844 = vmatpush.bf16.msrb.mxu2 %v4648_v9  ;;  %v4679_v9 = vld [vmem:[%s5789_s1 + $0x290] sm:$0xff]  ;;  %v914_v14 = vshrl.u32 %v911_v7, 16 }
  0x3f   : > { %858 = vmatpush.bf16.msrb.mxu3 %v4656_v10  ;;  %v4687_v10 = vld [vmem:[%s5789_s1 + $0x2d0] sm:$0xff] }
  0x40   : > { %662 = vmatpush.bf16.msrb.mxu0 %v4631_v15  ;;  %v917_v15 = vshll.u32 %v911_v7, 16  ;;  %v4719_v7 = vld [vmem:[%s5789_s1 + $0x3d0] sm:$0xff] }
  0x41   : > { %676 = vmatpush.bf16.msrb.mxu1 %v4639_v16  ;;  %v922_v16 = vshrl.u32 %v912_v8, 16 }
  0x42   : > { %845 = vmatpush.bf16.msrb.mxu2 %v4647_v17  ;;  %v925_v17 = vshll.u32 %v912_v8, 16  ;;  %v919_v28 = vrot.slane %v917_v15, 3 }
  0x43   : > { %859 = vmatpush.bf16.msrb.mxu3 %v4655_v18  ;;  %v4678_v18 = vld [vmem:[%s5789_s1 + $0x288] sm:$0xff]  ;;  %v924_v29 = vrot.slane %v922_v16, 2 }
  0x44   : > { %663 = vmatpush.bf16.msrb.mxu0 %v4630_v22  ;;  %v1093_v22 = vunpack.c.h.b16 %v1057_v11  ;;  %v927_v30 = vrot.slane %v925_v17, 3  ;;  %v4710_v16 = vld [vmem:[%s5789_s1 + $0x388] sm:$0xff] }
  0x45   : > { %677 = vmatpush.bf16.msrb.mxu1 %v4638_v24  ;;  %v4661_v24 = vld [vmem:[%s5789_s1 + $0x200] sm:$0xff]  ;;  %v4718_v17 = vld [vmem:[%s5789_s1 + $0x3c8] sm:$0xff] }
  0x46   : > { %846 = vmatpush.bf16.msrb.mxu2 %v4646_v26  ;;  %v4669_v26 = vld [vmem:[%s5789_s1 + $0x240] sm:$0xff]  ;;  %v1095_v34 = vpack.c.b16 %v5174_v2, %v1093_v22  ;;  %v928_v40 = vor.u32 %v927_v30, %v924_v29 }
  0x47   : > { %860 = vmatpush.bf16.msrb.mxu3 %v4654_v27  ;;  %v916_v27 = vrot.slane %v914_v14, 2 }
  0x48   : > { %664 = vmatpush.bf16.msrb.mxu0 %v4629_v32  ;;  %v4685_v32 = vld [vmem:[%s5789_s1 + $0x2c0] sm:$0xff] }
  0x49   : > { %678 = vmatpush.bf16.msrb.mxu1 %v4637_v33  ;;  %v1094_v33 = vpack.c.b16 %v5172_v0, %v1092_v20  ;;  %v920_v39 = vor.u32 %v919_v28, %v916_v27  ;;  %v4709_v27 = vld [vmem:[%s5789_s1 + $0x380] sm:$0xff] }
  0x4a   : > { %847 = vmatpush.bf16.msrb.mxu2 %v4645_v36  ;;  %v4708_v36 = vld [vmem:[%s5789_s1 + $0x378] sm:$0xff]  ;;  %v4717_v28 = vld [vmem:[%s5789_s1 + $0x3c0] sm:$0xff] }
  0x4b   : > { %861 = vmatpush.bf16.msrb.mxu3 %v4653_v37  ;;  %665 = vmatmul.bf16.vlgmr.msrb.gmra.mxu0 %v557_v43  ;;  %v4716_v37 = vld [vmem:[%s5789_s1 + $0x3b8] sm:$0xff]  ;;  %v1096_v41 = vrot.slane %v1094_v33, 3  ;;  %v4723_v43 = vld [vmem:[%s5789_s1 + $0x3f0] sm:$0xff] }
  0x4c   : > { %1027 = vmatpush.bf16.msra.mxu0 %v4668_v23  ;;  %679 = vmatmul.bf16.vlgmr.msrb.gmra.mxu1 %v558_v44  ;;  %v1097_v23 = vrot.slane %v1095_v34, 3  ;;  %v4698_v44 = vld [vmem:[%s5789_s1 + $0x328] sm:$0xff]  ;;  %v4732_v33 = vld [vmem:[%s5789_s1 + $0x438] sm:$0xff] }
  0x4d   : > { %1041 = vmatpush.bf16.msra.mxu1 %v4676_v21  ;;  %848 = vmatmul.bf16.vlgmr.msrb.gmra.mxu2 %v733_v45  ;;  %v4699_v21 = vld [vmem:[%s5789_s1 + $0x330] sm:$0xff]  ;;  %v4706_v45 = vld [vmem:[%s5789_s1 + $0x368] sm:$0xff]  ;;  %v4740_v34 = vld [vmem:[%s5789_s1 + $0x478] sm:$0xff] }
  0x4e   : > { %1196 = vmatpush.bf16.msra.mxu2 %v4684_v25  ;;  %862 = vmatmul.bf16.vlgmr.msrb.gmra.mxu3 %v741_v46  ;;  %v4707_v25 = vld [vmem:[%s5789_s1 + $0x370] sm:$0xff]  ;;  %v4714_v46 = vld [vmem:[%s5789_s1 + $0x3a8] sm:$0xff] }
  0x4f   : > { %1210 = vmatpush.bf16.msra.mxu3 %v4692_v42  ;;  %v4715_v42 = vld [vmem:[%s5789_s1 + $0x3b0] sm:$0xff] }
  0x50   : > { %1028 = vmatpush.bf16.msra.mxu0 %v4667_v47  ;;  %v4722_v47 = vld [vmem:[%s5789_s1 + $0x3e8] sm:$0xff] }
  0x51   : > { %1042 = vmatpush.bf16.msra.mxu1 %v4675_v48  ;;  %v1226_v48 = vld [vmem:[%s4953_s24] sm:$0x88] }
  0x52   : > { %1197 = vmatpush.bf16.msra.mxu2 %v4683_v49  ;;  %v4697_v49 = vld [vmem:[%s5789_s1 + $0x320] sm:$0xff] }
  0x53   : > { %1211 = vmatpush.bf16.msra.mxu3 %v4691_v50  ;;  %v4705_v50 = vld [vmem:[%s5789_s1 + $0x360] sm:$0xff] }
  0x54   : > { %1029 = vmatpush.bf16.msra.mxu0 %v4666_v51  ;;  %v1265_v51 = vunpack.c.l.b16 %v1226_v48 }
  0x55   : > { %1043 = vmatpush.bf16.msra.mxu1 %v4674_v52  ;;  %v4713_v52 = vld [vmem:[%s5789_s1 + $0x3a0] sm:$0xff] }
  0x56   : > { %1198 = vmatpush.bf16.msra.mxu2 %v4682_v53  ;;  %v4721_v53 = vld [vmem:[%s5789_s1 + $0x3e0] sm:$0xff] }
  0x57   : > { %1212 = vmatpush.bf16.msra.mxu3 %v4690_v54  ;;  %v1266_v54 = vunpack.c.h.b16 %v1226_v48  ;;  %v1593_v48 = vld [vmem:[%s4953_s24 + $0x8] sm:$0xee] }
  0x58   : > { %1030 = vmatpush.bf16.msra.mxu0 %v4665_v55  ;;  %v1228_v55 = vld [vmem:[%s4953_s24 + $0x10] sm:$0x11] }
  0x59   : > { %1044 = vmatpush.bf16.msra.mxu1 %v4673_v56  ;;  %v4696_v56 = vld [vmem:[%s5789_s1 + $0x318] sm:$0xff]  ;;  %v1272_v63 = vpack.c.b16 %v5174_v2, %v1266_v54  ;;  %v1630_v54 = vunpack.c.l.b16 %v1593_v48 }
  0x5a   : > { %1199 = vmatpush.bf16.msra.mxu2 %v4681_v57  ;;  %v4704_v57 = vld [vmem:[%s5789_s1 + $0x358] sm:$0xff] }
  0x5b   : > { %1213 = vmatpush.bf16.msra.mxu3 %v4689_v58  ;;  %v1271_v58 = vpack.c.b16 %v5172_v0, %v1265_v51  ;;  %v1293_v11 = vshll.u32 %v1272_v63, 16  ;;  %v4736_v51 = vld [vmem:[%s5789_s1 + $0x458] sm:$0xff] }
  0x5c   : > { %1031 = vmatpush.bf16.msra.mxu0 %v4664_v61  ;;  %v5286_v61 = vunpack.c.l.b16 %v1228_v55 }
  0x5d   : > { %1045 = vmatpush.bf16.msra.mxu1 %v4672_v62  ;;  %v5288_v62 = vunpack.c.h.b16 %v1228_v55  ;;  %v1295_v20 = vrot.slane %v1293_v11, 4  ;;  %v1631_v55 = vunpack.c.h.b16 %v1593_v48 }
  0x5e   : > { %1200 = vmatpush.bf16.msra.mxu2 %v4680_v3  ;;  %v4703_v3 = vld [vmem:[%s5789_s1 + $0x350] sm:$0xff]  ;;  %v1273_v8 = vpack.c.b16 %v5286_v61, %v5286_v61 }
  0x5f   : > { %1214 = vmatpush.bf16.msra.mxu3 %v4688_v4  ;;  %v1277_v4 = vshrl.u32 %v1271_v58, 16 }
  0x60   : > { %1032 = vmatpush.bf16.msra.mxu0 %v4663_v5  ;;  %v1280_v5 = vshll.u32 %v1271_v58, 16  ;;  %v4727_v58 = vld [vmem:[%s5789_s1 + $0x410] sm:$0xff] }
  0x61   : > { %1046 = vmatpush.bf16.msra.mxu1 %v4671_v6  ;;  %v4711_v6 = vld [vmem:[%s5789_s1 + $0x390] sm:$0xff]  ;;  %v1279_v14 = vrot.slane %v1277_v4, 3  ;;  %v4734_v4 = vld [vmem:[%s5789_s1 + $0x448] sm:$0xff] }
  0x62   : > { %1201 = vmatpush.bf16.msra.mxu2 %v4679_v9  ;;  %v1274_v9 = vpack.c.b16 %v5288_v62, %v5288_v62  ;;  %v1282_v15 = vrot.slane %v1280_v5, 4 }
  0x63   : > { %1215 = vmatpush.bf16.msra.mxu3 %v4687_v10  ;;  %v1290_v10 = vshrl.u32 %v1272_v63, 16 }
  0x64   : > { %1033 = vmatpush.bf16.msra.mxu0 %v4662_v12  ;;  %v4694_v12 = vld [vmem:[%s5789_s1 + $0x308] sm:$0xff]  ;;  %v1298_v22 = vshll.u32 %v1274_v9, 16  ;;  %v1283_v29 = vor.u32 %v1282_v15, %v1279_v14  ;;  %v4733_v14 = vld [vmem:[%s5789_s1 + $0x440] sm:$0xff] }
  0x65   : > { %1047 = vmatpush.bf16.msra.mxu1 %v4670_v13  ;;  %v4702_v13 = vld [vmem:[%s5789_s1 + $0x348] sm:$0xff] }
  0x66   : > { %1202 = vmatpush.bf16.msra.mxu2 %v4678_v18  ;;  %v1285_v18 = vshll.u32 %v1273_v8, 16  ;;  %v4750_v8 = vld [vmem:[%s5789_s1 + $0x4c8] sm:$0xff] }
  0x67   : > { %1216 = vmatpush.bf16.msra.mxu3 %v4686_v19  ;;  %v1292_v19 = vrot.slane %v1290_v10, 3 }
  0x68   : > { %1034 = vmatpush.bf16.msra.mxu0 %v4661_v24  ;;  %v4693_v24 = vld [vmem:[%s5789_s1 + $0x300] sm:$0xff]  ;;  %v1287_v30 = vrot.slane %v1285_v18, 4 }
  0x69   : > { %1048 = vmatpush.bf16.msra.mxu1 %v4669_v26  ;;  %v4701_v26 = vld [vmem:[%s5789_s1 + $0x340] sm:$0xff] }
  0x6a   : > { %1203 = vmatpush.bf16.msra.mxu2 %v4677_v31  ;;  %v1296_v31 = vor.u32 %v1295_v20, %v1292_v19  ;;  %v4749_v18 = vld [vmem:[%s5789_s1 + $0x4c0] sm:$0xff] }
  0x6b   : > { %1217 = vmatpush.bf16.msra.mxu3 %v4685_v32  ;;  %1035 = vmatmul.bf16.vlgmr.msra.gmra.mxu0 %v920_v39  ;;  %v1300_v32 = vrot.slane %v1298_v22, 4 }
  0x6c   : > { %1400 = vmatpush.bf16.msrb.mxu0 %v4700_v35  ;;  %1049 = vmatmul.bf16.vlgmr.msra.gmra.mxu1 %v928_v40  ;;  %v4748_v35 = vld [vmem:[%s5789_s1 + $0x4b8] sm:$0xff]  ;;  %v1464_v40 = vpack.c.b16 %v5288_v62, %v5174_v2  ;;  %v4755_v2 = vld [vmem:[%s5789_s1 + $0x4f0] sm:$0xff] }
  0x6d   : > { %1414 = vmatpush.bf16.msrb.mxu1 %v4708_v36  ;;  %1204 = vmatmul.bf16.vlgmr.msra.gmra.mxu2 %v1096_v41  ;;  %v4756_v36 = vld [vmem:[%s5789_s1 + $0x4f8] sm:$0xff]  ;;  %v1301_v39 = vsel %vm1275_vm0, %v1296_v31, %v1300_v32  ;;  %v4731_v41 = vld [vmem:[%s5789_s1 + $0x430] sm:$0xff] }
  0x6e   : > { %1563 = vmatpush.bf16.msrb.mxu2 %v4716_v37  ;;  %1218 = vmatmul.bf16.vlgmr.msra.gmra.mxu3 %v1097_v23  ;;  %v1463_v37 = vpack.c.b16 %v5286_v61, %v5172_v0  ;;  %v4739_v23 = vld [vmem:[%s5789_s1 + $0x470] sm:$0xff] }
  0x6f   : > { %1577 = vmatpush.bf16.msrb.mxu3 %v4724_v38  ;;  %v1288_v38 = vsel %vm1275_vm0, %v1283_v29, %v1287_v30  ;;  %v4747_v0 = vld [vmem:[%s5789_s1 + $0x4b0] sm:$0xff]  ;;  %v4788_v29 = vld [vmem:[%s5789_s1 + $0x5f8] sm:$0xff] }
  0x70   : > { %1401 = vmatpush.bf16.msrb.mxu0 %v4699_v21  ;;  %v4730_v21 = vld [vmem:[%s5789_s1 + $0x428] sm:$0xff]  ;;  %v4751_v61 = vld [vmem:[%s5789_s1 + $0x4d0] sm:$0xff] }
  0x71   : > { %1415 = vmatpush.bf16.msrb.mxu1 %v4707_v25  ;;  %v4738_v25 = vld [vmem:[%s5789_s1 + $0x468] sm:$0xff]  ;;  %v1594_v62 = vld [vmem:[%s4953_s24 + $0x10] sm:$0x33] }
  0x72   : > { %1564 = vmatpush.bf16.msrb.mxu2 %v4715_v42  ;;  %v4746_v42 = vld [vmem:[%s5789_s1 + $0x4a8] sm:$0xff]  ;;  %v1632_v5 = vunpack.c.l.b16 %v1594_v62 }
  0x73   : > { %1578 = vmatpush.bf16.msrb.mxu3 %v4723_v43  ;;  %v4754_v43 = vld [vmem:[%s5789_s1 + $0x4e8] sm:$0xff] }
  0x74   : > { %1402 = vmatpush.bf16.msrb.mxu0 %v4698_v44  ;;  %v4729_v44 = vld [vmem:[%s5789_s1 + $0x420] sm:$0xff]  ;;  %v1634_v15 = vpack.c.b16 %v1632_v5, %v1630_v54  ;;  %v4783_v5 = vld [vmem:[%s5789_s1 + $0x5d0] sm:$0xff] }
  0x75   : > { %1416 = vmatpush.bf16.msrb.mxu1 %v4706_v45  ;;  %v4737_v45 = vld [vmem:[%s5789_s1 + $0x460] sm:$0xff] }
  0x76   : > { %1565 = vmatpush.bf16.msrb.mxu2 %v4714_v46  ;;  %v4745_v46 = vld [vmem:[%s5789_s1 + $0x4a0] sm:$0xff]  ;;  %v1636_v30 = vrot.slane %v1634_v15, 1 }
  0x77   : > { %1579 = vmatpush.bf16.msrb.mxu3 %v4722_v47  ;;  %v4753_v47 = vld [vmem:[%s5789_s1 + $0x4e0] sm:$0xff] }
  0x78   : > { %1403 = vmatpush.bf16.msrb.mxu0 %v4697_v49  ;;  %v5387_v49 = vld [vmem:[%s4953_s24 + $0x10] sm:$0x77] }
  0x79   : > { %1417 = vmatpush.bf16.msrb.mxu1 %v4705_v50  ;;  %v4728_v50 = vld [vmem:[%s5789_s1 + $0x418] sm:$0xff] }
  0x7a   : > { %1566 = vmatpush.bf16.msrb.mxu2 %v4713_v52  ;;  %v4744_v52 = vld [vmem:[%s5789_s1 + $0x498] sm:$0xff] }
  0x7b   : > { %1580 = vmatpush.bf16.msrb.mxu3 %v4721_v53  ;;  %v4752_v53 = vld [vmem:[%s5789_s1 + $0x4d8] sm:$0xff] }
  0x7c   : > { %1404 = vmatpush.bf16.msrb.mxu0 %v4696_v56  ;;  %v1801_v56 = vunpack.c.l.b16 %v5387_v49 }
  0x7d   : > { %1418 = vmatpush.bf16.msrb.mxu1 %v4704_v57  ;;  %v1802_v57 = vunpack.c.h.b16 %v5387_v49  ;;  %v4796_v49 = vld [vmem:[%s5789_s1 + $0x638] sm:$0xff] }
  0x7e   : > { %1567 = vmatpush.bf16.msrb.mxu2 %v4712_v59  ;;  %v4735_v59 = vld [vmem:[%s5789_s1 + $0x450] sm:$0xff]  ;;  %v1803_v63 = vpack.c.b16 %v1801_v56, %v1630_v54 }
  0x7f   : > { %1581 = vmatpush.bf16.msrb.mxu3 %v4720_v60  ;;  %v4743_v60 = vld [vmem:[%s5789_s1 + $0x490] sm:$0xff] }
  0x80   : > { %1405 = vmatpush.bf16.msrb.mxu0 %v4695_v1  ;;  %v1804_v1 = vpack.c.b16 %v1802_v57, %v1631_v55  ;;  %v1806_v9 = vshrl.u32 %v1803_v63, 16  ;;  %v1809_v10 = vshll.u32 %v1803_v63, 16  ;;  %v4767_v63 = vld [vmem:[%s5789_s1 + $0x550] sm:$0xff] }
  0x81   : > { %1419 = vmatpush.bf16.msrb.mxu1 %v4703_v3  ;;  %v4726_v3 = vld [vmem:[%s5789_s1 + $0x408] sm:$0xff] }
  0x82   : > { %1568 = vmatpush.bf16.msrb.mxu2 %v4711_v6  ;;  %v1633_v6 = vunpack.c.h.b16 %v1594_v62  ;;  %v1814_v11 = vshrl.u32 %v1804_v1, 16  ;;  %v1808_v19 = vrot.slane %v1806_v9, 1  ;;  %v1811_v20 = vrot.slane %v1809_v10, 2  ;;  %v4759_v62 = vld [vmem:[%s5789_s1 + $0x510] sm:$0xff]  ;;  %v4766_v9 = vld [vmem:[%s5789_s1 + $0x548] sm:$0xff] }
  0x83   : > { %1582 = vmatpush.bf16.msrb.mxu3 %v4719_v7  ;;  %v4742_v7 = vld [vmem:[%s5789_s1 + $0x488] sm:$0xff] }
  0x84   : > { %1406 = vmatpush.bf16.msrb.mxu0 %v4694_v12  ;;  %v1817_v12 = vshll.u32 %v1804_v1, 16  ;;  %v1816_v22 = vrot.slane %v1814_v11, 1  ;;  %v1812_v32 = vor.u32 %v1811_v20, %v1808_v19  ;;  %v4774_v11 = vld [vmem:[%s5789_s1 + $0x588] sm:$0xff]  ;;  %v4765_v19 = vld [vmem:[%s5789_s1 + $0x540] sm:$0xff] }
  0x85   : > { %1420 = vmatpush.bf16.msrb.mxu1 %v4702_v13  ;;  %v4725_v13 = vld [vmem:[%s5789_s1 + $0x400] sm:$0xff] }
  0x86   : > { %1569 = vmatpush.bf16.msrb.mxu2 %v4710_v16  ;;  %v1635_v16 = vpack.c.b16 %v1633_v6, %v1631_v55 }
  0x87   : > { %1583 = vmatpush.bf16.msrb.mxu3 %v4718_v17  ;;  %v4741_v17 = vld [vmem:[%s5789_s1 + $0x480] sm:$0xff] }
  0x88   : > { %1407 = vmatpush.bf16.msrb.mxu0 %v4693_v24  ;;  %v1819_v24 = vrot.slane %v1817_v12, 2  ;;  %v1637_v31 = vrot.slane %v1635_v16, 1  ;;  %v4782_v12 = vld [vmem:[%s5789_s1 + $0x5c8] sm:$0xff] }
  0x89   : > { %1421 = vmatpush.bf16.msrb.mxu1 %v4701_v26  ;;  %v4764_v26 = vld [vmem:[%s5789_s1 + $0x538] sm:$0xff] }
  0x8a   : > { %1570 = vmatpush.bf16.msrb.mxu2 %v4709_v27  ;;  %v4772_v27 = vld [vmem:[%s5789_s1 + $0x578] sm:$0xff] }
  0x8b   : > { %1584 = vmatpush.bf16.msrb.mxu3 %v4717_v28  ;;  %1408 = vmatmul.bf16.vlgmr.msrb.gmra.mxu0 %v1288_v38  ;;  %v4780_v28 = vld [vmem:[%s5789_s1 + $0x5b8] sm:$0xff]  ;;  %v4762_v38 = vld [vmem:[%s5789_s1 + $0x528] sm:$0xff] }
  0x8c   : > { %1736 = vmatpush.bf16.msra.mxu0 %v4732_v33  ;;  %1422 = vmatmul.bf16.vlgmr.msrb.gmra.mxu1 %v1301_v39  ;;  %v1820_v33 = vor.u32 %v1819_v24, %v1816_v22  ;;  %v4770_v39 = vld [vmem:[%s5789_s1 + $0x568] sm:$0xff] }
  0x8d   : > { %1750 = vmatpush.bf16.msra.mxu1 %v4740_v34  ;;  %1571 = vmatmul.bf16.vlgmr.msrb.gmra.mxu2 %v1463_v37  ;;  %v4763_v34 = vld [vmem:[%s5789_s1 + $0x530] sm:$0xff] }
  0x8e   : > { %1919 = vmatpush.bf16.msra.mxu2 %v4748_v35  ;;  %1585 = vmatmul.bf16.vlgmr.msrb.gmra.mxu3 %v1464_v40  ;;  %v4771_v35 = vld [vmem:[%s5789_s1 + $0x570] sm:$0xff]  ;;  %v4778_v40 = vld [vmem:[%s5789_s1 + $0x5a8] sm:$0xff] }
  0x8f   : > { %1933 = vmatpush.bf16.msra.mxu3 %v4756_v36  ;;  %v4779_v36 = vld [vmem:[%s5789_s1 + $0x5b0] sm:$0xff] }
  0x90   : > { %1737 = vmatpush.bf16.msra.mxu0 %v4731_v41  ;;  %v4787_v37 = vld [vmem:[%s5789_s1 + $0x5f0] sm:$0xff]  ;;  %v4786_v41 = vld [vmem:[%s5789_s1 + $0x5e8] sm:$0xff] }
  0x91   : > { %1751 = vmatpush.bf16.msra.mxu1 %v4739_v23 }
  0x92   : > { %1920 = vmatpush.bf16.msra.mxu2 %v4747_v0 }
  0x93   : > { %1934 = vmatpush.bf16.msra.mxu3 %v4755_v2  ;;  %v4761_v2 = vld [vmem:[%s5789_s1 + $0x520] sm:$0xff] }
  0x94   : > { %1738 = vmatpush.bf16.msra.mxu0 %v4730_v21  ;;  %v4769_v21 = vld [vmem:[%s5789_s1 + $0x560] sm:$0xff] }
  0x95   : > { %1752 = vmatpush.bf16.msra.mxu1 %v4738_v25  ;;  %v4777_v25 = vld [vmem:[%s5789_s1 + $0x5a0] sm:$0xff] }
  0x96   : > { %1921 = vmatpush.bf16.msra.mxu2 %v4746_v42 }
  0x97   : > { %1935 = vmatpush.bf16.msra.mxu3 %v4754_v43  ;;  %v4785_v43 = vld [vmem:[%s5789_s1 + $0x5e0] sm:$0xff] }
  0x98   : > { %1739 = vmatpush.bf16.msra.mxu0 %v4729_v44  ;;  %v1949_v44 = vld [vmem:[%s4953_s24 + $0x8] sm:$0xcc] }
  0x99   : > { %1753 = vmatpush.bf16.msra.mxu1 %v4737_v45  ;;  %v2118_v45 = vld [vmem:[%s4953_s24 + $0x10] sm:$0xff]  ;;  %v1984_v48 = vunpack.c.l.b16 %v1949_v44 }
  0x9a   : > { %1922 = vmatpush.bf16.msra.mxu2 %v4745_v46  ;;  %v4760_v46 = vld [vmem:[%s5789_s1 + $0x518] sm:$0xff]  ;;  %v5508_v54 = vunpack.c.h.b16 %v2118_v45 }
  0x9b   : > { %1936 = vmatpush.bf16.msra.mxu3 %v4753_v47  ;;  %v4768_v47 = vld [vmem:[%s5789_s1 + $0x558] sm:$0xff]  ;;  %v1986_v20 = vpack.c.b16 %v1801_v56, %v1984_v48 }
  0x9c   : > { %1740 = vmatpush.bf16.msra.mxu0 %v4728_v50  ;;  %v5500_v50 = vunpack.c.l.b16 %v2118_v45  ;;  %v4804_v56 = vld [vmem:[%s5789_s1 + $0x678] sm:$0xff]  ;;  %v4793_v45 = vld [vmem:[%s5789_s1 + $0x620] sm:$0xff] }
  0x9d   : > { %1754 = vmatpush.bf16.msra.mxu1 %v4736_v51  ;;  %v4776_v51 = vld [vmem:[%s5789_s1 + $0x598] sm:$0xff] }
  0x9e   : > { %1923 = vmatpush.bf16.msra.mxu2 %v4744_v52  ;;  %v4784_v52 = vld [vmem:[%s5789_s1 + $0x5d8] sm:$0xff]  ;;  %v2155_v1 = vpack.c.b16 %v5500_v50, %v1984_v48 }
  0x9f   : > { %1937 = vmatpush.bf16.msra.mxu3 %v4752_v53  ;;  %v1985_v53 = vunpack.c.h.b16 %v1949_v44 }
  0xa0   : > { %1741 = vmatpush.bf16.msra.mxu0 %v4727_v58  ;;  %v2158_v10 = vshrl.u32 %v2155_v1, 16 }
  0xa1   : > { %1755 = vmatpush.bf16.msra.mxu1 %v4735_v59  ;;  %v1987_v22 = vpack.c.b16 %v1802_v57, %v1985_v53  ;;  %v4812_v57 = vld [vmem:[%s5789_s1 + $0x6b8] sm:$0xff] }
  0xa2   : > { %1924 = vmatpush.bf16.msra.mxu2 %v4743_v60  ;;  %v2160_v24 = vrot.slane %v2158_v10, 2  ;;  %v4791_v10 = vld [vmem:[%s5789_s1 + $0x610] sm:$0xff] }
  0xa3   : > { %1938 = vmatpush.bf16.msra.mxu3 %v4751_v61 }
  0xa4   : > { %1742 = vmatpush.bf16.msra.mxu0 %v4726_v3 }
  0xa5   : > { %1756 = vmatpush.bf16.msra.mxu1 %v4734_v4  ;;  %v4775_v4 = vld [vmem:[%s5789_s1 + $0x590] sm:$0xff] }
  0xa6   : > { %1925 = vmatpush.bf16.msra.mxu2 %v4742_v7  ;;  %v2156_v7 = vpack.c.b16 %v5508_v54, %v1985_v53 }
  0xa7   : > { %1939 = vmatpush.bf16.msra.mxu3 %v4750_v8  ;;  %v4758_v8 = vld [vmem:[%s5789_s1 + $0x508] sm:$0xff] }
  0xa8   : > { %1743 = vmatpush.bf16.msra.mxu0 %v4725_v13  ;;  %v368_v23 = vpop.f32.mrf.mxu0  ;;  %v2161_v13 = vshll.u32 %v2155_v1, 16  ;;  %v2169_v15 = vshll.u32 %v2156_v7, 16 }
  0xa9   : > { %1757 = vmatpush.bf16.msra.mxu1 %v4733_v14  ;;  %v382_v0 = vpop.f32.mrf.mxu1  ;;  %v2166_v14 = vshrl.u32 %v2156_v7, 16 }
  0xaa   : > { %1926 = vmatpush.bf16.msra.mxu2 %v4741_v17  ;;  %v383_v42 = vadd.f32 %v382_v0, %v368_v23  ;;  %v4794_v23 = vld [vmem:[%s5789_s1 + $0x628] sm:$0xff] }
  0xab   : > { %1940 = vmatpush.bf16.msra.mxu3 %v4749_v18  ;;  %1744 = vmatmul.bf16.vlgmr.msra.gmra.mxu0 %v1636_v30  ;;  %v4757_v18 = vld [vmem:[%s5789_s1 + $0x500] sm:$0xff]  ;;  %v2168_v30 = vrot.slane %v2166_v14, 2  ;;  %v4802_v0 = vld [vmem:[%s5789_s1 + $0x668] sm:$0xff] }
  0xac   : > { %2088 = vmatpush.bf16.msrb.mxu0 %v4764_v26  ;;  %1758 = vmatmul.bf16.vlgmr.msra.gmra.mxu1 %v1637_v31  ;;  %v2171_v31 = vrot.slane %v2169_v15, 3 }
  0xad   : > { %2102 = vmatpush.bf16.msrb.mxu1 %v4772_v27  ;;  %1927 = vmatmul.bf16.vlgmr.msra.gmra.mxu2 %v1812_v32  ;;  %v4773_v27 = vld [vmem:[%s5789_s1 + $0x580] sm:$0xff] }
  0xae   : > { %2271 = vmatpush.bf16.msrb.mxu2 %v4780_v28  ;;  %1941 = vmatmul.bf16.vlgmr.msra.gmra.mxu3 %v1820_v33  ;;  %v4781_v28 = vld [vmem:[%s5789_s1 + $0x5c0] sm:$0xff]  ;;  %v4820_v33 = vld [vmem:[%s5789_s1 + $0x6f8] sm:$0xff] }
  0xaf   : > { %2285 = vmatpush.bf16.msrb.mxu3 %v4788_v29  ;;  %v2163_v29 = vrot.slane %v2161_v13, 3 }
  0xb0   : > { %2089 = vmatpush.bf16.msrb.mxu0 %v4763_v34  ;;  %v499_v55 = vpop.f32.mrf.mxu2  ;;  %v370_v60 = vpop.f32.mrf.mxu0  ;;  %v1988_v34 = vrot.slane %v1986_v20, 2 }
  0xb1   : > { %2103 = vmatpush.bf16.msrb.mxu1 %v4771_v35  ;;  %v513_v58 = vpop.f32.mrf.mxu3  ;;  %v500_v59 = vadd.f32 %v499_v55, %v383_v42  ;;  %v384_v61 = vpop.f32.mrf.mxu1  ;;  %v1989_v35 = vrot.slane %v1987_v22, 2  ;;  %v2303_v55 = vld [vmem:[%s4953_s24 + $0x18] sm:$0x11] }
  0xb2   : > { %2272 = vmatpush.bf16.msrb.mxu2 %v4779_v36  ;;  %v385_v3 = vadd.f32 %v384_v61, %v370_v60  ;;  %v2164_v36 = vor.u32 %v2163_v29, %v2160_v24  ;;  %v5621_v1 = vunpack.c.l.b16 %v2303_v55  ;;  %v4790_v24 = vld [vmem:[%s5789_s1 + $0x608] sm:$0xff] }
  0xb3   : > { %2286 = vmatpush.bf16.msrb.mxu3 %v4787_v37  ;;  %v5523_v6 = vadd.f32 %v513_v58, %v500_v59  ;;  %v2172_v37 = vor.u32 %v2171_v31, %v2168_v30  ;;  %v4792_v58 = vld [vmem:[%s5789_s1 + $0x618] sm:$0xff]  ;;  %v4806_v29 = vld [vmem:[%s5789_s1 + $0x688] sm:$0xff] }
  0xb4   : > { %2090 = vmatpush.bf16.msrb.mxu0 %v4762_v38  ;;  %v4795_v38 = vld [vmem:[%s5789_s1 + $0x630] sm:$0xff]  ;;  %v4800_v59 = vld [vmem:[%s5789_s1 + $0x658] sm:$0xff]  ;;  %v4814_v30 = vld [vmem:[%s5789_s1 + $0x6c8] sm:$0xff] }
  0xb5   : > { %2104 = vmatpush.bf16.msrb.mxu1 %v4770_v39  ;;  %v4803_v39 = vld [vmem:[%s5789_s1 + $0x670] sm:$0xff] }
  0xb6   : > { %2273 = vmatpush.bf16.msrb.mxu2 %v4778_v40  ;;  %v4811_v40 = vld [vmem:[%s5789_s1 + $0x6b0] sm:$0xff] }
  0xb7   : > { %2287 = vmatpush.bf16.msrb.mxu3 %v4786_v41  ;;  %v4819_v41 = vld [vmem:[%s5789_s1 + $0x6f0] sm:$0xff] }
  0xb8   : > { %2091 = vmatpush.bf16.msrb.mxu0 %v4761_v2  ;;  %v501_v16 = vpop.f32.mrf.mxu2  ;;  %v4810_v2 = vld [vmem:[%s5789_s1 + $0x6a8] sm:$0xff] }
  0xb9   : > { %2105 = vmatpush.bf16.msrb.mxu1 %v4769_v21  ;;  %v502_v17 = vadd.f32 %v501_v16, %v385_v3  ;;  %v515_v26 = vpop.f32.mrf.mxu3  ;;  %v4818_v21 = vld [vmem:[%s5789_s1 + $0x6e8] sm:$0xff]  ;;  %v5623_v3 = vunpack.c.h.b16 %v2303_v55  ;;  %v4807_v16 = vld [vmem:[%s5789_s1 + $0x690] sm:$0xff] }
  0xba   : > { %2274 = vmatpush.bf16.msrb.mxu2 %v4777_v25  ;;  %v2301_v25 = vld [vmem:[%s4953_s24 + $0x8] sm:$0x88] }
  0xbb   : > { %2288 = vmatpush.bf16.msrb.mxu3 %v4785_v43  ;;  %v5554_v32 = vadd.f32 %v515_v26, %v502_v17  ;;  %v2341_v48 = vunpack.c.h.b16 %v2301_v25  ;;  %v4815_v17 = vld [vmem:[%s5789_s1 + $0x6d0] sm:$0xff]  ;;  %v4798_v26 = vld [vmem:[%s5789_s1 + $0x648] sm:$0xff] }
  0xbc   : > { %2092 = vmatpush.bf16.msrb.mxu0 %v4760_v46  ;;  %v4801_v46 = vld [vmem:[%s5789_s1 + $0x660] sm:$0xff]  ;;  %v4834_v55 = vld [vmem:[%s5789_s1 + $0x768] sm:$0xff] }
  0xbd   : > { %2106 = vmatpush.bf16.msrb.mxu1 %v4768_v47  ;;  %v2340_v47 = vunpack.c.l.b16 %v2301_v25  ;;  %v2347_v61 = vpack.c.b16 %v5508_v54, %v2341_v48  ;;  %v4844_v25 = vld [vmem:[%s5789_s1 + $0x7b8] sm:$0xff]  ;;  %v4835_v48 = vld [vmem:[%s5789_s1 + $0x770] sm:$0xff] }
  0xbe   : > { %2275 = vmatpush.bf16.msrb.mxu2 %v4776_v51  ;;  %v4809_v51 = vld [vmem:[%s5789_s1 + $0x6a0] sm:$0xff] }
  0xbf   : > { %2289 = vmatpush.bf16.msrb.mxu3 %v4784_v52  ;;  %v4817_v52 = vld [vmem:[%s5789_s1 + $0x6e0] sm:$0xff]  ;;  %v2346_v60 = vpack.c.b16 %v5500_v50, %v2340_v47  ;;  %v2364_v14 = vshrl.u32 %v2347_v61, 16  ;;  %v2367_v20 = vshll.u32 %v2347_v61, 16  ;;  %v4827_v47 = vld [vmem:[%s5789_s1 + $0x730] sm:$0xff] }
  0xc0   : > { %2093 = vmatpush.bf16.msrb.mxu0 %v4759_v62  ;;  %v4808_v62 = vld [vmem:[%s5789_s1 + $0x698] sm:$0xff]  ;;  %v4833_v61 = vld [vmem:[%s5789_s1 + $0x760] sm:$0xff] }
  0xc1   : > { %2107 = vmatpush.bf16.msrb.mxu1 %v4767_v63  ;;  %v4816_v63 = vld [vmem:[%s5789_s1 + $0x6d8] sm:$0xff]  ;;  %v2354_v13 = vshll.u32 %v2346_v60, 16 }
  0xc2   : > { %2276 = vmatpush.bf16.msrb.mxu2 %v4775_v4 }
  0xc3   : > { %2290 = vmatpush.bf16.msrb.mxu3 %v4783_v5 }
  0xc4   : > { %2094 = vmatpush.bf16.msrb.mxu0 %v4758_v8 }
  0xc5   : > { %2108 = vmatpush.bf16.msrb.mxu1 %v4766_v9 }
  0xc6   : > { %2277 = vmatpush.bf16.msrb.mxu2 %v4774_v11  ;;  %v4799_v11 = vld [vmem:[%s5789_s1 + $0x650] sm:$0xff] }
  0xc7   : > { %2291 = vmatpush.bf16.msrb.mxu3 %v4782_v12  ;;  %v2351_v12 = vshrl.u32 %v2346_v60, 16  ;;  %v4825_v60 = vld [vmem:[%s5789_s1 + $0x720] sm:$0xff] }
  0xc8   : > { %2095 = vmatpush.bf16.msrb.mxu0 %v4757_v18  ;;  %v666_v42 = vpop.f32.mrf.mxu0  ;;  %v2348_v18 = vpack.c.b16 %v5621_v1, %v5621_v1 }
  0xc9   : > { %2109 = vmatpush.bf16.msrb.mxu1 %v4765_v19  ;;  %v680_v43 = vpop.f32.mrf.mxu1  ;;  %v2349_v19 = vpack.c.b16 %v5623_v3, %v5623_v3 }
  0xca   : > { %2278 = vmatpush.bf16.msrb.mxu2 %v4773_v27  ;;  %v681_v44 = vadd.f32 %v680_v43, %v666_v42  ;;  %v2353_v27 = vrot.slane %v2351_v12, 3  ;;  %v2359_v31 = vshll.u32 %v2348_v18, 16  ;;  %v4852_v42 = vld [vmem:[%s5789_s1 + $0x7f8] sm:$0xff]  ;;  %v2537_v43 = vpack.c.b16 %v5621_v1, %v5500_v50  ;;  %v4849_v1 = vld [vmem:[%s5789_s1 + $0x7e0] sm:$0xff]  ;;  %v4831_v12 = vld [vmem:[%s5789_s1 + $0x750] sm:$0xff] }
  0xcb   : > { %2292 = vmatpush.bf16.msrb.mxu3 %v4781_v28  ;;  %2096 = vmatmul.bf16.vlgmr.msrb.gmra.mxu0 %v1988_v34  ;;  %v2356_v28 = vrot.slane %v2354_v13, 4  ;;  %v4839_v13 = vld [vmem:[%s5789_s1 + $0x790] sm:$0xff]  ;;  %v4830_v18 = vld [vmem:[%s5789_s1 + $0x748] sm:$0xff] }
  0xcc   : > { %2474 = vmatpush.bf16.msra.mxu0 %v4796_v49  ;;  %2110 = vmatmul.bf16.vlgmr.msrb.gmra.mxu1 %v1989_v35  ;;  %v685_v53 = vadd.f32 %v681_v44, %v5523_v6  ;;  %v2369_v49 = vrot.slane %v2367_v20, 4  ;;  %v4789_v35 = vld [vmem:[%s5789_s1 + $0x600] sm:$0xff] }
  0xcd   : > { %2488 = vmatpush.bf16.msra.mxu1 %v4804_v56  ;;  %2279 = vmatmul.bf16.vlgmr.msrb.gmra.mxu2 %v2164_v36  ;;  %v2372_v56 = vshll.u32 %v2349_v19, 16  ;;  %v4797_v36 = vld [vmem:[%s5789_s1 + $0x640] sm:$0xff] }
  0xce   : > { %2637 = vmatpush.bf16.msra.mxu2 %v4812_v57  ;;  %2293 = vmatmul.bf16.vlgmr.msrb.gmra.mxu3 %v2172_v37  ;;  %v2357_v37 = vor.u32 %v2356_v28, %v2353_v27 }
  0xcf   : > { %2651 = vmatpush.bf16.msra.mxu3 %v4820_v33 }
  0xd0   : > { %2475 = vmatpush.bf16.msra.mxu0 %v4795_v38  ;;  %v849_v4 = vpop.f32.mrf.mxu2  ;;  %v668_v7 = vpop.f32.mrf.mxu0 }
  0xd1   : > { %2489 = vmatpush.bf16.msra.mxu1 %v4803_v39  ;;  %v863_v5 = vpop.f32.mrf.mxu3  ;;  %v682_v8 = vpop.f32.mrf.mxu1  ;;  %v4805_v39 = vld [vmem:[%s5789_s1 + $0x680] sm:$0xff] }
  0xd2   : > { %2638 = vmatpush.bf16.msra.mxu2 %v4811_v40  ;;  %v864_v6 = vadd.f32 %v863_v5, %v849_v4  ;;  %v683_v9 = vadd.f32 %v682_v8, %v668_v7  ;;  %v4813_v40 = vld [vmem:[%s5789_s1 + $0x6c0] sm:$0xff]  ;;  %v4824_v5 = vld [vmem:[%s5789_s1 + $0x718] sm:$0xff] }
  0xd3   : > { %2652 = vmatpush.bf16.msra.mxu3 %v4819_v41  ;;  %v2361_v41 = vrot.slane %v2359_v31, 4  ;;  %v4840_v7 = vld [vmem:[%s5789_s1 + $0x798] sm:$0xff]  ;;  %v4829_v31 = vld [vmem:[%s5789_s1 + $0x740] sm:$0xff] }
  0xd4   : > { %2476 = vmatpush.bf16.msra.mxu0 %v4794_v23  ;;  %v5631_v15 = vadd.f32 %v864_v6, %v685_v53  ;;  %v686_v22 = vadd.f32 %v683_v9, %v5554_v32  ;;  %v2366_v32 = vrot.slane %v2364_v14, 3  ;;  %v4826_v53 = vld [vmem:[%s5789_s1 + $0x728] sm:$0xff]  ;;  %v4832_v6 = vld [vmem:[%s5789_s1 + $0x758] sm:$0xff] }
  0xd5   : > { %2490 = vmatpush.bf16.msra.mxu1 %v4802_v0  ;;  %v2374_v0 = vrot.slane %v2372_v56, 4  ;;  %v2362_v44 = vsel %vm1275_vm0, %v2357_v37, %v2361_v41  ;;  %v4848_v8 = vld [vmem:[%s5789_s1 + $0x7d8] sm:$0xff]  ;;  %v4837_v56 = vld [vmem:[%s5789_s1 + $0x780] sm:$0xff] }
  0xd6   : > { %2639 = vmatpush.bf16.msra.mxu2 %v4810_v2  ;;  %v2370_v23 = vor.u32 %v2369_v49, %v2366_v32  ;;  %v4828_v2 = vld [vmem:[%s5789_s1 + $0x738] sm:$0xff] }
  0xd7   : > { %2653 = vmatpush.bf16.msra.mxu3 %v4818_v21  ;;  %v4836_v21 = vld [vmem:[%s5789_s1 + $0x778] sm:$0xff] }
  0xd8   : > { %2477 = vmatpush.bf16.msra.mxu0 %v4793_v45  ;;  %v851_v57 = vpop.f32.mrf.mxu2  ;;  %v2375_v45 = vsel %vm1275_vm0, %v2370_v23, %v2374_v0 }
  0xd9   : > { %2491 = vmatpush.bf16.msra.mxu1 %v4801_v46  ;;  %v865_v33 = vpop.f32.mrf.mxu3  ;;  %v2538_v46 = vpack.c.b16 %v5623_v3, %v5508_v54 }
  0xda   : > { %2640 = vmatpush.bf16.msra.mxu2 %v4809_v51  ;;  %v866_v34 = vadd.f32 %v865_v33, %v851_v57  ;;  %v4843_v51 = vld [vmem:[%s5789_s1 + $0x7b0] sm:$0xff]  ;;  %v4845_v57 = vld [vmem:[%s5789_s1 + $0x7c0] sm:$0xff] }
  0xdb   : > { %2654 = vmatpush.bf16.msra.mxu3 %v4817_v52  ;;  %v4851_v52 = vld [vmem:[%s5789_s1 + $0x7f0] sm:$0xff] }
  0xdc   : > { %2478 = vmatpush.bf16.msra.mxu0 %v4792_v58  ;;  %v5662_v38 = vadd.f32 %v866_v34, %v686_v22  ;;  %v4842_v58 = vld [vmem:[%s5789_s1 + $0x7a8] sm:$0xff] }
  0xdd   : > { %2492 = vmatpush.bf16.msra.mxu1 %v4800_v59  ;;  %v4850_v59 = vld [vmem:[%s5789_s1 + $0x7e8] sm:$0xff] }
  0xde   : > { %2641 = vmatpush.bf16.msra.mxu2 %v4808_v62  ;;  %v2667_v62 = vld [vmem:[%s4953_s24 + $0x18] sm:$0x33]  ;;  %v4838_v22 = vld [vmem:[%s5789_s1 + $0x788] sm:$0xff] }
  0xdf   : > { %2655 = vmatpush.bf16.msra.mxu3 %v4816_v63  ;;  %v4841_v63 = vld [vmem:[%s5789_s1 + $0x7a0] sm:$0xff]  ;;  %v2702_v3 = vunpack.c.l.b16 %v2667_v62  ;;  %v2703_v4 = vunpack.c.h.b16 %v2667_v62 }
  0xe0   : > { %2479 = vmatpush.bf16.msra.mxu0 %v4791_v10 }
  0xe1   : > { %2493 = vmatpush.bf16.msra.mxu1 %v4799_v11  ;;  %v2704_v9 = vpack.c.b16 %v2702_v3, %v5500_v50  ;;  %v2705_v10 = vpack.c.b16 %v2703_v4, %v5508_v54  ;;  %v4823_v11 = vld [vmem:[%s5789_s1 + $0x710] sm:$0xff] }
  0xe2   : > { %2642 = vmatpush.bf16.msra.mxu2 %v4807_v16  ;;  %v4847_v50 = vld [vmem:[%s5789_s1 + $0x7d0] sm:$0xff] }
  0xe3   : > { %2656 = vmatpush.bf16.msra.mxu3 %v4815_v17  ;;  %v2848_v54 = vld [vmem:[%s4953_s24 + $0x10] sm:$0xee]  ;;  %v2709_v14 = vshll.u32 %v2704_v9, 16  ;;  %v2716_v16 = vshll.u32 %v2705_v10, 16  ;;  %v4822_v17 = vld [vmem:[%s5789_s1 + $0x708] sm:$0xff]  ;;  %v2714_v28 = vshrl.u32 %v2705_v10, 16 }
  0xe4   : > { %2480 = vmatpush.bf16.msra.mxu0 %v4790_v24  ;;  %v2883_v19 = vunpack.c.l.b16 %v2848_v54  ;;  %v2884_v20 = vunpack.c.h.b16 %v2848_v54  ;;  %v4846_v24 = vld [vmem:[%s5789_s1 + $0x7c8] sm:$0xff] }
  0xe5   : > { %2494 = vmatpush.bf16.msra.mxu1 %v4798_v26  ;;  %v2707_v26 = vshrl.u32 %v2704_v9, 16  ;;  %v2711_v27 = vrot.slane %v2709_v14, 1 }
  0xe6   : > { %2643 = vmatpush.bf16.msra.mxu2 %v4806_v29  ;;  %v2718_v29 = vrot.slane %v2716_v16, 1  ;;  %v2885_v32 = vpack.c.b16 %v2702_v3, %v2883_v19  ;;  %v2886_v49 = vpack.c.b16 %v2703_v4, %v2884_v20 }
  0xe7   : > { %2657 = vmatpush.bf16.msra.mxu3 %v4814_v30  ;;  %v4821_v30 = vld [vmem:[%s5789_s1 + $0x700] sm:$0xff]  ;;  %v2712_v33 = vor.u32 %v2711_v27, %v2707_v26 }
  0xe8   : > { %2481 = vmatpush.bf16.msra.mxu0 %v4789_v35  ;;  %v2719_v34 = vor.u32 %v2718_v29, %v2714_v28  ;;  %v2887_v35 = vrot.slane %v2885_v32, 1  ;;  %v1036_v37 = vpop.f32.mrf.mxu0 }
  0xe9   : > { %2495 = vmatpush.bf16.msra.mxu1 %v4797_v36  ;;  %v2888_v36 = vrot.slane %v2886_v49, 1 }
  0xea   : > { %2644 = vmatpush.bf16.msra.mxu2 %v4805_v39  ;;  %v1050_v39 = vpop.f32.mrf.mxu1 }
  0xeb   : > { %2658 = vmatpush.bf16.msra.mxu3 %v4813_v40  ;;  %2482 = vmatmul.bf16.vlgmr.msra.gmra.mxu0 %v2362_v44  ;;  %v1051_v10 = vadd.f32 %v1050_v39, %v1036_v37 }
  0xec   : > { %2818 = vmatpush.bf16.msrb.mxu0 %v4828_v2  ;;  %2496 = vmatmul.bf16.vlgmr.msra.gmra.mxu1 %v2375_v45 }
  0xed   : > { %2832 = vmatpush.bf16.msrb.mxu1 %v4836_v21  ;;  %2645 = vmatmul.bf16.vlgmr.msra.gmra.mxu2 %v2537_v43 }
  0xee   : > { %2987 = vmatpush.bf16.msrb.mxu2 %v4844_v25  ;;  %2659 = vmatmul.bf16.vlgmr.msra.gmra.mxu3 %v2538_v46 }
  0xef   : > { %3001 = vmatpush.bf16.msrb.mxu3 %v4852_v42 }
  0xf0   : > { %2819 = vmatpush.bf16.msrb.mxu0 %v4827_v47  ;;  %v1205_v40 = vpop.f32.mrf.mxu2  ;;  %v1038_v23 = vpop.f32.mrf.mxu0 }
  0xf1   : > { %2833 = vmatpush.bf16.msrb.mxu1 %v4835_v48  ;;  %v1219_v41 = vpop.f32.mrf.mxu3 }
  0xf2   : > { %2988 = vmatpush.bf16.msrb.mxu2 %v4843_v51  ;;  %v1052_v0 = vpop.f32.mrf.mxu1 }
  0xf3   : > { %3002 = vmatpush.bf16.msrb.mxu3 %v4851_v52 }
  0xf4   : > { %2820 = vmatpush.bf16.msrb.mxu0 %v4826_v53 }
  0xf5   : > { %2834 = vmatpush.bf16.msrb.mxu1 %v4834_v55 }
  0xf6   : > { %2989 = vmatpush.bf16.msrb.mxu2 %v4842_v58 }
  0xf7   : > { %3003 = vmatpush.bf16.msrb.mxu3 %v4850_v59 }
  0xf8   : > { %2821 = vmatpush.bf16.msrb.mxu0 %v4825_v60  ;;  %v1207_v2 = vpop.f32.mrf.mxu2 }
  0xf9   : > { %2835 = vmatpush.bf16.msrb.mxu1 %v4833_v61  ;;  %v1221_v21 = vpop.f32.mrf.mxu3 }
  0xfa   : > { %2990 = vmatpush.bf16.msrb.mxu2 %v4841_v63 }
  0xfb   : > { %3004 = vmatpush.bf16.msrb.mxu3 %v4849_v1 }
  0xfc   : > { %2822 = vmatpush.bf16.msrb.mxu0 %v4824_v5 }
  0xfd   : > { %2836 = vmatpush.bf16.msrb.mxu1 %v4832_v6 }
  0xfe   : > { %2991 = vmatpush.bf16.msrb.mxu2 %v4840_v7 }
  0xff   : > { %3005 = vmatpush.bf16.msrb.mxu3 %v4848_v8 }
 0x100   : > { %2823 = vmatpush.bf16.msrb.mxu0 %v4823_v11  ;;  %v1220_v11 = vadd.f32 %v1219_v41, %v1205_v40 }
 0x101   : > { %2837 = vmatpush.bf16.msrb.mxu1 %v4831_v12  ;;  %v1055_v12 = vadd.f32 %v1051_v10, %v5631_v15 }
 0x102   : > { %2992 = vmatpush.bf16.msrb.mxu2 %v4839_v13 }
 0x103   : > { %3006 = vmatpush.bf16.msrb.mxu3 %v4847_v50  ;;  %v1224_v14 = vadd.f32 %v1220_v11, %v1055_v12 }
 0x104   : > { %2824 = vmatpush.bf16.msrb.mxu0 %v4822_v17  ;;  %v1053_v17 = vadd.f32 %v1052_v0, %v1038_v23 }
 0x105   : > { %2838 = vmatpush.bf16.msrb.mxu1 %v4830_v18 }
 0x106   : > { %2993 = vmatpush.bf16.msrb.mxu2 %v4838_v22  ;;  %v1056_v28 = vadd.f32 %v1053_v17, %v5662_v38 }
 0x107   : > { %3007 = vmatpush.bf16.msrb.mxu3 %v4846_v24  ;;  %v1222_v24 = vadd.f32 %v1221_v21, %v1207_v2 }
 0x108   : > { %2825 = vmatpush.bf16.msrb.mxu0 %v4821_v30  ;;  %v1409_v25 = vpop.f32.mrf.mxu0 }
 0x109   : > { %2839 = vmatpush.bf16.msrb.mxu1 %v4829_v31  ;;  %v1423_v42 = vpop.f32.mrf.mxu1  ;;  %v1225_v32 = vadd.f32 %v1222_v24, %v1056_v28 }
 0x10a   : > { %2994 = vmatpush.bf16.msrb.mxu2 %v4837_v56  ;;  %v1424_v13 = vadd.f32 %v1423_v42, %v1409_v25 }
 0x10b   : > { %3008 = vmatpush.bf16.msrb.mxu3 %v4845_v57  ;;  %2826 = vmatmul.bf16.vlgmr.msrb.gmra.mxu0 %v2712_v33 }
 0x10c   : > { %2840 = vmatmul.bf16.vlgmr.msrb.gmra.mxu1 %v2719_v34  ;;  %v1428_v18 = vadd.f32 %v1424_v13, %v1224_v14 }
 0x10d   : > { %2995 = vmatmul.bf16.vlgmr.msrb.gmra.mxu2 %v2887_v35 }
 0x10e   : > { %3009 = vmatmul.bf16.vlgmr.msrb.gmra.mxu3 %v2888_v36 }
 0x110   : > { %v1572_v43 = vpop.f32.mrf.mxu2  ;;  %v1411_v45 = vpop.f32.mrf.mxu0 }
 0x111   : > { %v1586_v44 = vpop.f32.mrf.mxu3  ;;  %v1425_v46 = vpop.f32.mrf.mxu1 }
 0x112   : > { %v1587_v16 = vadd.f32 %v1586_v44, %v1572_v43  ;;  %v1426_v29 = vadd.f32 %v1425_v46, %v1411_v45 }
 0x114   : > { %v1591_v26 = vadd.f32 %v1587_v16, %v1428_v18  ;;  %v1429_v34 = vadd.f32 %v1426_v29, %v1225_v32 }
 0x118   : > { %v1574_v47 = vpop.f32.mrf.mxu2 }
 0x119   : > { %v1588_v48 = vpop.f32.mrf.mxu3 }
 0x11a   : > { %v1589_v15 = vadd.f32 %v1588_v48, %v1574_v47 }
 0x11c   : > { %v1592_v41 = vadd.f32 %v1589_v15, %v1429_v34 }
 0x128   : > { %v1745_v51 = vpop.f32.mrf.mxu0 }
 0x129   : > { %v1759_v52 = vpop.f32.mrf.mxu1 }
 0x12a   : > { %v1760_v19 = vadd.f32 %v1759_v52, %v1745_v51 }
 0x12c   : > { %v1764_v30 = vadd.f32 %v1760_v19, %v1591_v26 }
 0x130   : > { %v1928_v53 = vpop.f32.mrf.mxu2  ;;  %v1747_v58 = vpop.f32.mrf.mxu0 }
 0x131   : > { %v1942_v55 = vpop.f32.mrf.mxu3  ;;  %v1761_v59 = vpop.f32.mrf.mxu1 }
 0x132   : > { %v1943_v27 = vadd.f32 %v1942_v55, %v1928_v53  ;;  %v1762_v35 = vadd.f32 %v1761_v59, %v1747_v58  ;;  %v4862_v55 = vld [vmem:[%s5790_s2] ss:$0 sm:$0xff] }
 0x134   : > { %v1947_v49 = vadd.f32 %v1943_v27, %v1764_v30  ;;  %v1765_v2 = vadd.f32 %v1762_v35, %v1592_v41 }
 0x138   : > { %v1930_v60 = vpop.f32.mrf.mxu2 }
 0x139   : > { %v1944_v61 = vpop.f32.mrf.mxu3 }
 0x13a   : > { %v1945_v23 = vadd.f32 %v1944_v61, %v1930_v60 }
 0x13c   : > { %v1948_v43 = vadd.f32 %v1945_v23, %v1765_v2 }
 0x148   : > { %v2097_v62 = vpop.f32.mrf.mxu0 }
 0x149   : > { %v2111_v63 = vpop.f32.mrf.mxu1 }
 0x14a   : > { %v2112_v31 = vadd.f32 %v2111_v63, %v2097_v62 }
 0x14c   : > { %v2116_v36 = vadd.f32 %v2112_v31, %v1947_v49 }
 0x150   : > { %v2280_v1 = vpop.f32.mrf.mxu2  ;;  %v2099_v4 = vpop.f32.mrf.mxu0 }
 0x151   : > { %v2294_v3 = vpop.f32.mrf.mxu3  ;;  %v2113_v5 = vpop.f32.mrf.mxu1 }
 0x152   : > { %v2295_v56 = vadd.f32 %v2294_v3, %v2280_v1  ;;  %v2114_v21 = vadd.f32 %v2113_v5, %v2099_v4 }
 0x154   : > { %v2299_v0 = vadd.f32 %v2295_v56, %v2116_v36  ;;  %v2117_v48 = vadd.f32 %v2114_v21, %v1948_v43 }
 0x158   : > { %v2282_v6 = vpop.f32.mrf.mxu2 }
 0x159   : > { %v2296_v7 = vpop.f32.mrf.mxu3 }
 0x15a   : > { %v2297_v44 = vadd.f32 %v2296_v7, %v2282_v6 }
 0x15c   : > { %v2300_v60 = vadd.f32 %v2297_v44, %v2117_v48 }
 0x168   : > { %v2483_v8 = vpop.f32.mrf.mxu0 }
 0x169   : > { %v2497_v9 = vpop.f32.mrf.mxu1 }
 0x16a   : > { %v2498_v37 = vadd.f32 %v2497_v9, %v2483_v8 }
 0x16c   : > { %v2502_v25 = vadd.f32 %v2498_v37, %v2299_v0 }
 0x170   : > { %v2646_v50 = vpop.f32.mrf.mxu2  ;;  %v2485_v20 = vpop.f32.mrf.mxu0 }
 0x171   : > { %v2660_v54 = vpop.f32.mrf.mxu3  ;;  %v2499_v22 = vpop.f32.mrf.mxu1 }
 0x172   : > { %v2661_v38 = vadd.f32 %v2660_v54, %v2646_v50  ;;  %v2500_v51 = vadd.f32 %v2499_v22, %v2485_v20 }
 0x174   : > { %v2665_v45 = vadd.f32 %v2661_v38, %v2502_v25  ;;  %v2503_v63 = vadd.f32 %v2500_v51, %v2300_v60 }
 0x178   : > { %v2648_v57 = vpop.f32.mrf.mxu2 }
 0x179   : > { %v2662_v33 = vpop.f32.mrf.mxu3 }
 0x17a   : > { %v2663_v61 = vadd.f32 %v2662_v33, %v2648_v57 }
 0x17c   : > { %v2666_v4 = vadd.f32 %v2663_v61, %v2503_v63 }
 0x188   : > { %v2827_v39 = vpop.f32.mrf.mxu0 }
 0x189   : > { %v2841_v40 = vpop.f32.mrf.mxu1 }
 0x18a   : > { %v2842_v42 = vadd.f32 %v2841_v40, %v2827_v39 }
 0x18c   : > { %v2846_v52 = vadd.f32 %v2842_v42, %v2665_v45 }
 0x190   : > { %v2996_v46 = vpop.f32.mrf.mxu2  ;;  %v2829_v58 = vpop.f32.mrf.mxu0 }
 0x191   : > { %v3010_v47 = vpop.f32.mrf.mxu3  ;;  %v2843_v59 = vpop.f32.mrf.mxu1 }
 0x192   : > { %v3011_v53 = vadd.f32 %v3010_v47, %v2996_v46  ;;  %v2844_v3 = vadd.f32 %v2843_v59, %v2829_v58 }
 0x194   : > { %v3015_v62 = vadd.f32 %v3011_v53, %v2846_v52  ;;  %v2847_v7 = vadd.f32 %v2844_v3, %v2666_v4 }
 0x196   : > { %v3021_v1 = vadd.f32 %v4862_v55, %v3015_v62 }
 0x198   : > { %3024 = vst.msk [vmem:[%s170_s29] sm:$0xff] %vm3023_vm1, %v3021_v1  ;;  %v2998_v5 = vpop.f32.mrf.mxu2 }
 0x199   : > { %v3012_v6 = vpop.f32.mrf.mxu3 }
 0x19a   : > { %v3013_v8 = vadd.f32 %v3012_v6, %v2998_v5 }
 0x19c   : > { %v3016_v9 = vadd.f32 %v3013_v8, %v2847_v7 }
 0x19e   : > { %v3022_v10 = vadd.f32 %v4862_v55, %v3016_v9 }
 0x1a0   : > { %3026 = vst.msk [vmem:[%s170_s29 + $0x8] sm:$0x3] %vm3025_vm2, %v3022_v10 }
 0x1a1 PF: > { %s13_s12 = sadd.s32 1, %s4869_s12  }
 0x1a2   : > { %p10_p4 = scmp.ge.s32.totalorder %s13_s12, 4  }
 0x1a4   :  { %12 = sbr.rel (!%p10_p4) target bundleno = 1 (0x1), region = 77 }

</bundles_post_ra>
